<compile_context>
chip_gen: v7x
topology: tpu7x:2x2x1
jax: 0.10.0
libtpu: 0.0.40
codegen_flags: <defaults>
</compile_context>

<pallas_src>
import math

import jax
import jax.numpy as jnp
from jax.experimental import pallas as pl
from jax.experimental.pallas import tpu as pltpu

# ------------------------- small synthetic config -------------------------
B = 16                    # batch (raised so R = B*SEQ = 128 rows per call)
SEQ = 8                   # seq_len
IN_CH = 16                # in_channels (latent size)
OUT_CH = 16               # out_channels
MODEL_CH = 16             # model_channels
TIME_EMB_CH = MODEL_CH * 4
HIDDEN = 32               # bert hidden_size
HEADS = 4                 # bert num_attention_heads
HEAD_DIM = HIDDEN // HEADS
INTER = 64                # bert intermediate_size
LAYERS = 2                # bert num_hidden_layers
MAX_POS = 64              # bert max_position_embeddings
LN_EPS = 1e-12            # bert layer_norm_eps

LANES = 128               # lane-dense activation / slab width
VEC_ROWS = 7 + 10 * LAYERS   # packed bias / LayerNorm / mask rows

# Set to 2 on v7x to shard row chunks across both TensorCores
# ("parallel" grid axis).  Keep 1 on v5e/v6e (single TC, grid only adds
# per-step pipeline overhead).
GRID_CHUNKS = 1


def transformer_kernel(x_ref, emb_ref, mask_ref, wsm_ref, vec_ref,
                       wqkv_ref, wao_ref, wi_ref, wio_ref, o_ref):
    f32, bf16 = jnp.float32, jnp.bfloat16

    x = x_ref[...]              # (RC, 128) f32, valid lanes [0, IN_CH), pads zero
    emb = emb_ref[...]          # (RC, 128) f32, time + position embedding
    neg_mask = mask_ref[...]    # (RC, RC)  f32, block-diagonal batch mask
    vec = vec_ref[...]          # (VEC_PAD, 128) f32 packed biases / LN params

    def vrow(i):
        return vec[i:i + 1, :]                     # full 128-lane row (no slicing)

    valid = vrow(6)                                # lane-validity mask (1 in [0,HIDDEN))

    def ln(h, g, b):
        # LayerNorm over the HIDDEN valid lanes of a zero-padded (RC, 128) slab.
        mu = jnp.sum(h, axis=-1, keepdims=True) * (1.0 / HIDDEN)
        c = (h - mu) * valid                       # re-zero the padded lanes
        var = jnp.sum(c * c, axis=-1, keepdims=True) * (1.0 / HIDDEN)
        return c * jax.lax.rsqrt(var + LN_EPS) * g + b

    def mm(a, w):
        # MXU: bf16 operands, f32 accumulation (v5e-safe split).
        return jnp.dot(a.astype(bf16), w.astype(bf16), preferred_element_type=f32)

    # ---- first_block: Linear -> Tanh -> Linear ----
    h = mm(x, wsm_ref[0]) + vrow(0)
    h = jnp.tanh(h)
    h = mm(h, wsm_ref[1]) + vrow(1)

    # ---- add (hoisted) time embedding + position embedding ----
    h = h + emb

    # ---- layernorm_dropout ----
    # TODO(synk): training-mode dropout not implemented (eval semantics used).
    h = ln(h, vrow(2), vrow(3))

    # ---- BertEncoder: LAYERS x (self-attention + FFN), post-LN residuals ----
    for l in range(LAYERS):
        wqkv = wqkv_ref[l]                         # (128, 384) bf16, Q|K|V at 128-lane blocks
        wao = wao_ref[l]                           # (8, 512)   bf16, per-head Wao blocks
        wi = wi_ref[l]                             # (128, 128) bf16
        wio = wio_ref[l]                           # (128, 128) bf16
        V = 7 + 10 * l

        # One fused QKV matmul; Q/K/V land on their own 128-lane vreg blocks,
        # so the slices below are lane-aligned (no lane-shift relayouts).
        qkv = mm(h, wqkv)                          # (RC, 384) f32
        q = qkv[:, 0:LANES] + vrow(V)              # 1/sqrt(d) already folded into Wq/bq
        k = qkv[:, LANES:2 * LANES] + vrow(V + 1)
        v = qkv[:, 2 * LANES:3 * LANES] + vrow(V + 2)

        # Single explicit K transpose per layer; head slices of kT are
        # 8-sublane-aligned row slices.
        kT = k.T                                   # (128, RC) f32, rows [0,HIDDEN) valid

        attn = None
        for hd in range(HEADS):
            lo, hi = hd * HEAD_DIM, (hd + 1) * HEAD_DIM
            s = mm(q[:, lo:hi], kT[lo:hi, :])      # (RC, RC) scores, f32
            s = s + neg_mask                       # batch block-diagonal masking
            s = s - jnp.max(s, axis=-1, keepdims=True)
            p = jnp.exp(s)
            p = p * pl.reciprocal(jnp.sum(p, axis=-1, keepdims=True), approx=True)
            ctx = mm(p, v[:, lo:hi])               # (RC, HEAD_DIM)
            # Head merge fused into the output projection: accumulate
            # ctx_h @ Wao_h directly (no stack / concat / scratch stores).
            ho = mm(ctx, wao[:, hd * LANES:(hd + 1) * LANES])   # (RC, 128)
            attn = ho if attn is None else attn + ho

        attn = attn + vrow(V + 3)
        h = ln(attn + h, vrow(V + 4), vrow(V + 5))

        # ---- FFN ----
        inter = mm(h, wi) + vrow(V + 6)
        # TODO(synk): HF BERT default is exact (erf) GELU; tanh approximation used here.
        inter = jax.nn.gelu(inter, approximate=True)
        ffn = mm(inter, wio) + vrow(V + 7)
        h = ln(ffn + h, vrow(V + 8), vrow(V + 9))

    # ---- last_block: Linear -> Tanh -> Linear (output padded to 128 lanes) ----
    y = mm(h, wsm_ref[2]) + vrow(4)
    y = jnp.tanh(y)
    y = mm(y, wsm_ref[3]) + vrow(5)
    o_ref[...] = y.astype(o_ref.dtype)             # single lane-dense store


def init_params(key):
    """Deterministic synthetic parameters, pre-packed into lane-aligned slabs."""
    ks = iter(jax.random.split(key, 64))

    def w(shape, scale=0.02):
        return jax.random.normal(next(ks), shape, jnp.float32) * scale

    def pad2(a, rows=LANES, cols=LANES):
        return jnp.pad(a, ((0, rows - a.shape[0]), (0, cols - a.shape[1])))

    def row(v):
        v = jnp.reshape(v, (1, -1))
        return jnp.pad(v, ((0, 0), (0, LANES - v.shape[1])))

    # ---- hoisted time-MLP params + position table (used in the wrapper) ----
    tW1, tb1 = w((MODEL_CH, TIME_EMB_CH)), w((TIME_EMB_CH,))
    tW2, tb2 = w((TIME_EMB_CH, HIDDEN)), w((HIDDEN,))
    pos_table = w((MAX_POS, HIDDEN))

    # ---- small standalone weights, each padded to a (128, 128) tile ----
    fW1, fb1 = w((IN_CH, HIDDEN)), w((HIDDEN,))
    fW2, fb2 = w((HIDDEN, HIDDEN)), w((HIDDEN,))
    lW1, lb1 = w((HIDDEN, HIDDEN)), w((HIDDEN,))
    lW2, lb2 = w((HIDDEN, OUT_CH)), w((OUT_CH,))
    wsm = jnp.stack([pad2(fW1), pad2(fW2), pad2(lW1), pad2(lW2)])    # (4,128,128)

    ones_h = jnp.ones((HIDDEN,), jnp.float32)
    zeros_h = jnp.zeros((HIDDEN,), jnp.float32)
    rows = [row(fb1), row(fb2),            # first_block biases
            row(ones_h), row(zeros_h),     # layernorm_dropout gamma / beta
            row(lb1), row(lb2),            # last_block biases
            row(ones_h)]                   # LayerNorm lane-validity mask

    scale = 1.0 / math.sqrt(HEAD_DIM)
    wqkv_l, wao_l, wi_l, wio_l = [], [], [], []
    for _ in range(LAYERS):
        wq, bq = w((HIDDEN, HIDDEN)), w((HIDDEN,))
        wk, bk = w((HIDDEN, HIDDEN)), w((HIDDEN,))
        wv, bv = w((HIDDEN, HIDDEN)), w((HIDDEN,))
        wao, bao = w((HIDDEN, HIDDEN)), w((HIDDEN,))
        wi, bi = w((HIDDEN, INTER)), w((INTER,))
        wio, bio = w((INTER, HIDDEN)), w((HIDDEN,))

        # Q/K/V each in their own 128-lane block; 1/sqrt(d) folded into Q.
        qkv_blk = jnp.concatenate([pad2(wq * scale, HIDDEN), pad2(wk, HIDDEN),
                                   pad2(wv, HIDDEN)], axis=1)        # (32, 384)
        wqkv_l.append(jnp.pad(qkv_blk, ((0, LANES - HIDDEN), (0, 0))))  # (128, 384)

        # Attention-output weight split per head into 128-lane blocks.
        wao_l.append(jnp.concatenate(
            [pad2(wao[h * HEAD_DIM:(h + 1) * HEAD_DIM, :], HEAD_DIM)
             for h in range(HEADS)], axis=1))                        # (8, 512)

        wi_l.append(pad2(wi))                                        # (128, 128)
        wio_l.append(pad2(wio))                                      # (128, 128)

        rows += [row(bq * scale), row(bk), row(bv), row(bao),
                 row(ones_h), row(zeros_h),
                 row(bi), row(bio),
                 row(ones_h), row(zeros_h)]

    vec = jnp.concatenate(rows, axis=0)
    assert vec.shape == (VEC_ROWS, LANES)
    vec = jnp.pad(vec, ((0, (-VEC_ROWS) % 8), (0, 0)))               # sublane pad

    # Weight slabs feed the MXU as bf16 operands (f32 accumulation in-kernel).
    kernel_params = (wsm.astype(jnp.bfloat16), vec,
                     jnp.stack(wqkv_l).astype(jnp.bfloat16),
                     jnp.stack(wao_l).astype(jnp.bfloat16),
                     jnp.stack(wi_l).astype(jnp.bfloat16),
                     jnp.stack(wio_l).astype(jnp.bfloat16))
    time_mlp_params = (tW1, tb1, tW2, tb2)
    return kernel_params, time_mlp_params, pos_table


@jax.jit
def transformer_forward(xt, t, kernel_params, time_mlp_params, pos_table):
    wsm, vec, wqkv, wao, wi, wio = kernel_params
    tW1, tb1, tW2, tb2 = time_mlp_params
    bsz, seq, c_in = xt.shape
    R = bsz * seq

    # ---- hoisted time MLP: sinusoid -> Linear -> SiLU -> Linear (B-sized) ----
    half = MODEL_CH // 2
    freqs = jnp.exp(-math.log(10000.0) *
                    jnp.arange(half, dtype=jnp.float32) / (half - 1))
    ang = t.astype(jnp.float32)[:, None] * freqs[None, :]
    tsin = jnp.concatenate([jnp.sin(ang), jnp.cos(ang)], axis=-1)     # (B, MODEL_CH)
    te = jnp.dot(tsin, tW1) + tb1
    te = te * jax.nn.sigmoid(te)                                      # SiLU
    te = jnp.dot(te, tW2) + tb2                                       # (B, HIDDEN)

    # Time emb broadcast over seq + position embedding, merged and lane-padded.
    emb = (te[:, None, :] + pos_table[None, :seq, :]).reshape(R, HIDDEN)
    emb = jnp.pad(emb, ((0, 0), (0, LANES - HIDDEN)))
    x2 = jnp.pad(xt.reshape(R, c_in), ((0, 0), (0, LANES - c_in)))

    # Row-chunk grid (optionally sharded across v7x's 2 TensorCores).
    nc = GRID_CHUNKS
    chunk = R // nc
    assert R % nc == 0 and chunk % seq == 0 and chunk % 8 == 0

    # Block-diagonal batch mask precomputed on the host side of the call.
    rb = jnp.arange(chunk, dtype=jnp.int32) // seq
    neg_mask = jnp.where(rb[:, None] == rb[None, :], 0.0, -1e30).astype(jnp.float32)

    inputs = (x2, emb, neg_mask, wsm, vec, wqkv, wao, wi, wio)

    # Advisory cost estimate for the XLA scheduler (kernel is latency-bound).
    flops = 2 * R * (IN_CH * HIDDEN + HIDDEN * HIDDEN)
    flops += LAYERS * 2 * R * (3 * HIDDEN * HIDDEN + HIDDEN * HIDDEN + 2 * HIDDEN * INTER)
    flops += LAYERS * HEADS * 2 * chunk * chunk * HEAD_DIM * 2 * nc
    flops += 2 * R * (HIDDEN * HIDDEN + HIDDEN * OUT_CH)
    transcendentals = 2 * R * HIDDEN + LAYERS * (HEADS * nc * chunk * chunk + R * INTER)
    bytes_accessed = sum(int(a.size) * a.dtype.itemsize for a in inputs) + R * LANES * 4

    def rows_map(i):
        return (i, 0)

    full_spec = lambda a: pl.BlockSpec(a.shape, lambda i, _nd=a.ndim: (0,) * _nd)

    y = pl.pallas_call(
        transformer_kernel,
        out_shape=jax.ShapeDtypeStruct((R, LANES), jnp.float32),
        grid=(nc,),
        in_specs=[
            pl.BlockSpec((chunk, LANES), rows_map),      # x
            pl.BlockSpec((chunk, LANES), rows_map),      # emb
            full_spec(neg_mask),                         # mask
            full_spec(wsm),                              # first/last weights
            full_spec(vec),                              # biases / LN / lane mask
            full_spec(wqkv),                             # per-layer QKV slabs
            full_spec(wao),                              # per-layer per-head Wao
            full_spec(wi),                               # per-layer Wi
            full_spec(wio),                              # per-layer Wio
        ],
        out_specs=pl.BlockSpec((chunk, LANES), rows_map),
        compiler_params=pltpu.CompilerParams(dimension_semantics=("parallel",)),
        cost_estimate=pl.CostEstimate(flops=flops,
                                      transcendentals=transcendentals,
                                      bytes_accessed=bytes_accessed),
    )(*inputs)

    return y[:, :OUT_CH].reshape(bsz, seq, OUT_CH)


if __name__ == "__main__":
    key = jax.random.PRNGKey(0)
    k_x, k_t, k_p = jax.random.split(key, 3)

    xt = jax.random.normal(k_x, (B, SEQ, IN_CH), jnp.float32)
    t = jax.random.randint(k_t, (B,), 0, 1000).astype(jnp.float32)
    kernel_params, time_mlp_params, pos_table = init_params(k_p)

    out = transformer_forward(xt, t, kernel_params, time_mlp_params, pos_table)
    out = jax.block_until_ready(out)
    assert out.shape == (B, SEQ, OUT_CH)
    print("KERNEL_OK")
</pallas_src>

<mosaic_0001>
module attributes {stable_mosaic.version = 11 : i64} {
  func.func @transformer_kernel(%arg0: i32, %arg1: memref<128x128xf32, #tpu.memory_space<vmem>>, %arg2: memref<128x128xf32, #tpu.memory_space<vmem>>, %arg3: memref<128x128xf32, #tpu.memory_space<vmem>>, %arg4: memref<4x128x128xbf16, #tpu.memory_space<vmem>>, %arg5: memref<32x128xf32, #tpu.memory_space<vmem>>, %arg6: memref<2x128x384xbf16, #tpu.memory_space<vmem>>, %arg7: memref<2x8x512xbf16, #tpu.memory_space<vmem>>, %arg8: memref<2x128x128xbf16, #tpu.memory_space<vmem>>, %arg9: memref<2x128x128xbf16, #tpu.memory_space<vmem>>, %arg10: memref<128x128xf32, #tpu.memory_space<vmem>>) attributes {dimension_semantics = [#tpu.dimension_semantics<parallel>], iteration_bounds = array<i64: 1>, scalar_prefetch = 0 : i64, scratch_operands = 0 : i64, tpu.core_type = #tpu.core_type<tc>, window_params = [{transform_indices = @transform_0, window_bounds = array<i64: 128, 128>}, {transform_indices = @transform_1, window_bounds = array<i64: 128, 128>}, {pipeline_mode = #tpu.pipeline_mode<synchronous>, transform_indices = @transform_2, window_bounds = array<i64: 128, 128>}, {pipeline_mode = #tpu.pipeline_mode<synchronous>, transform_indices = @transform_3, window_bounds = array<i64: 4, 128, 128>}, {pipeline_mode = #tpu.pipeline_mode<synchronous>, transform_indices = @transform_4, window_bounds = array<i64: 32, 128>}, {pipeline_mode = #tpu.pipeline_mode<synchronous>, transform_indices = @transform_5, window_bounds = array<i64: 2, 128, 384>}, {pipeline_mode = #tpu.pipeline_mode<synchronous>, transform_indices = @transform_6, window_bounds = array<i64: 2, 8, 512>}, {pipeline_mode = #tpu.pipeline_mode<synchronous>, transform_indices = @transform_7, window_bounds = array<i64: 2, 128, 128>}, {pipeline_mode = #tpu.pipeline_mode<synchronous>, transform_indices = @transform_8, window_bounds = array<i64: 2, 128, 128>}, {transform_indices = @transform_9, window_bounds = array<i64: 128, 128>}]} {
    %c0 = arith.constant 0 : index
    %c0_0 = arith.constant 0 : index
    %0 = vector.load %arg1[%c0, %c0_0] : memref<128x128xf32, #tpu.memory_space<vmem>>, vector<128x128xf32>
    %c0_1 = arith.constant 0 : index
    %c0_2 = arith.constant 0 : index
    %1 = vector.load %arg2[%c0_1, %c0_2] : memref<128x128xf32, #tpu.memory_space<vmem>>, vector<128x128xf32>
    %c0_3 = arith.constant 0 : index
    %c0_4 = arith.constant 0 : index
    %2 = vector.load %arg3[%c0_3, %c0_4] : memref<128x128xf32, #tpu.memory_space<vmem>>, vector<128x128xf32>
    %c0_5 = arith.constant 0 : index
    %c0_6 = arith.constant 0 : index
    %3 = vector.load %arg5[%c0_5, %c0_6] : memref<32x128xf32, #tpu.memory_space<vmem>>, vector<32x128xf32>
    %4 = vector.extract_strided_slice %3 {offsets = [6, 0], sizes = [1, 128], strides = [1, 1]} : vector<32x128xf32> to vector<1x128xf32>
    %c0_7 = arith.constant 0 : index
    %c0_8 = arith.constant 0 : index
    %c0_9 = arith.constant 0 : index
    %5 = vector.load %arg4[%c0_7, %c0_8, %c0_9] : memref<4x128x128xbf16, #tpu.memory_space<vmem>>, vector<1x128x128xbf16>
    %6 = vector.shape_cast %5 : vector<1x128x128xbf16> to vector<128x128xbf16>
    %7 = arith.truncf %0 : vector<128x128xf32> to vector<128x128xbf16>
    %cst = arith.constant dense<0.000000e+00> : vector<128x128xf32>
    %8 = tpu.matmul %7, %6, %cst {dimension_numbers = #tpu.dot_dimension_numbers<[1], [0], [0], [1], [0, 0, 1, 1], [], []>} : vector<128x128xbf16>, vector<128x128xbf16>, vector<128x128xf32> -> vector<128x128xf32>
    %9 = vector.extract_strided_slice %3 {offsets = [0, 0], sizes = [1, 128], strides = [1, 1]} : vector<32x128xf32> to vector<1x128xf32>
    %10 = vector.broadcast %9 : vector<1x128xf32> to vector<128x128xf32>
    %11 = arith.addf %8, %10 : vector<128x128xf32>
    %12 = math.tanh %11 : vector<128x128xf32>
    %c1 = arith.constant 1 : index
    %c0_10 = arith.constant 0 : index
    %c0_11 = arith.constant 0 : index
    %13 = vector.load %arg4[%c1, %c0_10, %c0_11] : memref<4x128x128xbf16, #tpu.memory_space<vmem>>, vector<1x128x128xbf16>
    %14 = vector.shape_cast %13 : vector<1x128x128xbf16> to vector<128x128xbf16>
    %15 = arith.truncf %12 : vector<128x128xf32> to vector<128x128xbf16>
    %cst_12 = arith.constant dense<0.000000e+00> : vector<128x128xf32>
    %16 = tpu.matmul %15, %14, %cst_12 {dimension_numbers = #tpu.dot_dimension_numbers<[1], [0], [0], [1], [0, 0, 1, 1], [], []>} : vector<128x128xbf16>, vector<128x128xbf16>, vector<128x128xf32> -> vector<128x128xf32>
    %17 = vector.extract_strided_slice %3 {offsets = [1, 0], sizes = [1, 128], strides = [1, 1]} : vector<32x128xf32> to vector<1x128xf32>
    %18 = vector.broadcast %17 : vector<1x128xf32> to vector<128x128xf32>
    %19 = arith.addf %16, %18 : vector<128x128xf32>
    %20 = arith.addf %19, %1 : vector<128x128xf32>
    %21 = vector.extract_strided_slice %3 {offsets = [2, 0], sizes = [1, 128], strides = [1, 1]} : vector<32x128xf32> to vector<1x128xf32>
    %22 = vector.extract_strided_slice %3 {offsets = [3, 0], sizes = [1, 128], strides = [1, 1]} : vector<32x128xf32> to vector<1x128xf32>
    %cst_13 = arith.constant dense<0.000000e+00> : vector<128xf32>
    %23 = vector.multi_reduction <add>, %20, %cst_13 [1] : vector<128x128xf32> to vector<128xf32>
    %24 = vector.shape_cast %23 : vector<128xf32> to vector<128x1xf32>
    %cst_14 = arith.constant 3.125000e-02 : f32
    %25 = vector.broadcast %cst_14 : f32 to vector<128x1xf32>
    %26 = arith.mulf %24, %25 : vector<128x1xf32>
    %27 = vector.broadcast %26 : vector<128x1xf32> to vector<128x128xf32>
    %28 = arith.subf %20, %27 : vector<128x128xf32>
    %29 = vector.broadcast %4 : vector<1x128xf32> to vector<128x128xf32>
    %30 = arith.mulf %28, %29 : vector<128x128xf32>
    %31 = arith.mulf %30, %30 : vector<128x128xf32>
    %cst_15 = arith.constant dense<0.000000e+00> : vector<128xf32>
    %32 = vector.multi_reduction <add>, %31, %cst_15 [1] : vector<128x128xf32> to vector<128xf32>
    %33 = vector.shape_cast %32 : vector<128xf32> to vector<128x1xf32>
    %cst_16 = arith.constant 3.125000e-02 : f32
    %34 = vector.broadcast %cst_16 : f32 to vector<128x1xf32>
    %35 = arith.mulf %33, %34 : vector<128x1xf32>
    %cst_17 = arith.constant 9.99999996E-13 : f32
    %36 = vector.broadcast %cst_17 : f32 to vector<128x1xf32>
    %37 = arith.addf %35, %36 : vector<128x1xf32>
    %38 = math.rsqrt %37 : vector<128x1xf32>
    %39 = vector.broadcast %38 : vector<128x1xf32> to vector<128x128xf32>
    %40 = arith.mulf %30, %39 : vector<128x128xf32>
    %41 = vector.broadcast %21 : vector<1x128xf32> to vector<128x128xf32>
    %42 = arith.mulf %40, %41 : vector<128x128xf32>
    %43 = vector.broadcast %22 : vector<1x128xf32> to vector<128x128xf32>
    %44 = arith.addf %42, %43 : vector<128x128xf32>
    %c0_18 = arith.constant 0 : index
    %c0_19 = arith.constant 0 : index
    %c0_20 = arith.constant 0 : index
    %45 = vector.load %arg6[%c0_18, %c0_19, %c0_20] : memref<2x128x384xbf16, #tpu.memory_space<vmem>>, vector<1x128x384xbf16>
    %46 = vector.shape_cast %45 : vector<1x128x384xbf16> to vector<128x384xbf16>
    %c0_21 = arith.constant 0 : index
    %c0_22 = arith.constant 0 : index
    %c0_23 = arith.constant 0 : index
    %47 = vector.load %arg7[%c0_21, %c0_22, %c0_23] : memref<2x8x512xbf16, #tpu.memory_space<vmem>>, vector<1x8x512xbf16>
    %48 = vector.shape_cast %47 : vector<1x8x512xbf16> to vector<8x512xbf16>
    %c0_24 = arith.constant 0 : index
    %c0_25 = arith.constant 0 : index
    %c0_26 = arith.constant 0 : index
    %49 = vector.load %arg8[%c0_24, %c0_25, %c0_26] : memref<2x128x128xbf16, #tpu.memory_space<vmem>>, vector<1x128x128xbf16>
    %50 = vector.shape_cast %49 : vector<1x128x128xbf16> to vector<128x128xbf16>
    %c0_27 = arith.constant 0 : index
    %c0_28 = arith.constant 0 : index
    %c0_29 = arith.constant 0 : index
    %51 = vector.load %arg9[%c0_27, %c0_28, %c0_29] : memref<2x128x128xbf16, #tpu.memory_space<vmem>>, vector<1x128x128xbf16>
    %52 = vector.shape_cast %51 : vector<1x128x128xbf16> to vector<128x128xbf16>
    %53 = arith.truncf %44 : vector<128x128xf32> to vector<128x128xbf16>
    %cst_30 = arith.constant dense<0.000000e+00> : vector<128x384xf32>
    %54 = tpu.matmul %53, %46, %cst_30 {dimension_numbers = #tpu.dot_dimension_numbers<[1], [0], [0], [1], [0, 0, 1, 1], [], []>} : vector<128x128xbf16>, vector<128x384xbf16>, vector<128x384xf32> -> vector<128x384xf32>
    %55 = vector.extract_strided_slice %54 {offsets = [0, 0], sizes = [128, 128], strides = [1, 1]} : vector<128x384xf32> to vector<128x128xf32>
    %56 = vector.extract_strided_slice %3 {offsets = [7, 0], sizes = [1, 128], strides = [1, 1]} : vector<32x128xf32> to vector<1x128xf32>
    %57 = vector.broadcast %56 : vector<1x128xf32> to vector<128x128xf32>
    %58 = arith.addf %55, %57 : vector<128x128xf32>
    %59 = vector.extract_strided_slice %54 {offsets = [0, 128], sizes = [128, 128], strides = [1, 1]} : vector<128x384xf32> to vector<128x128xf32>
    %60 = vector.extract_strided_slice %3 {offsets = [8, 0], sizes = [1, 128], strides = [1, 1]} : vector<32x128xf32> to vector<1x128xf32>
    %61 = vector.broadcast %60 : vector<1x128xf32> to vector<128x128xf32>
    %62 = arith.addf %59, %61 : vector<128x128xf32>
    %63 = vector.extract_strided_slice %54 {offsets = [0, 256], sizes = [128, 128], strides = [1, 1]} : vector<128x384xf32> to vector<128x128xf32>
    %64 = vector.extract_strided_slice %3 {offsets = [9, 0], sizes = [1, 128], strides = [1, 1]} : vector<32x128xf32> to vector<1x128xf32>
    %65 = vector.broadcast %64 : vector<1x128xf32> to vector<128x128xf32>
    %66 = arith.addf %63, %65 : vector<128x128xf32>
    %67 = tpu.transpose %62, [1, 0] : vector<128x128xf32> -> vector<128x128xf32>
    %68 = vector.extract_strided_slice %58 {offsets = [0, 0], sizes = [128, 8], strides = [1, 1]} : vector<128x128xf32> to vector<128x8xf32>
    %69 = vector.extract_strided_slice %67 {offsets = [0, 0], sizes = [8, 128], strides = [1, 1]} : vector<128x128xf32> to vector<8x128xf32>
    %70 = arith.truncf %68 : vector<128x8xf32> to vector<128x8xbf16>
    %71 = arith.truncf %69 : vector<8x128xf32> to vector<8x128xbf16>
    %cst_31 = arith.constant dense<0.000000e+00> : vector<128x128xf32>
    %72 = tpu.matmul %70, %71, %cst_31 {dimension_numbers = #tpu.dot_dimension_numbers<[1], [0], [0], [1], [0, 0, 1, 1], [], []>} : vector<128x8xbf16>, vector<8x128xbf16>, vector<128x128xf32> -> vector<128x128xf32>
    %73 = arith.addf %72, %2 : vector<128x128xf32>
    %cst_32 = arith.constant dense<0xFF800000> : vector<128xf32>
    %74 = vector.multi_reduction <maximumf>, %73, %cst_32 [1] : vector<128x128xf32> to vector<128xf32>
    %75 = vector.shape_cast %74 : vector<128xf32> to vector<128x1xf32>
    %76 = vector.broadcast %75 : vector<128x1xf32> to vector<128x128xf32>
    %77 = arith.subf %73, %76 : vector<128x128xf32>
    %78 = math.exp %77 : vector<128x128xf32>
    %cst_33 = arith.constant dense<0.000000e+00> : vector<128xf32>
    %79 = vector.multi_reduction <add>, %78, %cst_33 [1] : vector<128x128xf32> to vector<128xf32>
    %80 = vector.shape_cast %79 : vector<128xf32> to vector<128x1xf32>
    %81 = tpu.reciprocal %80 {approx = true} : vector<128x1xf32> -> vector<128x1xf32>
    %82 = vector.broadcast %81 : vector<128x1xf32> to vector<128x128xf32>
    %83 = arith.mulf %78, %82 : vector<128x128xf32>
    %84 = vector.extract_strided_slice %66 {offsets = [0, 0], sizes = [128, 8], strides = [1, 1]} : vector<128x128xf32> to vector<128x8xf32>
    %85 = arith.truncf %83 : vector<128x128xf32> to vector<128x128xbf16>
    %86 = arith.truncf %84 : vector<128x8xf32> to vector<128x8xbf16>
    %cst_34 = arith.constant dense<0.000000e+00> : vector<128x8xf32>
    %87 = tpu.matmul %85, %86, %cst_34 {dimension_numbers = #tpu.dot_dimension_numbers<[1], [0], [0], [1], [0, 0, 1, 1], [], []>} : vector<128x128xbf16>, vector<128x8xbf16>, vector<128x8xf32> -> vector<128x8xf32>
    %88 = vector.extract_strided_slice %48 {offsets = [0, 0], sizes = [8, 128], strides = [1, 1]} : vector<8x512xbf16> to vector<8x128xbf16>
    %89 = arith.truncf %87 : vector<128x8xf32> to vector<128x8xbf16>
    %cst_35 = arith.constant dense<0.000000e+00> : vector<128x128xf32>
    %90 = tpu.matmul %89, %88, %cst_35 {dimension_numbers = #tpu.dot_dimension_numbers<[1], [0], [0], [1], [0, 0, 1, 1], [], []>} : vector<128x8xbf16>, vector<8x128xbf16>, vector<128x128xf32> -> vector<128x128xf32>
    %91 = vector.extract_strided_slice %58 {offsets = [0, 8], sizes = [128, 8], strides = [1, 1]} : vector<128x128xf32> to vector<128x8xf32>
    %92 = vector.extract_strided_slice %67 {offsets = [8, 0], sizes = [8, 128], strides = [1, 1]} : vector<128x128xf32> to vector<8x128xf32>
    %93 = arith.truncf %91 : vector<128x8xf32> to vector<128x8xbf16>
    %94 = arith.truncf %92 : vector<8x128xf32> to vector<8x128xbf16>
    %cst_36 = arith.constant dense<0.000000e+00> : vector<128x128xf32>
    %95 = tpu.matmul %93, %94, %cst_36 {dimension_numbers = #tpu.dot_dimension_numbers<[1], [0], [0], [1], [0, 0, 1, 1], [], []>} : vector<128x8xbf16>, vector<8x128xbf16>, vector<128x128xf32> -> vector<128x128xf32>
    %96 = arith.addf %95, %2 : vector<128x128xf32>
    %cst_37 = arith.constant dense<0xFF800000> : vector<128xf32>
    %97 = vector.multi_reduction <maximumf>, %96, %cst_37 [1] : vector<128x128xf32> to vector<128xf32>
    %98 = vector.shape_cast %97 : vector<128xf32> to vector<128x1xf32>
    %99 = vector.broadcast %98 : vector<128x1xf32> to vector<128x128xf32>
    %100 = arith.subf %96, %99 : vector<128x128xf32>
    %101 = math.exp %100 : vector<128x128xf32>
    %cst_38 = arith.constant dense<0.000000e+00> : vector<128xf32>
    %102 = vector.multi_reduction <add>, %101, %cst_38 [1] : vector<128x128xf32> to vector<128xf32>
    %103 = vector.shape_cast %102 : vector<128xf32> to vector<128x1xf32>
    %104 = tpu.reciprocal %103 {approx = true} : vector<128x1xf32> -> vector<128x1xf32>
    %105 = vector.broadcast %104 : vector<128x1xf32> to vector<128x128xf32>
    %106 = arith.mulf %101, %105 : vector<128x128xf32>
    %107 = vector.extract_strided_slice %66 {offsets = [0, 8], sizes = [128, 8], strides = [1, 1]} : vector<128x128xf32> to vector<128x8xf32>
    %108 = arith.truncf %106 : vector<128x128xf32> to vector<128x128xbf16>
    %109 = arith.truncf %107 : vector<128x8xf32> to vector<128x8xbf16>
    %cst_39 = arith.constant dense<0.000000e+00> : vector<128x8xf32>
    %110 = tpu.matmul %108, %109, %cst_39 {dimension_numbers = #tpu.dot_dimension_numbers<[1], [0], [0], [1], [0, 0, 1, 1], [], []>} : vector<128x128xbf16>, vector<128x8xbf16>, vector<128x8xf32> -> vector<128x8xf32>
    %111 = vector.extract_strided_slice %48 {offsets = [0, 128], sizes = [8, 128], strides = [1, 1]} : vector<8x512xbf16> to vector<8x128xbf16>
    %112 = arith.truncf %110 : vector<128x8xf32> to vector<128x8xbf16>
    %cst_40 = arith.constant dense<0.000000e+00> : vector<128x128xf32>
    %113 = tpu.matmul %112, %111, %cst_40 {dimension_numbers = #tpu.dot_dimension_numbers<[1], [0], [0], [1], [0, 0, 1, 1], [], []>} : vector<128x8xbf16>, vector<8x128xbf16>, vector<128x128xf32> -> vector<128x128xf32>
    %114 = arith.addf %90, %113 : vector<128x128xf32>
    %115 = vector.extract_strided_slice %58 {offsets = [0, 16], sizes = [128, 8], strides = [1, 1]} : vector<128x128xf32> to vector<128x8xf32>
    %116 = vector.extract_strided_slice %67 {offsets = [16, 0], sizes = [8, 128], strides = [1, 1]} : vector<128x128xf32> to vector<8x128xf32>
    %117 = arith.truncf %115 : vector<128x8xf32> to vector<128x8xbf16>
    %118 = arith.truncf %116 : vector<8x128xf32> to vector<8x128xbf16>
    %cst_41 = arith.constant dense<0.000000e+00> : vector<128x128xf32>
    %119 = tpu.matmul %117, %118, %cst_41 {dimension_numbers = #tpu.dot_dimension_numbers<[1], [0], [0], [1], [0, 0, 1, 1], [], []>} : vector<128x8xbf16>, vector<8x128xbf16>, vector<128x128xf32> -> vector<128x128xf32>
    %120 = arith.addf %119, %2 : vector<128x128xf32>
    %cst_42 = arith.constant dense<0xFF800000> : vector<128xf32>
    %121 = vector.multi_reduction <maximumf>, %120, %cst_42 [1] : vector<128x128xf32> to vector<128xf32>
    %122 = vector.shape_cast %121 : vector<128xf32> to vector<128x1xf32>
    %123 = vector.broadcast %122 : vector<128x1xf32> to vector<128x128xf32>
    %124 = arith.subf %120, %123 : vector<128x128xf32>
    %125 = math.exp %124 : vector<128x128xf32>
    %cst_43 = arith.constant dense<0.000000e+00> : vector<128xf32>
    %126 = vector.multi_reduction <add>, %125, %cst_43 [1] : vector<128x128xf32> to vector<128xf32>
    %127 = vector.shape_cast %126 : vector<128xf32> to vector<128x1xf32>
    %128 = tpu.reciprocal %127 {approx = true} : vector<128x1xf32> -> vector<128x1xf32>
    %129 = vector.broadcast %128 : vector<128x1xf32> to vector<128x128xf32>
    %130 = arith.mulf %125, %129 : vector<128x128xf32>
    %131 = vector.extract_strided_slice %66 {offsets = [0, 16], sizes = [128, 8], strides = [1, 1]} : vector<128x128xf32> to vector<128x8xf32>
    %132 = arith.truncf %130 : vector<128x128xf32> to vector<128x128xbf16>
    %133 = arith.truncf %131 : vector<128x8xf32> to vector<128x8xbf16>
    %cst_44 = arith.constant dense<0.000000e+00> : vector<128x8xf32>
    %134 = tpu.matmul %132, %133, %cst_44 {dimension_numbers = #tpu.dot_dimension_numbers<[1], [0], [0], [1], [0, 0, 1, 1], [], []>} : vector<128x128xbf16>, vector<128x8xbf16>, vector<128x8xf32> -> vector<128x8xf32>
    %135 = vector.extract_strided_slice %48 {offsets = [0, 256], sizes = [8, 128], strides = [1, 1]} : vector<8x512xbf16> to vector<8x128xbf16>
    %136 = arith.truncf %134 : vector<128x8xf32> to vector<128x8xbf16>
    %cst_45 = arith.constant dense<0.000000e+00> : vector<128x128xf32>
    %137 = tpu.matmul %136, %135, %cst_45 {dimension_numbers = #tpu.dot_dimension_numbers<[1], [0], [0], [1], [0, 0, 1, 1], [], []>} : vector<128x8xbf16>, vector<8x128xbf16>, vector<128x128xf32> -> vector<128x128xf32>
    %138 = arith.addf %114, %137 : vector<128x128xf32>
    %139 = vector.extract_strided_slice %58 {offsets = [0, 24], sizes = [128, 8], strides = [1, 1]} : vector<128x128xf32> to vector<128x8xf32>
    %140 = vector.extract_strided_slice %67 {offsets = [24, 0], sizes = [8, 128], strides = [1, 1]} : vector<128x128xf32> to vector<8x128xf32>
    %141 = arith.truncf %139 : vector<128x8xf32> to vector<128x8xbf16>
    %142 = arith.truncf %140 : vector<8x128xf32> to vector<8x128xbf16>
    %cst_46 = arith.constant dense<0.000000e+00> : vector<128x128xf32>
    %143 = tpu.matmul %141, %142, %cst_46 {dimension_numbers = #tpu.dot_dimension_numbers<[1], [0], [0], [1], [0, 0, 1, 1], [], []>} : vector<128x8xbf16>, vector<8x128xbf16>, vector<128x128xf32> -> vector<128x128xf32>
    %144 = arith.addf %143, %2 : vector<128x128xf32>
    %cst_47 = arith.constant dense<0xFF800000> : vector<128xf32>
    %145 = vector.multi_reduction <maximumf>, %144, %cst_47 [1] : vector<128x128xf32> to vector<128xf32>
    %146 = vector.shape_cast %145 : vector<128xf32> to vector<128x1xf32>
    %147 = vector.broadcast %146 : vector<128x1xf32> to vector<128x128xf32>
    %148 = arith.subf %144, %147 : vector<128x128xf32>
    %149 = math.exp %148 : vector<128x128xf32>
    %cst_48 = arith.constant dense<0.000000e+00> : vector<128xf32>
    %150 = vector.multi_reduction <add>, %149, %cst_48 [1] : vector<128x128xf32> to vector<128xf32>
    %151 = vector.shape_cast %150 : vector<128xf32> to vector<128x1xf32>
    %152 = tpu.reciprocal %151 {approx = true} : vector<128x1xf32> -> vector<128x1xf32>
    %153 = vector.broadcast %152 : vector<128x1xf32> to vector<128x128xf32>
    %154 = arith.mulf %149, %153 : vector<128x128xf32>
    %155 = vector.extract_strided_slice %66 {offsets = [0, 24], sizes = [128, 8], strides = [1, 1]} : vector<128x128xf32> to vector<128x8xf32>
    %156 = arith.truncf %154 : vector<128x128xf32> to vector<128x128xbf16>
    %157 = arith.truncf %155 : vector<128x8xf32> to vector<128x8xbf16>
    %cst_49 = arith.constant dense<0.000000e+00> : vector<128x8xf32>
    %158 = tpu.matmul %156, %157, %cst_49 {dimension_numbers = #tpu.dot_dimension_numbers<[1], [0], [0], [1], [0, 0, 1, 1], [], []>} : vector<128x128xbf16>, vector<128x8xbf16>, vector<128x8xf32> -> vector<128x8xf32>
    %159 = vector.extract_strided_slice %48 {offsets = [0, 384], sizes = [8, 128], strides = [1, 1]} : vector<8x512xbf16> to vector<8x128xbf16>
    %160 = arith.truncf %158 : vector<128x8xf32> to vector<128x8xbf16>
    %cst_50 = arith.constant dense<0.000000e+00> : vector<128x128xf32>
    %161 = tpu.matmul %160, %159, %cst_50 {dimension_numbers = #tpu.dot_dimension_numbers<[1], [0], [0], [1], [0, 0, 1, 1], [], []>} : vector<128x8xbf16>, vector<8x128xbf16>, vector<128x128xf32> -> vector<128x128xf32>
    %162 = arith.addf %138, %161 : vector<128x128xf32>
    %163 = vector.extract_strided_slice %3 {offsets = [10, 0], sizes = [1, 128], strides = [1, 1]} : vector<32x128xf32> to vector<1x128xf32>
    %164 = vector.broadcast %163 : vector<1x128xf32> to vector<128x128xf32>
    %165 = arith.addf %162, %164 : vector<128x128xf32>
    %166 = arith.addf %165, %44 : vector<128x128xf32>
    %167 = vector.extract_strided_slice %3 {offsets = [11, 0], sizes = [1, 128], strides = [1, 1]} : vector<32x128xf32> to vector<1x128xf32>
    %168 = vector.extract_strided_slice %3 {offsets = [12, 0], sizes = [1, 128], strides = [1, 1]} : vector<32x128xf32> to vector<1x128xf32>
    %cst_51 = arith.constant dense<0.000000e+00> : vector<128xf32>
    %169 = vector.multi_reduction <add>, %166, %cst_51 [1] : vector<128x128xf32> to vector<128xf32>
    %170 = vector.shape_cast %169 : vector<128xf32> to vector<128x1xf32>
    %cst_52 = arith.constant 3.125000e-02 : f32
    %171 = vector.broadcast %cst_52 : f32 to vector<128x1xf32>
    %172 = arith.mulf %170, %171 : vector<128x1xf32>
    %173 = vector.broadcast %172 : vector<128x1xf32> to vector<128x128xf32>
    %174 = arith.subf %166, %173 : vector<128x128xf32>
    %175 = vector.broadcast %4 : vector<1x128xf32> to vector<128x128xf32>
    %176 = arith.mulf %174, %175 : vector<128x128xf32>
    %177 = arith.mulf %176, %176 : vector<128x128xf32>
    %cst_53 = arith.constant dense<0.000000e+00> : vector<128xf32>
    %178 = vector.multi_reduction <add>, %177, %cst_53 [1] : vector<128x128xf32> to vector<128xf32>
    %179 = vector.shape_cast %178 : vector<128xf32> to vector<128x1xf32>
    %cst_54 = arith.constant 3.125000e-02 : f32
    %180 = vector.broadcast %cst_54 : f32 to vector<128x1xf32>
    %181 = arith.mulf %179, %180 : vector<128x1xf32>
    %cst_55 = arith.constant 9.99999996E-13 : f32
    %182 = vector.broadcast %cst_55 : f32 to vector<128x1xf32>
    %183 = arith.addf %181, %182 : vector<128x1xf32>
    %184 = math.rsqrt %183 : vector<128x1xf32>
    %185 = vector.broadcast %184 : vector<128x1xf32> to vector<128x128xf32>
    %186 = arith.mulf %176, %185 : vector<128x128xf32>
    %187 = vector.broadcast %167 : vector<1x128xf32> to vector<128x128xf32>
    %188 = arith.mulf %186, %187 : vector<128x128xf32>
    %189 = vector.broadcast %168 : vector<1x128xf32> to vector<128x128xf32>
    %190 = arith.addf %188, %189 : vector<128x128xf32>
    %191 = arith.truncf %190 : vector<128x128xf32> to vector<128x128xbf16>
    %cst_56 = arith.constant dense<0.000000e+00> : vector<128x128xf32>
    %192 = tpu.matmul %191, %50, %cst_56 {dimension_numbers = #tpu.dot_dimension_numbers<[1], [0], [0], [1], [0, 0, 1, 1], [], []>} : vector<128x128xbf16>, vector<128x128xbf16>, vector<128x128xf32> -> vector<128x128xf32>
    %193 = vector.extract_strided_slice %3 {offsets = [13, 0], sizes = [1, 128], strides = [1, 1]} : vector<32x128xf32> to vector<1x128xf32>
    %194 = vector.broadcast %193 : vector<1x128xf32> to vector<128x128xf32>
    %195 = arith.addf %192, %194 : vector<128x128xf32>
    %196 = arith.mulf %195, %195 : vector<128x128xf32>
    %197 = arith.mulf %195, %196 : vector<128x128xf32>
    %cst_57 = arith.constant 4.471500e-02 : f32
    %198 = vector.broadcast %cst_57 : f32 to vector<128x128xf32>
    %199 = arith.mulf %198, %197 : vector<128x128xf32>
    %200 = arith.addf %195, %199 : vector<128x128xf32>
    %cst_58 = arith.constant 0.797884583 : f32
    %201 = vector.broadcast %cst_58 : f32 to vector<128x128xf32>
    %202 = arith.mulf %201, %200 : vector<128x128xf32>
    %203 = math.tanh %202 : vector<128x128xf32>
    %cst_59 = arith.constant 1.000000e+00 : f32
    %204 = vector.broadcast %cst_59 : f32 to vector<128x128xf32>
    %205 = arith.addf %204, %203 : vector<128x128xf32>
    %cst_60 = arith.constant 5.000000e-01 : f32
    %206 = vector.broadcast %cst_60 : f32 to vector<128x128xf32>
    %207 = arith.mulf %206, %205 : vector<128x128xf32>
    %208 = arith.mulf %195, %207 : vector<128x128xf32>
    %209 = arith.truncf %208 : vector<128x128xf32> to vector<128x128xbf16>
    %cst_61 = arith.constant dense<0.000000e+00> : vector<128x128xf32>
    %210 = tpu.matmul %209, %52, %cst_61 {dimension_numbers = #tpu.dot_dimension_numbers<[1], [0], [0], [1], [0, 0, 1, 1], [], []>} : vector<128x128xbf16>, vector<128x128xbf16>, vector<128x128xf32> -> vector<128x128xf32>
    %211 = vector.extract_strided_slice %3 {offsets = [14, 0], sizes = [1, 128], strides = [1, 1]} : vector<32x128xf32> to vector<1x128xf32>
    %212 = vector.broadcast %211 : vector<1x128xf32> to vector<128x128xf32>
    %213 = arith.addf %210, %212 : vector<128x128xf32>
    %214 = arith.addf %213, %190 : vector<128x128xf32>
    %215 = vector.extract_strided_slice %3 {offsets = [15, 0], sizes = [1, 128], strides = [1, 1]} : vector<32x128xf32> to vector<1x128xf32>
    %216 = vector.extract_strided_slice %3 {offsets = [16, 0], sizes = [1, 128], strides = [1, 1]} : vector<32x128xf32> to vector<1x128xf32>
    %cst_62 = arith.constant dense<0.000000e+00> : vector<128xf32>
    %217 = vector.multi_reduction <add>, %214, %cst_62 [1] : vector<128x128xf32> to vector<128xf32>
    %218 = vector.shape_cast %217 : vector<128xf32> to vector<128x1xf32>
    %cst_63 = arith.constant 3.125000e-02 : f32
    %219 = vector.broadcast %cst_63 : f32 to vector<128x1xf32>
    %220 = arith.mulf %218, %219 : vector<128x1xf32>
    %221 = vector.broadcast %220 : vector<128x1xf32> to vector<128x128xf32>
    %222 = arith.subf %214, %221 : vector<128x128xf32>
    %223 = vector.broadcast %4 : vector<1x128xf32> to vector<128x128xf32>
    %224 = arith.mulf %222, %223 : vector<128x128xf32>
    %225 = arith.mulf %224, %224 : vector<128x128xf32>
    %cst_64 = arith.constant dense<0.000000e+00> : vector<128xf32>
    %226 = vector.multi_reduction <add>, %225, %cst_64 [1] : vector<128x128xf32> to vector<128xf32>
    %227 = vector.shape_cast %226 : vector<128xf32> to vector<128x1xf32>
    %cst_65 = arith.constant 3.125000e-02 : f32
    %228 = vector.broadcast %cst_65 : f32 to vector<128x1xf32>
    %229 = arith.mulf %227, %228 : vector<128x1xf32>
    %cst_66 = arith.constant 9.99999996E-13 : f32
    %230 = vector.broadcast %cst_66 : f32 to vector<128x1xf32>
    %231 = arith.addf %229, %230 : vector<128x1xf32>
    %232 = math.rsqrt %231 : vector<128x1xf32>
    %233 = vector.broadcast %232 : vector<128x1xf32> to vector<128x128xf32>
    %234 = arith.mulf %224, %233 : vector<128x128xf32>
    %235 = vector.broadcast %215 : vector<1x128xf32> to vector<128x128xf32>
    %236 = arith.mulf %234, %235 : vector<128x128xf32>
    %237 = vector.broadcast %216 : vector<1x128xf32> to vector<128x128xf32>
    %238 = arith.addf %236, %237 : vector<128x128xf32>
    %c1_67 = arith.constant 1 : index
    %c0_68 = arith.constant 0 : index
    %c0_69 = arith.constant 0 : index
    %239 = vector.load %arg6[%c1_67, %c0_68, %c0_69] : memref<2x128x384xbf16, #tpu.memory_space<vmem>>, vector<1x128x384xbf16>
    %240 = vector.shape_cast %239 : vector<1x128x384xbf16> to vector<128x384xbf16>
    %c1_70 = arith.constant 1 : index
    %c0_71 = arith.constant 0 : index
    %c0_72 = arith.constant 0 : index
    %241 = vector.load %arg7[%c1_70, %c0_71, %c0_72] : memref<2x8x512xbf16, #tpu.memory_space<vmem>>, vector<1x8x512xbf16>
    %242 = vector.shape_cast %241 : vector<1x8x512xbf16> to vector<8x512xbf16>
    %c1_73 = arith.constant 1 : index
    %c0_74 = arith.constant 0 : index
    %c0_75 = arith.constant 0 : index
    %243 = vector.load %arg8[%c1_73, %c0_74, %c0_75] : memref<2x128x128xbf16, #tpu.memory_space<vmem>>, vector<1x128x128xbf16>
    %244 = vector.shape_cast %243 : vector<1x128x128xbf16> to vector<128x128xbf16>
    %c1_76 = arith.constant 1 : index
    %c0_77 = arith.constant 0 : index
    %c0_78 = arith.constant 0 : index
    %245 = vector.load %arg9[%c1_76, %c0_77, %c0_78] : memref<2x128x128xbf16, #tpu.memory_space<vmem>>, vector<1x128x128xbf16>
    %246 = vector.shape_cast %245 : vector<1x128x128xbf16> to vector<128x128xbf16>
    %247 = arith.truncf %238 : vector<128x128xf32> to vector<128x128xbf16>
    %cst_79 = arith.constant dense<0.000000e+00> : vector<128x384xf32>
    %248 = tpu.matmul %247, %240, %cst_79 {dimension_numbers = #tpu.dot_dimension_numbers<[1], [0], [0], [1], [0, 0, 1, 1], [], []>} : vector<128x128xbf16>, vector<128x384xbf16>, vector<128x384xf32> -> vector<128x384xf32>
    %249 = vector.extract_strided_slice %248 {offsets = [0, 0], sizes = [128, 128], strides = [1, 1]} : vector<128x384xf32> to vector<128x128xf32>
    %250 = vector.extract_strided_slice %3 {offsets = [17, 0], sizes = [1, 128], strides = [1, 1]} : vector<32x128xf32> to vector<1x128xf32>
    %251 = vector.broadcast %250 : vector<1x128xf32> to vector<128x128xf32>
    %252 = arith.addf %249, %251 : vector<128x128xf32>
    %253 = vector.extract_strided_slice %248 {offsets = [0, 128], sizes = [128, 128], strides = [1, 1]} : vector<128x384xf32> to vector<128x128xf32>
    %254 = vector.extract_strided_slice %3 {offsets = [18, 0], sizes = [1, 128], strides = [1, 1]} : vector<32x128xf32> to vector<1x128xf32>
    %255 = vector.broadcast %254 : vector<1x128xf32> to vector<128x128xf32>
    %256 = arith.addf %253, %255 : vector<128x128xf32>
    %257 = vector.extract_strided_slice %248 {offsets = [0, 256], sizes = [128, 128], strides = [1, 1]} : vector<128x384xf32> to vector<128x128xf32>
    %258 = vector.extract_strided_slice %3 {offsets = [19, 0], sizes = [1, 128], strides = [1, 1]} : vector<32x128xf32> to vector<1x128xf32>
    %259 = vector.broadcast %258 : vector<1x128xf32> to vector<128x128xf32>
    %260 = arith.addf %257, %259 : vector<128x128xf32>
    %261 = tpu.transpose %256, [1, 0] : vector<128x128xf32> -> vector<128x128xf32>
    %262 = vector.extract_strided_slice %252 {offsets = [0, 0], sizes = [128, 8], strides = [1, 1]} : vector<128x128xf32> to vector<128x8xf32>
    %263 = vector.extract_strided_slice %261 {offsets = [0, 0], sizes = [8, 128], strides = [1, 1]} : vector<128x128xf32> to vector<8x128xf32>
    %264 = arith.truncf %262 : vector<128x8xf32> to vector<128x8xbf16>
    %265 = arith.truncf %263 : vector<8x128xf32> to vector<8x128xbf16>
    %cst_80 = arith.constant dense<0.000000e+00> : vector<128x128xf32>
    %266 = tpu.matmul %264, %265, %cst_80 {dimension_numbers = #tpu.dot_dimension_numbers<[1], [0], [0], [1], [0, 0, 1, 1], [], []>} : vector<128x8xbf16>, vector<8x128xbf16>, vector<128x128xf32> -> vector<128x128xf32>
    %267 = arith.addf %266, %2 : vector<128x128xf32>
    %cst_81 = arith.constant dense<0xFF800000> : vector<128xf32>
    %268 = vector.multi_reduction <maximumf>, %267, %cst_81 [1] : vector<128x128xf32> to vector<128xf32>
    %269 = vector.shape_cast %268 : vector<128xf32> to vector<128x1xf32>
    %270 = vector.broadcast %269 : vector<128x1xf32> to vector<128x128xf32>
    %271 = arith.subf %267, %270 : vector<128x128xf32>
    %272 = math.exp %271 : vector<128x128xf32>
    %cst_82 = arith.constant dense<0.000000e+00> : vector<128xf32>
    %273 = vector.multi_reduction <add>, %272, %cst_82 [1] : vector<128x128xf32> to vector<128xf32>
    %274 = vector.shape_cast %273 : vector<128xf32> to vector<128x1xf32>
    %275 = tpu.reciprocal %274 {approx = true} : vector<128x1xf32> -> vector<128x1xf32>
    %276 = vector.broadcast %275 : vector<128x1xf32> to vector<128x128xf32>
    %277 = arith.mulf %272, %276 : vector<128x128xf32>
    %278 = vector.extract_strided_slice %260 {offsets = [0, 0], sizes = [128, 8], strides = [1, 1]} : vector<128x128xf32> to vector<128x8xf32>
    %279 = arith.truncf %277 : vector<128x128xf32> to vector<128x128xbf16>
    %280 = arith.truncf %278 : vector<128x8xf32> to vector<128x8xbf16>
    %cst_83 = arith.constant dense<0.000000e+00> : vector<128x8xf32>
    %281 = tpu.matmul %279, %280, %cst_83 {dimension_numbers = #tpu.dot_dimension_numbers<[1], [0], [0], [1], [0, 0, 1, 1], [], []>} : vector<128x128xbf16>, vector<128x8xbf16>, vector<128x8xf32> -> vector<128x8xf32>
    %282 = vector.extract_strided_slice %242 {offsets = [0, 0], sizes = [8, 128], strides = [1, 1]} : vector<8x512xbf16> to vector<8x128xbf16>
    %283 = arith.truncf %281 : vector<128x8xf32> to vector<128x8xbf16>
    %cst_84 = arith.constant dense<0.000000e+00> : vector<128x128xf32>
    %284 = tpu.matmul %283, %282, %cst_84 {dimension_numbers = #tpu.dot_dimension_numbers<[1], [0], [0], [1], [0, 0, 1, 1], [], []>} : vector<128x8xbf16>, vector<8x128xbf16>, vector<128x128xf32> -> vector<128x128xf32>
    %285 = vector.extract_strided_slice %252 {offsets = [0, 8], sizes = [128, 8], strides = [1, 1]} : vector<128x128xf32> to vector<128x8xf32>
    %286 = vector.extract_strided_slice %261 {offsets = [8, 0], sizes = [8, 128], strides = [1, 1]} : vector<128x128xf32> to vector<8x128xf32>
    %287 = arith.truncf %285 : vector<128x8xf32> to vector<128x8xbf16>
    %288 = arith.truncf %286 : vector<8x128xf32> to vector<8x128xbf16>
    %cst_85 = arith.constant dense<0.000000e+00> : vector<128x128xf32>
    %289 = tpu.matmul %287, %288, %cst_85 {dimension_numbers = #tpu.dot_dimension_numbers<[1], [0], [0], [1], [0, 0, 1, 1], [], []>} : vector<128x8xbf16>, vector<8x128xbf16>, vector<128x128xf32> -> vector<128x128xf32>
    %290 = arith.addf %289, %2 : vector<128x128xf32>
    %cst_86 = arith.constant dense<0xFF800000> : vector<128xf32>
    %291 = vector.multi_reduction <maximumf>, %290, %cst_86 [1] : vector<128x128xf32> to vector<128xf32>
    %292 = vector.shape_cast %291 : vector<128xf32> to vector<128x1xf32>
    %293 = vector.broadcast %292 : vector<128x1xf32> to vector<128x128xf32>
    %294 = arith.subf %290, %293 : vector<128x128xf32>
    %295 = math.exp %294 : vector<128x128xf32>
    %cst_87 = arith.constant dense<0.000000e+00> : vector<128xf32>
    %296 = vector.multi_reduction <add>, %295, %cst_87 [1] : vector<128x128xf32> to vector<128xf32>
    %297 = vector.shape_cast %296 : vector<128xf32> to vector<128x1xf32>
    %298 = tpu.reciprocal %297 {approx = true} : vector<128x1xf32> -> vector<128x1xf32>
    %299 = vector.broadcast %298 : vector<128x1xf32> to vector<128x128xf32>
    %300 = arith.mulf %295, %299 : vector<128x128xf32>
    %301 = vector.extract_strided_slice %260 {offsets = [0, 8], sizes = [128, 8], strides = [1, 1]} : vector<128x128xf32> to vector<128x8xf32>
    %302 = arith.truncf %300 : vector<128x128xf32> to vector<128x128xbf16>
    %303 = arith.truncf %301 : vector<128x8xf32> to vector<128x8xbf16>
    %cst_88 = arith.constant dense<0.000000e+00> : vector<128x8xf32>
    %304 = tpu.matmul %302, %303, %cst_88 {dimension_numbers = #tpu.dot_dimension_numbers<[1], [0], [0], [1], [0, 0, 1, 1], [], []>} : vector<128x128xbf16>, vector<128x8xbf16>, vector<128x8xf32> -> vector<128x8xf32>
    %305 = vector.extract_strided_slice %242 {offsets = [0, 128], sizes = [8, 128], strides = [1, 1]} : vector<8x512xbf16> to vector<8x128xbf16>
    %306 = arith.truncf %304 : vector<128x8xf32> to vector<128x8xbf16>
    %cst_89 = arith.constant dense<0.000000e+00> : vector<128x128xf32>
    %307 = tpu.matmul %306, %305, %cst_89 {dimension_numbers = #tpu.dot_dimension_numbers<[1], [0], [0], [1], [0, 0, 1, 1], [], []>} : vector<128x8xbf16>, vector<8x128xbf16>, vector<128x128xf32> -> vector<128x128xf32>
    %308 = arith.addf %284, %307 : vector<128x128xf32>
    %309 = vector.extract_strided_slice %252 {offsets = [0, 16], sizes = [128, 8], strides = [1, 1]} : vector<128x128xf32> to vector<128x8xf32>
    %310 = vector.extract_strided_slice %261 {offsets = [16, 0], sizes = [8, 128], strides = [1, 1]} : vector<128x128xf32> to vector<8x128xf32>
    %311 = arith.truncf %309 : vector<128x8xf32> to vector<128x8xbf16>
    %312 = arith.truncf %310 : vector<8x128xf32> to vector<8x128xbf16>
    %cst_90 = arith.constant dense<0.000000e+00> : vector<128x128xf32>
    %313 = tpu.matmul %311, %312, %cst_90 {dimension_numbers = #tpu.dot_dimension_numbers<[1], [0], [0], [1], [0, 0, 1, 1], [], []>} : vector<128x8xbf16>, vector<8x128xbf16>, vector<128x128xf32> -> vector<128x128xf32>
    %314 = arith.addf %313, %2 : vector<128x128xf32>
    %cst_91 = arith.constant dense<0xFF800000> : vector<128xf32>
    %315 = vector.multi_reduction <maximumf>, %314, %cst_91 [1] : vector<128x128xf32> to vector<128xf32>
    %316 = vector.shape_cast %315 : vector<128xf32> to vector<128x1xf32>
    %317 = vector.broadcast %316 : vector<128x1xf32> to vector<128x128xf32>
    %318 = arith.subf %314, %317 : vector<128x128xf32>
    %319 = math.exp %318 : vector<128x128xf32>
    %cst_92 = arith.constant dense<0.000000e+00> : vector<128xf32>
    %320 = vector.multi_reduction <add>, %319, %cst_92 [1] : vector<128x128xf32> to vector<128xf32>
    %321 = vector.shape_cast %320 : vector<128xf32> to vector<128x1xf32>
    %322 = tpu.reciprocal %321 {approx = true} : vector<128x1xf32> -> vector<128x1xf32>
    %323 = vector.broadcast %322 : vector<128x1xf32> to vector<128x128xf32>
    %324 = arith.mulf %319, %323 : vector<128x128xf32>
    %325 = vector.extract_strided_slice %260 {offsets = [0, 16], sizes = [128, 8], strides = [1, 1]} : vector<128x128xf32> to vector<128x8xf32>
    %326 = arith.truncf %324 : vector<128x128xf32> to vector<128x128xbf16>
    %327 = arith.truncf %325 : vector<128x8xf32> to vector<128x8xbf16>
    %cst_93 = arith.constant dense<0.000000e+00> : vector<128x8xf32>
    %328 = tpu.matmul %326, %327, %cst_93 {dimension_numbers = #tpu.dot_dimension_numbers<[1], [0], [0], [1], [0, 0, 1, 1], [], []>} : vector<128x128xbf16>, vector<128x8xbf16>, vector<128x8xf32> -> vector<128x8xf32>
    %329 = vector.extract_strided_slice %242 {offsets = [0, 256], sizes = [8, 128], strides = [1, 1]} : vector<8x512xbf16> to vector<8x128xbf16>
    %330 = arith.truncf %328 : vector<128x8xf32> to vector<128x8xbf16>
    %cst_94 = arith.constant dense<0.000000e+00> : vector<128x128xf32>
    %331 = tpu.matmul %330, %329, %cst_94 {dimension_numbers = #tpu.dot_dimension_numbers<[1], [0], [0], [1], [0, 0, 1, 1], [], []>} : vector<128x8xbf16>, vector<8x128xbf16>, vector<128x128xf32> -> vector<128x128xf32>
    %332 = arith.addf %308, %331 : vector<128x128xf32>
    %333 = vector.extract_strided_slice %252 {offsets = [0, 24], sizes = [128, 8], strides = [1, 1]} : vector<128x128xf32> to vector<128x8xf32>
    %334 = vector.extract_strided_slice %261 {offsets = [24, 0], sizes = [8, 128], strides = [1, 1]} : vector<128x128xf32> to vector<8x128xf32>
    %335 = arith.truncf %333 : vector<128x8xf32> to vector<128x8xbf16>
    %336 = arith.truncf %334 : vector<8x128xf32> to vector<8x128xbf16>
    %cst_95 = arith.constant dense<0.000000e+00> : vector<128x128xf32>
    %337 = tpu.matmul %335, %336, %cst_95 {dimension_numbers = #tpu.dot_dimension_numbers<[1], [0], [0], [1], [0, 0, 1, 1], [], []>} : vector<128x8xbf16>, vector<8x128xbf16>, vector<128x128xf32> -> vector<128x128xf32>
    %338 = arith.addf %337, %2 : vector<128x128xf32>
    %cst_96 = arith.constant dense<0xFF800000> : vector<128xf32>
    %339 = vector.multi_reduction <maximumf>, %338, %cst_96 [1] : vector<128x128xf32> to vector<128xf32>
    %340 = vector.shape_cast %339 : vector<128xf32> to vector<128x1xf32>
    %341 = vector.broadcast %340 : vector<128x1xf32> to vector<128x128xf32>
    %342 = arith.subf %338, %341 : vector<128x128xf32>
    %343 = math.exp %342 : vector<128x128xf32>
    %cst_97 = arith.constant dense<0.000000e+00> : vector<128xf32>
    %344 = vector.multi_reduction <add>, %343, %cst_97 [1] : vector<128x128xf32> to vector<128xf32>
    %345 = vector.shape_cast %344 : vector<128xf32> to vector<128x1xf32>
    %346 = tpu.reciprocal %345 {approx = true} : vector<128x1xf32> -> vector<128x1xf32>
    %347 = vector.broadcast %346 : vector<128x1xf32> to vector<128x128xf32>
    %348 = arith.mulf %343, %347 : vector<128x128xf32>
    %349 = vector.extract_strided_slice %260 {offsets = [0, 24], sizes = [128, 8], strides = [1, 1]} : vector<128x128xf32> to vector<128x8xf32>
    %350 = arith.truncf %348 : vector<128x128xf32> to vector<128x128xbf16>
    %351 = arith.truncf %349 : vector<128x8xf32> to vector<128x8xbf16>
    %cst_98 = arith.constant dense<0.000000e+00> : vector<128x8xf32>
    %352 = tpu.matmul %350, %351, %cst_98 {dimension_numbers = #tpu.dot_dimension_numbers<[1], [0], [0], [1], [0, 0, 1, 1], [], []>} : vector<128x128xbf16>, vector<128x8xbf16>, vector<128x8xf32> -> vector<128x8xf32>
    %353 = vector.extract_strided_slice %242 {offsets = [0, 384], sizes = [8, 128], strides = [1, 1]} : vector<8x512xbf16> to vector<8x128xbf16>
    %354 = arith.truncf %352 : vector<128x8xf32> to vector<128x8xbf16>
    %cst_99 = arith.constant dense<0.000000e+00> : vector<128x128xf32>
    %355 = tpu.matmul %354, %353, %cst_99 {dimension_numbers = #tpu.dot_dimension_numbers<[1], [0], [0], [1], [0, 0, 1, 1], [], []>} : vector<128x8xbf16>, vector<8x128xbf16>, vector<128x128xf32> -> vector<128x128xf32>
    %356 = arith.addf %332, %355 : vector<128x128xf32>
    %357 = vector.extract_strided_slice %3 {offsets = [20, 0], sizes = [1, 128], strides = [1, 1]} : vector<32x128xf32> to vector<1x128xf32>
    %358 = vector.broadcast %357 : vector<1x128xf32> to vector<128x128xf32>
    %359 = arith.addf %356, %358 : vector<128x128xf32>
    %360 = arith.addf %359, %238 : vector<128x128xf32>
    %361 = vector.extract_strided_slice %3 {offsets = [21, 0], sizes = [1, 128], strides = [1, 1]} : vector<32x128xf32> to vector<1x128xf32>
    %362 = vector.extract_strided_slice %3 {offsets = [22, 0], sizes = [1, 128], strides = [1, 1]} : vector<32x128xf32> to vector<1x128xf32>
    %cst_100 = arith.constant dense<0.000000e+00> : vector<128xf32>
    %363 = vector.multi_reduction <add>, %360, %cst_100 [1] : vector<128x128xf32> to vector<128xf32>
    %364 = vector.shape_cast %363 : vector<128xf32> to vector<128x1xf32>
    %cst_101 = arith.constant 3.125000e-02 : f32
    %365 = vector.broadcast %cst_101 : f32 to vector<128x1xf32>
    %366 = arith.mulf %364, %365 : vector<128x1xf32>
    %367 = vector.broadcast %366 : vector<128x1xf32> to vector<128x128xf32>
    %368 = arith.subf %360, %367 : vector<128x128xf32>
    %369 = vector.broadcast %4 : vector<1x128xf32> to vector<128x128xf32>
    %370 = arith.mulf %368, %369 : vector<128x128xf32>
    %371 = arith.mulf %370, %370 : vector<128x128xf32>
    %cst_102 = arith.constant dense<0.000000e+00> : vector<128xf32>
    %372 = vector.multi_reduction <add>, %371, %cst_102 [1] : vector<128x128xf32> to vector<128xf32>
    %373 = vector.shape_cast %372 : vector<128xf32> to vector<128x1xf32>
    %cst_103 = arith.constant 3.125000e-02 : f32
    %374 = vector.broadcast %cst_103 : f32 to vector<128x1xf32>
    %375 = arith.mulf %373, %374 : vector<128x1xf32>
    %cst_104 = arith.constant 9.99999996E-13 : f32
    %376 = vector.broadcast %cst_104 : f32 to vector<128x1xf32>
    %377 = arith.addf %375, %376 : vector<128x1xf32>
    %378 = math.rsqrt %377 : vector<128x1xf32>
    %379 = vector.broadcast %378 : vector<128x1xf32> to vector<128x128xf32>
    %380 = arith.mulf %370, %379 : vector<128x128xf32>
    %381 = vector.broadcast %361 : vector<1x128xf32> to vector<128x128xf32>
    %382 = arith.mulf %380, %381 : vector<128x128xf32>
    %383 = vector.broadcast %362 : vector<1x128xf32> to vector<128x128xf32>
    %384 = arith.addf %382, %383 : vector<128x128xf32>
    %385 = arith.truncf %384 : vector<128x128xf32> to vector<128x128xbf16>
    %cst_105 = arith.constant dense<0.000000e+00> : vector<128x128xf32>
    %386 = tpu.matmul %385, %244, %cst_105 {dimension_numbers = #tpu.dot_dimension_numbers<[1], [0], [0], [1], [0, 0, 1, 1], [], []>} : vector<128x128xbf16>, vector<128x128xbf16>, vector<128x128xf32> -> vector<128x128xf32>
    %387 = vector.extract_strided_slice %3 {offsets = [23, 0], sizes = [1, 128], strides = [1, 1]} : vector<32x128xf32> to vector<1x128xf32>
    %388 = vector.broadcast %387 : vector<1x128xf32> to vector<128x128xf32>
    %389 = arith.addf %386, %388 : vector<128x128xf32>
    %390 = arith.mulf %389, %389 : vector<128x128xf32>
    %391 = arith.mulf %389, %390 : vector<128x128xf32>
    %cst_106 = arith.constant 4.471500e-02 : f32
    %392 = vector.broadcast %cst_106 : f32 to vector<128x128xf32>
    %393 = arith.mulf %392, %391 : vector<128x128xf32>
    %394 = arith.addf %389, %393 : vector<128x128xf32>
    %cst_107 = arith.constant 0.797884583 : f32
    %395 = vector.broadcast %cst_107 : f32 to vector<128x128xf32>
    %396 = arith.mulf %395, %394 : vector<128x128xf32>
    %397 = math.tanh %396 : vector<128x128xf32>
    %cst_108 = arith.constant 1.000000e+00 : f32
    %398 = vector.broadcast %cst_108 : f32 to vector<128x128xf32>
    %399 = arith.addf %398, %397 : vector<128x128xf32>
    %cst_109 = arith.constant 5.000000e-01 : f32
    %400 = vector.broadcast %cst_109 : f32 to vector<128x128xf32>
    %401 = arith.mulf %400, %399 : vector<128x128xf32>
    %402 = arith.mulf %389, %401 : vector<128x128xf32>
    %403 = arith.truncf %402 : vector<128x128xf32> to vector<128x128xbf16>
    %cst_110 = arith.constant dense<0.000000e+00> : vector<128x128xf32>
    %404 = tpu.matmul %403, %246, %cst_110 {dimension_numbers = #tpu.dot_dimension_numbers<[1], [0], [0], [1], [0, 0, 1, 1], [], []>} : vector<128x128xbf16>, vector<128x128xbf16>, vector<128x128xf32> -> vector<128x128xf32>
    %405 = vector.extract_strided_slice %3 {offsets = [24, 0], sizes = [1, 128], strides = [1, 1]} : vector<32x128xf32> to vector<1x128xf32>
    %406 = vector.broadcast %405 : vector<1x128xf32> to vector<128x128xf32>
    %407 = arith.addf %404, %406 : vector<128x128xf32>
    %408 = arith.addf %407, %384 : vector<128x128xf32>
    %409 = vector.extract_strided_slice %3 {offsets = [25, 0], sizes = [1, 128], strides = [1, 1]} : vector<32x128xf32> to vector<1x128xf32>
    %410 = vector.extract_strided_slice %3 {offsets = [26, 0], sizes = [1, 128], strides = [1, 1]} : vector<32x128xf32> to vector<1x128xf32>
    %cst_111 = arith.constant dense<0.000000e+00> : vector<128xf32>
    %411 = vector.multi_reduction <add>, %408, %cst_111 [1] : vector<128x128xf32> to vector<128xf32>
    %412 = vector.shape_cast %411 : vector<128xf32> to vector<128x1xf32>
    %cst_112 = arith.constant 3.125000e-02 : f32
    %413 = vector.broadcast %cst_112 : f32 to vector<128x1xf32>
    %414 = arith.mulf %412, %413 : vector<128x1xf32>
    %415 = vector.broadcast %414 : vector<128x1xf32> to vector<128x128xf32>
    %416 = arith.subf %408, %415 : vector<128x128xf32>
    %417 = vector.broadcast %4 : vector<1x128xf32> to vector<128x128xf32>
    %418 = arith.mulf %416, %417 : vector<128x128xf32>
    %419 = arith.mulf %418, %418 : vector<128x128xf32>
    %cst_113 = arith.constant dense<0.000000e+00> : vector<128xf32>
    %420 = vector.multi_reduction <add>, %419, %cst_113 [1] : vector<128x128xf32> to vector<128xf32>
    %421 = vector.shape_cast %420 : vector<128xf32> to vector<128x1xf32>
    %cst_114 = arith.constant 3.125000e-02 : f32
    %422 = vector.broadcast %cst_114 : f32 to vector<128x1xf32>
    %423 = arith.mulf %421, %422 : vector<128x1xf32>
    %cst_115 = arith.constant 9.99999996E-13 : f32
    %424 = vector.broadcast %cst_115 : f32 to vector<128x1xf32>
    %425 = arith.addf %423, %424 : vector<128x1xf32>
    %426 = math.rsqrt %425 : vector<128x1xf32>
    %427 = vector.broadcast %426 : vector<128x1xf32> to vector<128x128xf32>
    %428 = arith.mulf %418, %427 : vector<128x128xf32>
    %429 = vector.broadcast %409 : vector<1x128xf32> to vector<128x128xf32>
    %430 = arith.mulf %428, %429 : vector<128x128xf32>
    %431 = vector.broadcast %410 : vector<1x128xf32> to vector<128x128xf32>
    %432 = arith.addf %430, %431 : vector<128x128xf32>
    %c2 = arith.constant 2 : index
    %c0_116 = arith.constant 0 : index
    %c0_117 = arith.constant 0 : index
    %433 = vector.load %arg4[%c2, %c0_116, %c0_117] : memref<4x128x128xbf16, #tpu.memory_space<vmem>>, vector<1x128x128xbf16>
    %434 = vector.shape_cast %433 : vector<1x128x128xbf16> to vector<128x128xbf16>
    %435 = arith.truncf %432 : vector<128x128xf32> to vector<128x128xbf16>
    %cst_118 = arith.constant dense<0.000000e+00> : vector<128x128xf32>
    %436 = tpu.matmul %435, %434, %cst_118 {dimension_numbers = #tpu.dot_dimension_numbers<[1], [0], [0], [1], [0, 0, 1, 1], [], []>} : vector<128x128xbf16>, vector<128x128xbf16>, vector<128x128xf32> -> vector<128x128xf32>
    %437 = vector.extract_strided_slice %3 {offsets = [4, 0], sizes = [1, 128], strides = [1, 1]} : vector<32x128xf32> to vector<1x128xf32>
    %438 = vector.broadcast %437 : vector<1x128xf32> to vector<128x128xf32>
    %439 = arith.addf %436, %438 : vector<128x128xf32>
    %440 = math.tanh %439 : vector<128x128xf32>
    %c3 = arith.constant 3 : index
    %c0_119 = arith.constant 0 : index
    %c0_120 = arith.constant 0 : index
    %441 = vector.load %arg4[%c3, %c0_119, %c0_120] : memref<4x128x128xbf16, #tpu.memory_space<vmem>>, vector<1x128x128xbf16>
    %442 = vector.shape_cast %441 : vector<1x128x128xbf16> to vector<128x128xbf16>
    %443 = arith.truncf %440 : vector<128x128xf32> to vector<128x128xbf16>
    %cst_121 = arith.constant dense<0.000000e+00> : vector<128x128xf32>
    %444 = tpu.matmul %443, %442, %cst_121 {dimension_numbers = #tpu.dot_dimension_numbers<[1], [0], [0], [1], [0, 0, 1, 1], [], []>} : vector<128x128xbf16>, vector<128x128xbf16>, vector<128x128xf32> -> vector<128x128xf32>
    %445 = vector.extract_strided_slice %3 {offsets = [5, 0], sizes = [1, 128], strides = [1, 1]} : vector<32x128xf32> to vector<1x128xf32>
    %446 = vector.broadcast %445 : vector<1x128xf32> to vector<128x128xf32>
    %447 = arith.addf %444, %446 : vector<128x128xf32>
    %c0_122 = arith.constant 0 : index
    %c0_123 = arith.constant 0 : index
    %448 = vector.load %arg10[%c0_122, %c0_123] : memref<128x128xf32, #tpu.memory_space<vmem>>, vector<128x128xf32>
    tpu.vector_store %arg10[%c0_122, %c0_123], %447 {strides = array<i32>} : memref<128x128xf32, #tpu.memory_space<vmem>>, vector<128x128xf32>,
    return
  }
  func.func @transform_0(%arg0: i32) -> (i32, i32) {
    %c0_i32 = arith.constant 0 : i32
    %c0_i32_0 = arith.constant 0 : i32
    return %arg0, %c0_i32 : i32, i32
  }
  func.func @transform_1(%arg0: i32) -> (i32, i32) {
    %c0_i32 = arith.constant 0 : i32
    %c0_i32_0 = arith.constant 0 : i32
    return %arg0, %c0_i32 : i32, i32
  }
  func.func @transform_2(%arg0: i32) -> (i32, i32) {
    %c0_i32 = arith.constant 0 : i32
    %c0_i32_0 = arith.constant 0 : i32
    %c0_i32_1 = arith.constant 0 : i32
    return %c0_i32, %c0_i32_0 : i32, i32
  }
  func.func @transform_3(%arg0: i32) -> (i32, i32, i32) {
    %c0_i32 = arith.constant 0 : i32
    %c0_i32_0 = arith.constant 0 : i32
    %c0_i32_1 = arith.constant 0 : i32
    %c0_i32_2 = arith.constant 0 : i32
    return %c0_i32, %c0_i32_0, %c0_i32_1 : i32, i32, i32
  }
  func.func @transform_4(%arg0: i32) -> (i32, i32) {
    %c0_i32 = arith.constant 0 : i32
    %c0_i32_0 = arith.constant 0 : i32
    %c0_i32_1 = arith.constant 0 : i32
    return %c0_i32, %c0_i32_0 : i32, i32
  }
  func.func @transform_5(%arg0: i32) -> (i32, i32, i32) {
    %c0_i32 = arith.constant 0 : i32
    %c0_i32_0 = arith.constant 0 : i32
    %c0_i32_1 = arith.constant 0 : i32
    %c0_i32_2 = arith.constant 0 : i32
    return %c0_i32, %c0_i32_0, %c0_i32_1 : i32, i32, i32
  }
  func.func @transform_6(%arg0: i32) -> (i32, i32, i32) {
    %c0_i32 = arith.constant 0 : i32
    %c0_i32_0 = arith.constant 0 : i32
    %c0_i32_1 = arith.constant 0 : i32
    %c0_i32_2 = arith.constant 0 : i32
    return %c0_i32, %c0_i32_0, %c0_i32_1 : i32, i32, i32
  }
  func.func @transform_7(%arg0: i32) -> (i32, i32, i32) {
    %c0_i32 = arith.constant 0 : i32
    %c0_i32_0 = arith.constant 0 : i32
    %c0_i32_1 = arith.constant 0 : i32
    %c0_i32_2 = arith.constant 0 : i32
    return %c0_i32, %c0_i32_0, %c0_i32_1 : i32, i32, i32
  }
  func.func @transform_8(%arg0: i32) -> (i32, i32, i32) {
    %c0_i32 = arith.constant 0 : i32
    %c0_i32_0 = arith.constant 0 : i32
    %c0_i32_1 = arith.constant 0 : i32
    %c0_i32_2 = arith.constant 0 : i32
    return %c0_i32, %c0_i32_0, %c0_i32_1 : i32, i32, i32
  }
  func.func @transform_9(%arg0: i32) -> (i32, i32) {
    %c0_i32 = arith.constant 0 : i32
    %c0_i32_0 = arith.constant 0 : i32
    return %arg0, %c0_i32 : i32, i32
  }
}

</mosaic_0001>

<bundles_post_ra>
// kernel: transformer_forward.1
= control target key start
LH: loop header
LB: loop body
LE: loop exit
PB: predicated region body
PF: predicated region fallthrough
CT: control target
= control target key end

     0   :  { %v109_v40 = vlaneseq  ;;  %vm1213_vm0 = vcmask 64512   ;;  %s11230_s26 = smov 120   ;;  %vm1238_vm1 = vcmask 1043456   ;;  %s11231_s15 = smov 112   ;;  %s15541_s3 = inlined_call_operand.vmem [shape: bf16[4,128,128], index: 3, kind: input, shape index: {}]   ;;  %s15542_s0 = inlined_call_operand.vmem [shape: f32[128,128], index: 0, kind: input, shape index: {}]   ;;  %s15543_s4 = inlined_call_operand.vmem [shape: f32[32,128], index: 4, kind: input, shape index: {}]   ;;  %s15544_s1 = inlined_call_operand.vmem [shape: f32[128,128], index: 1, kind: input, shape index: {}]   ;;  %s15545_s5 = inlined_call_operand.vmem [shape: bf16[2,128,384], index: 5, kind: input, shape index: {}]   ;;  %s15546_s2 = inlined_call_operand.vmem [shape: f32[128,128], index: 2, kind: input, shape index: {}]   ;;  %s15547_s6 = inlined_call_operand.vmem [shape: bf16[2,8,512], index: 6, kind: input, shape index: {}]   ;;  %s15548_s7 = inlined_call_operand.vmem [shape: bf16[2,128,128], index: 7, kind: input, shape index: {}]   ;;  %s15549_s8 = inlined_call_operand.vmem [shape: bf16[2,128,128], index: 8, kind: input, shape index: {}]   ;;  %s15550_s9 = inlined_call_operand.vmem [shape: f32[128,128], index: 9, kind: output, shape index: {}]  }
   0x1   :  { %v10244_v0 = vld [vmem:[%s15541_s3] sm:$0xff]   ;;  %v10245_v1 = vld [vmem:[%s15541_s3 + $0x8] sm:$0xff]   ;;  %v10246_v2 = vld [vmem:[%s15541_s3 + $0x10] sm:$0xff]   ;;  %s11232_s28 = smov 104  }
   0x2   :  { %9264 = vmatprep.subr.bf16.mxu0 %v10244_v0  ;;  %v10247_v3 = vld [vmem:[%s15541_s3 + $0x18] sm:$0xff]   ;;  %v33_v4 = vld [vmem:[%s15542_s0] sm:$0xff]  ;;  %v34_v5 = vld [vmem:[%s15542_s0 + $0x8] sm:$0xff]  ;;  %v11379_v41 = vshrl.u32 %v109_v40, 7 }
   0x3   :  { %9265 = vmatpush3.bf16.msra.mxu0 %v10244_v0  ;;  %v101_v6 = vpack.c.bf16 %v34_v5, %v33_v4  ;;  %v10248_v7 = vld [vmem:[%s15541_s3 + $0x20] sm:$0xff]   ;;  %v10253_v9 = vld [vmem:[%s15541_s3 + $0x48] sm:$0xff]   ;;  %v10254_v11 = vld [vmem:[%s15541_s3 + $0x50] sm:$0xff]  }
   0x4   :  { %9266 = vmatprep.subr.bf16.mxu0 %v10245_v1  ;;  %v10252_v8 = vld [vmem:[%s15541_s3 + $0x40] sm:$0xff]   ;;  %v10249_v10 = vld [vmem:[%s15541_s3 + $0x28] sm:$0xff]   ;;  %v10250_v12 = vld [vmem:[%s15541_s3 + $0x30] sm:$0xff]   ;;  %15632 = vst [vmem:[#allocation2_spill] sm:$0xff] %v11379_v41  ;;  %v11382_v42 = vsub.s32 0, %v11379_v41 }
   0x5   :  { %9280 = vmatprep.mubr.bf16.mxu0 %v101_v6  ;;  %9296 = vmatprep.subr.bf16.mxu1 %v10252_v8  ;;  %v10251_v13 = vld [vmem:[%s15541_s3 + $0x38] sm:$0xff]   ;;  %v35_v14 = vld [vmem:[%s15542_s0 + $0x10] sm:$0xff]  ;;  %v37_v16 = vld [vmem:[%s15542_s0 + $0x20] sm:$0xff] }
   0x6   :  { %9297 = vmatpush3.bf16.msra.mxu1 %v10252_v8  ;;  %v36_v15 = vld [vmem:[%s15542_s0 + $0x18] sm:$0xff]  ;;  %v38_v17 = vld [vmem:[%s15542_s0 + $0x28] sm:$0xff]  ;;  %v39_v20 = vld [vmem:[%s15542_s0 + $0x30] sm:$0xff]  ;;  %15633 = vst [vmem:[#allocation3_spill] sm:$0xff] %v11382_v42 }
   0x7   :  { %9267 = vmatpush3.bf16.msra.mxu0 %v10245_v1  ;;  %9298 = vmatprep.subr.bf16.mxu1 %v10253_v9  ;;  %v102_v18 = vpack.c.bf16 %v36_v15, %v35_v14  ;;  %v103_v19 = vpack.c.bf16 %v38_v17, %v37_v16  ;;  %v40_v21 = vld [vmem:[%s15542_s0 + $0x38] sm:$0xff]  ;;  %v41_v22 = vld [vmem:[%s15542_s0 + $0x40] sm:$0xff]  ;;  %v42_v23 = vld [vmem:[%s15542_s0 + $0x48] sm:$0xff] }
   0x8   :  { %9268 = vmatprep.subr.bf16.mxu0 %v10246_v2  ;;  %v104_v24 = vpack.c.bf16 %v40_v21, %v39_v20  ;;  %v105_v25 = vpack.c.bf16 %v42_v23, %v41_v22  ;;  %v43_v26 = vld [vmem:[%s15542_s0 + $0x50] sm:$0xff]  ;;  %v44_v27 = vld [vmem:[%s15542_s0 + $0x58] sm:$0xff]  ;;  %v45_v28 = vld [vmem:[%s15542_s0 + $0x60] sm:$0xff] }
   0x9   :  { %v46_v29 = vld [vmem:[%s15542_s0 + $0x68] sm:$0xff]  ;;  %v106_v30 = vpack.c.bf16 %v44_v27, %v43_v26  ;;  %v47_v32 = vld [vmem:[%s15542_s0 + $0x70] sm:$0xff]  ;;  %v48_v33 = vld [vmem:[%s15542_s0 + $0x78] sm:$0xff] }
   0xa   :  { %9299 = vmatpush3.bf16.msra.mxu1 %v10253_v9  ;;  %v107_v31 = vpack.c.bf16 %v46_v29, %v45_v28  ;;  %v108_v34 = vpack.c.bf16 %v48_v33, %v47_v32  ;;  %v10255_v35 = vld [vmem:[%s15541_s3 + $0x58] sm:$0xff]   ;;  %v10256_v36 = vld [vmem:[%s15541_s3 + $0x60] sm:$0xff]   ;;  %v10257_v37 = vld [vmem:[%s15541_s3 + $0x68] sm:$0xff]  }
   0xb   :  { %9269 = vmatpush3.bf16.msra.mxu0 %v10246_v2  ;;  %9300 = vmatprep.subr.bf16.mxu1 %v10254_v11  ;;  %v10258_v38 = vld [vmem:[%s15541_s3 + $0x70] sm:$0xff]   ;;  %v10259_v39 = vld [vmem:[%s15541_s3 + $0x78] sm:$0xff]   ;;  %v11387_v43 = vld [vmem:[%s15543_s4] sm:$0xff] }
   0xc   :  { %9270 = vmatprep.subr.bf16.mxu0 %v10247_v3  ;;  %v112_v44 = vrot.slane %v11387_v43, %v11382_v42  ;;  %v51_v40 = vld [vmem:[%s15544_s1 + $0x10] sm:$0xff] }
   0xe   :  { %9301 = vmatpush3.bf16.msra.mxu1 %v10254_v11 }
   0xf   :  { %9271 = vmatpush3.bf16.msra.mxu0 %v10247_v3  ;;  %9302 = vmatprep.subr.bf16.mxu1 %v10255_v35 }
  0x10   :  { %9272 = vmatprep.subr.bf16.mxu0 %v10248_v7 }
  0x12   :  { %9303 = vmatpush3.bf16.msra.mxu1 %v10255_v35 }
  0x13   :  { %9273 = vmatpush3.bf16.msra.mxu0 %v10248_v7  ;;  %9304 = vmatprep.subr.bf16.mxu1 %v10256_v36 }
  0x14   :  { %9274 = vmatprep.subr.bf16.mxu0 %v10249_v10 }
  0x16   :  { %9305 = vmatpush3.bf16.msra.mxu1 %v10256_v36 }
  0x17   :  { %9275 = vmatpush3.bf16.msra.mxu0 %v10249_v10  ;;  %9306 = vmatprep.subr.bf16.mxu1 %v10257_v37 }
  0x18   :  { %9276 = vmatprep.subr.bf16.mxu0 %v10250_v12 }
  0x1a   :  { %9307 = vmatpush3.bf16.msra.mxu1 %v10257_v37  ;;  %v11392_v37 = vsub.s32 1, %v11379_v41 }
  0x1b   :  { %9277 = vmatpush3.bf16.msra.mxu0 %v10250_v12  ;;  %9308 = vmatprep.subr.bf16.mxu1 %v10258_v38 }
  0x1c   :  { %9278 = vmatprep.subr.bf16.mxu0 %v10251_v13  ;;  %15634 = vst [vmem:[#allocation4_spill] sm:$0xff] %v11392_v37 }
  0x1e   :  { %9309 = vmatpush3.bf16.msra.mxu1 %v10258_v38  ;;  %v11396_v38 = vrot.slane %v11387_v43, %v11392_v37 }
  0x1f   :  { %9279 = vmatpush3.bf16.msra.mxu0 %v10251_v13  ;;  %9310 = vmatprep.subr.bf16.mxu1 %v10259_v39 }
  0x22   :  { %9281 = vmatmul.mubr.bf16.vlgmr.msra.gmra.mrb[0].mxu0 %v102_v18  ;;  %9311 = vmatpush3.bf16.msra.mxu1 %v10259_v39 }
  0x23   :  { %9284 = vmatprep.mubr.bf16.mxu0 %v103_v19 }
  0x2a   :  { %9285 = vmatmul.mubr.bf16.gmra.mrb[4].mxu0 %v104_v24 }
  0x2b   :  { %9288 = vmatprep.mubr.bf16.mxu0 %v105_v25 }
  0x32   :  { %9289 = vmatmul.mubr.bf16.gmra.mrb[8].mxu0 %v106_v30 }
  0x33   :  { %9292 = vmatprep.mubr.bf16.mxu0 %v107_v31 }
  0x3a   :  { %9293 = vmatmul.mubr.bf16.gmra.mrb[12].mxu0 %v108_v34 }
  0xf5   :  { %v9282_v45 = vpop.f32.mrb[0].mxu0 }
  0xf6   :  { %v204_v46 = vadd.f32 %v9282_v45, %v112_v44  ;;  %v195_v47 = vpop.f32.mrb[1].mxu0 }
  0xf7   :  { %v196_v48 = vadd.f32 %v195_v47, %v112_v44  ;;  %v9283_v49 = vpop.f32.mrb[2].mxu0 }
  0xf8   :  { %10376 = vtanh.f32 %v204_v46  ;;  %v207_v50 = vadd.f32 %v9283_v49, %v112_v44  ;;  %v198_v51 = vpop.f32.mrb[3].mxu0  ;;  %v49_v46 = vld [vmem:[%s15544_s1] sm:$0xff] }
  0xf9   :  { %10378 = vtanh.f32 %v196_v48  ;;  %v199_v52 = vadd.f32 %v198_v51, %v112_v44 }
  0xfa   :  { %10380 = vtanh.f32 %v207_v50 }
  0xfb   :  { %10382 = vtanh.f32 %v199_v52 }
  0xfd   :  { %v9286_v53 = vpop.f32.mrb[4].mxu0 }
  0xfe   :  { %v220_v54 = vadd.f32 %v9286_v53, %v112_v44  ;;  %v211_v55 = vpop.f32.mrb[5].mxu0 }
  0xff   :  { %v212_v56 = vadd.f32 %v211_v55, %v112_v44  ;;  %v9287_v57 = vpop.f32.mrb[6].mxu0  ;;  %v50_v55 = vld [vmem:[%s15544_s1 + $0x8] sm:$0xff] }
 0x100   :  { %10384 = vtanh.f32 %v220_v54  ;;  %v223_v58 = vadd.f32 %v9287_v57, %v112_v44  ;;  %v214_v59 = vpop.f32.mrb[7].mxu0  ;;  %v52_v54 = vld [vmem:[%s15544_s1 + $0x18] sm:$0xff] }
 0x101   :  { %10386 = vtanh.f32 %v212_v56  ;;  %v215_v60 = vadd.f32 %v214_v59, %v112_v44 }
 0x102   :  { %v10377_v61 = vpop.eup %10376  ;;  %10388 = vtanh.f32 %v223_v58 }
 0x103   :  { %v10379_v62 = vpop.eup %10378  ;;  %10390 = vtanh.f32 %v215_v60  ;;  %v53_v60 = vld [vmem:[%s15544_s1 + $0x20] sm:$0xff] }
 0x104   :  { %v10381_v63 = vpop.eup %10380 }
 0x105   :  { %v10383_v0 = vpop.eup %10382  ;;  %v9290_v1 = vpop.f32.mrb[8].mxu0  ;;  %v292_v2 = vpack.c.bf16 %v10381_v63, %v10377_v61 }
 0x106   :  { %v236_v3 = vadd.f32 %v9290_v1, %v112_v44  ;;  %v227_v4 = vpop.f32.mrb[9].mxu0  ;;  %v291_v5 = vpack.c.bf16 %v10383_v0, %v10379_v62  ;;  %v54_v1 = vld [vmem:[%s15544_s1 + $0x28] sm:$0xff] }
 0x107   :  { %v228_v6 = vadd.f32 %v227_v4, %v112_v44  ;;  %v9291_v7 = vpop.f32.mrb[10].mxu0 }
 0x108   :  { %10392 = vtanh.f32 %v236_v3  ;;  %v239_v8 = vadd.f32 %v9291_v7, %v112_v44  ;;  %v230_v9 = vpop.f32.mrb[11].mxu0  ;;  %9312 = vmatprep.mubr.bf16.mxu1 %v291_v5 }
 0x109   :  { %10394 = vtanh.f32 %v228_v6  ;;  %v231_v10 = vadd.f32 %v230_v9, %v112_v44  ;;  %9313 = vmatmul.mubr.bf16.vlgmr.msra.gmra.mrb[0].mxu1 %v292_v2  ;;  %v55_v2 = vld [vmem:[%s15544_s1 + $0x30] sm:$0xff]  ;;  %v56_v6 = vld [vmem:[%s15544_s1 + $0x38] sm:$0xff] }
 0x10a   :  { %v10385_v11 = vpop.eup %10384  ;;  %10396 = vtanh.f32 %v239_v8 }
 0x10b   :  { %v10387_v12 = vpop.eup %10386  ;;  %10398 = vtanh.f32 %v231_v10 }
 0x10c   :  { %v10389_v13 = vpop.eup %10388 }
 0x10d   :  { %v10391_v14 = vpop.eup %10390  ;;  %v9294_v15 = vpop.f32.mrb[12].mxu0  ;;  %v294_v16 = vpack.c.bf16 %v10389_v13, %v10385_v11 }
 0x10e   :  { %v252_v17 = vadd.f32 %v9294_v15, %v112_v44  ;;  %v243_v18 = vpop.f32.mrb[13].mxu0  ;;  %v293_v19 = vpack.c.bf16 %v10391_v14, %v10387_v12  ;;  %v57_v12 = vld [vmem:[%s15544_s1 + $0x40] sm:$0xff] }
 0x10f   :  { %v244_v20 = vadd.f32 %v243_v18, %v112_v44  ;;  %v9295_v21 = vpop.f32.mrb[14].mxu0  ;;  %v59_v18 = vld [vmem:[%s15544_s1 + $0x50] sm:$0xff] }
 0x110   :  { %10400 = vtanh.f32 %v252_v17  ;;  %v255_v22 = vadd.f32 %v9295_v21, %v112_v44  ;;  %v246_v23 = vpop.f32.mrb[15].mxu0  ;;  %9316 = vmatprep.mubr.bf16.mxu1 %v293_v19  ;;  %v58_v17 = vld [vmem:[%s15544_s1 + $0x48] sm:$0xff] }
 0x111   :  { %10402 = vtanh.f32 %v244_v20  ;;  %v247_v24 = vadd.f32 %v246_v23, %v112_v44  ;;  %9317 = vmatmul.mubr.bf16.gmra.mrb[4].mxu1 %v294_v16 }
 0x112   :  { %v10393_v25 = vpop.eup %10392  ;;  %10404 = vtanh.f32 %v255_v22  ;;  %v60_v22 = vld [vmem:[%s15544_s1 + $0x58] sm:$0xff] }
 0x113   :  { %v10395_v26 = vpop.eup %10394  ;;  %10406 = vtanh.f32 %v247_v24 }
 0x114   :  { %v10397_v27 = vpop.eup %10396 }
 0x115   :  { %v10399_v28 = vpop.eup %10398  ;;  %v296_v29 = vpack.c.bf16 %v10397_v27, %v10393_v25 }
 0x116   :  { %v295_v30 = vpack.c.bf16 %v10399_v28, %v10395_v26  ;;  %v61_v28 = vld [vmem:[%s15544_s1 + $0x60] sm:$0xff] }
 0x118   :  { %9320 = vmatprep.mubr.bf16.mxu1 %v295_v30 }
 0x119   :  { %9321 = vmatmul.mubr.bf16.gmra.mrb[8].mxu1 %v296_v29 }
 0x11a   :  { %v10401_v31 = vpop.eup %10400 }
 0x11b   :  { %v10403_v32 = vpop.eup %10402 }
 0x11c   :  { %v10405_v33 = vpop.eup %10404 }
 0x11d   :  { %v10407_v34 = vpop.eup %10406  ;;  %v298_v35 = vpack.c.bf16 %v10405_v33, %v10401_v31  ;;  %v62_v33 = vld [vmem:[%s15544_s1 + $0x68] sm:$0xff] }
 0x11e   :  { %v297_v36 = vpack.c.bf16 %v10407_v34, %v10403_v32  ;;  %v63_v34 = vld [vmem:[%s15544_s1 + $0x70] sm:$0xff] }
 0x120   :  { %9324 = vmatprep.mubr.bf16.mxu1 %v297_v36 }
 0x121   :  { %9325 = vmatmul.mubr.bf16.gmra.mrb[12].mxu1 %v298_v35 }
 0x1dc   :  { %v9314_v39 = vpop.f32.mrb[0].mxu1 }
 0x1dd   :  { %v394_v44 = vadd.f32 %v9314_v39, %v11396_v38  ;;  %v385_v45 = vpop.f32.mrb[1].mxu1 }
 0x1de   :  { %v386_v47 = vadd.f32 %v385_v45, %v11396_v38  ;;  %v9315_v48 = vpop.f32.mrb[2].mxu1 }
 0x1df   :  { %v397_v49 = vadd.f32 %v9315_v48, %v11396_v38  ;;  %v388_v50 = vpop.f32.mrb[3].mxu1  ;;  %v11407_v51 = vadd.f32 %v394_v44, %v51_v40  ;;  %v64_v40 = vld [vmem:[%s15544_s1 + $0x78] sm:$0xff] }
 0x1e0   :  { %v389_v52 = vadd.f32 %v388_v50, %v11396_v38  ;;  %v11410_v53 = vadd.f32 %v386_v47, %v49_v46  ;;  %v10262_v47 = vld [vmem:[%s15545_s5 + $0x4] ss:$12 sps:$4 sm:$0xff]   ;;  %v10266_v50 = vld [vmem:[%s15545_s5 + $0x8] ss:$12 sps:$4 sm:$0xff]  }
 0x1e1   :  { %468 = vadd.xlane.f32.xlu1 %v11407_v51  ;;  %v11420_v56 = vadd.f32 %v397_v49, %v52_v54  ;;  %v10263_v48 = vld [vmem:[%s15545_s5 + $0x18] ss:$12 sps:$4 sm:$0xff]   ;;  %v10265_v49 = vld [vmem:[%s15545_s5 + $0x1c] ss:$12 sps:$4 sm:$0xff]   ;;  %902 = vmatprep.subr.bf16.mxu0 %v10262_v47 }
 0x1e2   :  { %464 = vadd.xlane.f32.xlu0 %v11410_v53  ;;  %v11422_v58 = vadd.f32 %v389_v52, %v50_v55  ;;  %9328 = vmatprep.subr.bf16.mxu1 %v10266_v50  ;;  %v11526_v52 = vsub.s32 6, %v11379_v41 }
 0x1e3   :  { %9329 = vmatpush3.bf16.msra.mxu1 %v10266_v50 }
 0x1e4   :  { %v9318_v57 = vpop.f32.mrb[4].mxu1  ;;  %15635 = vst [vmem:[#allocation5_spill] sm:$0xff] %v11526_v52 }
 0x1e5   :  { %470 = vadd.xlane.f32.xlu1 %v11420_v56  ;;  %v401_v59 = vpop.f32.mrb[5].mxu1  ;;  %v410_v61 = vadd.f32 %v9318_v57, %v11396_v38 }
 0x1e6   :  { %v402_v62 = vadd.f32 %v401_v59, %v11396_v38  ;;  %v9319_v63 = vpop.f32.mrb[6].mxu1  ;;  %466 = vadd.xlane.f32.xlu0 %v11422_v58  ;;  %v11530_v59 = vrot.slane %v11387_v43, %v11526_v52  ;;  %v75_v52 = vld [vmem:[%s15546_s2 + $0x50] sm:$0xff] }
 0x1e7   :  { %v404_v0 = vpop.f32.mrb[7].mxu1  ;;  %v413_v3 = vadd.f32 %v9319_v63, %v11396_v38  ;;  %v11447_v8 = vadd.f32 %v410_v61, %v55_v2 }
 0x1e8   :  { %v405_v4 = vadd.f32 %v404_v0, %v11396_v38  ;;  %v11439_v5 = vadd.f32 %v402_v62, %v53_v60  ;;  %15636 = vst [vmem:[#allocation6_spill] sm:$0xff] %v11530_v59 }
 0x1e9   :  { %v11450_v10 = vadd.f32 %v413_v3, %v56_v6 }
 0x1ea   :  { %472 = vadd.xlane.f32.xlu0 %v11439_v5  ;;  %v11445_v7 = vadd.f32 %v405_v4, %v54_v1 }
 0x1ec   :  { %v9322_v9 = vpop.f32.mrb[8].mxu1  ;;  %474 = vadd.xlane.f32.xlu1 %v11445_v7 }
 0x1ed   :  { %v417_v11 = vpop.f32.mrb[9].mxu1  ;;  %v426_v13 = vadd.f32 %v9322_v9, %v11396_v38 }
 0x1ee   :  { %v418_v14 = vadd.f32 %v417_v11, %v11396_v38  ;;  %v9323_v15 = vpop.f32.mrb[10].mxu1  ;;  %476 = vadd.xlane.f32.xlu0 %v11447_v8 }
 0x1ef   :  { %v420_v16 = vpop.f32.mrb[11].mxu1  ;;  %v429_v19 = vadd.f32 %v9323_v15, %v11396_v38  ;;  %v11475_v24 = vadd.f32 %v426_v13, %v59_v18 }
 0x1f0   :  { %v421_v20 = vadd.f32 %v420_v16, %v11396_v38  ;;  %478 = vadd.xlane.f32.xlu1 %v11450_v10  ;;  %v11467_v21 = vadd.f32 %v418_v14, %v57_v12 }
 0x1f1   :  { %v11478_v26 = vadd.f32 %v429_v19, %v60_v22 }
 0x1f2   :  { %480 = vadd.xlane.f32.xlu0 %v11467_v21  ;;  %v11473_v23 = vadd.f32 %v421_v20, %v58_v17 }
 0x1f4   :  { %v9326_v25 = vpop.f32.mrb[12].mxu1  ;;  %482 = vadd.xlane.f32.xlu1 %v11473_v23 }
 0x1f5   :  { %v433_v27 = vpop.f32.mrb[13].mxu1  ;;  %v442_v29 = vadd.f32 %v9326_v25, %v11396_v38 }
 0x1f6   :  { %v434_v30 = vadd.f32 %v433_v27, %v11396_v38  ;;  %v9327_v31 = vpop.f32.mrb[14].mxu1  ;;  %484 = vadd.xlane.f32.xlu0 %v11475_v24 }
 0x1f7   :  { %v436_v32 = vpop.f32.mrb[15].mxu1  ;;  %v445_v35 = vadd.f32 %v9327_v31, %v11396_v38  ;;  %v11503_v45 = vadd.f32 %v442_v29, %v63_v34 }
 0x1f8   :  { %v437_v36 = vadd.f32 %v436_v32, %v11396_v38  ;;  %486 = vadd.xlane.f32.xlu1 %v11478_v26  ;;  %v11495_v39 = vadd.f32 %v434_v30, %v61_v28  ;;  %v10260_v38 = vld [vmem:[%s15545_s5] ss:$12 sps:$4 sm:$0xff]  }
 0x1f9   :  { %v11506_v46 = vadd.f32 %v445_v35, %v64_v40  ;;  %903 = vmatpush1.bf16.msra.mxu0 %v10260_v38 }
 0x1fa   :  { %488 = vadd.xlane.f32.xlu0 %v11495_v39  ;;  %v11501_v44 = vadd.f32 %v437_v36, %v62_v33  ;;  %904 = vmatprep.subr.bf16.mxu0 %v10265_v49 }
 0x1fc   :  { %490 = vadd.xlane.f32.xlu1 %v11501_v44 }
 0x1fd   :  { %905 = vmatpush1.bf16.msra.mxu0 %v10263_v48 }
 0x1fe   :  { %492 = vadd.xlane.f32.xlu0 %v11503_v45 }
 0x200   :  { %494 = vadd.xlane.f32.xlu1 %v11506_v46 }
 0x26e   :  { %v469_v54 = vpop.xlane.xlu1 %468 }
 0x26f   :  { %v498_v55 = vmul.f32 0.03125, %v469_v54  ;;  %v465_v57 = vpop.xlane.xlu0 %464 }
 0x270   :  { %v496_v60 = vmul.f32 0.03125, %v465_v57 }
 0x271   :  { %v514_v61 = vsub.f32 %v11407_v51, %v498_v55 }
 0x272   :  { %v512_v62 = vsub.f32 %v11410_v53, %v496_v60  ;;  %v471_v63 = vpop.xlane.xlu1 %470  ;;  %v10269_v60 = vld [vmem:[%s15545_s5 + $0x34] ss:$12 sps:$4 sm:$0xff]  }
 0x273   :  { %v499_v0 = vmul.f32 0.03125, %v471_v63  ;;  %v467_v1 = vpop.xlane.xlu0 %466  ;;  %v11542_v11 = vmul.f32 %v11530_v59, %v514_v61  ;;  %v10270_v61 = vld [vmem:[%s15545_s5 + $0x20] ss:$12 sps:$4 sm:$0xff]   ;;  %906 = vmatprep.subr.bf16.mxu0 %v10269_v60 }
 0x274   :  { %v497_v2 = vmul.f32 0.03125, %v467_v1  ;;  %v11535_v3 = vmul.f32 %v11530_v59, %v512_v62  ;;  %9330 = vmatprep.subr.bf16.mxu1 %v10270_v61 }
 0x275   :  { %v515_v4 = vsub.f32 %v11420_v56, %v499_v0  ;;  %v10267_v0 = vld [vmem:[%s15545_s5 + $0x30] ss:$12 sps:$4 sm:$0xff]   ;;  %9331 = vmatpush3.bf16.msra.mxu1 %v10270_v61 }
 0x276   :  { %v513_v6 = vsub.f32 %v11422_v58, %v497_v2  ;;  %v548_v9 = vmul.f32 %v11535_v3, %v11535_v3  ;;  %v550_v58 = vmul.f32 %v11542_v11, %v11542_v11  ;;  %907 = vmatpush1.bf16.msra.mxu0 %v10267_v0 }
 0x277   :  { %v473_v51 = vpop.xlane.xlu0 %472  ;;  %v11548_v14 = vmul.f32 %v11530_v59, %v515_v4 }
 0x278   :  { %v500_v12 = vmul.f32 0.03125, %v473_v51  ;;  %564 = vadd.xlane.f32.xlu0 %v548_v9  ;;  %v11545_v53 = vmul.f32 %v11530_v59, %v513_v6 }
 0x279   :  { %v475_v13 = vpop.xlane.xlu1 %474 }
 0x27a   :  { %v516_v56 = vsub.f32 %v11439_v5, %v500_v12  ;;  %v501_v15 = vmul.f32 0.03125, %v475_v13  ;;  %v549_v16 = vmul.f32 %v11545_v53, %v11545_v53  ;;  %v551_v5 = vmul.f32 %v11548_v14, %v11548_v14 }
 0x27b   :  { %v477_v17 = vpop.xlane.xlu0 %476 }
 0x27c   :  { %v517_v18 = vsub.f32 %v11445_v7, %v501_v15  ;;  %v502_v19 = vmul.f32 0.03125, %v477_v17  ;;  %568 = vadd.xlane.f32.xlu0 %v550_v58  ;;  %566 = vadd.xlane.f32.xlu1 %v549_v16  ;;  %v11557_v20 = vmul.f32 %v11530_v59, %v516_v56  ;;  %v10274_v15 = vld [vmem:[%s15545_s5 + $0x38] ss:$12 sps:$4 sm:$0xff]  }
 0x27d   :  { %v479_v22 = vpop.xlane.xlu1 %478  ;;  %9332 = vmatprep.subr.bf16.mxu1 %v10274_v15 }
 0x27e   :  { %v518_v25 = vsub.f32 %v11447_v8, %v502_v19  ;;  %v503_v27 = vmul.f32 0.03125, %v479_v22  ;;  %v552_v28 = vmul.f32 %v11557_v20, %v11557_v20  ;;  %v11565_v29 = vmul.f32 %v11530_v59, %v517_v18  ;;  %9333 = vmatpush3.bf16.msra.mxu1 %v10274_v15 }
 0x27f   :  { %v481_v7 = vpop.xlane.xlu0 %480 }
 0x280   :  { %v519_v30 = vsub.f32 %v11450_v10, %v503_v27  ;;  %v504_v31 = vmul.f32 0.03125, %v481_v7  ;;  %570 = vadd.xlane.f32.xlu1 %v551_v5  ;;  %572 = vadd.xlane.f32.xlu0 %v552_v28  ;;  %v11569_v32 = vmul.f32 %v11530_v59, %v518_v25  ;;  %v553_v8 = vmul.f32 %v11565_v29, %v11565_v29  ;;  %v10278_v27 = vld [vmem:[%s15545_s5 + $0x50] ss:$12 sps:$4 sm:$0xff]   ;;  %v10275_v28 = vld [vmem:[%s15545_s5 + $0x60] ss:$12 sps:$4 sm:$0xff]  }
 0x281   :  { %v483_v33 = vpop.xlane.xlu1 %482  ;;  %9334 = vmatprep.subr.bf16.mxu1 %v10278_v27 }
 0x282   :  { %v520_v34 = vsub.f32 %v11467_v21, %v504_v31  ;;  %v505_v35 = vmul.f32 0.03125, %v483_v33  ;;  %v554_v36 = vmul.f32 %v11569_v32, %v11569_v32  ;;  %v11577_v40 = vmul.f32 %v11530_v59, %v519_v30  ;;  %9335 = vmatpush3.bf16.msra.mxu1 %v10278_v27  ;;  %v10281_v31 = vld [vmem:[%s15545_s5 + $0x7c] ss:$12 sps:$4 sm:$0xff]  }
 0x283   :  { %v485_v10 = vpop.xlane.xlu0 %484  ;;  %v10282_v33 = vld [vmem:[%s15545_s5 + $0x68] ss:$12 sps:$4 sm:$0xff]  }
 0x284   :  { %v521_v38 = vsub.f32 %v11473_v23, %v505_v35  ;;  %v506_v47 = vmul.f32 0.03125, %v485_v10  ;;  %574 = vadd.xlane.f32.xlu1 %v553_v8  ;;  %576 = vadd.xlane.f32.xlu0 %v554_v36  ;;  %v11581_v48 = vmul.f32 %v11530_v59, %v520_v34  ;;  %v555_v21 = vmul.f32 %v11577_v40, %v11577_v40  ;;  %v10279_v8 = vld [vmem:[%s15545_s5 + $0x78] ss:$12 sps:$4 sm:$0xff]   ;;  %v10285_v35 = vld [vmem:[%s15545_s5 + $0x94] ss:$12 sps:$4 sm:$0xff]  }
 0x285   :  { %v487_v49 = vpop.xlane.xlu1 %486  ;;  %9336 = vmatprep.subr.bf16.mxu1 %v10282_v33  ;;  %v10286_v36 = vld [vmem:[%s15545_s5 + $0x80] ss:$12 sps:$4 sm:$0xff]   ;;  %v10283_v10 = vld [vmem:[%s15545_s5 + $0x90] ss:$12 sps:$4 sm:$0xff]  }
 0x286   :  { %v522_v50 = vsub.f32 %v11475_v24, %v506_v47  ;;  %v507_v54 = vmul.f32 0.03125, %v487_v49  ;;  %v556_v55 = vmul.f32 %v11581_v48, %v11581_v48  ;;  %v11589_v57 = vmul.f32 %v11530_v59, %v521_v38  ;;  %9337 = vmatpush3.bf16.msra.mxu1 %v10282_v33  ;;  %v10289_v38 = vld [vmem:[%s15545_s5 + $0xac] ss:$12 sps:$4 sm:$0xff]   ;;  %v10287_v49 = vld [vmem:[%s15545_s5 + $0xa8] ss:$12 sps:$4 sm:$0xff]  }
 0x287   :  { %v489_v23 = vpop.xlane.xlu0 %488  ;;  %9338 = vmatprep.subr.bf16.mxu1 %v10286_v36  ;;  %v10290_v47 = vld [vmem:[%s15545_s5 + $0x98] ss:$12 sps:$4 sm:$0xff]  }
 0x288   :  { %v523_v62 = vsub.f32 %v11478_v26, %v507_v54  ;;  %v508_v63 = vmul.f32 0.03125, %v489_v23  ;;  %578 = vadd.xlane.f32.xlu1 %v555_v21  ;;  %580 = vadd.xlane.f32.xlu0 %v556_v55  ;;  %v11599_v24 = vmul.f32 %v11530_v59, %v522_v50  ;;  %v557_v2 = vmul.f32 %v11589_v57, %v11589_v57  ;;  %v10291_v21 = vld [vmem:[%s15545_s5 + $0xb0] ss:$12 sps:$4 sm:$0xff]  }
 0x289   :  { %v491_v1 = vpop.xlane.xlu1 %490  ;;  %v15551_v50 = vmov 0  }
 0x28a   :  { %v524_v4 = vsub.f32 %v11495_v39, %v508_v63  ;;  %v509_v6 = vmul.f32 0.03125, %v491_v1  ;;  %v558_v26 = vmul.f32 %v11599_v24, %v11599_v24  ;;  %v11610_v9 = vmul.f32 %v11530_v59, %v523_v62  ;;  %v10273_v39 = vld [vmem:[%s15545_s5 + $0x4c] ss:$12 sps:$4 sm:$0xff]   ;;  %9339 = vmatpush3.bf16.msra.mxu1 %v10286_v36  ;;  %934 = vmatprep.mubr.bf16.mxu0 %v15551_v50 }
 0x28b   :  { %v493_v51 = vpop.xlane.xlu0 %492  ;;  %908 = vmatprep.subr.bf16.mxu0 %v10273_v39  ;;  %9340 = vmatprep.subr.bf16.mxu1 %v10290_v47 }
 0x28c   :  { %v525_v12 = vsub.f32 %v11501_v44, %v509_v6  ;;  %v510_v13 = vmul.f32 0.03125, %v493_v51  ;;  %582 = vadd.xlane.f32.xlu1 %v557_v2  ;;  %584 = vadd.xlane.f32.xlu0 %v558_v26  ;;  %v11614_v56 = vmul.f32 %v11530_v59, %v524_v4  ;;  %v559_v16 = vmul.f32 %v11610_v9, %v11610_v9  ;;  %v10271_v44 = vld [vmem:[%s15545_s5 + $0x48] ss:$12 sps:$4 sm:$0xff]  }
 0x28d   :  { %v495_v58 = vpop.xlane.xlu1 %494  ;;  %909 = vmatpush1.bf16.msra.mxu0 %v10271_v44 }
 0x28e   :  { %v526_v17 = vsub.f32 %v11503_v45, %v510_v13  ;;  %v511_v18 = vmul.f32 0.03125, %v495_v58  ;;  %v560_v19 = vmul.f32 %v11614_v56, %v11614_v56  ;;  %v11631_v22 = vmul.f32 %v11530_v59, %v525_v12  ;;  %v10277_v45 = vld [vmem:[%s15545_s5 + $0x64] ss:$12 sps:$4 sm:$0xff]   ;;  %9341 = vmatpush3.bf16.msra.mxu1 %v10290_v47 }
 0x28f   :  { %910 = vmatprep.subr.bf16.mxu0 %v10277_v45  ;;  %9342 = vmatprep.subr.bf16.mxu1 %v10291_v21  ;;  %v11687_v13 = vsub.s32 2, %v11379_v41 }
 0x290   :  { %v527_v5 = vsub.f32 %v11506_v46, %v511_v18  ;;  %586 = vadd.xlane.f32.xlu1 %v559_v16  ;;  %588 = vadd.xlane.f32.xlu0 %v560_v19  ;;  %v11635_v25 = vmul.f32 %v11530_v59, %v526_v17  ;;  %v561_v46 = vmul.f32 %v11631_v22, %v11631_v22 }
 0x291   :  { %911 = vmatpush1.bf16.msra.mxu0 %v10275_v28  ;;  %15637 = vst [vmem:[#allocation7_spill] sm:$0xff] %v11687_v13  ;;  %v11691_v19 = vrot.slane %v11387_v43, %v11687_v13  ;;  %v11695_v28 = vsub.s32 3, %v11379_v41 }
 0x292   :  { %v562_v7 = vmul.f32 %v11635_v25, %v11635_v25  ;;  %v11651_v30 = vmul.f32 %v11530_v59, %v527_v5  ;;  %912 = vmatprep.subr.bf16.mxu0 %v10281_v31  ;;  %9343 = vmatpush3.bf16.msra.mxu1 %v10291_v21  ;;  %v73_v59 = vld [vmem:[%s15546_s2 + $0x40] sm:$0xff] }
 0x293   :  { %15638 = vst [vmem:[#allocation8_spill] sm:$0xff] %v11695_v28 }
 0x294   :  { %590 = vadd.xlane.f32.xlu1 %v561_v46  ;;  %592 = vadd.xlane.f32.xlu0 %v562_v7  ;;  %v563_v34 = vmul.f32 %v11651_v30, %v11651_v30 }
 0x295   :  { %913 = vmatpush1.bf16.msra.mxu0 %v10279_v8 }
 0x296   :  { %914 = vmatprep.subr.bf16.mxu0 %v10285_v35 }
 0x298   :  { %594 = vadd.xlane.f32.xlu1 %v563_v34 }
 0x299   :  { %915 = vmatpush1.bf16.msra.mxu0 %v10283_v10 }
 0x29a   :  { %916 = vmatprep.subr.bf16.mxu0 %v10289_v38 }
 0x29d   :  { %917 = vmatpush1.bf16.msra.mxu0 %v10287_v49 }
 0x305   :  { %v565_v54 = vpop.xlane.xlu0 %564 }
 0x306   :  { %v596_v55 = vmul.f32 0.03125, %v565_v54 }
 0x308   :  { %v612_v23 = vadd.f32 1e-12, %v596_v55 }
 0x309   :  { %v567_v60 = vpop.xlane.xlu1 %566  ;;  %v569_v61 = vpop.xlane.xlu0 %568 }
 0x30a   :  { %10408 = vrsqrt.f32 %v612_v23  ;;  %v597_v62 = vmul.f32 0.03125, %v567_v60  ;;  %v598_v63 = vmul.f32 0.03125, %v569_v61 }
 0x30c   :  { %v613_v0 = vadd.f32 1e-12, %v597_v62  ;;  %v614_v1 = vadd.f32 1e-12, %v598_v63 }
 0x30d   :  { %v571_v2 = vpop.xlane.xlu1 %570  ;;  %v573_v4 = vpop.xlane.xlu0 %572 }
 0x30e   :  { %10410 = vrsqrt.f32 %v613_v0  ;;  %v599_v6 = vmul.f32 0.03125, %v571_v2  ;;  %v600_v26 = vmul.f32 0.03125, %v573_v4 }
 0x30f   :  { %10412 = vrsqrt.f32 %v614_v1 }
 0x310   :  { %v615_v51 = vadd.f32 1e-12, %v599_v6  ;;  %v616_v12 = vadd.f32 1e-12, %v600_v26 }
 0x311   :  { %v575_v39 = vpop.xlane.xlu1 %574  ;;  %v577_v15 = vpop.xlane.xlu0 %576 }
 0x312   :  { %10414 = vrsqrt.f32 %v615_v51  ;;  %v601_v58 = vmul.f32 0.03125, %v575_v39  ;;  %v602_v16 = vmul.f32 0.03125, %v577_v15 }
 0x313   :  { %10416 = vrsqrt.f32 %v616_v12 }
 0x314   :  { %v10409_v44 = vpop.eup %10408  ;;  %v617_v17 = vadd.f32 1e-12, %v601_v58  ;;  %v618_v18 = vadd.f32 1e-12, %v602_v16 }
 0x315   :  { %v644_v5 = vmul.f32 %v10409_v44, %v11535_v3  ;;  %v579_v45 = vpop.xlane.xlu1 %578  ;;  %v581_v27 = vpop.xlane.xlu0 %580  ;;  %v11701_v3 = vrot.slane %v11387_v43, %v11695_v28 }
 0x316   :  { %10418 = vrsqrt.f32 %v617_v17  ;;  %v603_v46 = vmul.f32 0.03125, %v579_v45  ;;  %v604_v7 = vmul.f32 0.03125, %v581_v27 }
 0x317   :  { %10420 = vrsqrt.f32 %v618_v18  ;;  %v664_v35 = vmul.f32 %v11691_v19, %v644_v5 }
 0x318   :  { %v10411_v31 = vpop.eup %10410  ;;  %v619_v33 = vadd.f32 1e-12, %v603_v46  ;;  %v620_v8 = vadd.f32 1e-12, %v604_v7 }
 0x319   :  { %v10413_v34 = vpop.eup %10412  ;;  %v645_v36 = vmul.f32 %v10411_v31, %v11545_v53  ;;  %v583_v10 = vpop.xlane.xlu1 %582  ;;  %v11708_v43 = vadd.f32 %v11701_v3, %v664_v35 }
 0x31a   :  { %v585_v38 = vpop.xlane.xlu0 %584  ;;  %v646_v47 = vmul.f32 %v10413_v34, %v11542_v11  ;;  %10422 = vrsqrt.f32 %v619_v33  ;;  %v605_v49 = vmul.f32 0.03125, %v583_v10 }
 0x31b   :  { %v606_v21 = vmul.f32 0.03125, %v585_v38  ;;  %v665_v54 = vmul.f32 %v11691_v19, %v645_v36  ;;  %10424 = vrsqrt.f32 %v620_v8  ;;  %15639 = vst [vmem:[#allocation9_spill] sm:$0xff] %v11708_v43 }
 0x31c   :  { %v10415_v55 = vpop.eup %10414  ;;  %v666_v23 = vmul.f32 %v11691_v19, %v646_v47  ;;  %v621_v60 = vadd.f32 1e-12, %v605_v49 }
 0x31d   :  { %v622_v61 = vadd.f32 1e-12, %v606_v21  ;;  %v10417_v53 = vpop.eup %10416  ;;  %v647_v62 = vmul.f32 %v10415_v55, %v11548_v14  ;;  %v587_v63 = vpop.xlane.xlu1 %586  ;;  %v11711_v11 = vadd.f32 %v11701_v3, %v665_v54 }
 0x31e   :  { %v589_v0 = vpop.xlane.xlu0 %588  ;;  %10426 = vrsqrt.f32 %v621_v60  ;;  %v607_v1 = vmul.f32 0.03125, %v587_v63  ;;  %v648_v26 = vmul.f32 %v10417_v53, %v11557_v20  ;;  %v11718_v39 = vadd.f32 %v11701_v3, %v666_v23 }
 0x31f   :  { %15640 = vst [vmem:[#allocation10_spill] sm:$0xff] %v11711_v11  ;;  %v608_v2 = vmul.f32 0.03125, %v589_v0  ;;  %v667_v4 = vmul.f32 %v11691_v19, %v647_v62  ;;  %10428 = vrsqrt.f32 %v622_v61  ;;  %v766_v6 = vpack.c.bf16 %v11711_v11, %v11708_v43 }
 0x320   :  { %v10419_v14 = vpop.eup %10418  ;;  %v623_v51 = vadd.f32 1e-12, %v607_v1  ;;  %15641 = vst [vmem:[#allocation11_spill] sm:$0xff] %v11718_v39  ;;  %v668_v18 = vmul.f32 %v11691_v19, %v648_v26 }
 0x321   :  { %v624_v12 = vadd.f32 1e-12, %v608_v2  ;;  %v10421_v15 = vpop.eup %10420  ;;  %v591_v58 = vpop.xlane.xlu1 %590  ;;  %935 = vmatmul.mubr.bf16.vlgmr.msra.gmra.mrb[16].mxu0 %v766_v6  ;;  %9344 = vmatprep.mubr.bf16.mxu1 %v766_v6  ;;  %v11721_v44 = vadd.f32 %v11701_v3, %v667_v4  ;;  %v649_v17 = vmul.f32 %v10419_v14, %v11565_v29 }
 0x322   :  { %v593_v16 = vpop.xlane.xlu0 %592  ;;  %10430 = vrsqrt.f32 %v623_v51  ;;  %v609_v20 = vmul.f32 0.03125, %v591_v58  ;;  %944 = vmatprep.mubr.bf16.mxu0 %v15551_v50  ;;  %v650_v45 = vmul.f32 %v10421_v15, %v11569_v32  ;;  %v11732_v35 = vadd.f32 %v11701_v3, %v668_v18 }
 0x323   :  { %15642 = vst [vmem:[#allocation12_spill] sm:$0xff] %v11721_v44  ;;  %v610_v5 = vmul.f32 0.03125, %v593_v16  ;;  %10432 = vrsqrt.f32 %v624_v12  ;;  %v767_v27 = vpack.c.bf16 %v11721_v44, %v11718_v39  ;;  %v669_v46 = vmul.f32 %v11691_v19, %v649_v17 }
 0x324   :  { %v10423_v7 = vpop.eup %10422  ;;  %v625_v31 = vadd.f32 1e-12, %v609_v20  ;;  %v670_v29 = vmul.f32 %v11691_v19, %v650_v45  ;;  %15643 = vst [vmem:[#allocation13_spill] sm:$0xff] %v11732_v35 }
 0x325   :  { %v626_v33 = vadd.f32 1e-12, %v610_v5  ;;  %v10425_v8 = vpop.eup %10424  ;;  %v595_v34 = vpop.xlane.xlu1 %594  ;;  %9345 = vmatmul.mubr.bf16.vlgmr.msra.gmra.mrb[16].mxu1 %v767_v27  ;;  %v11735_v36 = vadd.f32 %v11701_v3, %v669_v46  ;;  %v651_v32 = vmul.f32 %v10423_v7, %v11577_v40 }
 0x326   :  { %10434 = vrsqrt.f32 %v625_v31  ;;  %v611_v10 = vmul.f32 0.03125, %v595_v34  ;;  %v652_v38 = vmul.f32 %v10425_v8, %v11581_v48  ;;  %v11743_v55 = vadd.f32 %v11701_v3, %v670_v29 }
 0x327   :  { %15644 = vst [vmem:[#allocation14_spill] sm:$0xff] %v11735_v36  ;;  %10436 = vrsqrt.f32 %v626_v33  ;;  %v768_v47 = vpack.c.bf16 %v11735_v36, %v11732_v35  ;;  %v671_v49 = vmul.f32 %v11691_v19, %v651_v32  ;;  %v11176_v33 = vld [vmem:[%s15543_s4] sm:$0xff] }
 0x328   :  { %v10427_v21 = vpop.eup %10426  ;;  %v627_v54 = vadd.f32 1e-12, %v611_v10  ;;  %15645 = vst [vmem:[#allocation15_spill] sm:$0xff] %v11743_v55  ;;  %v672_v48 = vmul.f32 %v11691_v19, %v652_v38 }
 0x329   :  { %v10429_v23 = vpop.eup %10428  ;;  %945 = vmatmul.mubr.bf16.gmra.mrb[20].mxu0 %v767_v27  ;;  %9348 = vmatprep.mubr.bf16.mxu1 %v768_v47  ;;  %v11746_v40 = vadd.f32 %v11701_v3, %v671_v49  ;;  %v653_v60 = vmul.f32 %v10427_v21, %v11589_v57 }
 0x32a   :  { %10438 = vrsqrt.f32 %v627_v54  ;;  %954 = vmatprep.mubr.bf16.mxu0 %v15551_v50  ;;  %v654_v61 = vmul.f32 %v10429_v23, %v11599_v24  ;;  %v11757_v2 = vadd.f32 %v11701_v3, %v672_v48 }
 0x32b   :  { %15646 = vst [vmem:[#allocation16_spill] sm:$0xff] %v11746_v40  ;;  %v769_v53 = vpack.c.bf16 %v11746_v40, %v11743_v55  ;;  %v673_v62 = vmul.f32 %v11691_v19, %v653_v60  ;;  %v79_v55 = vld [vmem:[%s15546_s2 + $0x70] sm:$0xff] }
 0x32c   :  { %v10431_v63 = vpop.eup %10430  ;;  %v674_v0 = vmul.f32 %v11691_v19, %v654_v61  ;;  %15647 = vst [vmem:[#allocation17_spill] sm:$0xff] %v11757_v2 }
 0x32d   :  { %v10433_v1 = vpop.eup %10432  ;;  %9349 = vmatmul.mubr.bf16.gmra.mrb[20].mxu1 %v769_v53  ;;  %v11760_v57 = vadd.f32 %v11701_v3, %v673_v62  ;;  %v655_v4 = vmul.f32 %v10431_v63, %v11610_v9 }
 0x32e   :  { %v656_v24 = vmul.f32 %v10433_v1, %v11614_v56  ;;  %v11768_v51 = vadd.f32 %v11701_v3, %v674_v0 }
 0x32f   :  { %15648 = vst [vmem:[#allocation18_spill] sm:$0xff] %v11760_v57  ;;  %v770_v6 = vpack.c.bf16 %v11760_v57, %v11757_v2  ;;  %v675_v26 = vmul.f32 %v11691_v19, %v655_v4 }
 0x330   :  { %v10435_v14 = vpop.eup %10434  ;;  %15649 = vst [vmem:[#allocation19_spill] sm:$0xff] %v11768_v51  ;;  %v676_v9 = vmul.f32 %v11691_v19, %v656_v24 }
 0x331   :  { %v10437_v12 = vpop.eup %10436  ;;  %955 = vmatmul.mubr.bf16.gmra.mrb[24].mxu0 %v768_v47  ;;  %9352 = vmatprep.mubr.bf16.mxu1 %v770_v6  ;;  %v11771_v15 = vadd.f32 %v11701_v3, %v675_v26  ;;  %v657_v58 = vmul.f32 %v10435_v14, %v11631_v22 }
 0x332   :  { %964 = vmatprep.mubr.bf16.mxu0 %v15551_v50  ;;  %v658_v56 = vmul.f32 %v10437_v12, %v11635_v25  ;;  %v11781_v20 = vadd.f32 %v11701_v3, %v676_v9 }
 0x333   :  { %15650 = vst [vmem:[#allocation20_spill] sm:$0xff] %v11771_v15  ;;  %v771_v16 = vpack.c.bf16 %v11771_v15, %v11768_v51  ;;  %v677_v17 = vmul.f32 %v11691_v19, %v657_v58  ;;  %v74_v51 = vld [vmem:[%s15546_s2 + $0x48] sm:$0xff] }
 0x334   :  { %v10439_v18 = vpop.eup %10438  ;;  %15651 = vst [vmem:[#allocation21_spill] sm:$0xff] %v11781_v20  ;;  %v678_v45 = vmul.f32 %v11691_v19, %v658_v56 }
 0x335   :  { %9353 = vmatmul.mubr.bf16.gmra.mrb[24].mxu1 %v771_v16  ;;  %v11784_v5 = vadd.f32 %v11701_v3, %v677_v17  ;;  %v659_v22 = vmul.f32 %v10439_v18, %v11651_v30 }
 0x336   :  { %v11792_v46 = vadd.f32 %v11701_v3, %v678_v45 }
 0x337   :  { %15652 = vst [vmem:[#allocation22_spill] sm:$0xff] %v11784_v5  ;;  %v772_v25 = vpack.c.bf16 %v11784_v5, %v11781_v20  ;;  %v679_v27 = vmul.f32 %v11691_v19, %v659_v22  ;;  %v82_v19 = vld [vmem:[%s15543_s4 + $0x8] sm:$0xff]  ;;  %v76_v5 = vld [vmem:[%s15546_s2 + $0x58] sm:$0xff] }
 0x338   :  { %15653 = vst [vmem:[#allocation23_spill] sm:$0xff] %v11792_v46  ;;  %v11810_v31 = vrot.slane %v82_v19, %v11382_v42  ;;  %v11822_v21 = vrot.slane %v82_v19, %v11392_v37  ;;  %v12039_v37 = vld [vmem:[%s15546_s2 + $0x28] sm:$0xff] }
 0x339   :  { %965 = vmatmul.mubr.bf16.gmra.mrb[28].mxu0 %v769_v53  ;;  %9356 = vmatprep.mubr.bf16.mxu1 %v772_v25  ;;  %v11795_v7 = vadd.f32 %v11701_v3, %v679_v27  ;;  %v11807_v3 = vsub.s32 7, %v11379_v41 }
 0x33a   :  { %974 = vmatprep.mubr.bf16.mxu0 %v15551_v50 }
 0x33b   :  { %15654 = vst [vmem:[#allocation24_spill] sm:$0xff] %v11795_v7  ;;  %v773_v30 = vpack.c.bf16 %v11795_v7, %v11792_v46  ;;  %15655 = vst [vmem:[#allocation25_spill] sm:$0xff] %v11807_v3  ;;  %v11816_v29 = vrot.slane %v11176_v33, %v11807_v3 }
 0x33d   :  { %9357 = vmatmul.mubr.bf16.gmra.mrb[28].mxu1 %v773_v30 }
 0x341   :  { %975 = vmatmul.mubr.bf16.gmra.mrb[32].mxu0 %v770_v6 }
 0x342   :  { %984 = vmatprep.mubr.bf16.mxu0 %v15551_v50 }
 0x349   :  { %985 = vmatmul.mubr.bf16.gmra.mrb[36].mxu0 %v771_v16 }
 0x34a   :  { %994 = vmatprep.mubr.bf16.mxu0 %v15551_v50 }
 0x351   :  { %995 = vmatmul.mubr.bf16.gmra.mrb[40].mxu0 %v772_v25 }
 0x352   :  { %1004 = vmatprep.mubr.bf16.mxu0 %v15551_v50 }
 0x359   :  { %1005 = vmatmul.mubr.bf16.gmra.mrb[44].mxu0 %v773_v30 }
 0x3f4   :  { %v936_v8 = vpop.f32.mrb[16].mxu0 }
 0x3f5   :  { %v938_v34 = vpop.f32.mrb[17].mxu0  ;;  %v1116_v38 = vadd.f32 %v11816_v29, %v936_v8 }
 0x3f6   :  { %v1136_v32 = vadd.f32 %v11810_v31, %v938_v34  ;;  %v940_v10 = vpop.f32.mrb[18].mxu0 }
 0x3f7   :  { %v1117_v47 = vadd.f32 %v11816_v29, %v940_v10  ;;  %v942_v49 = vpop.f32.mrb[19].mxu0 }
 0x3f8   :  { %1172 = vxpose.xlu0.b32.start [1/16] (narrow) %v1136_v32, 32  ;;  %v9346_v54 = vpop.f32.mrb[16].mxu1  ;;  %v1137_v48 = vadd.f32 %v11810_v31, %v942_v49 }
 0x3f9   :  { %v11824_v23 = vpack.c.bf16 %v1117_v47, %v1116_v38  ;;  %v1049_v60 = vpop.f32.mrb[17].mxu1  ;;  %v1158_v53 = vadd.f32 %v9346_v54, %v11822_v21 }
 0x3fa   :  { %v9347_v61 = vpop.f32.mrb[18].mxu1  ;;  %v1156_v0 = vadd.f32 %v11822_v21, %v1049_v60 }
 0x3fb   :  { %v1159_v62 = vadd.f32 %v9347_v61, %v11822_v21  ;;  %1613 = vrot.lane.b32.xlu1 %v11824_v23, %s11230_s26  ;;  %v1052_v63 = vpop.f32.mrb[19].mxu1  ;;  %9362 = vmatprep.mubr.msk.bf16.mxu1 %vm1213_vm0, %v11824_v23 }
 0x3fc   :  { %v1157_v1 = vadd.f32 %v11822_v21, %v1052_v63  ;;  %1173 = vxpose.xlu0.b32.cont [2/16] (narrow) %v1137_v48, 32  ;;  %v946_v4 = vpop.f32.mrb[20].mxu0 }
 0x3fd   :  { %v11835_v24 = vpack.c.bf16 %v1159_v62, %v1158_v53  ;;  %v948_v6 = vpop.f32.mrb[21].mxu0  ;;  %v1118_v58 = vadd.f32 %v11816_v29, %v946_v4 }
 0x3fe   :  { %v11837_v26 = vpack.c.bf16 %v1157_v1, %v1156_v0  ;;  %v1138_v14 = vadd.f32 %v11810_v31, %v948_v6  ;;  %v950_v12 = vpop.f32.mrb[22].mxu0 }
 0x3ff   :  { %v1119_v9 = vadd.f32 %v11816_v29, %v950_v12  ;;  %v952_v56 = vpop.f32.mrb[23].mxu0 }
 0x400   :  { %9378 = vmatprep.subr.bf16.mxu0 %v11837_v26  ;;  %1174 = vxpose.xlu0.b32.cont [3/16] (narrow) %v1138_v14, 32  ;;  %v9350_v16 = vpop.f32.mrb[20].mxu1  ;;  %v1139_v22 = vadd.f32 %v11810_v31, %v952_v56 }
 0x401   :  { %v11843_v17 = vpack.c.bf16 %v1119_v9, %v1118_v58  ;;  %v1065_v18 = vpop.f32.mrb[21].mxu1  ;;  %9379 = vmatpush3.bf16.msra.mxu0 %v11837_v26  ;;  %v1162_v25 = vadd.f32 %v9350_v16, %v11822_v21 }
 0x402   :  { %v9351_v45 = vpop.f32.mrb[22].mxu1  ;;  %9380 = vmatprep.subr.bf16.mxu0 %v11835_v24  ;;  %v1160_v19 = vadd.f32 %v11822_v21, %v1065_v18 }
 0x403   :  { %v1163_v27 = vadd.f32 %v9351_v45, %v11822_v21  ;;  %1615 = vrot.lane.b32.xlu1 %v11843_v17, %s11230_s26  ;;  %v1068_v30 = vpop.f32.mrb[23].mxu1 }
 0x404   :  { %v1161_v33 = vadd.f32 %v11822_v21, %v1068_v30  ;;  %1175 = vxpose.xlu0.b32.cont [4/16] (narrow) %v1139_v22, 32  ;;  %v956_v8 = vpop.f32.mrb[24].mxu0 }
 0x405   :  { %v11854_v34 = vpack.c.bf16 %v1163_v27, %v1162_v25  ;;  %v958_v32 = vpop.f32.mrb[25].mxu0  ;;  %9381 = vmatpush3.bf16.msra.mxu0 %v11835_v24  ;;  %v1120_v49 = vadd.f32 %v11816_v29, %v956_v8 }
 0x406   :  { %v11857_v10 = vpack.c.bf16 %v1161_v33, %v1160_v19  ;;  %v1140_v38 = vadd.f32 %v11810_v31, %v958_v32  ;;  %v960_v47 = vpop.f32.mrb[26].mxu0 }
 0x407   :  { %15656 = vst [vmem:[#allocation26_spill] sm:$0xff] %v11854_v34  ;;  %v1121_v54 = vadd.f32 %v11816_v29, %v960_v47  ;;  %v962_v60 = vpop.f32.mrb[27].mxu0 }
 0x408   :  { %15657 = vst [vmem:[#allocation27_spill] sm:$0xff] %v11857_v10  ;;  %1176 = vxpose.xlu0.b32.cont [5/16] (narrow) %v1140_v38, 32  ;;  %v9354_v48 = vpop.f32.mrb[24].mxu1  ;;  %9382 = vmatprep.subr.bf16.mxu0 %v11857_v10  ;;  %v1141_v62 = vadd.f32 %v11810_v31, %v962_v60 }
 0x409   :  { %v11863_v61 = vpack.c.bf16 %v1121_v54, %v1120_v49  ;;  %v1081_v53 = vpop.f32.mrb[25].mxu1  ;;  %9383 = vmatpush3.bf16.msra.mxu0 %v11857_v10  ;;  %v1166_v0 = vadd.f32 %v9354_v48, %v11822_v21 }
 0x40a   :  { %v9355_v63 = vpop.f32.mrb[26].mxu1  ;;  %9384 = vmatprep.subr.bf16.mxu0 %v11854_v34  ;;  %v1164_v6 = vadd.f32 %v11822_v21, %v1081_v53 }
 0x40b   :  { %v1167_v1 = vadd.f32 %v9355_v63, %v11822_v21  ;;  %1617 = vrot.lane.b32.xlu1 %v11863_v61, %s11230_s26  ;;  %v1084_v4 = vpop.f32.mrb[27].mxu1 }
 0x40c   :  { %v1165_v14 = vadd.f32 %v11822_v21, %v1084_v4  ;;  %1177 = vxpose.xlu0.b32.cont [6/16] (narrow) %v1141_v62, 32  ;;  %v966_v12 = vpop.f32.mrb[28].mxu0 }
 0x40d   :  { %v11874_v58 = vpack.c.bf16 %v1167_v1, %v1166_v0  ;;  %v968_v9 = vpop.f32.mrb[29].mxu0  ;;  %9385 = vmatpush3.bf16.msra.mxu0 %v11854_v34  ;;  %v1122_v22 = vadd.f32 %v11816_v29, %v966_v12 }
 0x40e   :  { %v11877_v56 = vpack.c.bf16 %v1165_v14, %v1164_v6  ;;  %v1142_v16 = vadd.f32 %v11810_v31, %v968_v9  ;;  %v970_v18 = vpop.f32.mrb[30].mxu0 }
 0x40f   :  { %15658 = vst [vmem:[#allocation28_spill] sm:$0xff] %v11874_v58  ;;  %v1123_v45 = vadd.f32 %v11816_v29, %v970_v18  ;;  %v972_v25 = vpop.f32.mrb[31].mxu0 }
 0x410   :  { %15659 = vst [vmem:[#allocation29_spill] sm:$0xff] %v11877_v56  ;;  %1178 = vxpose.xlu0.b32.cont [7/16] (narrow) %v1142_v16, 32  ;;  %v9358_v27 = vpop.f32.mrb[28].mxu1  ;;  %9386 = vmatprep.subr.bf16.mxu0 %v11877_v56  ;;  %v1143_v33 = vadd.f32 %v11810_v31, %v972_v25 }
 0x411   :  { %v11883_v30 = vpack.c.bf16 %v1123_v45, %v1122_v22  ;;  %v1097_v19 = vpop.f32.mrb[29].mxu1  ;;  %9387 = vmatpush3.bf16.msra.mxu0 %v11877_v56  ;;  %v1170_v32 = vadd.f32 %v9358_v27, %v11822_v21 }
 0x412   :  { %v9359_v8 = vpop.f32.mrb[30].mxu1  ;;  %9388 = vmatprep.subr.bf16.mxu0 %v11874_v58  ;;  %v1168_v49 = vadd.f32 %v11822_v21, %v1097_v19 }
 0x413   :  { %v1171_v38 = vadd.f32 %v9359_v8, %v11822_v21  ;;  %1619 = vrot.lane.b32.xlu1 %v11883_v30, %s11230_s26  ;;  %v1100_v47 = vpop.f32.mrb[31].mxu1 }
 0x414   :  { %v1169_v54 = vadd.f32 %v11822_v21, %v1100_v47  ;;  %1179 = vxpose.xlu0.b32.cont [8/16] (narrow) %v1143_v33, 32  ;;  %v976_v60 = vpop.f32.mrb[32].mxu0 }
 0x415   :  { %v11894_v48 = vpack.c.bf16 %v1171_v38, %v1170_v32  ;;  %v978_v53 = vpop.f32.mrb[33].mxu0  ;;  %9389 = vmatpush3.bf16.msra.mxu0 %v11874_v58  ;;  %v1124_v1 = vadd.f32 %v11816_v29, %v976_v60 }
 0x416   :  { %v11897_v62 = vpack.c.bf16 %v1169_v54, %v1168_v49  ;;  %v1144_v63 = vadd.f32 %v11810_v31, %v978_v53  ;;  %v980_v0 = vpop.f32.mrb[34].mxu0 }
 0x417   :  { %v1125_v4 = vadd.f32 %v11816_v29, %v980_v0  ;;  %v982_v6 = vpop.f32.mrb[35].mxu0 }
 0x418   :  { %15660 = vst [vmem:[#allocation30_spill] sm:$0xff] %v11897_v62  ;;  %1180 = vxpose.xlu0.b32.cont [9/16] (narrow) %v1144_v63, 32  ;;  %9390 = vmatprep.subr.bf16.mxu0 %v11897_v62  ;;  %v1145_v14 = vadd.f32 %v11810_v31, %v982_v6 }
 0x419   :  { %v11903_v21 = vpack.c.bf16 %v1125_v4, %v1124_v1  ;;  %9391 = vmatpush3.bf16.msra.mxu0 %v11897_v62 }
 0x41a   :  { %9392 = vmatprep.subr.bf16.mxu0 %v11894_v48 }
 0x41b   :  { %1621 = vrot.lane.b32.xlu1 %v11903_v21, %s11230_s26 }
 0x41c   :  { %1181 = vxpose.xlu0.b32.cont [10/16] (narrow) %v1145_v14, 32  ;;  %v986_v12 = vpop.f32.mrb[36].mxu0 }
 0x41d   :  { %v988_v9 = vpop.f32.mrb[37].mxu0  ;;  %9393 = vmatpush3.bf16.msra.mxu0 %v11894_v48  ;;  %v1126_v22 = vadd.f32 %v11816_v29, %v986_v12 }
 0x41e   :  { %v1146_v16 = vadd.f32 %v11810_v31, %v988_v9  ;;  %v990_v18 = vpop.f32.mrb[38].mxu0 }
 0x41f   :  { %v1127_v45 = vadd.f32 %v11816_v29, %v990_v18  ;;  %v992_v25 = vpop.f32.mrb[39].mxu0 }
 0x420   :  { %1182 = vxpose.xlu0.b32.cont [11/16] (narrow) %v1146_v16, 32  ;;  %v1147_v19 = vadd.f32 %v11810_v31, %v992_v25 }
 0x421   :  { %v11914_v27 = vpack.c.bf16 %v1127_v45, %v1126_v22 }
 0x423   :  { %1623 = vrot.lane.b32.xlu1 %v11914_v27, %s11230_s26 }
 0x424   :  { %1183 = vxpose.xlu0.b32.cont [12/16] (narrow) %v1147_v19, 32  ;;  %v996_v33 = vpop.f32.mrb[40].mxu0 }
 0x425   :  { %v998_v8 = vpop.f32.mrb[41].mxu0  ;;  %v1128_v47 = vadd.f32 %v11816_v29, %v996_v33 }
 0x426   :  { %v1148_v32 = vadd.f32 %v11810_v31, %v998_v8  ;;  %v1000_v38 = vpop.f32.mrb[42].mxu0 }
 0x427   :  { %v1129_v49 = vadd.f32 %v11816_v29, %v1000_v38  ;;  %v1002_v54 = vpop.f32.mrb[43].mxu0 }
 0x428   :  { %1184 = vxpose.xlu0.b32.cont [13/16] (narrow) %v1148_v32, 32  ;;  %v1149_v53 = vadd.f32 %v11810_v31, %v1002_v54 }
 0x429   :  { %v11922_v60 = vpack.c.bf16 %v1129_v49, %v1128_v47 }
 0x42b   :  { %1625 = vrot.lane.b32.xlu1 %v11922_v60, %s11230_s26 }
 0x42c   :  { %1185 = vxpose.xlu0.b32.cont [14/16] (narrow) %v1149_v53, 32  ;;  %v1006_v63 = vpop.f32.mrb[44].mxu0 }
 0x42d   :  { %v1008_v0 = vpop.f32.mrb[45].mxu0  ;;  %v1130_v6 = vadd.f32 %v11816_v29, %v1006_v63 }
 0x42e   :  { %v1150_v1 = vadd.f32 %v11810_v31, %v1008_v0  ;;  %v1010_v4 = vpop.f32.mrb[46].mxu0 }
 0x42f   :  { %v1131_v14 = vadd.f32 %v11816_v29, %v1010_v4  ;;  %v1012_v12 = vpop.f32.mrb[47].mxu0 }
 0x430   :  { %1186 = vxpose.xlu0.b32.cont [15/16] (narrow) %v1150_v1, 32  ;;  %v1151_v16 = vadd.f32 %v11810_v31, %v1012_v12  ;;  %v11983_v1 = vld [vmem:[%s15546_s2 + $0x10] sm:$0xff]  ;;  %v11991_v12 = vld [vmem:[%s15546_s2] sm:$0xff] }
 0x431   :  { %v11930_v9 = vpack.c.bf16 %v1131_v14, %v1130_v6 }
 0x433   :  { %1627 = vrot.lane.b32.xlu1 %v11930_v9, %s11230_s26 }
 0x434   :  { %1187 = vxpose.xlu0.b32.end [16/16] (narrow) %v1151_v16, 32 }
 0x437   :  { %1915 = vrot.lane.b32.xlu1 %v11835_v24, %s11230_s26 }
 0x43b   :  { %1921 = vrot.lane.b32.xlu1 %v11877_v56, %s11230_s26 }
 0x43f   :  { %1923 = vrot.lane.b32.xlu1 %v11874_v58, %s11230_s26 }
 0x45d   :  { %1913 = vrot.lane.b32.xlu0 %v11837_v26, %s11230_s26 }
 0x461   :  { %1917 = vrot.lane.b32.xlu0 %v11857_v10, %s11230_s26 }
 0x465   :  { %1919 = vrot.lane.b32.xlu0 %v11854_v34, %s11230_s26 }
 0x46d   :  { %v1614_v19 = vpop.permute.xlu1 %1613 }
 0x475   :  { %v1616_v33 = vpop.permute.xlu1 %1615 }
 0x478   :  { %v1188_v31 = vpop.trf.xlu0 }
 0x479   :  { %v1212_v29 = vpack.c.bf16 %v1188_v31, %v1188_v31 }
 0x47b   :  { %10224 = vmatprep.subr.msk.bf16.mxu1 %vm1238_vm1, %v1212_v29  ;;  %v1240_v18 = vsel %vm1238_vm1, %v1212_v29, 0 }
 0x47c   :  { %9361 = vmatpush3.bf16.msra.mxu1 %v1240_v18  ;;  %v1189_v22 = vpop.trf.xlu0  ;;  %v12000_v18 = vld [vmem:[%s15546_s2 + $0x18] sm:$0xff] }
 0x47d   :  { %v1604_v45 = vpack.c.bf16 %v1189_v22, %v1189_v22  ;;  %v1618_v8 = vpop.permute.xlu1 %1617 }
 0x47f   :  { %9363 = vmatmul.mubr.msk.bf16.vlgmr.msra.gmra.mrb[32].mxu1 %vm1213_vm0, %v11843_v17  ;;  %10225 = vmatprep.subr.msk.bf16.mxu1 %vm1238_vm1, %v1604_v45  ;;  %v1654_v25 = vsel %vm1238_vm1, %v1604_v45, 0  ;;  %v12006_v45 = vld [vmem:[%s15546_s2 + $0x38] sm:$0xff] }
 0x480   :  { %9366 = vmatprep.mubr.msk.bf16.mxu1 %vm1213_vm0, %v11863_v61  ;;  %9411 = vmatpush3.bf16.msra.mxu1 %v1654_v25  ;;  %v11973_v53 = vpop.trf.xlu0 }
 0x481   :  { %15661 = vst [vmem:[#allocation31_spill] sm:$0xff] %v11973_v53 }
 0x484   :  { %v11975_v63 = vpop.trf.xlu0 }
 0x485   :  { %v1620_v32 = vpop.permute.xlu1 %1619  ;;  %15662 = vst [vmem:[#allocation32_spill] sm:$0xff] %v11975_v63 }
 0x487   :  { %9367 = vmatmul.mubr.msk.bf16.gmra.mrb[36].mxu1 %vm1213_vm0, %v11883_v30 }
 0x488   :  { %9370 = vmatprep.mubr.msk.bf16.mxu1 %vm1213_vm0, %v11903_v21 }
 0x48d   :  { %v1622_v38 = vpop.permute.xlu1 %1621 }
 0x48f   :  { %9371 = vmatmul.mubr.msk.bf16.gmra.mrb[40].mxu1 %vm1213_vm0, %v11914_v27 }
 0x490   :  { %9374 = vmatprep.mubr.msk.bf16.mxu1 %vm1213_vm0, %v11922_v60 }
 0x495   :  { %v1624_v47 = vpop.permute.xlu1 %1623 }
 0x497   :  { %9375 = vmatmul.mubr.msk.bf16.gmra.mrb[44].mxu1 %vm1213_vm0, %v11930_v9 }
 0x498   :  { %9412 = vmatprep.mubr.msk.bf16.mxu1 %vm1213_vm0, %v1614_v19 }
 0x49d   :  { %v1626_v49 = vpop.permute.xlu1 %1625 }
 0x49f   :  { %9413 = vmatmul.mubr.msk.bf16.vlgmr.msra.gmra.mrb[48].mxu1 %vm1213_vm0, %v1616_v33  ;;  %v12014_v33 = vld [vmem:[%s15546_s2 + $0x8] sm:$0xff] }
 0x4a0   :  { %9416 = vmatprep.mubr.msk.bf16.mxu1 %vm1213_vm0, %v1618_v8 }
 0x4a5   :  { %v1628_v54 = vpop.permute.xlu1 %1627 }
 0x4a7   :  { %9417 = vmatmul.mubr.msk.bf16.gmra.mrb[52].mxu1 %vm1213_vm0, %v1620_v32 }
 0x4a8   :  { %9420 = vmatprep.mubr.msk.bf16.mxu1 %vm1213_vm0, %v1622_v38 }
 0x4af   :  { %9421 = vmatmul.mubr.msk.bf16.gmra.mrb[56].mxu1 %vm1213_vm0, %v1624_v47 }
 0x4b0   :  { %9424 = vmatprep.mubr.msk.bf16.mxu1 %vm1213_vm0, %v1626_v49  ;;  %v71_v49 = vld [vmem:[%s15546_s2 + $0x30] sm:$0xff] }
 0x4b7   :  { %9425 = vmatmul.mubr.msk.bf16.gmra.mrb[60].mxu1 %vm1213_vm0, %v1628_v54 }
 0x4cf   :  { %v11977_v0 = vpop.permute.xlu0 %1913 }
 0x4d0   :  { %9428 = vmatprep.subr.bf16.mxu0 %v11977_v0 }
 0x552   :  { %v9364_v4 = vpop.f32.mrb[32].mxu1 }
 0x553   :  { %v11986_v6 = vadd.f32 %v9364_v4, %v11983_v1  ;;  %v1276_v14 = vpop.f32.mrb[33].mxu1 }
 0x554   :  { %v9365_v16 = vpop.f32.mrb[34].mxu1  ;;  %v11995_v29 = vadd.f32 %v1276_v14, %v11991_v12 }
 0x555   :  { %1343 = vmax.xlane.f32.xlu1 %v11986_v6  ;;  %v1279_v31 = vpop.f32.mrb[35].mxu1  ;;  %v12009_v25 = vadd.f32 %v9365_v16, %v12000_v18  ;;  %v69_v16 = vld [vmem:[%s15546_s2 + $0x20] sm:$0xff] }
 0x556   :  { %v12021_v47 = vadd.f32 %v1279_v31, %v12014_v33 }
 0x559   :  { %1339 = vmax.xlane.f32.xlu1 %v11995_v29 }
 0x55a   :  { %v9368_v22 = vpop.f32.mrb[36].mxu1 }
 0x55b   :  { %v1292_v19 = vpop.f32.mrb[37].mxu1  ;;  %v12028_v4 = vadd.f32 %v9368_v22, %v71_v49 }
 0x55c   :  { %v9369_v8 = vpop.f32.mrb[38].mxu1  ;;  %v12034_v31 = vadd.f32 %v1292_v19, %v69_v16 }
 0x55d   :  { %v12017_v32 = vadd.f32 %v9369_v8, %v12006_v45  ;;  %v1295_v38 = vpop.f32.mrb[39].mxu1  ;;  %1345 = vmax.xlane.f32.xlu1 %v12009_v25 }
 0x55e   :  { %v12043_v42 = vadd.f32 %v1295_v38, %v12039_v37 }
 0x55f   :  { %1353 = vmax.xlane.f32.xlu0 %v12017_v32 }
 0x561   :  { %1341 = vmax.xlane.f32.xlu1 %v12021_v47 }
 0x562   :  { %v9372_v54 = vpop.f32.mrb[40].mxu1 }
 0x563   :  { %v1308_v14 = vpop.f32.mrb[41].mxu1  ;;  %v12049_v19 = vadd.f32 %v9372_v54, %v75_v52 }
 0x564   :  { %v9373_v8 = vpop.f32.mrb[42].mxu1  ;;  %v12055_v38 = vadd.f32 %v1308_v14, %v73_v59 }
 0x565   :  { %v1311_v50 = vpop.f32.mrb[43].mxu1  ;;  %1351 = vmax.xlane.f32.xlu1 %v12028_v4  ;;  %v12061_v54 = vadd.f32 %v9373_v8, %v76_v5 }
 0x566   :  { %v12067_v14 = vadd.f32 %v1311_v50, %v74_v51  ;;  %v77_v50 = vld [vmem:[%s15546_s2 + $0x60] sm:$0xff] }
 0x569   :  { %1347 = vmax.xlane.f32.xlu1 %v12034_v31 }
 0x56a   :  { %v9376_v22 = vpop.f32.mrb[44].mxu1 }
 0x56b   :  { %v1324_v3 = vpop.f32.mrb[45].mxu1  ;;  %v12076_v35 = vadd.f32 %v9376_v22, %v79_v55  ;;  %v80_v22 = vld [vmem:[%s15546_s2 + $0x78] sm:$0xff] }
 0x56c   :  { %v9377_v41 = vpop.f32.mrb[46].mxu1 }
 0x56d   :  { %v1327_v28 = vpop.f32.mrb[47].mxu1  ;;  %1349 = vmax.xlane.f32.xlu1 %v12043_v42  ;;  %v12094_v43 = vadd.f32 %v9377_v41, %v80_v22 }
 0x571   :  { %1359 = vmax.xlane.f32.xlu1 %v12049_v19 }
 0x572   :  { %v9414_v7 = vpop.f32.mrb[48].mxu1 }
 0x573   :  { %v1690_v46 = vpop.f32.mrb[49].mxu1 }
 0x574   :  { %v9415_v20 = vpop.f32.mrb[50].mxu1 }
 0x575   :  { %1355 = vmax.xlane.f32.xlu1 %v12055_v38  ;;  %v1693_v15 = vpop.f32.mrb[51].mxu1 }
 0x579   :  { %1361 = vmax.xlane.f32.xlu1 %v12061_v54 }
 0x57a   :  { %v9418_v57 = vpop.f32.mrb[52].mxu1 }
 0x57b   :  { %v12069_v2 = vadd.f32 %v9418_v57, %v71_v49  ;;  %v1706_v40 = vpop.f32.mrb[53].mxu1  ;;  %v12085_v49 = vadd.f32 %v1324_v3, %v77_v50 }
 0x57c   :  { %v9419_v36 = vpop.f32.mrb[54].mxu1  ;;  %v12078_v44 = vadd.f32 %v1706_v40, %v69_v16 }
 0x57d   :  { %1357 = vmax.xlane.f32.xlu1 %v12067_v14  ;;  %1765 = vmax.xlane.f32.xlu0 %v12069_v2  ;;  %v1709_v8 = vpop.f32.mrb[55].mxu1 }
 0x581   :  { %1367 = vmax.xlane.f32.xlu1 %v12076_v35  ;;  %1761 = vmax.xlane.f32.xlu0 %v12078_v44 }
 0x582   :  { %v9422_v57 = vpop.f32.mrb[56].mxu1 }
 0x583   :  { %v12087_v39 = vadd.f32 %v9422_v57, %v75_v52  ;;  %v1722_v11 = vpop.f32.mrb[57].mxu1  ;;  %v78_v52 = vld [vmem:[%s15546_s2 + $0x68] sm:$0xff] }
 0x584   :  { %v9423_v40 = vpop.f32.mrb[58].mxu1  ;;  %v12096_v13 = vadd.f32 %v1722_v11, %v73_v59  ;;  %v12103_v57 = vadd.f32 %v1327_v28, %v78_v52  ;;  %v12110_v59 = vadd.f32 %v9414_v7, %v11983_v1  ;;  %v12117_v28 = vadd.f32 %v1690_v46, %v11991_v12  ;;  %v12154_v12 = vpop.permute.xlu0 %1917 }
 0x585   :  { %1363 = vmax.xlane.f32.xlu1 %v12085_v49  ;;  %v1725_v16 = vpop.f32.mrb[59].mxu1  ;;  %1773 = vmax.xlane.f32.xlu0 %v12087_v39  ;;  %v12129_v7 = vadd.f32 %v9419_v36, %v12006_v45  ;;  %v12133_v46 = vadd.f32 %v1709_v8, %v12039_v37  ;;  %v12148_v37 = vpop.permute.xlu1 %1915 }
 0x588   :  { %v12158_v8 = vpop.permute.xlu0 %1919 }
 0x589   :  { %1369 = vmax.xlane.f32.xlu1 %v12094_v43  ;;  %1769 = vmax.xlane.f32.xlu0 %v12096_v13  ;;  %v12150_v1 = vpop.permute.xlu1 %1921 }
 0x58a   :  { %v9426_v3 = vpop.f32.mrb[60].mxu1 }
 0x58b   :  { %v12105_v63 = vadd.f32 %v9426_v3, %v79_v55  ;;  %v1738_v58 = vpop.f32.mrb[61].mxu1  ;;  %v12121_v55 = vadd.f32 %v9415_v20, %v12000_v18  ;;  %v12125_v3 = vadd.f32 %v1693_v15, %v12014_v33  ;;  %v12139_v20 = vadd.f32 %v1725_v16, %v74_v51 }
 0x58c   :  { %v9427_v34 = vpop.f32.mrb[62].mxu1  ;;  %v12112_v11 = vadd.f32 %v1738_v58, %v77_v50  ;;  %v12136_v58 = vadd.f32 %v9423_v40, %v76_v5 }
 0x58d   :  { %1365 = vmax.xlane.f32.xlu1 %v12103_v57  ;;  %v1741_v41 = vpop.f32.mrb[63].mxu1  ;;  %1781 = vmax.xlane.f32.xlu0 %v12105_v63  ;;  %v12142_v15 = vadd.f32 %v9427_v34, %v80_v22  ;;  %v12152_v5 = vpop.permute.xlu1 %1923 }
 0x58e   :  { %v12145_v36 = vadd.f32 %v1741_v41, %v78_v52 }
 0x591   :  { %1757 = vmax.xlane.f32.xlu1 %v12110_v59  ;;  %1777 = vmax.xlane.f32.xlu0 %v12112_v11 }
 0x595   :  { %1753 = vmax.xlane.f32.xlu1 %v12117_v28 }
 0x599   :  { %1759 = vmax.xlane.f32.xlu1 %v12121_v55 }
 0x59d   :  { %1755 = vmax.xlane.f32.xlu1 %v12125_v3 }
 0x5a1   :  { %1767 = vmax.xlane.f32.xlu1 %v12129_v7 }
 0x5a5   :  { %1763 = vmax.xlane.f32.xlu1 %v12133_v46 }
 0x5a9   :  { %1775 = vmax.xlane.f32.xlu1 %v12136_v58 }
 0x5ad   :  { %1771 = vmax.xlane.f32.xlu1 %v12139_v20 }
 0x5b1   :  { %1783 = vmax.xlane.f32.xlu1 %v12142_v15 }
 0x5b5   :  { %1779 = vmax.xlane.f32.xlu1 %v12145_v36 }
 0x5e2   :  { %v1344_v51 = vpop.xlane.xlu1 %1343 }
 0x5e3   :  { %v1373_v18 = vsub.f32 %v11986_v6, %v1344_v51 }
 0x5e5   :  { %v1391_v45 = vmul.f32 1.442695, %v1373_v18 }
 0x5e6   :  { %v1340_v34 = vpop.xlane.xlu1 %1339 }
 0x5e7   :  { %10440 = vpow2.f32 %v1391_v45  ;;  %v1371_v33 = vsub.f32 %v11995_v29, %v1340_v34 }
 0x5e9   :  { %v1387_v50 = vmul.f32 1.442695, %v1371_v33 }
 0x5ea   :  { %v1346_v22 = vpop.xlane.xlu1 %1345 }
 0x5eb   :  { %10442 = vpow2.f32 %v1387_v50  ;;  %v1374_v40 = vsub.f32 %v12009_v25, %v1346_v22 }
 0x5ec   :  { %v1354_v16 = vpop.xlane.xlu0 %1353 }
 0x5ed   :  { %v1393_v52 = vmul.f32 1.442695, %v1374_v40  ;;  %v1378_v41 = vsub.f32 %v12017_v32, %v1354_v16 }
 0x5ee   :  { %v1342_v10 = vpop.xlane.xlu1 %1341 }
 0x5ef   :  { %10444 = vpow2.f32 %v1393_v52  ;;  %v1372_v6 = vsub.f32 %v12021_v47, %v1342_v10  ;;  %v1401_v45 = vmul.f32 1.442695, %v1378_v41 }
 0x5f1   :  { %v12163_v51 = vpop.eup %10440  ;;  %v1389_v18 = vmul.f32 1.442695, %v1372_v6 }
 0x5f2   :  { %v1352_v29 = vpop.xlane.xlu1 %1351  ;;  %1423 = vadd.xlane.f32.xlu0 %v12163_v51 }
 0x5f3   :  { %10446 = vpow2.f32 %v1389_v18  ;;  %v1377_v34 = vsub.f32 %v12028_v4, %v1352_v29 }
 0x5f4   :  { %10448 = vpow2.f32 %v1401_v45 }
 0x5f5   :  { %v12167_v33 = vpop.eup %10442  ;;  %v1399_v25 = vmul.f32 1.442695, %v1377_v34 }
 0x5f6   :  { %v1348_v50 = vpop.xlane.xlu1 %1347  ;;  %1419 = vadd.xlane.f32.xlu0 %v12167_v33 }
 0x5f7   :  { %10450 = vpow2.f32 %v1399_v25  ;;  %v1375_v10 = vsub.f32 %v12034_v31, %v1348_v50 }
 0x5f9   :  { %v12171_v32 = vpop.eup %10444  ;;  %v1395_v47 = vmul.f32 1.442695, %v1375_v10 }
 0x5fa   :  { %v1350_v22 = vpop.xlane.xlu1 %1349  ;;  %1425 = vadd.xlane.f32.xlu1 %v12171_v32 }
 0x5fb   :  { %10452 = vpow2.f32 %v1395_v47  ;;  %v1376_v40 = vsub.f32 %v12043_v42, %v1350_v22 }
 0x5fd   :  { %v12175_v4 = vpop.eup %10446  ;;  %v1397_v16 = vmul.f32 1.442695, %v1376_v40 }
 0x5fe   :  { %v1360_v52 = vpop.xlane.xlu1 %1359  ;;  %1421 = vadd.xlane.f32.xlu1 %v12175_v4  ;;  %v12179_v6 = vpop.eup %10448 }
 0x5ff   :  { %10454 = vpow2.f32 %v1397_v16  ;;  %v1381_v41 = vsub.f32 %v12049_v19, %v1360_v52 }
 0x601   :  { %v12181_v31 = vpop.eup %10450  ;;  %v1407_v18 = vmul.f32 1.442695, %v1381_v41 }
 0x602   :  { %v1356_v45 = vpop.xlane.xlu1 %1355  ;;  %1431 = vadd.xlane.f32.xlu0 %v12181_v31  ;;  %1433 = vadd.xlane.f32.xlu1 %v12179_v6 }
 0x603   :  { %10456 = vpow2.f32 %v1407_v18  ;;  %v1379_v42 = vsub.f32 %v12055_v38, %v1356_v45 }
 0x605   :  { %v12186_v29 = vpop.eup %10452  ;;  %v1403_v34 = vmul.f32 1.442695, %v1379_v42 }
 0x606   :  { %v1362_v25 = vpop.xlane.xlu1 %1361  ;;  %1427 = vadd.xlane.f32.xlu0 %v12186_v29 }
 0x607   :  { %10458 = vpow2.f32 %v1403_v34  ;;  %v1382_v19 = vsub.f32 %v12061_v54, %v1362_v25 }
 0x609   :  { %v12190_v50 = vpop.eup %10454  ;;  %v1409_v10 = vmul.f32 1.442695, %v1382_v19 }
 0x60a   :  { %v1358_v47 = vpop.xlane.xlu1 %1357  ;;  %1429 = vadd.xlane.f32.xlu1 %v12190_v50 }
 0x60b   :  { %10460 = vpow2.f32 %v1409_v10  ;;  %v1380_v22 = vsub.f32 %v12067_v14, %v1358_v47 }
 0x60d   :  { %v12194_v40 = vpop.eup %10456  ;;  %v1405_v38 = vmul.f32 1.442695, %v1380_v22 }
 0x60e   :  { %v1368_v16 = vpop.xlane.xlu1 %1367  ;;  %1439 = vadd.xlane.f32.xlu0 %v12194_v40 }
 0x60f   :  { %10462 = vpow2.f32 %v1405_v38  ;;  %v1385_v52 = vsub.f32 %v12076_v35, %v1368_v16  ;;  %v1766_v38 = vpop.xlane.xlu0 %1765 }
 0x611   :  { %v12198_v41 = vpop.eup %10458  ;;  %v1415_v54 = vmul.f32 1.442695, %v1385_v52 }
 0x612   :  { %v1364_v18 = vpop.xlane.xlu1 %1363  ;;  %1435 = vadd.xlane.f32.xlu0 %v12198_v41 }
 0x613   :  { %10464 = vpow2.f32 %v1415_v54  ;;  %v1383_v45 = vsub.f32 %v12085_v49, %v1364_v18 }
 0x615   :  { %v12202_v42 = vpop.eup %10460  ;;  %v1411_v14 = vmul.f32 1.442695, %v1383_v45 }
 0x616   :  { %v1370_v34 = vpop.xlane.xlu1 %1369  ;;  %1441 = vadd.xlane.f32.xlu1 %v12202_v42 }
 0x617   :  { %10466 = vpow2.f32 %v1411_v14  ;;  %v1386_v25 = vsub.f32 %v12094_v43, %v1370_v34 }
 0x619   :  { %v12206_v19 = vpop.eup %10462  ;;  %v1417_v35 = vmul.f32 1.442695, %v1386_v25 }
 0x61a   :  { %v1366_v10 = vpop.xlane.xlu1 %1365  ;;  %1437 = vadd.xlane.f32.xlu1 %v12206_v19 }
 0x61b   :  { %10468 = vpow2.f32 %v1417_v35  ;;  %v1384_v47 = vsub.f32 %v12103_v57, %v1366_v10  ;;  %v1762_v57 = vpop.xlane.xlu0 %1761 }
 0x61d   :  { %v12210_v22 = vpop.eup %10464  ;;  %v1413_v49 = vmul.f32 1.442695, %v1384_v47 }
 0x61e   :  { %v1758_v16 = vpop.xlane.xlu1 %1757  ;;  %1447 = vadd.xlane.f32.xlu0 %v12210_v22 }
 0x61f   :  { %10470 = vpow2.f32 %v1413_v49  ;;  %v1787_v52 = vsub.f32 %v12110_v59, %v1758_v16  ;;  %v1774_v47 = vpop.xlane.xlu0 %1773 }
 0x621   :  { %v12214_v43 = vpop.eup %10466  ;;  %v1805_v54 = vmul.f32 1.442695, %v1787_v52 }
 0x622   :  { %1443 = vadd.xlane.f32.xlu0 %v12214_v43  ;;  %v1754_v18 = vpop.xlane.xlu1 %1753 }
 0x623   :  { %10472 = vpow2.f32 %v1805_v54  ;;  %v1785_v45 = vsub.f32 %v12117_v28, %v1754_v18  ;;  %v1770_v18 = vpop.xlane.xlu0 %1769 }
 0x625   :  { %v12218_v14 = vpop.eup %10468  ;;  %v1801_v34 = vmul.f32 1.442695, %v1785_v45 }
 0x626   :  { %v1760_v25 = vpop.xlane.xlu1 %1759  ;;  %1449 = vadd.xlane.f32.xlu1 %v12218_v14 }
 0x627   :  { %10474 = vpow2.f32 %v1801_v34  ;;  %v1788_v35 = vsub.f32 %v12121_v55, %v1760_v25 }
 0x629   :  { %v12222_v59 = vpop.eup %10470  ;;  %v1807_v10 = vmul.f32 1.442695, %v1788_v35 }
 0x62a   :  { %v1756_v49 = vpop.xlane.xlu1 %1755  ;;  %1445 = vadd.xlane.f32.xlu1 %v12222_v59 }
 0x62b   :  { %10476 = vpow2.f32 %v1807_v10  ;;  %v1786_v28 = vsub.f32 %v12125_v3, %v1756_v49  ;;  %v1782_v10 = vpop.xlane.xlu0 %1781 }
 0x62d   :  { %v12226_v16 = vpop.eup %10472  ;;  %v1803_v52 = vmul.f32 1.442695, %v1786_v28 }
 0x62e   :  { %15663 = vst [vmem:[#allocation33_spill] sm:$0xff] %v12226_v16  ;;  %v1768_v54 = vpop.xlane.xlu1 %1767  ;;  %1837 = vadd.xlane.f32.xlu1 %v12226_v16 }
 0x62f   :  { %10478 = vpow2.f32 %v1803_v52  ;;  %v1799_v52 = vsub.f32 %v12105_v63, %v1782_v10  ;;  %v1789_v63 = vsub.f32 %v12078_v44, %v1762_v57  ;;  %v1793_v57 = vsub.f32 %v12096_v13, %v1770_v18 }
 0x631   :  { %v12229_v45 = vpop.eup %10474 }
 0x632   :  { %v1764_v55 = vpop.xlane.xlu1 %1763  ;;  %1833 = vadd.xlane.f32.xlu1 %v12229_v45 }
 0x633   :  { %v1790_v34 = vsub.f32 %v12133_v46, %v1764_v55  ;;  %v1778_v55 = vpop.xlane.xlu0 %1777 }
 0x634   :  { %v1797_v16 = vsub.f32 %v12112_v11, %v1778_v55 }
 0x635   :  { %v12233_v25 = vpop.eup %10476  ;;  %v1811_v35 = vmul.f32 1.442695, %v1790_v34  ;;  %v1829_v34 = vmul.f32 1.442695, %v1799_v52 }
 0x636   :  { %15664 = vst [vmem:[#allocation34_spill] sm:$0xff] %v12233_v25  ;;  %v1776_v3 = vpop.xlane.xlu1 %1775  ;;  %1839 = vadd.xlane.f32.xlu1 %v12233_v25 }
 0x637   :  { %10480 = vpow2.f32 %v1811_v35  ;;  %v1825_v35 = vmul.f32 1.442695, %v1797_v16  ;;  %v1795_v16 = vsub.f32 %v12087_v39, %v1774_v47 }
 0x638   :  { %1925 = vrot.lane.b32.xlu0 %v11897_v62, %s11230_s26  ;;  %v1791_v62 = vsub.f32 %v12069_v2, %v1766_v38 }
 0x639   :  { %v12238_v49 = vpop.eup %10478 }
 0x63a   :  { %v1772_v28 = vpop.xlane.xlu1 %1771  ;;  %1835 = vadd.xlane.f32.xlu1 %v12238_v49  ;;  %v1813_v25 = vmul.f32 1.442695, %v1791_v62  ;;  %v1821_v62 = vmul.f32 1.442695, %v1795_v16 }
 0x63b   :  { %v1794_v46 = vsub.f32 %v12139_v20, %v1772_v28  ;;  %v1809_v20 = vmul.f32 1.442695, %v1789_v63 }
 0x63d   :  { %v1819_v56 = vmul.f32 1.442695, %v1794_v46 }
 0x63e   :  { %v1784_v44 = vpop.xlane.xlu1 %1783 }
 0x63f   :  { %10482 = vpow2.f32 %v1819_v56  ;;  %v1792_v56 = vsub.f32 %v12129_v7, %v1768_v54  ;;  %v1817_v7 = vmul.f32 1.442695, %v1793_v57  ;;  %v1796_v54 = vsub.f32 %v12136_v58, %v1776_v3 }
 0x640   :  { %10484 = vpow2.f32 %v1829_v34  ;;  %v1800_v13 = vsub.f32 %v12142_v15, %v1784_v44 }
 0x641   :  { %v12244_v53 = vpop.eup %10480  ;;  %10486 = vpow2.f32 %v1825_v35  ;;  %v1815_v2 = vmul.f32 1.442695, %v1792_v56  ;;  %v1823_v47 = vmul.f32 1.442695, %v1796_v54 }
 0x642   :  { %1843 = vadd.xlane.f32.xlu1 %v12244_v53  ;;  %10488 = vpow2.f32 %v1813_v25  ;;  %v1780_v28 = vpop.xlane.xlu1 %1779  ;;  %v1831_v58 = vmul.f32 1.442695, %v1800_v13 }
 0x643   :  { %10490 = vpow2.f32 %v1809_v20  ;;  %v1798_v52 = vsub.f32 %v12145_v36, %v1780_v28 }
 0x644   :  { %10492 = vpow2.f32 %v1815_v2 }
 0x645   :  { %10494 = vpow2.f32 %v1821_v62  ;;  %v1827_v18 = vmul.f32 1.442695, %v1798_v52 }
 0x646   :  { %10496 = vpow2.f32 %v1817_v7 }
 0x647   :  { %10498 = vpow2.f32 %v1823_v47 }
 0x648   :  { %10500 = vpow2.f32 %v1827_v18 }
 0x649   :  { %v12249_v10 = vpop.eup %10482  ;;  %10502 = vpow2.f32 %v1831_v58 }
 0x64a   :  { %1851 = vadd.xlane.f32.xlu1 %v12249_v10  ;;  %v12253_v11 = vpop.eup %10484 }
 0x64b   :  { %v12257_v38 = vpop.eup %10486 }
 0x64c   :  { %v12261_v25 = vpop.eup %10488 }
 0x64d   :  { %v12265_v39 = vpop.eup %10490 }
 0x64e   :  { %1861 = vadd.xlane.f32.xlu1 %v12253_v11  ;;  %v12269_v46 = vpop.eup %10492 }
 0x64f   :  { %v12273_v55 = vpop.eup %10494 }
 0x650   :  { %v12278_v3 = vpop.eup %10496 }
 0x651   :  { %v12283_v15 = vpop.eup %10498 }
 0x652   :  { %1857 = vadd.xlane.f32.xlu1 %v12257_v38  ;;  %v12288_v36 = vpop.eup %10500 }
 0x653   :  { %v12293_v34 = vpop.eup %10502 }
 0x657   :  { %1845 = vadd.xlane.f32.xlu0 %v12261_v25 }
 0x65b   :  { %1841 = vadd.xlane.f32.xlu0 %v12265_v39 }
 0x65f   :  { %1847 = vadd.xlane.f32.xlu0 %v12269_v46 }
 0x663   :  { %1853 = vadd.xlane.f32.xlu0 %v12273_v55  ;;  %1927 = vrot.lane.b32.xlu1 %v11894_v48, %s11230_s26 }
 0x667   :  { %1849 = vadd.xlane.f32.xlu0 %v12278_v3  ;;  %2296 = vrot.lane.b32.xlu1 %v11843_v17, %s11231_s15 }
 0x66b   :  { %1855 = vadd.xlane.f32.xlu0 %v12283_v15  ;;  %2298 = vrot.lane.b32.xlu1 %v11863_v61, %s11231_s15 }
 0x66f   :  { %1859 = vadd.xlane.f32.xlu0 %v12288_v36  ;;  %2302 = vrot.lane.b32.xlu1 %v11903_v21, %s11231_s15 }
 0x673   :  { %1863 = vadd.xlane.f32.xlu0 %v12293_v34  ;;  %2306 = vrot.lane.b32.xlu1 %v11922_v60, %s11231_s15 }
 0x677   :  { %2588 = vrot.lane.b32.xlu1 %v11835_v24, %s11231_s15 }
 0x67f   :  { %v1424_v35 = vpop.xlane.xlu0 %1423 }
 0x683   :  { %v1420_v63 = vpop.xlane.xlu0 %1419 }
 0x687   :  { %v1426_v20 = vpop.xlane.xlu1 %1425 }
 0x688   :  { %10504 = vrcp.f32 %v1426_v20 }
 0x689   :  { %2294 = vrot.lane.b32.xlu0 %v11824_v23, %s11231_s15  ;;  %10506 = vrcp.f32 %v1420_v63 }
 0x68a   :  { %10508 = vrcp.f32 %v1424_v35 }
 0x68b   :  { %v1422_v56 = vpop.xlane.xlu1 %1421 }
 0x68c   :  { %10510 = vrcp.f32 %v1422_v56 }
 0x68d   :  { %2300 = vrot.lane.b32.xlu0 %v11883_v30, %s11231_s15 }
 0x68f   :  { %v1432_v16 = vpop.xlane.xlu0 %1431  ;;  %v1434_v2 = vpop.xlane.xlu1 %1433 }
 0x690   :  { %10512 = vrcp.f32 %v1434_v2 }
 0x691   :  { %2304 = vrot.lane.b32.xlu0 %v11914_v27, %s11231_s15  ;;  %10514 = vrcp.f32 %v1432_v16 }
 0x692   :  { %v10505_v44 = vpop.eup %10504 }
 0x693   :  { %v1428_v62 = vpop.xlane.xlu0 %1427  ;;  %v10507_v57 = vpop.eup %10506  ;;  %v1470_v28 = vmul.f32 %v10505_v44, %v12171_v32 }
 0x694   :  { %v10509_v7 = vpop.eup %10508  ;;  %10516 = vrcp.f32 %v1428_v62  ;;  %v1467_v52 = vmul.f32 %v10507_v57, %v12167_v33 }
 0x695   :  { %2308 = vrot.lane.b32.xlu0 %v11930_v9, %s11231_s15  ;;  %v1469_v18 = vmul.f32 %v10509_v7, %v12163_v51 }
 0x696   :  { %v10511_v54 = vpop.eup %10510 }
 0x697   :  { %v1430_v47 = vpop.xlane.xlu1 %1429  ;;  %v1468_v13 = vmul.f32 %v10511_v54, %v12175_v4  ;;  %v1484_v35 = vpack.c.bf16 %v1470_v28, %v1469_v18 }
 0x698   :  { %10518 = vrcp.f32 %v1430_v47 }
 0x699   :  { %2586 = vrot.lane.b32.xlu0 %v11837_v26, %s11231_s15  ;;  %v1483_v58 = vpack.c.bf16 %v1468_v13, %v1467_v52 }
 0x69a   :  { %v10513_v32 = vpop.eup %10512 }
 0x69b   :  { %9394 = vmatprep.mubr.bf16.mxu0 %v1483_v58  ;;  %v1440_v63 = vpop.xlane.xlu0 %1439  ;;  %v10515_v20 = vpop.eup %10514  ;;  %v1474_v56 = vmul.f32 %v10513_v32, %v12179_v6 }
 0x69c   :  { %9395 = vmatmul.mubr.bf16.vlgmr.msra.gmra.mrb[48].mxu0 %v1484_v35  ;;  %v1473_v51 = vmul.f32 %v10515_v20, %v12181_v31 }
 0x69d   :  { %9429 = vmatpush3.bf16.msra.mxu0 %v11977_v0 }
 0x69e   :  { %9430 = vmatprep.subr.bf16.mxu0 %v12148_v37  ;;  %v10517_v33 = vpop.eup %10516 }
 0x69f   :  { %v1436_v16 = vpop.xlane.xlu0 %1435  ;;  %v1471_v44 = vmul.f32 %v10517_v33, %v12186_v29 }
 0x6a1   :  { %9431 = vmatpush3.bf16.msra.mxu0 %v12148_v37  ;;  %v1486_v37 = vpack.c.bf16 %v1474_v56, %v1473_v51 }
 0x6a2   :  { %v10519_v4 = vpop.eup %10518  ;;  %9432 = vmatprep.subr.bf16.mxu0 %v12154_v12 }
 0x6a3   :  { %v1442_v2 = vpop.xlane.xlu1 %1441  ;;  %v1472_v0 = vmul.f32 %v10519_v4, %v12190_v50 }
 0x6a4   :  { %10520 = vrcp.f32 %v1442_v2 }
 0x6a5   :  { %9433 = vmatpush3.bf16.msra.mxu0 %v12154_v12  ;;  %v1485_v62 = vpack.c.bf16 %v1472_v0, %v1471_v44  ;;  %10522 = vrcp.f32 %v1436_v16 }
 0x6a6   :  { %9434 = vmatprep.subr.bf16.mxu0 %v12158_v8  ;;  %10524 = vrcp.f32 %v1440_v63 }
 0x6a7   :  { %v1438_v57 = vpop.xlane.xlu1 %1437  ;;  %9398 = vmatprep.mubr.bf16.mxu0 %v1485_v62 }
 0x6a8   :  { %10526 = vrcp.f32 %v1438_v57  ;;  %9399 = vmatmul.mubr.bf16.gmra.mrb[52].mxu0 %v1486_v37 }
 0x6a9   :  { %9435 = vmatpush3.bf16.msra.mxu0 %v12158_v8 }
 0x6aa   :  { %9436 = vmatprep.subr.bf16.mxu0 %v12150_v1 }
 0x6ab   :  { %v1448_v6 = vpop.xlane.xlu0 %1447 }
 0x6ad   :  { %9437 = vmatpush3.bf16.msra.mxu0 %v12150_v1 }
 0x6ae   :  { %9438 = vmatprep.subr.bf16.mxu0 %v12152_v5  ;;  %v10521_v12 = vpop.eup %10520 }
 0x6af   :  { %v1444_v31 = vpop.xlane.xlu0 %1443  ;;  %v10523_v29 = vpop.eup %10522  ;;  %v1478_v54 = vmul.f32 %v10521_v12, %v12202_v42  ;;  %v15665_v12 = vld [vmem:[#allocation34_spill] sm:$0xff] }
 0x6b0   :  { %v10525_v50 = vpop.eup %10524  ;;  %v1475_v8 = vmul.f32 %v10523_v29, %v12198_v41 }
 0x6b1   :  { %9439 = vmatpush3.bf16.msra.mxu0 %v12152_v5  ;;  %v1477_v1 = vmul.f32 %v10525_v50, %v12194_v40  ;;  %v15666_v50 = vld [vmem:[#allocation31_spill] sm:$0xff] }
 0x6b2   :  { %v10527_v7 = vpop.eup %10526 }
 0x6b3   :  { %v1450_v28 = vpop.xlane.xlu1 %1449  ;;  %v1926_v47 = vpop.permute.xlu0 %1925  ;;  %v1476_v52 = vmul.f32 %v10527_v7, %v12206_v19  ;;  %v1488_v18 = vpack.c.bf16 %v1478_v54, %v1477_v1  ;;  %v2293_v7 = vpack.c.bf16 %v15666_v50, %v15666_v50  ;;  %v15667_v54 = vld [vmem:[#allocation33_spill] sm:$0xff] }
 0x6b4   :  { %9440 = vmatprep.subr.bf16.mxu0 %v1926_v47  ;;  %10528 = vrcp.f32 %v1450_v28 }
 0x6b5   :  { %9441 = vmatpush3.bf16.msra.mxu0 %v1926_v47  ;;  %v1487_v13 = vpack.c.bf16 %v1476_v52, %v1475_v8  ;;  %10530 = vrcp.f32 %v1444_v31  ;;  %v2335_v8 = vsel %vm1238_vm1, %v2293_v7, 0 }
 0x6b6   :  { %10532 = vrcp.f32 %v1448_v6 }
 0x6b7   :  { %v1446_v58 = vpop.xlane.xlu1 %1445  ;;  %9402 = vmatprep.mubr.bf16.mxu0 %v1487_v13 }
 0x6b8   :  { %10534 = vrcp.f32 %v1446_v58  ;;  %9403 = vmatmul.mubr.bf16.gmra.mrb[56].mxu0 %v1488_v18 }
 0x6bb   :  { %v1838_v5 = vpop.xlane.xlu1 %1837 }
 0x6be   :  { %v10529_v42 = vpop.eup %10528 }
 0x6bf   :  { %v1834_v35 = vpop.xlane.xlu1 %1833  ;;  %v10531_v63 = vpop.eup %10530  ;;  %v1482_v19 = vmul.f32 %v10529_v42, %v12218_v14 }
 0x6c0   :  { %v10533_v41 = vpop.eup %10532  ;;  %v1479_v40 = vmul.f32 %v10531_v63, %v12214_v43  ;;  %10536 = vrcp.f32 %v1834_v35 }
 0x6c1   :  { %v1481_v4 = vmul.f32 %v10533_v41, %v12210_v22 }
 0x6c2   :  { %v10535_v32 = vpop.eup %10534 }
 0x6c3   :  { %v1840_v20 = vpop.xlane.xlu1 %1839  ;;  %v1480_v33 = vmul.f32 %v10535_v32, %v12222_v59  ;;  %v1490_v56 = vpack.c.bf16 %v1482_v19, %v1481_v4 }
 0x6c5   :  { %v1489_v51 = vpack.c.bf16 %v1480_v33, %v1479_v40 }
 0x6c7   :  { %v1836_v16 = vpop.xlane.xlu1 %1835  ;;  %9406 = vmatprep.mubr.bf16.mxu0 %v1489_v51 }
 0x6c8   :  { %10538 = vrcp.f32 %v1836_v16  ;;  %9407 = vmatmul.mubr.bf16.gmra.mrb[60].mxu0 %v1490_v56 }
 0x6c9   :  { %10540 = vrcp.f32 %v1840_v20 }
 0x6ca   :  { %v10537_v2 = vpop.eup %10536  ;;  %10542 = vrcp.f32 %v1838_v5 }
 0x6cb   :  { %v1881_v62 = vmul.f32 %v10537_v2, %v12229_v45 }
 0x6cf   :  { %v1844_v0 = vpop.xlane.xlu1 %1843 }
 0x6d0   :  { %10544 = vrcp.f32 %v1844_v0 }
 0x6d2   :  { %v10539_v44 = vpop.eup %10538 }
 0x6d3   :  { %v1882_v14 = vmul.f32 %v10539_v44, %v12238_v49  ;;  %v10541_v37 = vpop.eup %10540 }
 0x6d4   :  { %v10543_v6 = vpop.eup %10542  ;;  %v1884_v31 = vmul.f32 %v10541_v37, %v15665_v12 }
 0x6d5   :  { %v1897_v43 = vpack.c.bf16 %v1882_v14, %v1881_v62  ;;  %v1883_v28 = vmul.f32 %v10543_v6, %v15667_v54 }
 0x6d7   :  { %v1852_v59 = vpop.xlane.xlu1 %1851  ;;  %9444 = vmatprep.mubr.bf16.mxu0 %v1897_v43  ;;  %v1898_v49 = vpack.c.bf16 %v1884_v31, %v1883_v28 }
 0x6da   :  { %v10545_v13 = vpop.eup %10544 }
 0x6db   :  { %v1862_v22 = vpop.xlane.xlu1 %1861  ;;  %v1886_v42 = vmul.f32 %v10545_v13, %v12244_v53 }
 0x6df   :  { %v1858_v57 = vpop.xlane.xlu1 %1857 }
 0x6e3   :  { %v1928_v29 = vpop.permute.xlu1 %1927 }
 0x6e4   :  { %9442 = vmatprep.subr.bf16.mxu0 %v1928_v29  ;;  %v1846_v45 = vpop.xlane.xlu0 %1845 }
 0x6e5   :  { %9443 = vmatpush3.bf16.msra.mxu0 %v1928_v29 }
 0x6e6   :  { %10228 = vmatprep.subr.msk.bf16.mxu0 %vm1238_vm1, %v2293_v7 }
 0x6e7   :  { %v2297_v2 = vpop.permute.xlu1 %2296 }
 0x6e8   :  { %9445 = vmatmul.mubr.bf16.vlgmr.msra.gmra.mrb[64].mxu0 %v1898_v49  ;;  %v1842_v47 = vpop.xlane.xlu0 %1841 }
 0x6e9   :  { %10546 = vrcp.f32 %v1842_v47  ;;  %9497 = vmatpush3.bf16.msra.mxu0 %v2335_v8 }
 0x6ea   :  { %10548 = vrcp.f32 %v1846_v45 }
 0x6ec   :  { %v1848_v52 = vpop.xlane.xlu0 %1847 }
 0x6ed   :  { %10550 = vrcp.f32 %v1848_v52 }
 0x6ee   :  { %10552 = vrcp.f32 %v1852_v59 }
 0x6f0   :  { %v1854_v1 = vpop.xlane.xlu0 %1853 }
 0x6f3   :  { %v10547_v18 = vpop.eup %10546 }
 0x6f4   :  { %v1850_v58 = vpop.xlane.xlu0 %1849  ;;  %v1885_v5 = vmul.f32 %v10547_v18, %v12265_v39  ;;  %v10549_v35 = vpop.eup %10548 }
 0x6f5   :  { %10554 = vrcp.f32 %v1850_v58  ;;  %v1887_v19 = vmul.f32 %v10549_v35, %v12261_v25 }
 0x6f6   :  { %v1899_v63 = vpack.c.bf16 %v1886_v42, %v1885_v5  ;;  %10556 = vrcp.f32 %v1854_v1 }
 0x6f7   :  { %v10551_v41 = vpop.eup %10550 }
 0x6f8   :  { %9448 = vmatprep.mubr.bf16.mxu0 %v1899_v63  ;;  %v1856_v32 = vpop.xlane.xlu0 %1855  ;;  %v1888_v20 = vmul.f32 %v10551_v41, %v12269_v46  ;;  %v10553_v4 = vpop.eup %10552 }
 0x6f9   :  { %10558 = vrcp.f32 %v1856_v32  ;;  %v1890_v56 = vmul.f32 %v10553_v4, %v12249_v10 }
 0x6fa   :  { %v1900_v40 = vpack.c.bf16 %v1888_v20, %v1887_v19  ;;  %10560 = vrcp.f32 %v1858_v57 }
 0x6fc   :  { %9449 = vmatmul.mubr.bf16.gmra.mrb[68].mxu0 %v1900_v40  ;;  %v1860_v33 = vpop.xlane.xlu0 %1859 }
 0x6fd   :  { %10562 = vrcp.f32 %v1860_v33 }
 0x6fe   :  { %10564 = vrcp.f32 %v1862_v22  ;;  %v2299_v22 = vpop.permute.xlu1 %2298 }
 0x6ff   :  { %v10555_v39 = vpop.eup %10554 }
 0x700   :  { %v1864_v53 = vpop.xlane.xlu0 %1863  ;;  %v1889_v51 = vmul.f32 %v10555_v39, %v12278_v3  ;;  %v10557_v16 = vpop.eup %10556 }
 0x701   :  { %10566 = vrcp.f32 %v1864_v53  ;;  %v1891_v0 = vmul.f32 %v10557_v16, %v12273_v55 }
 0x702   :  { %v1901_v25 = vpack.c.bf16 %v1890_v56, %v1889_v51 }
 0x703   :  { %v10559_v44 = vpop.eup %10558 }
 0x704   :  { %9452 = vmatprep.mubr.bf16.mxu0 %v1901_v25  ;;  %v2295_v46 = vpop.permute.xlu0 %2294  ;;  %v1892_v62 = vmul.f32 %v10559_v44, %v12283_v15  ;;  %v10561_v14 = vpop.eup %10560 }
 0x705   :  { %v1893_v3 = vmul.f32 %v10561_v14, %v12257_v38  ;;  %v2303_v15 = vpop.permute.xlu1 %2302 }
 0x706   :  { %v1902_v43 = vpack.c.bf16 %v1892_v62, %v1891_v0 }
 0x707   :  { %v10563_v59 = vpop.eup %10562 }
 0x708   :  { %9453 = vmatmul.mubr.bf16.gmra.mrb[72].mxu0 %v1902_v43  ;;  %v2301_v37 = vpop.permute.xlu0 %2300  ;;  %v1894_v10 = vmul.f32 %v10563_v59, %v12288_v36  ;;  %v10565_v57 = vpop.eup %10564 }
 0x709   :  { %v1895_v29 = vmul.f32 %v10565_v57, %v12253_v11  ;;  %v2307_v54 = vpop.permute.xlu1 %2306  ;;  %v732_v11 = vld [vmem:[%s15547_s6] sm:$0xff] }
 0x70a   :  { %v1903_v6 = vpack.c.bf16 %v1894_v10, %v1893_v3  ;;  %v8546_v36 = vcombine.high %v732_v11, %v732_v11  ;;  %v2194_v62 = vsel %vm1238_vm1, %v732_v11, 0 }
 0x70b   :  { %v10567_v12 = vpop.eup %10566 }
 0x70c   :  { %9456 = vmatprep.mubr.bf16.mxu0 %v1903_v6  ;;  %v2305_v31 = vpop.permute.xlu0 %2304  ;;  %v1896_v55 = vmul.f32 %v10567_v12, %v12293_v34  ;;  %10226 = vmatprep.subr.msk.bf16.mxu1 %vm1238_vm1, %v8546_v36  ;;  %v2070_v34 = vsel %vm1238_vm1, %v8546_v36, 0 }
 0x70d   :  { %v2589_v38 = vpop.permute.xlu1 %2588  ;;  %9461 = vmatpush3.bf16.msra.mxu1 %v2070_v34 }
 0x70e   :  { %v1904_v50 = vpack.c.bf16 %v1896_v55, %v1895_v29  ;;  %10227 = vmatprep.subr.msk.bf16.mxu1 %vm1238_vm1, %v732_v11  ;;  %v12426_v11 = vld [vmem:[%s15546_s2 + $0x10] sm:$0xff] }
 0x710   :  { %9457 = vmatmul.mubr.bf16.gmra.mrb[76].mxu0 %v1904_v50  ;;  %v2309_v7 = vpop.permute.xlu0 %2308 }
 0x711   :  { %9498 = vmatprep.mubr.msk.bf16.mxu0 %vm1213_vm0, %v2295_v46 }
 0x714   :  { %v2587_v28 = vpop.permute.xlu0 %2586 }
 0x715   :  { %9514 = vmatprep.subr.bf16.mxu0 %v2587_v28 }
 0x718   :  { %9499 = vmatmul.mubr.msk.bf16.vlgmr.msra.gmra.mrb[80].mxu0 %vm1213_vm0, %v2297_v2 }
 0x719   :  { %9515 = vmatpush3.bf16.msra.mxu0 %v2587_v28  ;;  %9502 = vmatprep.mubr.msk.bf16.mxu0 %vm1213_vm0, %v2299_v22 }
 0x71a   :  { %9516 = vmatprep.subr.bf16.mxu0 %v2589_v38 }
 0x71d   :  { %9517 = vmatpush3.bf16.msra.mxu0 %v2589_v38 }
 0x720   :  { %9503 = vmatmul.mubr.msk.bf16.gmra.mrb[84].mxu0 %vm1213_vm0, %v2301_v37 }
 0x721   :  { %9506 = vmatprep.mubr.msk.bf16.mxu0 %vm1213_vm0, %v2303_v15 }
 0x728   :  { %9507 = vmatmul.mubr.msk.bf16.gmra.mrb[88].mxu0 %vm1213_vm0, %v2305_v31 }
 0x729   :  { %9510 = vmatprep.mubr.msk.bf16.mxu0 %vm1213_vm0, %v2307_v54 }
 0x730   :  { %9511 = vmatmul.mubr.msk.bf16.gmra.mrb[92].mxu0 %vm1213_vm0, %v2309_v7 }
 0x76f   :  { %v12371_v45 = vpop.f32.mrb[48].mxu0 }
 0x770   :  { %v1533_v49 = vpop.f32.mrb[49].mxu0 }
 0x771   :  { %v12373_v47 = vpop.f32.mrb[50].mxu0 }
 0x772   :  { %v1597_v8 = vpack.c.bf16 %v12373_v47, %v12371_v45  ;;  %v1536_v52 = vpop.f32.mrb[51].mxu0 }
 0x773   :  { %v1596_v1 = vpack.c.bf16 %v1536_v52, %v1533_v49  ;;  %v12434_v49 = vld [vmem:[%s15546_s2] sm:$0xff] }
 0x77b   :  { %v12377_v13 = vpop.f32.mrb[52].mxu0 }
 0x77c   :  { %v12379_v18 = vpop.f32.mrb[53].mxu0 }
 0x77d   :  { %v12381_v58 = vpop.f32.mrb[54].mxu0 }
 0x77e   :  { %v1599_v5 = vpack.c.bf16 %v12381_v58, %v12377_v13  ;;  %v12385_v42 = vpop.f32.mrb[55].mxu0 }
 0x77f   :  { %v1598_v35 = vpack.c.bf16 %v12385_v42, %v12379_v18 }
 0x78b   :  { %v12389_v63 = vpop.f32.mrb[56].mxu0 }
 0x78c   :  { %v12391_v41 = vpop.f32.mrb[57].mxu0 }
 0x78d   :  { %v12393_v32 = vpop.f32.mrb[58].mxu0 }
 0x78e   :  { %v1601_v19 = vpack.c.bf16 %v12393_v32, %v12389_v63  ;;  %v12397_v20 = vpop.f32.mrb[59].mxu0 }
 0x78f   :  { %v1600_v40 = vpack.c.bf16 %v12397_v20, %v12391_v41 }
 0x79b   :  { %v12401_v33 = vpop.f32.mrb[60].mxu0 }
 0x79c   :  { %v12403_v4 = vpop.f32.mrb[61].mxu0 }
 0x79d   :  { %v12405_v39 = vpop.f32.mrb[62].mxu0 }
 0x79e   :  { %v1603_v53 = vpack.c.bf16 %v12405_v39, %v12401_v33  ;;  %v12409_v51 = vpop.f32.mrb[63].mxu0  ;;  %v12588_v33 = vld [vmem:[%s15546_s2 + $0x78] sm:$0xff] }
 0x79f   :  { %v1602_v56 = vpack.c.bf16 %v12409_v51, %v12403_v4  ;;  %v12567_v4 = vld [vmem:[%s15546_s2 + $0x60] sm:$0xff] }
 0x7bb   :  { %v9446_v16 = vpop.f32.mrb[64].mxu0 }
 0x7bc   :  { %v1971_v2 = vpop.f32.mrb[65].mxu0 }
 0x7bd   :  { %v9447_v25 = vpop.f32.mrb[66].mxu0 }
 0x7be   :  { %v2035_v44 = vpack.c.bf16 %v9447_v25, %v9446_v16  ;;  %v1974_v46 = vpop.f32.mrb[67].mxu0 }
 0x7bf   :  { %v2034_v0 = vpack.c.bf16 %v1974_v46, %v1971_v2  ;;  %v12443_v2 = vld [vmem:[%s15546_s2 + $0x8] sm:$0xff] }
 0x7c1   :  { %9462 = vmatprep.mubr.msk.bf16.mxu1 %vm1213_vm0, %v2034_v0 }
 0x7c2   :  { %9463 = vmatmul.mubr.msk.bf16.vlgmr.msra.gmra.mrb[64].mxu1 %vm1213_vm0, %v2035_v44  ;;  %v12452_v44 = vld [vmem:[%s15546_s2 + $0x18] sm:$0xff] }
 0x7c3   :  { %9479 = vmatpush3.bf16.msra.mxu1 %v2194_v62  ;;  %v12470_v62 = vld [vmem:[%s15546_s2 + $0x30] sm:$0xff] }
 0x7cf   :  { %v9450_v14 = vpop.f32.mrb[68].mxu0 }
 0x7d0   :  { %v1987_v43 = vpop.f32.mrb[69].mxu0 }
 0x7d1   :  { %v9451_v59 = vpop.f32.mrb[70].mxu0 }
 0x7d2   :  { %v2037_v22 = vpack.c.bf16 %v9451_v59, %v9450_v14  ;;  %v1990_v37 = vpop.f32.mrb[71].mxu0  ;;  %v12496_v59 = vld [vmem:[%s15546_s2 + $0x28] sm:$0xff] }
 0x7d3   :  { %v2036_v3 = vpack.c.bf16 %v1990_v37, %v1987_v43 }
 0x7d5   :  { %9466 = vmatprep.mubr.msk.bf16.mxu1 %vm1213_vm0, %v2036_v3  ;;  %v12513_v3 = vld [vmem:[%s15546_s2 + $0x50] sm:$0xff] }
 0x7d6   :  { %9467 = vmatmul.mubr.msk.bf16.gmra.mrb[68].mxu1 %vm1213_vm0, %v2037_v22 }
 0x7db   :  { %v9454_v10 = vpop.f32.mrb[72].mxu0 }
 0x7dc   :  { %v2003_v57 = vpop.f32.mrb[73].mxu0 }
 0x7dd   :  { %v9455_v6 = vpop.f32.mrb[74].mxu0 }
 0x7de   :  { %v2039_v12 = vpack.c.bf16 %v9455_v6, %v9454_v10  ;;  %v2006_v31 = vpop.f32.mrb[75].mxu0  ;;  %v12540_v6 = vld [vmem:[%s15546_s2 + $0x48] sm:$0xff] }
 0x7df   :  { %v2038_v29 = vpack.c.bf16 %v2006_v31, %v2003_v57 }
 0x7e1   :  { %9470 = vmatprep.mubr.msk.bf16.mxu1 %vm1213_vm0, %v2038_v29  ;;  %v12557_v29 = vld [vmem:[%s15546_s2 + $0x70] sm:$0xff] }
 0x7e2   :  { %9471 = vmatmul.mubr.msk.bf16.gmra.mrb[72].mxu1 %vm1213_vm0, %v2039_v12 }
 0x7e3   :  { %v9458_v55 = vpop.f32.mrb[76].mxu0 }
 0x7e4   :  { %v2019_v15 = vpop.f32.mrb[77].mxu0 }
 0x7e5   :  { %v9459_v50 = vpop.f32.mrb[78].mxu0 }
 0x7e6   :  { %v2041_v7 = vpack.c.bf16 %v9459_v50, %v9458_v55  ;;  %v2022_v54 = vpop.f32.mrb[79].mxu0  ;;  %v15670_v50 = vld [vmem:[#allocation26_spill] sm:$0xff] }
 0x7e7   :  { %v2040_v28 = vpack.c.bf16 %v2022_v54, %v2019_v15  ;;  %v15669_v15 = vld [vmem:[#allocation27_spill] sm:$0xff] }
 0x7e9   :  { %9474 = vmatprep.mubr.msk.bf16.mxu1 %vm1213_vm0, %v2040_v28  ;;  %v15672_v28 = vld [vmem:[#allocation28_spill] sm:$0xff] }
 0x7ea   :  { %9475 = vmatmul.mubr.msk.bf16.gmra.mrb[76].mxu1 %vm1213_vm0, %v2041_v7  ;;  %v15671_v7 = vld [vmem:[#allocation30_spill] sm:$0xff] }
 0x7eb   :  { %9480 = vmatprep.mubr.msk.bf16.mxu1 %vm1213_vm0, %v1596_v1  ;;  %v9500_v38 = vpop.f32.mrb[80].mxu0 }
 0x7ec   :  { %v12429_v36 = vadd.f32 %v12426_v11, %v9500_v38  ;;  %v2371_v34 = vpop.f32.mrb[81].mxu0 }
 0x7ed   :  { %v12437_v52 = vadd.f32 %v12434_v49, %v2371_v34  ;;  %v9501_v16 = vpop.f32.mrb[82].mxu0 }
 0x7ee   :  { %2438 = vmax.xlane.f32.xlu0 %v12429_v36  ;;  %v2374_v1 = vpop.f32.mrb[83].mxu0  ;;  %v12455_v46 = vadd.f32 %v12452_v44, %v9501_v16 }
 0x7ef   :  { %v12446_v25 = vadd.f32 %v12443_v2, %v2374_v1  ;;  %2434 = vmax.xlane.f32.xlu1 %v12437_v52 }
 0x7f2   :  { %9481 = vmatmul.mubr.msk.bf16.vlgmr.msra.gmra.mrb[64].mxu1 %vm1213_vm0, %v1597_v8  ;;  %2436 = vmax.xlane.f32.xlu0 %v12446_v25  ;;  %v12478_v8 = vld [vmem:[%s15546_s2 + $0x38] sm:$0xff] }
 0x7f3   :  { %9484 = vmatprep.mubr.msk.bf16.mxu1 %vm1213_vm0, %v1598_v35  ;;  %2440 = vmax.xlane.f32.xlu1 %v12455_v46  ;;  %v9504_v0 = vpop.f32.mrb[84].mxu0  ;;  %v12487_v35 = vld [vmem:[%s15546_s2 + $0x20] sm:$0xff] }
 0x7f4   :  { %v12473_v14 = vadd.f32 %v12470_v62, %v9504_v0  ;;  %v2387_v45 = vpop.f32.mrb[85].mxu0 }
 0x7f5   :  { %v9505_v47 = vpop.f32.mrb[86].mxu0  ;;  %v12490_v43 = vadd.f32 %v12487_v35, %v2387_v45 }
 0x7f6   :  { %v12481_v18 = vadd.f32 %v12478_v8, %v9505_v47  ;;  %2446 = vmax.xlane.f32.xlu0 %v12473_v14  ;;  %v2390_v42 = vpop.f32.mrb[87].mxu0 }
 0x7f7   :  { %v12499_v22 = vadd.f32 %v12496_v59, %v2390_v42 }
 0x7f8   :  { %2448 = vmax.xlane.f32.xlu1 %v12481_v18 }
 0x7fa   :  { %9485 = vmatmul.mubr.msk.bf16.gmra.mrb[68].mxu1 %vm1213_vm0, %v1599_v5  ;;  %2442 = vmax.xlane.f32.xlu0 %v12490_v43  ;;  %v12522_v5 = vld [vmem:[%s15546_s2 + $0x58] sm:$0xff] }
 0x7fb   :  { %9488 = vmatprep.mubr.msk.bf16.mxu1 %vm1213_vm0, %v1600_v40  ;;  %v9508_v37 = vpop.f32.mrb[88].mxu0  ;;  %v12531_v40 = vld [vmem:[%s15546_s2 + $0x40] sm:$0xff] }
 0x7fc   :  { %v12516_v10 = vadd.f32 %v12513_v3, %v9508_v37  ;;  %2444 = vmax.xlane.f32.xlu1 %v12499_v22  ;;  %v2403_v13 = vpop.f32.mrb[89].mxu0 }
 0x7fd   :  { %v9509_v58 = vpop.f32.mrb[90].mxu0  ;;  %v12534_v57 = vadd.f32 %v12531_v40, %v2403_v13 }
 0x7fe   :  { %v12525_v41 = vadd.f32 %v12522_v5, %v9509_v58  ;;  %2454 = vmax.xlane.f32.xlu0 %v12516_v10  ;;  %v2406_v20 = vpop.f32.mrb[91].mxu0 }
 0x7ff   :  { %v12543_v12 = vadd.f32 %v12540_v6, %v2406_v20 }
 0x800   :  { %2456 = vmax.xlane.f32.xlu1 %v12525_v41 }
 0x802   :  { %9489 = vmatmul.mubr.msk.bf16.gmra.mrb[72].mxu1 %vm1213_vm0, %v1601_v19  ;;  %2450 = vmax.xlane.f32.xlu0 %v12534_v57 }
 0x803   :  { %9492 = vmatprep.mubr.msk.bf16.mxu1 %vm1213_vm0, %v1602_v56  ;;  %v9512_v31 = vpop.f32.mrb[92].mxu0  ;;  %v15668_v56 = vld [vmem:[#allocation29_spill] sm:$0xff] }
 0x804   :  { %v12560_v55 = vadd.f32 %v12557_v29, %v9512_v31  ;;  %2452 = vmax.xlane.f32.xlu1 %v12543_v12  ;;  %v2419_v63 = vpop.f32.mrb[93].mxu0 }
 0x805   :  { %v9513_v32 = vpop.f32.mrb[94].mxu0  ;;  %v12570_v51 = vadd.f32 %v12567_v4, %v2419_v63 }
 0x806   :  { %2462 = vmax.xlane.f32.xlu0 %v12560_v55  ;;  %v2422_v19 = vpop.f32.mrb[95].mxu0  ;;  %v12591_v39 = vadd.f32 %v12588_v33, %v9513_v32 }
 0x80a   :  { %9493 = vmatmul.mubr.msk.bf16.gmra.mrb[76].mxu1 %vm1213_vm0, %v1603_v53  ;;  %2458 = vmax.xlane.f32.xlu0 %v12570_v51  ;;  %v12597_v53 = vld [vmem:[%s15546_s2 + $0x68] sm:$0xff] }
 0x80b   :  { %v12600_v54 = vadd.f32 %v12597_v53, %v2422_v19 }
 0x815   :  { %2594 = vrot.lane.b32.xlu1 %v15668_v56, %s11231_s15 }
 0x820   :  { %2590 = vrot.lane.b32.xlu0 %v15669_v15, %s11231_s15 }
 0x824   :  { %2592 = vrot.lane.b32.xlu0 %v15670_v50, %s11231_s15 }
 0x828   :  { %2598 = vrot.lane.b32.xlu0 %v15671_v7, %s11231_s15 }
 0x839   :  { %2464 = vmax.xlane.f32.xlu1 %v12591_v39 }
 0x83d   :  { %2460 = vmax.xlane.f32.xlu1 %v12600_v54 }
 0x84e   :  { %2596 = vrot.lane.b32.xlu1 %v15672_v28, %s11231_s15 }
 0x87b   :  { %v2439_v38 = vpop.xlane.xlu0 %2438 }
 0x87c   :  { %v2468_v34 = vsub.f32 %v12429_v36, %v2439_v38  ;;  %v2435_v16 = vpop.xlane.xlu1 %2434 }
 0x87d   :  { %v2466_v1 = vsub.f32 %v12437_v52, %v2435_v16 }
 0x87e   :  { %v2486_v0 = vmul.f32 1.442695, %v2468_v34 }
 0x87f   :  { %v2437_v45 = vpop.xlane.xlu0 %2436  ;;  %v2482_v47 = vmul.f32 1.442695, %v2466_v1 }
 0x880   :  { %10568 = vpow2.f32 %v2486_v0  ;;  %v2441_v42 = vpop.xlane.xlu1 %2440  ;;  %v2467_v13 = vsub.f32 %v12446_v25, %v2437_v45 }
 0x881   :  { %v2469_v37 = vsub.f32 %v12455_v46, %v2441_v42  ;;  %10570 = vpow2.f32 %v2482_v47 }
 0x882   :  { %v2484_v36 = vmul.f32 1.442695, %v2467_v13 }
 0x883   :  { %v2488_v58 = vmul.f32 1.442695, %v2469_v37  ;;  %v2447_v20 = vpop.xlane.xlu0 %2446 }
 0x884   :  { %v2472_v31 = vsub.f32 %v12473_v14, %v2447_v20 }
 0x885   :  { %v2449_v63 = vpop.xlane.xlu1 %2448  ;;  %10572 = vpow2.f32 %v2488_v58 }
 0x886   :  { %v2494_v32 = vmul.f32 1.442695, %v2472_v31  ;;  %v2473_v52 = vsub.f32 %v12481_v18, %v2449_v63 }
 0x887   :  { %v2443_v19 = vpop.xlane.xlu0 %2442 }
 0x888   :  { %10574 = vpow2.f32 %v2494_v32  ;;  %v2470_v38 = vsub.f32 %v12490_v43, %v2443_v19  ;;  %v2496_v1 = vmul.f32 1.442695, %v2473_v52 }
 0x889   :  { %v2445_v34 = vpop.xlane.xlu1 %2444  ;;  %10576 = vpow2.f32 %v2484_v36 }
 0x88a   :  { %v12612_v16 = vpop.eup %10568  ;;  %v2490_v46 = vmul.f32 1.442695, %v2470_v38  ;;  %v2471_v25 = vsub.f32 %v12499_v22, %v2445_v34 }
 0x88b   :  { %2518 = vadd.xlane.f32.xlu1 %v12612_v16  ;;  %v2455_v14 = vpop.xlane.xlu0 %2454  ;;  %v12617_v47 = vpop.eup %10570 }
 0x88c   :  { %10578 = vpow2.f32 %v2490_v46  ;;  %v2492_v0 = vmul.f32 1.442695, %v2471_v25  ;;  %v2476_v45 = vsub.f32 %v12516_v10, %v2455_v14 }
 0x88d   :  { %v2457_v18 = vpop.xlane.xlu1 %2456  ;;  %10580 = vpow2.f32 %v2496_v1 }
 0x88e   :  { %10582 = vpow2.f32 %v2492_v0  ;;  %v2502_v42 = vmul.f32 1.442695, %v2476_v45  ;;  %v2477_v10 = vsub.f32 %v12525_v41, %v2457_v18 }
 0x88f   :  { %2514 = vadd.xlane.f32.xlu1 %v12617_v47  ;;  %v2451_v43 = vpop.xlane.xlu0 %2450  ;;  %v12621_v37 = vpop.eup %10572 }
 0x890   :  { %v2474_v22 = vsub.f32 %v12534_v57, %v2451_v43  ;;  %10584 = vpow2.f32 %v2502_v42 }
 0x891   :  { %v2453_v13 = vpop.xlane.xlu1 %2452 }
 0x892   :  { %v12623_v58 = vpop.eup %10574  ;;  %v2475_v20 = vsub.f32 %v12543_v12, %v2453_v13  ;;  %v2498_v63 = vmul.f32 1.442695, %v2474_v22  ;;  %v2504_v12 = vmul.f32 1.442695, %v2477_v10 }
 0x893   :  { %2520 = vadd.xlane.f32.xlu1 %v12621_v37  ;;  %2526 = vadd.xlane.f32.xlu0 %v12623_v58  ;;  %v2463_v31 = vpop.xlane.xlu0 %2462  ;;  %v12630_v57 = vpop.eup %10576 }
 0x894   :  { %v2500_v32 = vmul.f32 1.442695, %v2475_v20  ;;  %v2480_v36 = vsub.f32 %v12560_v55, %v2463_v31 }
 0x895   :  { %v2595_v0 = vpop.permute.xlu1 %2594 }
 0x896   :  { %v12632_v52 = vpop.eup %10578  ;;  %10586 = vpow2.f32 %v2500_v32  ;;  %v2510_v19 = vmul.f32 1.442695, %v2480_v36 }
 0x897   :  { %2516 = vadd.xlane.f32.xlu1 %v12630_v57  ;;  %2522 = vadd.xlane.f32.xlu0 %v12632_v52  ;;  %v2459_v41 = vpop.xlane.xlu0 %2458  ;;  %10588 = vpow2.f32 %v2498_v63  ;;  %v12637_v34 = vpop.eup %10580 }
 0x898   :  { %v2478_v38 = vsub.f32 %v12570_v51, %v2459_v41  ;;  %v12639_v46 = vpop.eup %10582  ;;  %10590 = vpow2.f32 %v2510_v19 }
 0x899   :  { %10592 = vpow2.f32 %v2504_v12 }
 0x89a   :  { %v2506_v55 = vmul.f32 1.442695, %v2478_v38  ;;  %v12643_v1 = vpop.eup %10584 }
 0x89b   :  { %2524 = vadd.xlane.f32.xlu1 %v12639_v46  ;;  %2528 = vadd.xlane.f32.xlu0 %v12637_v34  ;;  %v2591_v25 = vpop.permute.xlu0 %2590 }
 0x89c   :  { %9518 = vmatprep.subr.bf16.mxu0 %v2591_v25  ;;  %10594 = vpow2.f32 %v2506_v55 }
 0x89d   :  { %9519 = vmatpush3.bf16.msra.mxu0 %v2591_v25 }
 0x89f   :  { %2534 = vadd.xlane.f32.xlu0 %v12643_v1  ;;  %v2593_v51 = vpop.permute.xlu0 %2592 }
 0x8a0   :  { %v12646_v14 = vpop.eup %10586  ;;  %9520 = vmatprep.subr.bf16.mxu0 %v2593_v51 }
 0x8a1   :  { %2532 = vadd.xlane.f32.xlu1 %v12646_v14  ;;  %9521 = vmatpush3.bf16.msra.mxu0 %v2593_v51  ;;  %v12649_v45 = vpop.eup %10588 }
 0x8a2   :  { %9522 = vmatprep.subr.bf16.mxu0 %v2595_v0  ;;  %v12652_v18 = vpop.eup %10590 }
 0x8a3   :  { %2530 = vadd.xlane.f32.xlu0 %v12649_v45  ;;  %v12655_v43 = vpop.eup %10592 }
 0x8a5   :  { %2542 = vadd.xlane.f32.xlu1 %v12652_v18  ;;  %9523 = vmatpush3.bf16.msra.mxu0 %v2595_v0 }
 0x8a6   :  { %v12658_v42 = vpop.eup %10594 }
 0x8a7   :  { %2536 = vadd.xlane.f32.xlu0 %v12655_v43 }
 0x8a9   :  { %2538 = vadd.xlane.f32.xlu1 %v12658_v42 }
 0x8ba   :  { %2600 = vrot.lane.b32.xlu1 %v11894_v48, %s11231_s15 }
 0x8be   :  { %2858 = vrot.lane.b32.xlu1 %v11843_v17, %s11232_s28 }
 0x8c2   :  { %2860 = vrot.lane.b32.xlu1 %v11863_v61, %s11232_s28  ;;  %v2599_v61 = vpop.permute.xlu0 %2598 }
 0x8c6   :  { %v2465_v22 = vpop.xlane.xlu1 %2464  ;;  %2864 = vrot.lane.b32.xlu1 %v11903_v21, %s11232_s28 }
 0x8c7   :  { %v2481_v20 = vsub.f32 %v12591_v39, %v2465_v22 }
 0x8c9   :  { %v2512_v17 = vmul.f32 1.442695, %v2481_v20 }
 0x8ca   :  { %v2461_v13 = vpop.xlane.xlu1 %2460  ;;  %2868 = vrot.lane.b32.xlu1 %v11922_v60, %s11232_s28 }
 0x8cb   :  { %v2479_v10 = vsub.f32 %v12600_v54, %v2461_v13 }
 0x8cd   :  { %v2508_v31 = vmul.f32 1.442695, %v2479_v10 }
 0x8ce   :  { %v2597_v63 = vpop.permute.xlu1 %2596  ;;  %3150 = vrot.lane.b32.xlu1 %v11835_v24, %s11232_s28  ;;  %v12690_v24 = vld [vmem:[%s15547_s6 + $0x8] sm:$0xff] }
 0x8cf   :  { %10596 = vpow2.f32 %v2508_v31  ;;  %9524 = vmatprep.subr.bf16.mxu0 %v2597_v63  ;;  %10229 = vmatprep.subr.msk.bf16.mxu1 %vm1238_vm1, %v12690_v24  ;;  %v2740_v39 = vsel %vm1238_vm1, %v12690_v24, 0 }
 0x8d0   :  { %9525 = vmatpush3.bf16.msra.mxu0 %v2597_v63  ;;  %10598 = vpow2.f32 %v2512_v17  ;;  %9547 = vmatpush3.bf16.msra.mxu1 %v2740_v39 }
 0x8d1   :  { %9526 = vmatprep.subr.bf16.mxu0 %v2599_v61 }
 0x8d4   :  { %9527 = vmatpush3.bf16.msra.mxu0 %v2599_v61 }
 0x8d9   :  { %v12675_v21 = vpop.eup %10596 }
 0x8da   :  { %2540 = vadd.xlane.f32.xlu0 %v12675_v21  ;;  %v12678_v60 = vpop.eup %10598 }
 0x8de   :  { %2544 = vadd.xlane.f32.xlu0 %v12678_v60 }
 0x8f4   :  { %2856 = vrot.lane.b32.xlu0 %v11824_v23, %s11232_s28 }
 0x8f8   :  { %2862 = vrot.lane.b32.xlu0 %v11883_v30, %s11232_s28 }
 0x8fc   :  { %2866 = vrot.lane.b32.xlu0 %v11914_v27, %s11232_s28 }
 0x900   :  { %2870 = vrot.lane.b32.xlu0 %v11930_v9, %s11232_s28 }
 0x904   :  { %3148 = vrot.lane.b32.xlu0 %v11837_v26, %s11232_s28 }
 0x908   :  { %3152 = vrot.lane.b32.xlu0 %v15669_v15, %s11232_s28 }
 0x90c   :  { %3154 = vrot.lane.b32.xlu0 %v15670_v50, %s11232_s28 }
 0x918   :  { %v2519_v23 = vpop.xlane.xlu1 %2518 }
 0x91c   :  { %v2515_v30 = vpop.xlane.xlu1 %2514 }
 0x91d   :  { %10600 = vrcp.f32 %v2515_v30 }
 0x920   :  { %v2521_v27 = vpop.xlane.xlu1 %2520  ;;  %v2527_v54 = vpop.xlane.xlu0 %2526 }
 0x924   :  { %v2517_v32 = vpop.xlane.xlu1 %2516  ;;  %v2523_v36 = vpop.xlane.xlu0 %2522 }
 0x925   :  { %10602 = vrcp.f32 %v2517_v32 }
 0x926   :  { %10604 = vrcp.f32 %v2521_v27 }
 0x927   :  { %v10601_v12 = vpop.eup %10600 }
 0x928   :  { %v2529_v19 = vpop.xlane.xlu0 %2528  ;;  %v2525_v41 = vpop.xlane.xlu1 %2524  ;;  %v2562_v50 = vmul.f32 %v10601_v12, %v12617_v47 }
 0x929   :  { %10606 = vrcp.f32 %v2525_v41 }
 0x92a   :  { %10608 = vrcp.f32 %v2519_v23 }
 0x92b   :  { %10610 = vrcp.f32 %v2523_v36 }
 0x92c   :  { %v2535_v9 = vpop.xlane.xlu0 %2534  ;;  %10612 = vrcp.f32 %v2529_v19 }
 0x92e   :  { %v2533_v26 = vpop.xlane.xlu1 %2532 }
 0x92f   :  { %v10603_v15 = vpop.eup %10602 }
 0x930   :  { %v2563_v38 = vmul.f32 %v10603_v15, %v12630_v57  ;;  %v2531_v55 = vpop.xlane.xlu0 %2530  ;;  %v10605_v0 = vpop.eup %10604  ;;  %v15673_v57 = vld [vmem:[#allocation32_spill] sm:$0xff] }
 0x931   :  { %10614 = vrcp.f32 %v2531_v55  ;;  %v2565_v31 = vmul.f32 %v10605_v0, %v12621_v37  ;;  %v2855_v61 = vpack.c.bf16 %v15673_v57, %v15673_v57 }
 0x932   :  { %v2543_v25 = vpop.xlane.xlu1 %2542  ;;  %v2578_v51 = vpack.c.bf16 %v2563_v38, %v2562_v50  ;;  %10616 = vrcp.f32 %v2527_v54 }
 0x933   :  { %v10607_v13 = vpop.eup %10606  ;;  %10618 = vrcp.f32 %v2533_v26 }
 0x934   :  { %9530 = vmatprep.mubr.bf16.mxu0 %v2578_v51  ;;  %v10609_v20 = vpop.eup %10608  ;;  %v2537_v63 = vpop.xlane.xlu0 %2536  ;;  %v2567_v47 = vmul.f32 %v10607_v13, %v12639_v46  ;;  %v2897_v46 = vsel %vm1238_vm1, %v2855_v61, 0 }
 0x935   :  { %v10611_v10 = vpop.eup %10610  ;;  %v2564_v39 = vmul.f32 %v10609_v20, %v12612_v16  ;;  %10620 = vrcp.f32 %v2537_v63 }
 0x936   :  { %v2539_v22 = vpop.xlane.xlu1 %2538  ;;  %v2566_v23 = vmul.f32 %v10611_v10, %v12632_v52  ;;  %v10613_v27 = vpop.eup %10612  ;;  %10622 = vrcp.f32 %v2535_v9 }
 0x937   :  { %v2579_v30 = vpack.c.bf16 %v2565_v31, %v2564_v39  ;;  %v2569_v16 = vmul.f32 %v10613_v27, %v12637_v34  ;;  %10624 = vrcp.f32 %v2539_v22 }
 0x938   :  { %v2580_v37 = vpack.c.bf16 %v2567_v47, %v2566_v23 }
 0x93a   :  { %v2601_v17 = vpop.permute.xlu1 %2600 }
 0x93b   :  { %9528 = vmatprep.subr.bf16.mxu0 %v2601_v17  ;;  %v10615_v54 = vpop.eup %10614 }
 0x93c   :  { %9529 = vmatpush3.bf16.msra.mxu0 %v2601_v17  ;;  %v10617_v32 = vpop.eup %10616  ;;  %v2570_v19 = vmul.f32 %v10615_v54, %v12649_v45 }
 0x93d   :  { %10230 = vmatprep.subr.msk.bf16.mxu0 %vm1238_vm1, %v2855_v61  ;;  %v10619_v36 = vpop.eup %10618  ;;  %v2568_v52 = vmul.f32 %v10617_v32, %v12623_v58 }
 0x93e   :  { %v2571_v41 = vmul.f32 %v10619_v36, %v12646_v14  ;;  %v2859_v47 = vpop.permute.xlu1 %2858 }
 0x93f   :  { %9531 = vmatmul.mubr.bf16.vlgmr.msra.gmra.mrb[96].mxu0 %v2579_v30  ;;  %v2581_v12 = vpack.c.bf16 %v2569_v16, %v2568_v52  ;;  %v10621_v26 = vpop.eup %10620 }
 0x940   :  { %9534 = vmatprep.mubr.bf16.mxu0 %v2580_v37  ;;  %9565 = vmatpush3.bf16.msra.mxu0 %v2897_v46  ;;  %v2582_v9 = vpack.c.bf16 %v2571_v41, %v2570_v19  ;;  %v10623_v15 = vpop.eup %10622  ;;  %v2573_v50 = vmul.f32 %v10621_v26, %v12655_v43 }
 0x941   :  { %v2572_v38 = vmul.f32 %v10623_v15, %v12643_v1  ;;  %v10625_v14 = vpop.eup %10624 }
 0x942   :  { %v2574_v13 = vmul.f32 %v10625_v14, %v12658_v42  ;;  %v2861_v42 = vpop.permute.xlu1 %2860 }
 0x943   :  { %v2583_v55 = vpack.c.bf16 %v2573_v50, %v2572_v38 }
 0x947   :  { %9535 = vmatmul.mubr.bf16.gmra.mrb[100].mxu0 %v2581_v12 }
 0x948   :  { %9538 = vmatprep.mubr.bf16.mxu0 %v2582_v9 }
 0x94f   :  { %9539 = vmatmul.mubr.bf16.gmra.mrb[104].mxu0 %v2583_v55 }
 0x967   :  { %v2541_v34 = vpop.xlane.xlu0 %2540 }
 0x968   :  { %10626 = vrcp.f32 %v2541_v34 }
 0x969   :  { %10628 = vrcp.f32 %v2543_v25 }
 0x96b   :  { %v2545_v45 = vpop.xlane.xlu0 %2544 }
 0x96c   :  { %10630 = vrcp.f32 %v2545_v45 }
 0x96f   :  { %v2857_v58 = vpop.permute.xlu0 %2856 }
 0x972   :  { %v10627_v51 = vpop.eup %10626 }
 0x973   :  { %v2863_v0 = vpop.permute.xlu0 %2862  ;;  %v2575_v20 = vmul.f32 %v10627_v51, %v12675_v21  ;;  %v10629_v10 = vpop.eup %10628 }
 0x974   :  { %v2576_v22 = vmul.f32 %v10629_v10, %v12652_v18  ;;  %v2865_v21 = vpop.permute.xlu1 %2864 }
 0x975   :  { %v2584_v43 = vpack.c.bf16 %v2575_v20, %v2574_v13 }
 0x976   :  { %v10631_v31 = vpop.eup %10630 }
 0x977   :  { %9542 = vmatprep.mubr.bf16.mxu0 %v2584_v43  ;;  %v2867_v1 = vpop.permute.xlu0 %2866  ;;  %v2577_v63 = vmul.f32 %v10631_v31, %v12678_v60 }
 0x978   :  { %v2869_v18 = vpop.permute.xlu1 %2868 }
 0x979   :  { %v2585_v25 = vpack.c.bf16 %v2577_v63, %v2576_v22 }
 0x97b   :  { %9543 = vmatmul.mubr.bf16.gmra.mrb[108].mxu0 %v2585_v25  ;;  %v2871_v17 = vpop.permute.xlu0 %2870 }
 0x97c   :  { %9566 = vmatprep.mubr.msk.bf16.mxu0 %vm1213_vm0, %v2857_v58  ;;  %v3151_v37 = vpop.permute.xlu1 %3150 }
 0x97f   :  { %v3149_v57 = vpop.permute.xlu0 %3148 }
 0x980   :  { %9582 = vmatprep.subr.bf16.mxu1 %v3149_v57 }
 0x983   :  { %9567 = vmatmul.mubr.msk.bf16.vlgmr.msra.gmra.mrb[112].mxu0 %vm1213_vm0, %v2859_v47  ;;  %v3153_v32 = vpop.permute.xlu0 %3152 }
 0x984   :  { %9570 = vmatprep.mubr.msk.bf16.mxu0 %vm1213_vm0, %v2861_v42 }
 0x987   :  { %v3155_v41 = vpop.permute.xlu0 %3154 }
 0x98b   :  { %9571 = vmatmul.mubr.msk.bf16.gmra.mrb[116].mxu0 %vm1213_vm0, %v2863_v0 }
 0x98c   :  { %9574 = vmatprep.mubr.msk.bf16.mxu0 %vm1213_vm0, %v2865_v21 }
 0x993   :  { %9575 = vmatmul.mubr.msk.bf16.gmra.mrb[120].mxu0 %vm1213_vm0, %v2867_v1 }
 0x994   :  { %9578 = vmatprep.mubr.msk.bf16.mxu0 %vm1213_vm0, %v2869_v18 }
 0x99b   :  { %9579 = vmatmul.mubr.msk.bf16.gmra.mrb[124].mxu0 %vm1213_vm0, %v2871_v17 }
 0xa12   :  { %v9532_v60 = vpop.f32.mrb[96].mxu0 }
 0xa13   :  { %v2644_v61 = vpop.f32.mrb[97].mxu0 }
 0xa14   :  { %v9533_v39 = vpop.f32.mrb[98].mxu0 }
 0xa15   :  { %v2708_v23 = vpack.c.bf16 %v9533_v39, %v9532_v60  ;;  %v2647_v30 = vpop.f32.mrb[99].mxu0 }
 0xa16   :  { %v2707_v27 = vpack.c.bf16 %v2647_v30, %v2644_v61 }
 0xa18   :  { %9548 = vmatprep.mubr.msk.bf16.mxu1 %vm1213_vm0, %v2707_v27 }
 0xa19   :  { %9549 = vmatmul.mubr.msk.bf16.vlgmr.msra.gmra.mrb[64].mxu1 %vm1213_vm0, %v2708_v23 }
 0xa1a   :  { %9583 = vmatpush3.bf16.msra.mxu1 %v3149_v57  ;;  %v9536_v54 = vpop.f32.mrb[100].mxu0 }
 0xa1b   :  { %9584 = vmatprep.subr.bf16.mxu1 %v3151_v37  ;;  %v2660_v46 = vpop.f32.mrb[101].mxu0 }
 0xa1c   :  { %v9537_v36 = vpop.f32.mrb[102].mxu0 }
 0xa1d   :  { %v2710_v16 = vpack.c.bf16 %v9537_v36, %v9536_v54  ;;  %v2663_v19 = vpop.f32.mrb[103].mxu0 }
 0xa1e   :  { %v2709_v52 = vpack.c.bf16 %v2663_v19, %v2660_v46  ;;  %9585 = vmatpush3.bf16.msra.mxu1 %v3151_v37 }
 0xa1f   :  { %9586 = vmatprep.subr.bf16.mxu1 %v3153_v32 }
 0xa20   :  { %9552 = vmatprep.mubr.msk.bf16.mxu1 %vm1213_vm0, %v2709_v52 }
 0xa21   :  { %9553 = vmatmul.mubr.msk.bf16.gmra.mrb[68].mxu1 %vm1213_vm0, %v2710_v16 }
 0xa22   :  { %9587 = vmatpush3.bf16.msra.mxu1 %v3153_v32  ;;  %v9540_v12 = vpop.f32.mrb[104].mxu0 }
 0xa23   :  { %9588 = vmatprep.subr.bf16.mxu1 %v3155_v41  ;;  %v2676_v26 = vpop.f32.mrb[105].mxu0 }
 0xa24   :  { %v9541_v9 = vpop.f32.mrb[106].mxu0 }
 0xa25   :  { %v2712_v15 = vpack.c.bf16 %v9541_v9, %v9540_v12  ;;  %v2679_v50 = vpop.f32.mrb[107].mxu0 }
 0xa26   :  { %v2711_v38 = vpack.c.bf16 %v2679_v50, %v2676_v26  ;;  %9589 = vmatpush3.bf16.msra.mxu1 %v3155_v41 }
 0xa28   :  { %9556 = vmatprep.mubr.msk.bf16.mxu1 %vm1213_vm0, %v2711_v38 }
 0xa29   :  { %9557 = vmatmul.mubr.msk.bf16.gmra.mrb[72].mxu1 %vm1213_vm0, %v2712_v15 }
 0xa4e   :  { %v9544_v55 = vpop.f32.mrb[108].mxu0 }
 0xa4f   :  { %v2692_v34 = vpop.f32.mrb[109].mxu0 }
 0xa50   :  { %v9545_v45 = vpop.f32.mrb[110].mxu0 }
 0xa51   :  { %v2714_v58 = vpack.c.bf16 %v9545_v45, %v9544_v55  ;;  %v2695_v14 = vpop.f32.mrb[111].mxu0 }
 0xa52   :  { %v2713_v51 = vpack.c.bf16 %v2695_v14, %v2692_v34 }
 0xa54   :  { %9560 = vmatprep.mubr.msk.bf16.mxu1 %vm1213_vm0, %v2713_v51 }
 0xa55   :  { %9561 = vmatmul.mubr.msk.bf16.gmra.mrb[76].mxu1 %vm1213_vm0, %v2714_v58 }
 0xa56   :  { %v9568_v0 = vpop.f32.mrb[112].mxu0 }
 0xa57   :  { %v2942_v13 = vadd.f32 %v12426_v11, %v9568_v0  ;;  %v2933_v20 = vpop.f32.mrb[113].mxu0 }
 0xa58   :  { %v2934_v10 = vadd.f32 %v12434_v49, %v2933_v20  ;;  %v9569_v43 = vpop.f32.mrb[114].mxu0 }
 0xa59   :  { %3000 = vmax.xlane.f32.xlu0 %v2942_v13  ;;  %v2936_v31 = vpop.f32.mrb[115].mxu0  ;;  %v2945_v22 = vadd.f32 %v12452_v44, %v9569_v43 }
 0xa5a   :  { %v2937_v1 = vadd.f32 %v12443_v2, %v2936_v31  ;;  %2996 = vmax.xlane.f32.xlu1 %v2934_v10 }
 0xa5d   :  { %2998 = vmax.xlane.f32.xlu0 %v2937_v1 }
 0xa5e   :  { %3002 = vmax.xlane.f32.xlu1 %v2945_v22  ;;  %v9572_v63 = vpop.f32.mrb[116].mxu0 }
 0xa5f   :  { %v2958_v25 = vadd.f32 %v12470_v62, %v9572_v63  ;;  %v2949_v17 = vpop.f32.mrb[117].mxu0 }
 0xa60   :  { %v9573_v47 = vpop.f32.mrb[118].mxu0  ;;  %v2950_v49 = vadd.f32 %v12487_v35, %v2949_v17 }
 0xa61   :  { %v2961_v11 = vadd.f32 %v12478_v8, %v9573_v47  ;;  %3008 = vmax.xlane.f32.xlu0 %v2958_v25  ;;  %v2952_v57 = vpop.f32.mrb[119].mxu0 }
 0xa62   :  { %v2953_v42 = vadd.f32 %v12496_v59, %v2952_v57 }
 0xa63   :  { %3010 = vmax.xlane.f32.xlu1 %v2961_v11 }
 0xa65   :  { %3004 = vmax.xlane.f32.xlu0 %v2950_v49 }
 0xa66   :  { %v9576_v2 = vpop.f32.mrb[120].mxu0 }
 0xa67   :  { %v12749_v44 = vadd.f32 %v12513_v3, %v9576_v2  ;;  %3006 = vmax.xlane.f32.xlu1 %v2953_v42  ;;  %v2965_v21 = vpop.f32.mrb[121].mxu0 }
 0xa68   :  { %v9577_v18 = vpop.f32.mrb[122].mxu0  ;;  %v12756_v60 = vadd.f32 %v12531_v40, %v2965_v21 }
 0xa69   :  { %v12752_v62 = vadd.f32 %v12522_v5, %v9577_v18  ;;  %3016 = vmax.xlane.f32.xlu0 %v12749_v44  ;;  %v2968_v8 = vpop.f32.mrb[123].mxu0 }
 0xa6a   :  { %v12760_v35 = vadd.f32 %v12540_v6, %v2968_v8 }
 0xa6b   :  { %3018 = vmax.xlane.f32.xlu1 %v12752_v62 }
 0xa6d   :  { %3012 = vmax.xlane.f32.xlu0 %v12756_v60 }
 0xa6e   :  { %v9580_v59 = vpop.f32.mrb[124].mxu0 }
 0xa6f   :  { %v12764_v3 = vadd.f32 %v12557_v29, %v9580_v59  ;;  %3014 = vmax.xlane.f32.xlu1 %v12760_v35  ;;  %v2981_v5 = vpop.f32.mrb[125].mxu0 }
 0xa70   :  { %v9581_v61 = vpop.f32.mrb[126].mxu0  ;;  %v12769_v40 = vadd.f32 %v12567_v4, %v2981_v5 }
 0xa71   :  { %3024 = vmax.xlane.f32.xlu0 %v12764_v3  ;;  %v2984_v39 = vpop.f32.mrb[127].mxu0  ;;  %v12777_v6 = vadd.f32 %v12588_v33, %v9581_v61 }
 0xa72   :  { %v12781_v29 = vadd.f32 %v12597_v53, %v2984_v39 }
 0xa75   :  { %3020 = vmax.xlane.f32.xlu0 %v12769_v40 }
 0xa80   :  { %3158 = vrot.lane.b32.xlu1 %v15672_v28, %s11232_s28 }
 0xa8b   :  { %3156 = vrot.lane.b32.xlu0 %v15668_v56, %s11232_s28 }
 0xaa4   :  { %3026 = vmax.xlane.f32.xlu1 %v12777_v6 }
 0xaa8   :  { %3022 = vmax.xlane.f32.xlu1 %v12781_v29 }
 0xae6   :  { %v3001_v4 = vpop.xlane.xlu0 %3000 }
 0xae7   :  { %v3030_v23 = vsub.f32 %v2942_v13, %v3001_v4  ;;  %v2997_v30 = vpop.xlane.xlu1 %2996 }
 0xae8   :  { %v3028_v27 = vsub.f32 %v2934_v10, %v2997_v30 }
 0xae9   :  { %v3048_v37 = vmul.f32 1.442695, %v3030_v23 }
 0xaea   :  { %v2999_v54 = vpop.xlane.xlu0 %2998  ;;  %v3044_v28 = vmul.f32 1.442695, %v3028_v27 }
 0xaeb   :  { %10632 = vpow2.f32 %v3048_v37  ;;  %v3003_v46 = vpop.xlane.xlu1 %3002  ;;  %v3029_v32 = vsub.f32 %v2937_v1, %v2999_v54 }
 0xaec   :  { %v3031_v56 = vsub.f32 %v2945_v22, %v3003_v46  ;;  %10634 = vpow2.f32 %v3044_v28 }
 0xaed   :  { %v3046_v52 = vmul.f32 1.442695, %v3029_v32 }
 0xaee   :  { %v3050_v33 = vmul.f32 1.442695, %v3031_v56  ;;  %v3009_v36 = vpop.xlane.xlu0 %3008 }
 0xaef   :  { %v3034_v16 = vsub.f32 %v2958_v25, %v3009_v36 }
 0xaf0   :  { %v3011_v19 = vpop.xlane.xlu1 %3010  ;;  %10636 = vpow2.f32 %v3050_v33 }
 0xaf1   :  { %v3056_v53 = vmul.f32 1.442695, %v3034_v16  ;;  %v3035_v41 = vsub.f32 %v2961_v11, %v3011_v19 }
 0xaf2   :  { %v3005_v12 = vpop.xlane.xlu0 %3004 }
 0xaf3   :  { %10638 = vpow2.f32 %v3056_v53  ;;  %v3032_v26 = vsub.f32 %v2950_v49, %v3005_v12  ;;  %v3058_v55 = vmul.f32 1.442695, %v3035_v41  ;;  %v12846_v12 = vcombine.high %v12690_v24, %v12690_v24 }
 0xaf4   :  { %v3007_v9 = vpop.xlane.xlu1 %3006  ;;  %10640 = vpow2.f32 %v3046_v52 }
 0xaf5   :  { %v12784_v15 = vpop.eup %10632  ;;  %v3052_v50 = vmul.f32 1.442695, %v3032_v26  ;;  %v3033_v38 = vsub.f32 %v2953_v42, %v3007_v9 }
 0xaf6   :  { %3080 = vadd.xlane.f32.xlu1 %v12784_v15  ;;  %v3017_v34 = vpop.xlane.xlu0 %3016  ;;  %v12787_v58 = vpop.eup %10634 }
 0xaf7   :  { %10642 = vpow2.f32 %v3052_v50  ;;  %v3054_v45 = vmul.f32 1.442695, %v3033_v38  ;;  %v3038_v57 = vsub.f32 %v12749_v44, %v3017_v34 }
 0xaf8   :  { %10644 = vpow2.f32 %v3058_v55  ;;  %v3019_v0 = vpop.xlane.xlu1 %3018 }
 0xaf9   :  { %10646 = vpow2.f32 %v3054_v45  ;;  %v3039_v42 = vsub.f32 %v12752_v62, %v3019_v0  ;;  %v3064_v21 = vmul.f32 1.442695, %v3038_v57 }
 0xafa   :  { %3076 = vadd.xlane.f32.xlu1 %v12787_v58  ;;  %v3013_v14 = vpop.xlane.xlu0 %3012  ;;  %v12790_v51 = vpop.eup %10636 }
 0xafb   :  { %v3036_v47 = vsub.f32 %v12756_v60, %v3013_v14  ;;  %v3066_v18 = vmul.f32 1.442695, %v3039_v42 }
 0xafc   :  { %v3015_v31 = vpop.xlane.xlu1 %3014 }
 0xafd   :  { %v12792_v13 = vpop.eup %10638  ;;  %v3037_v11 = vsub.f32 %v12760_v35, %v3015_v31  ;;  %v3060_v49 = vmul.f32 1.442695, %v3036_v47 }
 0xafe   :  { %3082 = vadd.xlane.f32.xlu1 %v12790_v51  ;;  %3088 = vadd.xlane.f32.xlu0 %v12792_v13  ;;  %v3025_v20 = vpop.xlane.xlu0 %3024  ;;  %v12796_v10 = vpop.eup %10640 }
 0xaff   :  { %v3062_v2 = vmul.f32 1.442695, %v3037_v11  ;;  %10648 = vpow2.f32 %v3060_v49 }
 0xb00   :  { %v3159_v17 = vpop.permute.xlu1 %3158 }
 0xb01   :  { %v12798_v43 = vpop.eup %10642  ;;  %10650 = vpow2.f32 %v3062_v2 }
 0xb02   :  { %3078 = vadd.xlane.f32.xlu1 %v12796_v10  ;;  %3084 = vadd.xlane.f32.xlu0 %v12798_v43  ;;  %v3021_v1 = vpop.xlane.xlu0 %3020  ;;  %v12802_v22 = vpop.eup %10644  ;;  %10652 = vpow2.f32 %v3064_v21 }
 0xb03   :  { %v12804_v63 = vpop.eup %10646  ;;  %v3040_v8 = vsub.f32 %v12769_v40, %v3021_v1  ;;  %10654 = vpow2.f32 %v3066_v18 }
 0xb05   :  { %v3068_v60 = vmul.f32 1.442695, %v3040_v8 }
 0xb06   :  { %3086 = vadd.xlane.f32.xlu1 %v12804_v63  ;;  %3090 = vadd.xlane.f32.xlu0 %v12802_v22  ;;  %v3157_v25 = vpop.permute.xlu0 %3156 }
 0xb07   :  { %9590 = vmatprep.subr.bf16.mxu1 %v3157_v25  ;;  %10656 = vpow2.f32 %v3068_v60 }
 0xb08   :  { %9591 = vmatpush3.bf16.msra.mxu1 %v3157_v25 }
 0xb09   :  { %9592 = vmatprep.subr.bf16.mxu1 %v3159_v17  ;;  %v12820_v61 = vpop.eup %10648 }
 0xb0b   :  { %v12822_v39 = vpop.eup %10650 }
 0xb0c   :  { %9593 = vmatpush3.bf16.msra.mxu1 %v3159_v17 }
 0xb17   :  { %3162 = vrot.lane.b32.xlu1 %v11894_v48, %s11232_s28 }
 0xb1c   :  { %3160 = vrot.lane.b32.xlu0 %v15671_v7, %s11232_s28  ;;  %v3042_v7 = vsub.f32 %v12764_v3, %v3025_v20  ;;  %v12826_v3 = vpop.eup %10652 }
 0xb1d   :  { %v12828_v40 = vpop.eup %10654 }
 0xb1e   :  { %v3072_v5 = vmul.f32 1.442695, %v3042_v7 }
 0xb31   :  { %v3027_v48 = vpop.xlane.xlu1 %3026 }
 0xb32   :  { %v3043_v35 = vsub.f32 %v12777_v6, %v3027_v48  ;;  %v12832_v6 = vpop.eup %10656 }
 0xb34   :  { %v3074_v4 = vmul.f32 1.442695, %v3043_v35 }
 0xb35   :  { %v3023_v59 = vpop.xlane.xlu1 %3022 }
 0xb36   :  { %v3041_v44 = vsub.f32 %v12781_v29, %v3023_v59 }
 0xb38   :  { %v3070_v62 = vmul.f32 1.442695, %v3041_v44 }
 0xb3a   :  { %10658 = vpow2.f32 %v3070_v62 }
 0xb3b   :  { %3094 = vadd.xlane.f32.xlu0 %v12822_v39  ;;  %3092 = vadd.xlane.f32.xlu1 %v12820_v61  ;;  %10660 = vpow2.f32 %v3072_v5 }
 0xb3c   :  { %10662 = vpow2.f32 %v3074_v4 }
 0xb3f   :  { %3096 = vadd.xlane.f32.xlu0 %v12826_v3  ;;  %3098 = vadd.xlane.f32.xlu1 %v12828_v40 }
 0xb43   :  { %3100 = vadd.xlane.f32.xlu0 %v12832_v6 }
 0xb44   :  { %v12835_v29 = vpop.eup %10658 }
 0xb45   :  { %3102 = vadd.xlane.f32.xlu1 %v12835_v29  ;;  %v12838_v23 = vpop.eup %10660 }
 0xb46   :  { %v12841_v30 = vpop.eup %10662 }
 0xb47   :  { %3104 = vadd.xlane.f32.xlu0 %v12838_v23 }
 0xb49   :  { %3106 = vadd.xlane.f32.xlu1 %v12841_v30 }
 0xb83   :  { %v3081_v27 = vpop.xlane.xlu1 %3080 }
 0xb87   :  { %v3077_v37 = vpop.xlane.xlu1 %3076 }
 0xb8b   :  { %v3083_v54 = vpop.xlane.xlu1 %3082  ;;  %v3089_v28 = vpop.xlane.xlu0 %3088 }
 0xb8c   :  { %10664 = vrcp.f32 %v3083_v54 }
 0xb8d   :  { %10666 = vrcp.f32 %v3077_v37 }
 0xb8e   :  { %10668 = vrcp.f32 %v3081_v27 }
 0xb8f   :  { %v3079_v46 = vpop.xlane.xlu1 %3078  ;;  %v3085_v56 = vpop.xlane.xlu0 %3084 }
 0xb90   :  { %10670 = vrcp.f32 %v3079_v46 }
 0xb91   :  { %10672 = vrcp.f32 %v3085_v56 }
 0xb93   :  { %v3087_v32 = vpop.xlane.xlu1 %3086  ;;  %v3091_v33 = vpop.xlane.xlu0 %3090 }
 0xb94   :  { %10674 = vrcp.f32 %v3087_v32 }
 0xb95   :  { %10676 = vrcp.f32 %v3091_v33 }
 0xb96   :  { %v10665_v36 = vpop.eup %10664  ;;  %10678 = vrcp.f32 %v3089_v28 }
 0xb97   :  { %v3161_v16 = vpop.permute.xlu0 %3160  ;;  %v10667_v19 = vpop.eup %10666  ;;  %v3127_v26 = vmul.f32 %v10665_v36, %v12790_v51 }
 0xb98   :  { %9594 = vmatprep.subr.bf16.mxu1 %v3161_v16  ;;  %v10669_v53 = vpop.eup %10668  ;;  %v3163_v52 = vpop.permute.xlu1 %3162  ;;  %v3124_v9 = vmul.f32 %v10667_v19, %v12787_v58 }
 0xb99   :  { %9595 = vmatpush3.bf16.msra.mxu1 %v3161_v16  ;;  %v3126_v55 = vmul.f32 %v10669_v53, %v12784_v15 }
 0xb9a   :  { %v10671_v41 = vpop.eup %10670  ;;  %9596 = vmatprep.subr.bf16.mxu1 %v3163_v52 }
 0xb9b   :  { %v3125_v50 = vmul.f32 %v10671_v41, %v12796_v10  ;;  %v10673_v38 = vpop.eup %10672  ;;  %v3141_v14 = vpack.c.bf16 %v3127_v26, %v3126_v55 }
 0xb9c   :  { %v3128_v24 = vmul.f32 %v10673_v38, %v12798_v43 }
 0xb9d   :  { %9597 = vmatpush3.bf16.msra.mxu1 %v3163_v52  ;;  %v3140_v34 = vpack.c.bf16 %v3125_v50, %v3124_v9 }
 0xb9e   :  { %v10675_v45 = vpop.eup %10674  ;;  %10231 = vmatprep.subr.msk.bf16.mxu1 %vm1238_vm1, %v12846_v12 }
 0xb9f   :  { %v10677_v0 = vpop.eup %10676  ;;  %9598 = vmatprep.mubr.bf16.mxu1 %v3140_v34  ;;  %v3129_v51 = vmul.f32 %v10675_v45, %v12804_v63  ;;  %v15674_v34 = vmov 0   ;;  %v12880_v45 = vld [vmem:[%s15543_s4 + $0x8] sm:$0xff] }
 0xba0   :  { %9599 = vmatmul.mubr.bf16.vlgmr.msra.gmra.mrb[80].mxu1 %v3141_v14  ;;  %v10679_v58 = vpop.eup %10678  ;;  %v3131_v10 = vmul.f32 %v10677_v0, %v12802_v22  ;;  %v15675_v14 = vld [vmem:[#allocation7_spill] sm:$0xff] }
 0xba1   :  { %v3142_v20 = vpack.c.bf16 %v3129_v51, %v3128_v24  ;;  %v3130_v15 = vmul.f32 %v10679_v58, %v12792_v13  ;;  %v3423_v0 = vrot.slane %v12880_v45, %v15675_v14 }
 0xba3   :  { %9602 = vmatprep.mubr.bf16.mxu1 %v3142_v20  ;;  %v3143_v31 = vpack.c.bf16 %v3131_v10, %v3130_v15 }
 0xba8   :  { %9603 = vmatmul.mubr.bf16.gmra.mrb[84].mxu1 %v3143_v31  ;;  %v15676_v31 = vld [vmem:[#allocation9_spill] sm:$0xff] }
 0xbc8   :  { %v3093_v1 = vpop.xlane.xlu1 %3092  ;;  %v3095_v25 = vpop.xlane.xlu0 %3094 }
 0xbc9   :  { %10680 = vrcp.f32 %v3093_v1 }
 0xbca   :  { %10682 = vrcp.f32 %v3095_v25 }
 0xbcc   :  { %v3099_v17 = vpop.xlane.xlu1 %3098  ;;  %v3097_v47 = vpop.xlane.xlu0 %3096 }
 0xbcd   :  { %10684 = vrcp.f32 %v3099_v17 }
 0xbce   :  { %10686 = vrcp.f32 %v3097_v47  ;;  %v15677_v47 = vld [vmem:[#allocation10_spill] sm:$0xff] }
 0xbd0   :  { %v3101_v43 = vpop.xlane.xlu0 %3100 }
 0xbd1   :  { %10688 = vrcp.f32 %v3101_v43 }
 0xbd2   :  { %v3103_v63 = vpop.xlane.xlu1 %3102 }
 0xbd3   :  { %v10681_v11 = vpop.eup %10680  ;;  %10690 = vrcp.f32 %v3103_v63  ;;  %v15678_v63 = vld [vmem:[#allocation11_spill] sm:$0xff] }
 0xbd4   :  { %v10683_v57 = vpop.eup %10682  ;;  %v3105_v22 = vpop.xlane.xlu0 %3104  ;;  %v3132_v49 = vmul.f32 %v10681_v11, %v12820_v61 }
 0xbd5   :  { %10692 = vrcp.f32 %v3105_v22  ;;  %v3133_v13 = vmul.f32 %v10683_v57, %v12822_v39 }
 0xbd6   :  { %v3107_v42 = vpop.xlane.xlu1 %3106 }
 0xbd7   :  { %v10685_v2 = vpop.eup %10684  ;;  %10694 = vrcp.f32 %v3107_v42  ;;  %v3144_v21 = vpack.c.bf16 %v3133_v13, %v3132_v49  ;;  %v15679_v49 = vld [vmem:[#allocation12_spill] sm:$0xff] }
 0xbd8   :  { %v10687_v18 = vpop.eup %10686  ;;  %v3135_v8 = vmul.f32 %v10685_v2, %v12828_v40 }
 0xbd9   :  { %9606 = vmatprep.mubr.bf16.mxu1 %v3144_v21  ;;  %v3134_v48 = vmul.f32 %v10687_v18, %v12826_v3  ;;  %v3305_v3 = vsel %vm1238_vm1, %v12846_v12, 0 }
 0xbda   :  { %9615 = vmatpush3.bf16.msra.mxu1 %v3305_v3 }
 0xbdb   :  { %v10689_v7 = vpop.eup %10688  ;;  %v3145_v60 = vpack.c.bf16 %v3135_v8, %v3134_v48  ;;  %v15680_v8 = vld [vmem:[#allocation13_spill] sm:$0xff] }
 0xbdc   :  { %v3136_v35 = vmul.f32 %v10689_v7, %v12832_v6 }
 0xbdd   :  { %v10691_v59 = vpop.eup %10690  ;;  %9607 = vmatmul.mubr.bf16.gmra.mrb[88].mxu1 %v3145_v60 }
 0xbde   :  { %v3137_v44 = vmul.f32 %v10691_v59, %v12835_v29  ;;  %v15681_v59 = vld [vmem:[#allocation14_spill] sm:$0xff] }
 0xbdf   :  { %v10693_v5 = vpop.eup %10692 }
 0xbe0   :  { %v3146_v62 = vpack.c.bf16 %v3137_v44, %v3136_v35  ;;  %v3138_v39 = vmul.f32 %v10693_v5, %v12838_v23  ;;  %v15682_v44 = vld [vmem:[#allocation15_spill] sm:$0xff] }
 0xbe1   :  { %v10695_v61 = vpop.eup %10694 }
 0xbe2   :  { %9610 = vmatprep.mubr.bf16.mxu1 %v3146_v62  ;;  %v3139_v4 = vmul.f32 %v10695_v61, %v12841_v30  ;;  %v15683_v62 = vld [vmem:[#allocation16_spill] sm:$0xff] }
 0xbe4   :  { %v3147_v40 = vpack.c.bf16 %v3139_v4, %v3138_v39 }
 0xbe6   :  { %9611 = vmatmul.mubr.bf16.gmra.mrb[92].mxu1 %v3147_v40 }
 0xc73   :  { %v9600_v27 = vpop.f32.mrb[80].mxu1 }
 0xc74   :  { %v3206_v37 = vpop.f32.mrb[81].mxu1 }
 0xc75   :  { %v9601_v54 = vpop.f32.mrb[82].mxu1 }
 0xc76   :  { %v3270_v6 = vpack.c.bf16 %v9601_v54, %v9600_v27  ;;  %v3209_v28 = vpop.f32.mrb[83].mxu1  ;;  %v15684_v54 = vld [vmem:[#allocation17_spill] sm:$0xff] }
 0xc77   :  { %v3269_v29 = vpack.c.bf16 %v3209_v28, %v3206_v37 }
 0xc79   :  { %9616 = vmatprep.mubr.msk.bf16.mxu1 %vm1213_vm0, %v3269_v29 }
 0xc7a   :  { %9617 = vmatmul.mubr.msk.bf16.vlgmr.msra.gmra.mrb[64].mxu1 %vm1213_vm0, %v3270_v6 }
 0xc7b   :  { %v9604_v46 = vpop.f32.mrb[84].mxu1 }
 0xc7c   :  { %v3222_v23 = vpop.f32.mrb[85].mxu1 }
 0xc7d   :  { %v9605_v56 = vpop.f32.mrb[86].mxu1 }
 0xc7e   :  { %v3272_v30 = vpack.c.bf16 %v9605_v56, %v9604_v46  ;;  %v3225_v32 = vpop.f32.mrb[87].mxu1  ;;  %v15685_v46 = vld [vmem:[#allocation18_spill] sm:$0xff]  ;;  %v15686_v56 = vld [vmem:[#allocation19_spill] sm:$0xff] }
 0xc7f   :  { %v3271_v33 = vpack.c.bf16 %v3225_v32, %v3222_v23 }
 0xc81   :  { %9620 = vmatprep.mubr.msk.bf16.mxu1 %vm1213_vm0, %v3271_v33  ;;  %v15687_v33 = vld [vmem:[#allocation20_spill] sm:$0xff] }
 0xc82   :  { %9621 = vmatmul.mubr.msk.bf16.gmra.mrb[68].mxu1 %vm1213_vm0, %v3272_v30 }
 0xcb0   :  { %v9608_v36 = vpop.f32.mrb[88].mxu1 }
 0xcb1   :  { %v3238_v16 = vpop.f32.mrb[89].mxu1 }
 0xcb2   :  { %v9609_v19 = vpop.f32.mrb[90].mxu1 }
 0xcb3   :  { %v3274_v53 = vpack.c.bf16 %v9609_v19, %v9608_v36  ;;  %v3241_v52 = vpop.f32.mrb[91].mxu1 }
 0xcb4   :  { %v3273_v41 = vpack.c.bf16 %v3241_v52, %v3238_v16 }
 0xcb6   :  { %9624 = vmatprep.mubr.msk.bf16.mxu1 %vm1213_vm0, %v3273_v41 }
 0xcb7   :  { %9625 = vmatmul.mubr.msk.bf16.gmra.mrb[72].mxu1 %vm1213_vm0, %v3274_v53 }
 0xcb9   :  { %v9612_v12 = vpop.f32.mrb[92].mxu1 }
 0xcba   :  { %v3254_v26 = vpop.f32.mrb[93].mxu1 }
 0xcbb   :  { %v9613_v9 = vpop.f32.mrb[94].mxu1 }
 0xcbc   :  { %v3276_v50 = vpack.c.bf16 %v9613_v9, %v9612_v12  ;;  %v3257_v38 = vpop.f32.mrb[95].mxu1  ;;  %v15688_v12 = vld [vmem:[#allocation21_spill] sm:$0xff] }
 0xcbd   :  { %v3275_v55 = vpack.c.bf16 %v3257_v38, %v3254_v26  ;;  %v15689_v38 = vld [vmem:[#allocation22_spill] sm:$0xff] }
 0xcbf   :  { %9628 = vmatprep.mubr.msk.bf16.mxu1 %vm1213_vm0, %v3275_v55 }
 0xcc0   :  { %9629 = vmatmul.mubr.msk.bf16.gmra.mrb[76].mxu1 %vm1213_vm0, %v3276_v50 }
 0xcc1   :  { %4632 = vmatprep.mubr.bf16.mxu1 %v15674_v34 }
 0xd4d   :  { %v9618_v24 = vpop.f32.mrb[64].mxu1 }
 0xd4e   :  { %v3341_v51 = vpop.f32.mrb[65].mxu1  ;;  %v3426_v15 = vadd.f32 %v9618_v24, %v3423_v0  ;;  %v15690_v24 = vld [vmem:[#allocation23_spill] sm:$0xff] }
 0xd4f   :  { %v3424_v58 = vadd.f32 %v3423_v0, %v3341_v51  ;;  %v9619_v20 = vpop.f32.mrb[66].mxu1 }
 0xd50   :  { %v3344_v10 = vpop.f32.mrb[67].mxu1  ;;  %v3427_v17 = vadd.f32 %v9619_v20, %v3423_v0  ;;  %v12892_v11 = vadd.f32 %v3426_v15, %v15678_v63  ;;  %v15692_v63 = vld [vmem:[#allocation6_spill] sm:$0xff] }
 0xd51   :  { %v12885_v1 = vadd.f32 %v3424_v58, %v15676_v31  ;;  %v3425_v25 = vadd.f32 %v3423_v0, %v3344_v10  ;;  %v15691_v58 = vld [vmem:[#allocation24_spill] sm:$0xff] }
 0xd52   :  { %v12896_v13 = vadd.f32 %v3427_v17, %v15679_v49 }
 0xd53   :  { %v12888_v43 = vadd.f32 %v3425_v25, %v15677_v47  ;;  %3456 = vadd.xlane.f32.xlu0 %v12885_v1 }
 0xd55   :  { %3458 = vadd.xlane.f32.xlu1 %v12888_v43  ;;  %v9622_v57 = vpop.f32.mrb[68].mxu1 }
 0xd56   :  { %v3357_v22 = vpop.f32.mrb[69].mxu1  ;;  %v3430_v18 = vadd.f32 %v9622_v57, %v3423_v0 }
 0xd57   :  { %v3428_v42 = vadd.f32 %v3423_v0, %v3357_v22  ;;  %3460 = vadd.xlane.f32.xlu0 %v12892_v11  ;;  %v9623_v2 = vpop.f32.mrb[70].mxu1 }
 0xd58   :  { %v3360_v21 = vpop.f32.mrb[71].mxu1  ;;  %v3431_v60 = vadd.f32 %v9623_v2, %v3423_v0  ;;  %v12908_v5 = vadd.f32 %v3430_v18, %v15682_v44 }
 0xd59   :  { %v12900_v48 = vadd.f32 %v3428_v42, %v15680_v8  ;;  %v3429_v7 = vadd.f32 %v3423_v0, %v3360_v21  ;;  %3462 = vadd.xlane.f32.xlu1 %v12896_v13 }
 0xd5a   :  { %v12912_v61 = vadd.f32 %v3431_v60, %v15683_v62 }
 0xd5b   :  { %v12904_v35 = vadd.f32 %v3429_v7, %v15681_v59  ;;  %3464 = vadd.xlane.f32.xlu0 %v12900_v48 }
 0xd5d   :  { %3466 = vadd.xlane.f32.xlu1 %v12904_v35 }
 0xd5f   :  { %3468 = vadd.xlane.f32.xlu0 %v12908_v5 }
 0xd61   :  { %3470 = vadd.xlane.f32.xlu1 %v12912_v61 }
 0xd8a   :  { %v9626_v39 = vpop.f32.mrb[72].mxu1 }
 0xd8b   :  { %v3373_v4 = vpop.f32.mrb[73].mxu1  ;;  %v3434_v37 = vadd.f32 %v9626_v39, %v3423_v0 }
 0xd8c   :  { %v3432_v40 = vadd.f32 %v3423_v0, %v3373_v4  ;;  %v9627_v3 = vpop.f32.mrb[74].mxu1 }
 0xd8d   :  { %v3376_v27 = vpop.f32.mrb[75].mxu1  ;;  %v3435_v29 = vadd.f32 %v9627_v3, %v3423_v0  ;;  %v12924_v30 = vadd.f32 %v3434_v37, %v15686_v56 }
 0xd8e   :  { %v12917_v6 = vadd.f32 %v3432_v40, %v15684_v54  ;;  %v3433_v28 = vadd.f32 %v3423_v0, %v3376_v27 }
 0xd8f   :  { %v12928_v36 = vadd.f32 %v3435_v29, %v15687_v33 }
 0xd90   :  { %v12920_v23 = vadd.f32 %v3433_v28, %v15685_v46  ;;  %3472 = vadd.xlane.f32.xlu0 %v12917_v6 }
 0xd92   :  { %3474 = vadd.xlane.f32.xlu1 %v12920_v23 }
 0xd93   :  { %v9630_v32 = vpop.f32.mrb[76].mxu1 }
 0xd94   :  { %3476 = vadd.xlane.f32.xlu0 %v12924_v30  ;;  %v3389_v16 = vpop.f32.mrb[77].mxu1  ;;  %v3438_v41 = vadd.f32 %v9630_v32, %v3423_v0 }
 0xd95   :  { %v3436_v19 = vadd.f32 %v3423_v0, %v3389_v16  ;;  %v9631_v53 = vpop.f32.mrb[78].mxu1 }
 0xd96   :  { %3478 = vadd.xlane.f32.xlu1 %v12928_v36  ;;  %v3392_v52 = vpop.f32.mrb[79].mxu1  ;;  %v3439_v50 = vadd.f32 %v9631_v53, %v3423_v0  ;;  %v12940_v51 = vadd.f32 %v3438_v41, %v15690_v24  ;;  %v10297_v53 = vld [vmem:[%s15548_s7 + $0x18] sm:$0xff]   ;;  %v10299_v41 = vld [vmem:[%s15548_s7 + $0x28] sm:$0xff]  }
 0xd97   :  { %v12933_v26 = vadd.f32 %v3436_v19, %v15688_v12  ;;  %v3437_v9 = vadd.f32 %v3423_v0, %v3392_v52  ;;  %v10294_v0 = vld [vmem:[%s15548_s7] sm:$0xff]   ;;  %v10296_v19 = vld [vmem:[%s15548_s7 + $0x10] sm:$0xff]  }
 0xd98   :  { %v12944_v20 = vadd.f32 %v3439_v50, %v15691_v58  ;;  %9632 = vmatprep.subr.bf16.mxu0 %v10294_v0  ;;  %v10298_v52 = vld [vmem:[%s15548_s7 + $0x20] sm:$0xff]   ;;  %v10300_v12 = vld [vmem:[%s15548_s7 + $0x30] sm:$0xff]  }
 0xd99   :  { %v12936_v55 = vadd.f32 %v3437_v9, %v15689_v38  ;;  %3480 = vadd.xlane.f32.xlu0 %v12933_v26  ;;  %9633 = vmatpush3.bf16.msra.mxu0 %v10294_v0  ;;  %v10301_v9 = vld [vmem:[%s15548_s7 + $0x38] sm:$0xff]  }
 0xd9b   :  { %3482 = vadd.xlane.f32.xlu1 %v12936_v55 }
 0xd9d   :  { %3484 = vadd.xlane.f32.xlu0 %v12940_v51 }
 0xd9f   :  { %3486 = vadd.xlane.f32.xlu1 %v12944_v20 }
 0xde0   :  { %v3457_v10 = vpop.xlane.xlu0 %3456 }
 0xde1   :  { %v3488_v15 = vmul.f32 0.03125, %v3457_v10 }
 0xde2   :  { %v3459_v31 = vpop.xlane.xlu1 %3458 }
 0xde3   :  { %v3504_v25 = vsub.f32 %v12885_v1, %v3488_v15  ;;  %v3489_v17 = vmul.f32 0.03125, %v3459_v31 }
 0xde4   :  { %v3461_v47 = vpop.xlane.xlu0 %3460 }
 0xde5   :  { %v12953_v57 = vmul.f32 %v3504_v25, %v15692_v63  ;;  %v3505_v22 = vsub.f32 %v12888_v43, %v3489_v17  ;;  %v3490_v49 = vmul.f32 0.03125, %v3461_v47 }
 0xde6   :  { %v3463_v42 = vpop.xlane.xlu1 %3462 }
 0xde7   :  { %v12957_v2 = vmul.f32 %v3505_v22, %v15692_v63  ;;  %v3506_v21 = vsub.f32 %v12892_v11, %v3490_v49  ;;  %v3491_v18 = vmul.f32 0.03125, %v3463_v42  ;;  %v3536_v8 = vmul.f32 %v12953_v57, %v12953_v57 }
 0xde8   :  { %v3465_v7 = vpop.xlane.xlu0 %3464 }
 0xde9   :  { %v12963_v1 = vmul.f32 %v3506_v21, %v15692_v63  ;;  %v3507_v60 = vsub.f32 %v12896_v13, %v3491_v18  ;;  %v3492_v59 = vmul.f32 0.03125, %v3465_v7  ;;  %3552 = vadd.xlane.f32.xlu0 %v3536_v8  ;;  %v3537_v43 = vmul.f32 %v12957_v2, %v12957_v2 }
 0xdea   :  { %v3467_v44 = vpop.xlane.xlu1 %3466 }
 0xdeb   :  { %v12969_v62 = vmul.f32 %v3507_v60, %v15692_v63  ;;  %v3508_v11 = vsub.f32 %v12900_v48, %v3492_v59  ;;  %v3493_v39 = vmul.f32 0.03125, %v3467_v44  ;;  %3554 = vadd.xlane.f32.xlu1 %v3537_v43  ;;  %v3538_v4 = vmul.f32 %v12963_v1, %v12963_v1 }
 0xdec   :  { %v3469_v40 = vpop.xlane.xlu0 %3468 }
 0xded   :  { %v12975_v3 = vmul.f32 %v3508_v11, %v15692_v63  ;;  %v3509_v13 = vsub.f32 %v12904_v35, %v3493_v39  ;;  %v3494_v27 = vmul.f32 0.03125, %v3469_v40  ;;  %3556 = vadd.xlane.f32.xlu0 %v3538_v4  ;;  %v3539_v37 = vmul.f32 %v12969_v62, %v12969_v62 }
 0xdee   :  { %v3471_v54 = vpop.xlane.xlu1 %3470 }
 0xdef   :  { %v12981_v28 = vmul.f32 %v3509_v13, %v15692_v63  ;;  %v3510_v48 = vsub.f32 %v12908_v5, %v3494_v27  ;;  %v3495_v29 = vmul.f32 0.03125, %v3471_v54  ;;  %3558 = vadd.xlane.f32.xlu1 %v3539_v37  ;;  %v3540_v46 = vmul.f32 %v12975_v3, %v12975_v3 }
 0xdf1   :  { %v12987_v56 = vmul.f32 %v3510_v48, %v15692_v63  ;;  %v3511_v35 = vsub.f32 %v12912_v61, %v3495_v29  ;;  %3560 = vadd.xlane.f32.xlu0 %v3540_v46  ;;  %v3541_v32 = vmul.f32 %v12981_v28, %v12981_v28  ;;  %v10295_v61 = vld [vmem:[%s15548_s7 + $0x8] sm:$0xff]  }
 0xdf2   :  { %9634 = vmatprep.subr.bf16.mxu0 %v10295_v61 }
 0xdf3   :  { %v12993_v33 = vmul.f32 %v3511_v35, %v15692_v63  ;;  %3562 = vadd.xlane.f32.xlu1 %v3541_v32  ;;  %v3542_v5 = vmul.f32 %v12987_v56, %v12987_v56  ;;  %9635 = vmatpush3.bf16.msra.mxu0 %v10295_v61 }
 0xdf4   :  { %9636 = vmatprep.subr.bf16.mxu0 %v10296_v19 }
 0xdf5   :  { %3564 = vadd.xlane.f32.xlu0 %v3542_v5  ;;  %v3543_v16 = vmul.f32 %v12993_v33, %v12993_v33 }
 0xdf7   :  { %3566 = vadd.xlane.f32.xlu1 %v3543_v16  ;;  %9637 = vmatpush3.bf16.msra.mxu0 %v10296_v19 }
 0xdf8   :  { %9638 = vmatprep.subr.bf16.mxu0 %v10297_v53 }
 0xdfb   :  { %9639 = vmatpush3.bf16.msra.mxu0 %v10297_v53 }
 0xdfc   :  { %9640 = vmatprep.subr.bf16.mxu0 %v10298_v52 }
 0xdff   :  { %9641 = vmatpush3.bf16.msra.mxu0 %v10298_v52 }
 0xe00   :  { %9642 = vmatprep.subr.bf16.mxu0 %v10299_v41 }
 0xe03   :  { %9643 = vmatpush3.bf16.msra.mxu0 %v10299_v41 }
 0xe04   :  { %9644 = vmatprep.subr.bf16.mxu0 %v10300_v12 }
 0xe07   :  { %9645 = vmatpush3.bf16.msra.mxu0 %v10300_v12 }
 0xe08   :  { %9646 = vmatprep.subr.bf16.mxu0 %v10301_v9 }
 0xe0b   :  { %9647 = vmatpush3.bf16.msra.mxu0 %v10301_v9 }
 0xe1d   :  { %v3473_v50 = vpop.xlane.xlu0 %3472 }
 0xe1e   :  { %v3496_v38 = vmul.f32 0.03125, %v3473_v50 }
 0xe1f   :  { %v3475_v24 = vpop.xlane.xlu1 %3474 }
 0xe20   :  { %v3512_v58 = vsub.f32 %v12917_v6, %v3496_v38  ;;  %v3497_v0 = vmul.f32 0.03125, %v3475_v24 }
 0xe21   :  { %v3477_v10 = vpop.xlane.xlu0 %3476 }
 0xe22   :  { %v13022_v15 = vmul.f32 %v3512_v58, %v15692_v63  ;;  %v3513_v31 = vsub.f32 %v12920_v23, %v3497_v0  ;;  %v3498_v25 = vmul.f32 0.03125, %v3477_v10 }
 0xe23   :  { %v3479_v17 = vpop.xlane.xlu1 %3478 }
 0xe24   :  { %v13026_v47 = vmul.f32 %v3513_v31, %v15692_v63  ;;  %v3514_v22 = vsub.f32 %v12924_v30, %v3498_v25  ;;  %v3499_v49 = vmul.f32 0.03125, %v3479_v17  ;;  %v3544_v42 = vmul.f32 %v13022_v15, %v13022_v15  ;;  %v15693_v17 = vld [vmem:[#allocation8_spill] sm:$0xff] }
 0xe26   :  { %v13032_v6 = vmul.f32 %v3514_v22, %v15692_v63  ;;  %v3515_v21 = vsub.f32 %v12928_v36, %v3499_v49  ;;  %3568 = vadd.xlane.f32.xlu0 %v3544_v42  ;;  %v3481_v18 = vpop.xlane.xlu0 %3480  ;;  %v3545_v23 = vmul.f32 %v13026_v47, %v13026_v47  ;;  %v13070_v22 = vrot.slane %v12880_v45, %v15693_v17  ;;  %v15694_v42 = vld [vmem:[#allocation2_spill] sm:$0xff] }
 0xe27   :  { %v3500_v8 = vmul.f32 0.03125, %v3481_v18 }
 0xe28   :  { %v13038_v7 = vmul.f32 %v3515_v21, %v15692_v63  ;;  %3570 = vadd.xlane.f32.xlu1 %v3545_v23  ;;  %v3483_v30 = vpop.xlane.xlu1 %3482  ;;  %v3546_v60 = vmul.f32 %v13032_v6, %v13032_v6  ;;  %v13073_v21 = vsub.s32 4, %v15694_v42 }
 0xe29   :  { %v3516_v59 = vsub.f32 %v12933_v26, %v3500_v8  ;;  %v3501_v43 = vmul.f32 0.03125, %v3483_v30 }
 0xe2a   :  { %3572 = vadd.xlane.f32.xlu0 %v3546_v60  ;;  %v3485_v44 = vpop.xlane.xlu0 %3484  ;;  %v3547_v36 = vmul.f32 %v13038_v7, %v13038_v7  ;;  %15695 = vst [vmem:[#allocation34_spill] sm:$0xff] %v13073_v21 }
 0xe2b   :  { %v13046_v11 = vmul.f32 %v3516_v59, %v15692_v63  ;;  %v3517_v39 = vsub.f32 %v12936_v55, %v3501_v43  ;;  %v3502_v4 = vmul.f32 0.03125, %v3485_v44 }
 0xe2c   :  { %3574 = vadd.xlane.f32.xlu1 %v3547_v36  ;;  %v3487_v40 = vpop.xlane.xlu1 %3486  ;;  %v13080_v36 = vrot.slane %v12880_v45, %v13073_v21  ;;  %v11210_v21 = vld [vmem:[%s15546_s2 + $0x68] sm:$0xff] }
 0xe2d   :  { %v13050_v13 = vmul.f32 %v3517_v39, %v15692_v63  ;;  %v3518_v27 = vsub.f32 %v12940_v51, %v3502_v4  ;;  %v3503_v26 = vmul.f32 0.03125, %v3487_v40  ;;  %v3548_v37 = vmul.f32 %v13046_v11, %v13046_v11 }
 0xe2f   :  { %v13056_v54 = vmul.f32 %v3518_v27, %v15692_v63  ;;  %v3519_v48 = vsub.f32 %v12944_v20, %v3503_v26  ;;  %3576 = vadd.xlane.f32.xlu0 %v3548_v37  ;;  %v3549_v55 = vmul.f32 %v13050_v13, %v13050_v13 }
 0xe31   :  { %v13062_v29 = vmul.f32 %v3519_v48, %v15692_v63  ;;  %3578 = vadd.xlane.f32.xlu1 %v3549_v55  ;;  %v3550_v51 = vmul.f32 %v13056_v54, %v13056_v54 }
 0xe33   :  { %3580 = vadd.xlane.f32.xlu0 %v3550_v51  ;;  %v3551_v46 = vmul.f32 %v13062_v29, %v13062_v29 }
 0xe35   :  { %3582 = vadd.xlane.f32.xlu1 %v3551_v46 }
 0xe76   :  { %v3553_v35 = vpop.xlane.xlu0 %3552 }
 0xe77   :  { %v3584_v32 = vmul.f32 0.03125, %v3553_v35 }
 0xe78   :  { %v3555_v5 = vpop.xlane.xlu1 %3554 }
 0xe79   :  { %v3600_v20 = vadd.f32 1e-12, %v3584_v32  ;;  %v3585_v16 = vmul.f32 0.03125, %v3555_v5 }
 0xe7a   :  { %v3557_v61 = vpop.xlane.xlu0 %3556 }
 0xe7b   :  { %10696 = vrsqrt.f32 %v3600_v20  ;;  %v3601_v19 = vadd.f32 1e-12, %v3585_v16  ;;  %v3586_v53 = vmul.f32 0.03125, %v3557_v61 }
 0xe7c   :  { %v3559_v52 = vpop.xlane.xlu1 %3558 }
 0xe7d   :  { %10698 = vrsqrt.f32 %v3601_v19  ;;  %v3602_v41 = vadd.f32 1e-12, %v3586_v53  ;;  %v3587_v12 = vmul.f32 0.03125, %v3559_v52 }
 0xe7e   :  { %v3561_v9 = vpop.xlane.xlu0 %3560 }
 0xe7f   :  { %10700 = vrsqrt.f32 %v3602_v41  ;;  %v3603_v50 = vadd.f32 1e-12, %v3587_v12  ;;  %v3588_v38 = vmul.f32 0.03125, %v3561_v9 }
 0xe80   :  { %v3563_v24 = vpop.xlane.xlu1 %3562 }
 0xe81   :  { %10702 = vrsqrt.f32 %v3603_v50  ;;  %v3604_v58 = vadd.f32 1e-12, %v3588_v38  ;;  %v3589_v0 = vmul.f32 0.03125, %v3563_v24 }
 0xe82   :  { %v3565_v10 = vpop.xlane.xlu0 %3564 }
 0xe83   :  { %10704 = vrsqrt.f32 %v3604_v58  ;;  %v3605_v31 = vadd.f32 1e-12, %v3589_v0  ;;  %v3590_v25 = vmul.f32 0.03125, %v3565_v10 }
 0xe84   :  { %v3567_v49 = vpop.xlane.xlu1 %3566 }
 0xe85   :  { %v10697_v18 = vpop.eup %10696  ;;  %10706 = vrsqrt.f32 %v3605_v31  ;;  %v3606_v23 = vadd.f32 1e-12, %v3590_v25  ;;  %v3591_v8 = vmul.f32 0.03125, %v3567_v49 }
 0xe86   :  { %v3632_v30 = vmul.f32 %v10697_v18, %v12953_v57 }
 0xe87   :  { %v10699_v60 = vpop.eup %10698  ;;  %10708 = vrsqrt.f32 %v3606_v23  ;;  %v3607_v59 = vadd.f32 1e-12, %v3591_v8 }
 0xe88   :  { %v3633_v43 = vmul.f32 %v10699_v60, %v12957_v2  ;;  %v3652_v44 = vmul.f32 %v13070_v22, %v3632_v30 }
 0xe89   :  { %v10701_v39 = vpop.eup %10700  ;;  %10710 = vrsqrt.f32 %v3607_v59 }
 0xe8a   :  { %v3634_v4 = vmul.f32 %v10701_v39, %v12963_v1  ;;  %v3653_v40 = vmul.f32 %v13070_v22, %v3633_v43  ;;  %v13087_v37 = vadd.f32 %v13080_v36, %v3652_v44 }
 0xe8b   :  { %v10703_v27 = vpop.eup %10702 }
 0xe8c   :  { %v3654_v57 = vmul.f32 %v13070_v22, %v3634_v4  ;;  %v3635_v26 = vmul.f32 %v10703_v27, %v12969_v62  ;;  %v13090_v2 = vadd.f32 %v13080_v36, %v3653_v40 }
 0xe8d   :  { %v10705_v48 = vpop.eup %10704 }
 0xe8e   :  { %v3655_v55 = vmul.f32 %v13070_v22, %v3635_v26  ;;  %v3688_v51 = vpack.c.bf16 %v13090_v2, %v13087_v37  ;;  %v3636_v1 = vmul.f32 %v10705_v48, %v12975_v3  ;;  %v13097_v35 = vadd.f32 %v13080_v36, %v3654_v57 }
 0xe8f   :  { %v10707_v46 = vpop.eup %10706 }
 0xe90   :  { %9648 = vmatprep.mubr.bf16.mxu0 %v3688_v51  ;;  %v13100_v62 = vadd.f32 %v13080_v36, %v3655_v55  ;;  %v3637_v32 = vmul.f32 %v10707_v46, %v12981_v28  ;;  %v3656_v5 = vmul.f32 %v13070_v22, %v3636_v1 }
 0xe91   :  { %v10709_v20 = vpop.eup %10708 }
 0xe92   :  { %v3689_v16 = vpack.c.bf16 %v13100_v62, %v13097_v35  ;;  %v3657_v61 = vmul.f32 %v13070_v22, %v3637_v32  ;;  %v3638_v3 = vmul.f32 %v10709_v20, %v12987_v56  ;;  %v13109_v53 = vadd.f32 %v13080_v36, %v3656_v5 }
 0xe93   :  { %v10711_v19 = vpop.eup %10710 }
 0xe94   :  { %9649 = vmatmul.mubr.bf16.vlgmr.msra.gmra.mrb[128].mxu0 %v3689_v16  ;;  %v13112_v52 = vadd.f32 %v13080_v36, %v3657_v61  ;;  %v3639_v28 = vmul.f32 %v10711_v19, %v12993_v33  ;;  %v3658_v41 = vmul.f32 %v13070_v22, %v3638_v3 }
 0xe96   :  { %v3690_v12 = vpack.c.bf16 %v13112_v52, %v13109_v53  ;;  %v3659_v9 = vmul.f32 %v13070_v22, %v3639_v28  ;;  %v13120_v56 = vadd.f32 %v13080_v36, %v3658_v41 }
 0xe98   :  { %9652 = vmatprep.mubr.bf16.mxu0 %v3690_v12  ;;  %v13123_v50 = vadd.f32 %v13080_v36, %v3659_v9 }
 0xe9a   :  { %v3691_v38 = vpack.c.bf16 %v13123_v50, %v13120_v56 }
 0xe9c   :  { %9653 = vmatmul.mubr.bf16.gmra.mrb[132].mxu0 %v3691_v38 }
 0xeb3   :  { %v3569_v24 = vpop.xlane.xlu0 %3568 }
 0xeb4   :  { %v3592_v33 = vmul.f32 0.03125, %v3569_v24 }
 0xeb5   :  { %v3571_v58 = vpop.xlane.xlu1 %3570 }
 0xeb6   :  { %v3608_v0 = vadd.f32 1e-12, %v3592_v33  ;;  %v3593_v10 = vmul.f32 0.03125, %v3571_v58 }
 0xeb7   :  { %v3573_v31 = vpop.xlane.xlu0 %3572 }
 0xeb8   :  { %10712 = vrsqrt.f32 %v3608_v0  ;;  %v3609_v25 = vadd.f32 1e-12, %v3593_v10  ;;  %v3594_v49 = vmul.f32 0.03125, %v3573_v31 }
 0xeb9   :  { %v3575_v18 = vpop.xlane.xlu1 %3574 }
 0xeba   :  { %10714 = vrsqrt.f32 %v3609_v25  ;;  %v3610_v23 = vadd.f32 1e-12, %v3594_v49  ;;  %v3595_v8 = vmul.f32 0.03125, %v3575_v18 }
 0xebc   :  { %10716 = vrsqrt.f32 %v3610_v23  ;;  %v3611_v30 = vadd.f32 1e-12, %v3595_v8  ;;  %v3577_v60 = vpop.xlane.xlu0 %3576 }
 0xebd   :  { %v3596_v59 = vmul.f32 0.03125, %v3577_v60 }
 0xebe   :  { %10718 = vrsqrt.f32 %v3611_v30  ;;  %v3579_v43 = vpop.xlane.xlu1 %3578 }
 0xebf   :  { %v3612_v44 = vadd.f32 1e-12, %v3596_v59  ;;  %v3597_v39 = vmul.f32 0.03125, %v3579_v43  ;;  %v10305_v43 = vld [vmem:[%s15549_s8 + $0x18] sm:$0xff]  }
 0xec0   :  { %v3581_v4 = vpop.xlane.xlu0 %3580 }
 0xec1   :  { %10720 = vrsqrt.f32 %v3612_v44  ;;  %v3613_v40 = vadd.f32 1e-12, %v3597_v39  ;;  %v3598_v27 = vmul.f32 0.03125, %v3581_v4  ;;  %v10306_v44 = vld [vmem:[%s15549_s8 + $0x20] sm:$0xff]   ;;  %v10307_v39 = vld [vmem:[%s15549_s8 + $0x28] sm:$0xff]   ;;  %v10308_v4 = vld [vmem:[%s15549_s8 + $0x30] sm:$0xff]  }
 0xec2   :  { %v10713_v57 = vpop.eup %10712  ;;  %v3583_v26 = vpop.xlane.xlu1 %3582 }
 0xec3   :  { %10722 = vrsqrt.f32 %v3613_v40  ;;  %v3614_v48 = vadd.f32 1e-12, %v3598_v27  ;;  %v3599_v55 = vmul.f32 0.03125, %v3583_v26  ;;  %v3640_v51 = vmul.f32 %v10713_v57, %v13022_v15  ;;  %v10309_v40 = vld [vmem:[%s15549_s8 + $0x38] sm:$0xff]  }
 0xec4   :  { %v10715_v1 = vpop.eup %10714  ;;  %v13200_v27 = vsub.s32 5, %v15694_v42 }
 0xec5   :  { %10724 = vrsqrt.f32 %v3614_v48  ;;  %v3615_v46 = vadd.f32 1e-12, %v3599_v55  ;;  %v3641_v32 = vmul.f32 %v10715_v1, %v13026_v47  ;;  %v3660_v5 = vmul.f32 %v13070_v22, %v3640_v51 }
 0xec6   :  { %v10717_v20 = vpop.eup %10716  ;;  %15696 = vst [vmem:[#allocation31_spill] sm:$0xff] %v13200_v27  ;;  %v13204_v57 = vrot.slane %v12880_v45, %v13200_v27  ;;  %v11204_v27 = vld [vmem:[%s15546_s2 + $0x40] sm:$0xff] }
 0xec7   :  { %10726 = vrsqrt.f32 %v3615_v46  ;;  %v3661_v16 = vmul.f32 %v13070_v22, %v3641_v32  ;;  %v3642_v61 = vmul.f32 %v10717_v20, %v13032_v6  ;;  %v13133_v19 = vadd.f32 %v13080_v36, %v3660_v5 }
 0xec8   :  { %v10719_v3 = vpop.eup %10718 }
 0xec9   :  { %v13136_v28 = vadd.f32 %v13080_v36, %v3661_v16  ;;  %v3643_v15 = vmul.f32 %v10719_v3, %v13038_v7  ;;  %v3662_v41 = vmul.f32 %v13070_v22, %v3642_v61 }
 0xecb   :  { %v10721_v47 = vpop.eup %10720  ;;  %v3692_v12 = vpack.c.bf16 %v13136_v28, %v13133_v19  ;;  %v3663_v9 = vmul.f32 %v13070_v22, %v3643_v15  ;;  %v13145_v24 = vadd.f32 %v13080_v36, %v3662_v41 }
 0xecc   :  { %v3644_v38 = vmul.f32 %v10721_v47, %v13046_v11 }
 0xecd   :  { %v10723_v6 = vpop.eup %10722  ;;  %9656 = vmatprep.mubr.bf16.mxu0 %v3692_v12  ;;  %v13148_v33 = vadd.f32 %v13080_v36, %v3663_v9 }
 0xece   :  { %v3645_v7 = vmul.f32 %v10723_v6, %v13050_v13  ;;  %v3664_v58 = vmul.f32 %v13070_v22, %v3644_v38 }
 0xecf   :  { %v10725_v0 = vpop.eup %10724  ;;  %v3693_v10 = vpack.c.bf16 %v13148_v33, %v13145_v24 }
 0xed0   :  { %v3665_v31 = vmul.f32 %v13070_v22, %v3645_v7  ;;  %v3646_v11 = vmul.f32 %v10725_v0, %v13056_v54  ;;  %v13157_v49 = vadd.f32 %v13080_v36, %v3664_v58 }
 0xed1   :  { %v10727_v25 = vpop.eup %10726  ;;  %9657 = vmatmul.mubr.bf16.gmra.mrb[136].mxu0 %v3693_v10 }
 0xed2   :  { %v13160_v18 = vadd.f32 %v13080_v36, %v3665_v31  ;;  %v3647_v13 = vmul.f32 %v10727_v25, %v13062_v29  ;;  %v3666_v23 = vmul.f32 %v13070_v22, %v3646_v11  ;;  %v10302_v29 = vld [vmem:[%s15549_s8] sm:$0xff]  }
 0xed3   :  { %9664 = vmatprep.subr.bf16.mxu0 %v10302_v29 }
 0xed4   :  { %v3694_v8 = vpack.c.bf16 %v13160_v18, %v13157_v49  ;;  %v3667_v30 = vmul.f32 %v13070_v22, %v3647_v13  ;;  %v13168_v54 = vadd.f32 %v13080_v36, %v3666_v23  ;;  %9665 = vmatpush3.bf16.msra.mxu0 %v10302_v29  ;;  %v10303_v22 = vld [vmem:[%s15549_s8 + $0x8] sm:$0xff]  }
 0xed5   :  { %9666 = vmatprep.subr.bf16.mxu0 %v10303_v22 }
 0xed6   :  { %9660 = vmatprep.mubr.bf16.mxu0 %v3694_v8  ;;  %v13171_v60 = vadd.f32 %v13080_v36, %v3667_v30  ;;  %v10304_v36 = vld [vmem:[%s15549_s8 + $0x10] sm:$0xff]  }
 0xed8   :  { %v3695_v59 = vpack.c.bf16 %v13171_v60, %v13168_v54  ;;  %9667 = vmatpush3.bf16.msra.mxu0 %v10303_v22 }
 0xed9   :  { %9668 = vmatprep.subr.bf16.mxu0 %v10304_v36 }
 0xeda   :  { %9661 = vmatmul.mubr.bf16.gmra.mrb[140].mxu0 %v3695_v59 }
 0xedc   :  { %9669 = vmatpush3.bf16.msra.mxu0 %v10304_v36 }
 0xedd   :  { %9670 = vmatprep.subr.bf16.mxu0 %v10305_v43 }
 0xee0   :  { %9671 = vmatpush3.bf16.msra.mxu0 %v10305_v43 }
 0xee1   :  { %9672 = vmatprep.subr.bf16.mxu0 %v10306_v44 }
 0xee4   :  { %9673 = vmatpush3.bf16.msra.mxu0 %v10306_v44 }
 0xee5   :  { %9674 = vmatprep.subr.bf16.mxu0 %v10307_v39 }
 0xee8   :  { %9675 = vmatpush3.bf16.msra.mxu0 %v10307_v39 }
 0xee9   :  { %9676 = vmatprep.subr.bf16.mxu0 %v10308_v4 }
 0xeec   :  { %9677 = vmatpush3.bf16.msra.mxu0 %v10308_v4 }
 0xeed   :  { %9678 = vmatprep.subr.bf16.mxu0 %v10309_v40 }
 0xef0   :  { %9679 = vmatpush3.bf16.msra.mxu0 %v10309_v40 }
 0xf67   :  { %v9650_v26 = vpop.f32.mrb[128].mxu0 }
 0xf68   :  { %v13207_v48 = vadd.f32 %v9650_v26, %v13204_v57  ;;  %v3782_v55 = vpop.f32.mrb[129].mxu0 }
 0xf69   :  { %v13210_v51 = vadd.f32 %v3782_v55, %v13204_v57  ;;  %v9651_v1 = vpop.f32.mrb[130].mxu0 }
 0xf6a   :  { %v3847_v46 = vmul.f32 %v13207_v48, %v13207_v48  ;;  %v13215_v32 = vadd.f32 %v9651_v1, %v13204_v57  ;;  %v3785_v42 = vpop.f32.mrb[131].mxu0 }
 0xf6b   :  { %v3845_v45 = vmul.f32 %v13210_v51, %v13210_v51  ;;  %v13220_v5 = vadd.f32 %v3785_v42, %v13204_v57 }
 0xf6c   :  { %v3863_v20 = vmul.f32 %v3847_v46, %v13207_v48  ;;  %v3848_v16 = vmul.f32 %v13215_v32, %v13215_v32 }
 0xf6d   :  { %v3861_v61 = vmul.f32 %v3845_v45, %v13210_v51  ;;  %v3846_v3 = vmul.f32 %v13220_v5, %v13220_v5 }
 0xf6e   :  { %v3879_v15 = vmul.f32 0.044715, %v3863_v20  ;;  %v3864_v41 = vmul.f32 %v3848_v16, %v13215_v32 }
 0xf6f   :  { %v3877_v47 = vmul.f32 0.044715, %v3861_v61  ;;  %v3862_v12 = vmul.f32 %v3846_v3, %v13220_v5  ;;  %v9654_v9 = vpop.f32.mrb[132].mxu0 }
 0xf70   :  { %v3895_v38 = vadd.f32 %v3879_v15, %v13207_v48  ;;  %v3880_v6 = vmul.f32 0.044715, %v3864_v41  ;;  %v13232_v7 = vadd.f32 %v9654_v9, %v13204_v57  ;;  %v3798_v58 = vpop.f32.mrb[133].mxu0 }
 0xf71   :  { %v3893_v0 = vadd.f32 %v3877_v47, %v13210_v51  ;;  %v3878_v10 = vmul.f32 0.044715, %v3862_v12  ;;  %v13236_v31 = vadd.f32 %v3798_v58, %v13204_v57  ;;  %v9655_v11 = vpop.f32.mrb[134].mxu0 }
 0xf72   :  { %v3911_v25 = vmul.f32 0.7978846, %v3895_v38  ;;  %v3896_v13 = vadd.f32 %v3880_v6, %v13215_v32  ;;  %v3851_v23 = vmul.f32 %v13232_v7, %v13232_v7  ;;  %v13242_v8 = vadd.f32 %v9655_v11, %v13204_v57  ;;  %v3801_v30 = vpop.f32.mrb[135].mxu0 }
 0xf73   :  { %v3909_v59 = vmul.f32 0.7978846, %v3893_v0  ;;  %v3894_v29 = vadd.f32 %v3878_v10, %v13220_v5  ;;  %v3849_v22 = vmul.f32 %v13236_v31, %v13236_v31  ;;  %v13248_v36 = vadd.f32 %v3801_v30, %v13204_v57 }
 0xf74   :  { %10728 = vtanh.f32 %v3911_v25  ;;  %v3912_v43 = vmul.f32 0.7978846, %v3896_v13  ;;  %v3867_v44 = vmul.f32 %v3851_v23, %v13232_v7  ;;  %v3852_v39 = vmul.f32 %v13242_v8, %v13242_v8 }
 0xf75   :  { %10730 = vtanh.f32 %v3909_v59  ;;  %v3910_v4 = vmul.f32 0.7978846, %v3894_v29  ;;  %v3865_v40 = vmul.f32 %v3849_v22, %v13236_v31  ;;  %v3850_v26 = vmul.f32 %v13248_v36, %v13248_v36 }
 0xf76   :  { %10732 = vtanh.f32 %v3912_v43  ;;  %v3883_v55 = vmul.f32 0.044715, %v3867_v44  ;;  %v3868_v1 = vmul.f32 %v3852_v39, %v13242_v8 }
 0xf77   :  { %10734 = vtanh.f32 %v3910_v4  ;;  %v3881_v46 = vmul.f32 0.044715, %v3865_v40  ;;  %v3866_v42 = vmul.f32 %v3850_v26, %v13248_v36 }
 0xf78   :  { %v3899_v45 = vadd.f32 %v3883_v55, %v13232_v7  ;;  %v3884_v20 = vmul.f32 0.044715, %v3868_v1 }
 0xf79   :  { %v3897_v16 = vadd.f32 %v3881_v46, %v13236_v31  ;;  %v3882_v61 = vmul.f32 0.044715, %v3866_v42 }
 0xf7a   :  { %v3915_v3 = vmul.f32 0.7978846, %v3899_v45  ;;  %v3900_v15 = vadd.f32 %v3884_v20, %v13242_v8 }
 0xf7b   :  { %v3913_v41 = vmul.f32 0.7978846, %v3897_v16  ;;  %v3898_v47 = vadd.f32 %v3882_v61, %v13248_v36 }
 0xf7c   :  { %10736 = vtanh.f32 %v3915_v3  ;;  %v3916_v12 = vmul.f32 0.7978846, %v3900_v15 }
 0xf7d   :  { %10738 = vtanh.f32 %v3913_v41  ;;  %v3914_v9 = vmul.f32 0.7978846, %v3898_v47 }
 0xf7e   :  { %v10729_v38 = vpop.eup %10728  ;;  %10740 = vtanh.f32 %v3916_v12 }
 0xf7f   :  { %v10731_v6 = vpop.eup %10730  ;;  %v3943_v58 = vadd.f32 1.0, %v10729_v38  ;;  %10742 = vtanh.f32 %v3914_v9 }
 0xf80   :  { %v10733_v0 = vpop.eup %10732  ;;  %v3941_v10 = vadd.f32 1.0, %v10731_v6 }
 0xf81   :  { %v10735_v11 = vpop.eup %10734  ;;  %v3959_v25 = vmul.f32 0.5, %v3943_v58  ;;  %v3944_v13 = vadd.f32 1.0, %v10733_v0 }
 0xf82   :  { %v3942_v23 = vadd.f32 1.0, %v10735_v11  ;;  %v3957_v30 = vmul.f32 0.5, %v3941_v10 }
 0xf83   :  { %v3960_v59 = vmul.f32 0.5, %v3944_v13  ;;  %v3975_v22 = vmul.f32 %v3959_v25, %v13207_v48 }
 0xf84   :  { %v3958_v29 = vmul.f32 0.5, %v3942_v23  ;;  %v3973_v39 = vmul.f32 %v3957_v30, %v13210_v51 }
 0xf85   :  { %v3976_v43 = vmul.f32 %v3960_v59, %v13215_v32 }
 0xf86   :  { %v10737_v44 = vpop.eup %10736  ;;  %v3974_v4 = vmul.f32 %v3958_v29, %v13220_v5 }
 0xf87   :  { %v10739_v40 = vpop.eup %10738  ;;  %v3990_v26 = vpack.c.bf16 %v3976_v43, %v3975_v22  ;;  %v3947_v55 = vadd.f32 1.0, %v10737_v44 }
 0xf88   :  { %v10741_v1 = vpop.eup %10740  ;;  %v3989_v46 = vpack.c.bf16 %v3974_v4, %v3973_v39  ;;  %v3945_v42 = vadd.f32 1.0, %v10739_v40 }
 0xf89   :  { %v10743_v45 = vpop.eup %10742  ;;  %v3948_v20 = vadd.f32 1.0, %v10741_v1  ;;  %v3963_v16 = vmul.f32 0.5, %v3947_v55 }
 0xf8a   :  { %9680 = vmatprep.mubr.bf16.mxu0 %v3989_v46  ;;  %v3946_v61 = vadd.f32 1.0, %v10743_v45  ;;  %v3961_v3 = vmul.f32 0.5, %v3945_v42 }
 0xf8b   :  { %9681 = vmatmul.mubr.bf16.vlgmr.msra.gmra.mrb[144].mxu0 %v3990_v26  ;;  %v3964_v48 = vmul.f32 0.5, %v3948_v20  ;;  %v3979_v15 = vmul.f32 %v3963_v16, %v13232_v7 }
 0xf8c   :  { %v3962_v32 = vmul.f32 0.5, %v3946_v61  ;;  %v3977_v5 = vmul.f32 %v3961_v3, %v13236_v31 }
 0xf8d   :  { %v3980_v51 = vmul.f32 %v3964_v48, %v13242_v8 }
 0xf8e   :  { %v3978_v41 = vmul.f32 %v3962_v32, %v13248_v36 }
 0xf8f   :  { %v3992_v47 = vpack.c.bf16 %v3980_v51, %v3979_v15 }
 0xf90   :  { %v3991_v12 = vpack.c.bf16 %v3978_v41, %v3977_v5 }
 0xf92   :  { %9684 = vmatprep.mubr.bf16.mxu0 %v3991_v12 }
 0xf93   :  { %9685 = vmatmul.mubr.bf16.gmra.mrb[148].mxu0 %v3992_v47 }
 0xfa4   :  { %v9658_v9 = vpop.f32.mrb[136].mxu0 }
 0xfa5   :  { %v13271_v38 = vadd.f32 %v9658_v9, %v13204_v57  ;;  %v3814_v6 = vpop.f32.mrb[137].mxu0 }
 0xfa6   :  { %v13274_v58 = vadd.f32 %v3814_v6, %v13204_v57  ;;  %v9659_v0 = vpop.f32.mrb[138].mxu0 }
 0xfa7   :  { %v3855_v7 = vmul.f32 %v13271_v38, %v13271_v38  ;;  %v13279_v31 = vadd.f32 %v9659_v0, %v13204_v57  ;;  %v3817_v8 = vpop.f32.mrb[139].mxu0 }
 0xfa8   :  { %v3853_v36 = vmul.f32 %v13274_v58, %v13274_v58  ;;  %v13284_v10 = vadd.f32 %v3817_v8, %v13204_v57 }
 0xfa9   :  { %v3871_v11 = vmul.f32 %v3855_v7, %v13271_v38  ;;  %v3856_v25 = vmul.f32 %v13279_v31, %v13279_v31 }
 0xfaa   :  { %v3869_v13 = vmul.f32 %v3853_v36, %v13274_v58  ;;  %v3854_v23 = vmul.f32 %v13284_v10, %v13284_v10 }
 0xfab   :  { %v3887_v30 = vmul.f32 0.044715, %v3871_v11  ;;  %v3872_v59 = vmul.f32 %v3856_v25, %v13279_v31 }
 0xfac   :  { %v3885_v29 = vmul.f32 0.044715, %v3869_v13  ;;  %v3870_v22 = vmul.f32 %v3854_v23, %v13284_v10 }
 0xfad   :  { %v3903_v43 = vadd.f32 %v3887_v30, %v13271_v38  ;;  %v3888_v44 = vmul.f32 0.044715, %v3872_v59  ;;  %v9662_v39 = vpop.f32.mrb[140].mxu0 }
 0xfae   :  { %v3901_v4 = vadd.f32 %v3885_v29, %v13274_v58  ;;  %v3886_v40 = vmul.f32 0.044715, %v3870_v22  ;;  %v13297_v26 = vadd.f32 %v9662_v39, %v13204_v57  ;;  %v3830_v55 = vpop.f32.mrb[141].mxu0 }
 0xfaf   :  { %v3919_v1 = vmul.f32 0.7978846, %v3903_v43  ;;  %v3904_v46 = vadd.f32 %v3888_v44, %v13279_v31  ;;  %v13301_v42 = vadd.f32 %v3830_v55, %v13204_v57  ;;  %v9663_v45 = vpop.f32.mrb[142].mxu0 }
 0xfb0   :  { %v3917_v20 = vmul.f32 0.7978846, %v3901_v4  ;;  %v3902_v16 = vadd.f32 %v3886_v40, %v13284_v10  ;;  %v3859_v61 = vmul.f32 %v13297_v26, %v13297_v26  ;;  %v13307_v3 = vadd.f32 %v9663_v45, %v13204_v57  ;;  %v3833_v48 = vpop.f32.mrb[143].mxu0 }
 0xfb1   :  { %10744 = vtanh.f32 %v3919_v1  ;;  %v3920_v32 = vmul.f32 0.7978846, %v3904_v46  ;;  %v3857_v15 = vmul.f32 %v13301_v42, %v13301_v42  ;;  %v3834_v51 = vadd.f32 %v3833_v48, %v13204_v57 }
 0xfb2   :  { %10746 = vtanh.f32 %v3917_v20  ;;  %v3918_v5 = vmul.f32 0.7978846, %v3902_v16  ;;  %v3875_v41 = vmul.f32 %v3859_v61, %v13297_v26  ;;  %v3860_v47 = vmul.f32 %v13307_v3, %v13307_v3 }
 0xfb3   :  { %10748 = vtanh.f32 %v3920_v32  ;;  %v3873_v12 = vmul.f32 %v3857_v15, %v13301_v42  ;;  %v3858_v9 = vmul.f32 %v3834_v51, %v3834_v51 }
 0xfb4   :  { %10750 = vtanh.f32 %v3918_v5  ;;  %v3891_v6 = vmul.f32 0.044715, %v3875_v41  ;;  %v3876_v0 = vmul.f32 %v3860_v47, %v13307_v3 }
 0xfb5   :  { %v3889_v7 = vmul.f32 0.044715, %v3873_v12  ;;  %v3874_v8 = vmul.f32 %v3858_v9, %v3834_v51 }
 0xfb6   :  { %v3907_v36 = vadd.f32 %v3891_v6, %v13297_v26  ;;  %v3892_v57 = vmul.f32 0.044715, %v3876_v0 }
 0xfb7   :  { %v3905_v11 = vadd.f32 %v3889_v7, %v13301_v42  ;;  %v3890_v25 = vmul.f32 0.044715, %v3874_v8 }
 0xfb8   :  { %v3923_v13 = vmul.f32 0.7978846, %v3907_v36  ;;  %v3908_v23 = vadd.f32 %v3892_v57, %v13307_v3 }
 0xfb9   :  { %v3921_v30 = vmul.f32 0.7978846, %v3905_v11  ;;  %v3906_v59 = vadd.f32 %v3890_v25, %v3834_v51 }
 0xfba   :  { %10752 = vtanh.f32 %v3923_v13  ;;  %v3924_v29 = vmul.f32 0.7978846, %v3908_v23 }
 0xfbb   :  { %v10745_v22 = vpop.eup %10744  ;;  %10754 = vtanh.f32 %v3921_v30  ;;  %v3922_v43 = vmul.f32 0.7978846, %v3906_v59 }
 0xfbc   :  { %v10747_v44 = vpop.eup %10746  ;;  %10756 = vtanh.f32 %v3924_v29  ;;  %v3951_v39 = vadd.f32 1.0, %v10745_v22  ;;  %v13330_v29 = vld [vmem:[%s15543_s4 + $0x8] sm:$0xff]  ;;  %v15697_v22 = vld [vmem:[#allocation5_spill] sm:$0xff] }
 0xfbd   :  { %v10749_v4 = vpop.eup %10748  ;;  %10758 = vtanh.f32 %v3922_v43  ;;  %v3949_v40 = vadd.f32 1.0, %v10747_v44  ;;  %v4000_v43 = vrot.slane %v13330_v29, %v15697_v22 }
 0xfbe   :  { %v10751_v55 = vpop.eup %10750  ;;  %v3952_v1 = vadd.f32 1.0, %v10749_v4  ;;  %v3967_v46 = vmul.f32 0.5, %v3951_v39 }
 0xfbf   :  { %v3950_v45 = vadd.f32 1.0, %v10751_v55  ;;  %v3965_v20 = vmul.f32 0.5, %v3949_v40 }
 0xfc0   :  { %v3968_v16 = vmul.f32 0.5, %v3952_v1  ;;  %v3983_v48 = vmul.f32 %v3967_v46, %v13271_v38 }
 0xfc1   :  { %v3966_v61 = vmul.f32 0.5, %v3950_v45  ;;  %v3981_v15 = vmul.f32 %v3965_v20, %v13274_v58 }
 0xfc2   :  { %v3984_v32 = vmul.f32 %v3968_v16, %v13279_v31 }
 0xfc3   :  { %v3982_v5 = vmul.f32 %v3966_v61, %v13284_v10 }
 0xfc4   :  { %v10753_v41 = vpop.eup %10752  ;;  %v3994_v47 = vpack.c.bf16 %v3984_v32, %v3983_v48 }
 0xfc5   :  { %v10755_v12 = vpop.eup %10754  ;;  %v3993_v9 = vpack.c.bf16 %v3982_v5, %v3981_v15  ;;  %v3955_v6 = vadd.f32 1.0, %v10753_v41 }
 0xfc6   :  { %v10757_v0 = vpop.eup %10756  ;;  %v3953_v7 = vadd.f32 1.0, %v10755_v12 }
 0xfc7   :  { %v10759_v8 = vpop.eup %10758  ;;  %9688 = vmatprep.mubr.bf16.mxu0 %v3993_v9  ;;  %v3956_v36 = vadd.f32 1.0, %v10757_v0  ;;  %v3971_v57 = vmul.f32 0.5, %v3955_v6 }
 0xfc8   :  { %9689 = vmatmul.mubr.bf16.gmra.mrb[152].mxu0 %v3994_v47  ;;  %v3954_v11 = vadd.f32 1.0, %v10759_v8  ;;  %v3969_v38 = vmul.f32 0.5, %v3953_v7 }
 0xfc9   :  { %v3972_v25 = vmul.f32 0.5, %v3956_v36  ;;  %v3987_v58 = vmul.f32 %v3971_v57, %v13297_v26 }
 0xfca   :  { %v3970_v31 = vmul.f32 0.5, %v3954_v11  ;;  %v3985_v13 = vmul.f32 %v3969_v38, %v13301_v42 }
 0xfcb   :  { %v3988_v10 = vmul.f32 %v3972_v25, %v13307_v3 }
 0xfcc   :  { %v3986_v23 = vmul.f32 %v3970_v31, %v3834_v51 }
 0xfcd   :  { %v3996_v30 = vpack.c.bf16 %v3988_v10, %v3987_v58 }
 0xfce   :  { %v3995_v59 = vpack.c.bf16 %v3986_v23, %v3985_v13  ;;  %v10313_v23 = vld [vmem:[%s15545_s5 + $0xd8] ss:$12 sps:$4 sm:$0xff]  }
 0xfd0   :  { %9692 = vmatprep.mubr.bf16.mxu0 %v3995_v59 }
 0xfd1   :  { %9693 = vmatmul.mubr.bf16.gmra.mrb[156].mxu0 %v3996_v30 }
0x105e   :  { %v9682_v44 = vpop.f32.mrb[144].mxu0 }
0x105f   :  { %v4083_v39 = vpop.f32.mrb[145].mxu0  ;;  %v4092_v40 = vadd.f32 %v9682_v44, %v4000_v43 }
0x1060   :  { %v4084_v26 = vadd.f32 %v4083_v39, %v4000_v43  ;;  %v9683_v4 = vpop.f32.mrb[146].mxu0 }
0x1061   :  { %v4086_v3 = vpop.f32.mrb[147].mxu0  ;;  %v4095_v55 = vadd.f32 %v9683_v4, %v4000_v43  ;;  %v13342_v46 = vadd.f32 %v4092_v40, %v13097_v35 }
0x1062   :  { %v13335_v42 = vadd.f32 %v4084_v26, %v13087_v37  ;;  %v4087_v51 = vadd.f32 %v4086_v3, %v4000_v43 }
0x1063   :  { %v13346_v16 = vadd.f32 %v4095_v55, %v13100_v62 }
0x1064   :  { %v13338_v1 = vadd.f32 %v4087_v51, %v13090_v2  ;;  %4162 = vadd.xlane.f32.xlu0 %v13335_v42 }
0x1066   :  { %v9686_v45 = vpop.f32.mrb[148].mxu0  ;;  %4164 = vadd.xlane.f32.xlu1 %v13338_v1 }
0x1067   :  { %v4099_v20 = vpop.f32.mrb[149].mxu0  ;;  %v4108_v32 = vadd.f32 %v9686_v45, %v4000_v43 }
0x1068   :  { %v4100_v61 = vadd.f32 %v4099_v20, %v4000_v43  ;;  %v9687_v37 = vpop.f32.mrb[150].mxu0  ;;  %4166 = vadd.xlane.f32.xlu0 %v13342_v46 }
0x1069   :  { %v4102_v48 = vpop.f32.mrb[151].mxu0  ;;  %v4111_v35 = vadd.f32 %v9687_v37, %v4000_v43  ;;  %v13358_v62 = vadd.f32 %v4108_v32, %v13120_v56 }
0x106a   :  { %v13350_v2 = vadd.f32 %v4100_v61, %v13109_v53  ;;  %v4103_v15 = vadd.f32 %v4102_v48, %v4000_v43  ;;  %4168 = vadd.xlane.f32.xlu1 %v13346_v16 }
0x106b   :  { %v13362_v41 = vadd.f32 %v4111_v35, %v13123_v50 }
0x106c   :  { %v13354_v5 = vadd.f32 %v4103_v15, %v13112_v52  ;;  %4170 = vadd.xlane.f32.xlu0 %v13350_v2 }
0x106e   :  { %4172 = vadd.xlane.f32.xlu1 %v13354_v5 }
0x1070   :  { %4174 = vadd.xlane.f32.xlu0 %v13358_v62 }
0x1072   :  { %4176 = vadd.xlane.f32.xlu1 %v13362_v41 }
0x109b   :  { %v9690_v53 = vpop.f32.mrb[152].mxu0 }
0x109c   :  { %v4115_v47 = vpop.f32.mrb[153].mxu0  ;;  %v4124_v6 = vadd.f32 %v9690_v53, %v4000_v43 }
0x109d   :  { %v4116_v12 = vadd.f32 %v4115_v47, %v4000_v43  ;;  %v9691_v9 = vpop.f32.mrb[154].mxu0 }
0x109e   :  { %v4118_v52 = vpop.f32.mrb[155].mxu0  ;;  %v4127_v7 = vadd.f32 %v9691_v9, %v4000_v43  ;;  %v13374_v50 = vadd.f32 %v4124_v6, %v13145_v24 }
0x109f   :  { %v13367_v0 = vadd.f32 %v4116_v12, %v13133_v19  ;;  %v4119_v56 = vadd.f32 %v4118_v52, %v4000_v43 }
0x10a0   :  { %v13378_v57 = vadd.f32 %v4127_v7, %v13148_v33 }
0x10a1   :  { %v13370_v8 = vadd.f32 %v4119_v56, %v13136_v28  ;;  %4178 = vadd.xlane.f32.xlu0 %v13367_v0 }
0x10a3   :  { %4180 = vadd.xlane.f32.xlu1 %v13370_v8 }
0x10a4   :  { %v9694_v36 = vpop.f32.mrb[156].mxu0 }
0x10a5   :  { %4182 = vadd.xlane.f32.xlu0 %v13374_v50  ;;  %v4131_v19 = vpop.f32.mrb[157].mxu0  ;;  %v4140_v25 = vadd.f32 %v9694_v36, %v4000_v43 }
0x10a6   :  { %v4132_v11 = vadd.f32 %v4131_v19, %v4000_v43  ;;  %v9695_v38 = vpop.f32.mrb[158].mxu0 }
0x10a7   :  { %4184 = vadd.xlane.f32.xlu1 %v13378_v57  ;;  %v4134_v28 = vpop.f32.mrb[159].mxu0  ;;  %v4143_v58 = vadd.f32 %v9695_v38, %v4000_v43  ;;  %v13390_v33 = vadd.f32 %v4140_v25, %v13168_v54  ;;  %v10315_v54 = vld [vmem:[%s15545_s5 + $0xdc] ss:$12 sps:$4 sm:$0xff]  }
0x10a8   :  { %v13383_v31 = vadd.f32 %v4132_v11, %v13157_v49  ;;  %v4135_v24 = vadd.f32 %v4134_v28, %v4000_v43  ;;  %v10310_v49 = vld [vmem:[%s15545_s5 + $0xc0] ss:$12 sps:$4 sm:$0xff]  }
0x10a9   :  { %v13394_v13 = vadd.f32 %v4143_v58, %v13171_v60  ;;  %v10316_v60 = vld [vmem:[%s15545_s5 + $0xc8] ss:$12 sps:$4 sm:$0xff]   ;;  %v10317_v58 = vld [vmem:[%s15545_s5 + $0xf0] ss:$12 sps:$4 sm:$0xff]  }
0x10aa   :  { %v13386_v10 = vadd.f32 %v4135_v24, %v13160_v18  ;;  %4186 = vadd.xlane.f32.xlu0 %v13383_v31  ;;  %v10312_v18 = vld [vmem:[%s15545_s5 + $0xc4] ss:$12 sps:$4 sm:$0xff]   ;;  %9696 = vmatprep.subr.bf16.mxu0 %v10316_v60  ;;  %v10320_v24 = vld [vmem:[%s15545_s5 + $0xe0] ss:$12 sps:$4 sm:$0xff]  }
0x10ab   :  { %4600 = vmatprep.subr.bf16.mxu1 %v10312_v18  ;;  %9697 = vmatpush3.bf16.msra.mxu0 %v10316_v60  ;;  %v10324_v18 = vld [vmem:[%s15545_s5 + $0xf8] ss:$12 sps:$4 sm:$0xff]  }
0x10ac   :  { %4188 = vadd.xlane.f32.xlu1 %v13386_v10  ;;  %4601 = vmatpush1.bf16.msra.mxu1 %v10310_v49  ;;  %v10323_v49 = vld [vmem:[%s15545_s5 + $0x10c] ss:$12 sps:$4 sm:$0xff]   ;;  %v10327_v60 = vld [vmem:[%s15545_s5 + $0x124] ss:$12 sps:$4 sm:$0xff]  }
0x10ad   :  { %4602 = vmatprep.subr.bf16.mxu1 %v10315_v54  ;;  %9698 = vmatprep.subr.bf16.mxu0 %v10320_v24  ;;  %v10321_v54 = vld [vmem:[%s15545_s5 + $0x108] ss:$12 sps:$4 sm:$0xff]  }
0x10ae   :  { %4190 = vadd.xlane.f32.xlu0 %v13390_v33 }
0x10af   :  { %9699 = vmatpush3.bf16.msra.mxu0 %v10320_v24 }
0x10b0   :  { %4192 = vadd.xlane.f32.xlu1 %v13394_v13  ;;  %4603 = vmatpush1.bf16.msra.mxu1 %v10313_v23  ;;  %v10328_v23 = vld [vmem:[%s15545_s5 + $0x110] ss:$12 sps:$4 sm:$0xff]  }
0x10b1   :  { %9700 = vmatprep.subr.bf16.mxu0 %v10324_v18 }
0x10b3   :  { %9701 = vmatpush3.bf16.msra.mxu0 %v10324_v18 }
0x10b4   :  { %9702 = vmatprep.subr.bf16.mxu0 %v10328_v23 }
0x10b7   :  { %9703 = vmatpush3.bf16.msra.mxu0 %v10328_v23 }
0x10f1   :  { %v4163_v30 = vpop.xlane.xlu0 %4162 }
0x10f2   :  { %v4194_v59 = vmul.f32 0.03125, %v4163_v30  ;;  %v10325_v30 = vld [vmem:[%s15545_s5 + $0x120] ss:$12 sps:$4 sm:$0xff]  }
0x10f3   :  { %v4165_v43 = vpop.xlane.xlu1 %4164 }
0x10f4   :  { %v4210_v44 = vsub.f32 %v13335_v42, %v4194_v59  ;;  %v4195_v39 = vmul.f32 0.03125, %v4165_v43  ;;  %v10331_v59 = vld [vmem:[%s15545_s5 + $0x13c] ss:$12 sps:$4 sm:$0xff]  }
0x10f5   :  { %v4167_v26 = vpop.xlane.xlu0 %4166  ;;  %v10332_v43 = vld [vmem:[%s15545_s5 + $0x128] ss:$12 sps:$4 sm:$0xff]  }
0x10f6   :  { %v13415_v4 = vmul.f32 %v4210_v44, %v15692_v63  ;;  %v4211_v3 = vsub.f32 %v13338_v1, %v4195_v39  ;;  %v4196_v40 = vmul.f32 0.03125, %v4167_v26  ;;  %v10329_v44 = vld [vmem:[%s15545_s5 + $0x138] ss:$12 sps:$4 sm:$0xff]   ;;  %9704 = vmatprep.subr.bf16.mxu0 %v10332_v43  ;;  %v10335_v39 = vld [vmem:[%s15545_s5 + $0x154] ss:$12 sps:$4 sm:$0xff]  }
0x10f7   :  { %v4169_v51 = vpop.xlane.xlu1 %4168  ;;  %9705 = vmatpush3.bf16.msra.mxu0 %v10332_v43  ;;  %v10336_v26 = vld [vmem:[%s15545_s5 + $0x140] ss:$12 sps:$4 sm:$0xff]  }
0x10f8   :  { %v13419_v55 = vmul.f32 %v4211_v3, %v15692_v63  ;;  %v4212_v45 = vsub.f32 %v13342_v46, %v4196_v40  ;;  %v4197_v20 = vmul.f32 0.03125, %v4169_v51  ;;  %v4242_v61 = vmul.f32 %v13415_v4, %v13415_v4  ;;  %v10333_v3 = vld [vmem:[%s15545_s5 + $0x150] ss:$12 sps:$4 sm:$0xff]   ;;  %9706 = vmatprep.subr.bf16.mxu0 %v10336_v26  ;;  %v10339_v40 = vld [vmem:[%s15545_s5 + $0x16c] ss:$12 sps:$4 sm:$0xff]  }
0x10f9   :  { %v4171_v37 = vpop.xlane.xlu0 %4170  ;;  %v10340_v51 = vld [vmem:[%s15545_s5 + $0x158] ss:$12 sps:$4 sm:$0xff]  }
0x10fa   :  { %v13425_v42 = vmul.f32 %v4212_v45, %v15692_v63  ;;  %v4213_v48 = vsub.f32 %v13346_v16, %v4197_v20  ;;  %v4198_v32 = vmul.f32 0.03125, %v4171_v37  ;;  %4258 = vadd.xlane.f32.xlu0 %v4242_v61  ;;  %v4243_v1 = vmul.f32 %v13419_v55, %v13419_v55  ;;  %v10337_v45 = vld [vmem:[%s15545_s5 + $0x168] ss:$12 sps:$4 sm:$0xff]   ;;  %v10341_v20 = vld [vmem:[%s15545_s5 + $0x170] ss:$12 sps:$4 sm:$0xff]  }
0x10fb   :  { %v4173_v15 = vpop.xlane.xlu1 %4172  ;;  %9707 = vmatpush3.bf16.msra.mxu0 %v10336_v26 }
0x10fc   :  { %v13431_v35 = vmul.f32 %v4213_v48, %v15692_v63  ;;  %v4214_v46 = vsub.f32 %v13350_v2, %v4198_v32  ;;  %v4199_v53 = vmul.f32 0.03125, %v4173_v15  ;;  %4260 = vadd.xlane.f32.xlu1 %v4243_v1  ;;  %v4244_v47 = vmul.f32 %v13425_v42, %v13425_v42  ;;  %9708 = vmatprep.subr.bf16.mxu0 %v10340_v51 }
0x10fd   :  { %v4175_v12 = vpop.xlane.xlu0 %4174 }
0x10fe   :  { %v13437_v9 = vmul.f32 %v4214_v46, %v15692_v63  ;;  %v4215_v16 = vsub.f32 %v13354_v5, %v4199_v53  ;;  %v4200_v52 = vmul.f32 0.03125, %v4175_v12  ;;  %4262 = vadd.xlane.f32.xlu0 %v4244_v47  ;;  %v4245_v6 = vmul.f32 %v13431_v35, %v13431_v35 }
0x10ff   :  { %v4177_v56 = vpop.xlane.xlu1 %4176  ;;  %9709 = vmatpush3.bf16.msra.mxu0 %v10340_v51 }
0x1100   :  { %v13443_v7 = vmul.f32 %v4215_v16, %v15692_v63  ;;  %v4216_v2 = vsub.f32 %v13358_v62, %v4200_v52  ;;  %v4201_v36 = vmul.f32 0.03125, %v4177_v56  ;;  %4264 = vadd.xlane.f32.xlu1 %v4245_v6  ;;  %v4246_v19 = vmul.f32 %v13437_v9, %v13437_v9  ;;  %9710 = vmatprep.subr.bf16.mxu0 %v10341_v20 }
0x1102   :  { %v13449_v11 = vmul.f32 %v4216_v2, %v15692_v63  ;;  %v4217_v5 = vsub.f32 %v13362_v41, %v4201_v36  ;;  %4266 = vadd.xlane.f32.xlu0 %v4246_v19  ;;  %v4247_v38 = vmul.f32 %v13443_v7, %v13443_v7  ;;  %v10319_v41 = vld [vmem:[%s15545_s5 + $0xf4] ss:$12 sps:$4 sm:$0xff]  }
0x1103   :  { %4604 = vmatprep.subr.bf16.mxu1 %v10319_v41  ;;  %9711 = vmatpush3.bf16.msra.mxu0 %v10341_v20 }
0x1104   :  { %v13455_v28 = vmul.f32 %v4217_v5, %v15692_v63  ;;  %4268 = vadd.xlane.f32.xlu1 %v4247_v38  ;;  %v4248_v62 = vmul.f32 %v13449_v11, %v13449_v11  ;;  %4605 = vmatpush1.bf16.msra.mxu1 %v10317_v58 }
0x1105   :  { %4606 = vmatprep.subr.bf16.mxu1 %v10323_v49 }
0x1106   :  { %4270 = vadd.xlane.f32.xlu0 %v4248_v62  ;;  %v4249_v25 = vmul.f32 %v13455_v28, %v13455_v28 }
0x1108   :  { %4272 = vadd.xlane.f32.xlu1 %v4249_v25  ;;  %4607 = vmatpush1.bf16.msra.mxu1 %v10321_v54 }
0x1109   :  { %4608 = vmatprep.subr.bf16.mxu1 %v10327_v60 }
0x110c   :  { %4609 = vmatpush1.bf16.msra.mxu1 %v10325_v30 }
0x110d   :  { %4610 = vmatprep.subr.bf16.mxu1 %v10331_v59 }
0x1110   :  { %4611 = vmatpush1.bf16.msra.mxu1 %v10329_v44 }
0x1111   :  { %4612 = vmatprep.subr.bf16.mxu1 %v10335_v39 }
0x1114   :  { %4613 = vmatpush1.bf16.msra.mxu1 %v10333_v3 }
0x1115   :  { %4614 = vmatprep.subr.bf16.mxu1 %v10339_v40 }
0x1118   :  { %4615 = vmatpush1.bf16.msra.mxu1 %v10337_v45 }
0x112e   :  { %v4179_v61 = vpop.xlane.xlu0 %4178 }
0x112f   :  { %v4202_v37 = vmul.f32 0.03125, %v4179_v61 }
0x1130   :  { %v4181_v48 = vpop.xlane.xlu1 %4180 }
0x1131   :  { %v4218_v32 = vsub.f32 %v13367_v0, %v4202_v37  ;;  %v4203_v1 = vmul.f32 0.03125, %v4181_v48 }
0x1132   :  { %v4183_v15 = vpop.xlane.xlu0 %4182 }
0x1133   :  { %v13520_v46 = vmul.f32 %v4218_v32, %v15692_v63  ;;  %v4219_v53 = vsub.f32 %v13370_v8, %v4203_v1  ;;  %v4204_v47 = vmul.f32 0.03125, %v4183_v15 }
0x1134   :  { %v4185_v12 = vpop.xlane.xlu1 %4184 }
0x1135   :  { %v13524_v16 = vmul.f32 %v4219_v53, %v15692_v63  ;;  %v4220_v52 = vsub.f32 %v13374_v50, %v4204_v47  ;;  %v4205_v6 = vmul.f32 0.03125, %v4185_v12  ;;  %v4250_v56 = vmul.f32 %v13520_v46, %v13520_v46 }
0x1137   :  { %v13530_v0 = vmul.f32 %v4220_v52, %v15692_v63  ;;  %v4221_v2 = vsub.f32 %v13378_v57, %v4205_v6  ;;  %4274 = vadd.xlane.f32.xlu0 %v4250_v56  ;;  %v4187_v36 = vpop.xlane.xlu0 %4186  ;;  %v4251_v8 = vmul.f32 %v13524_v16, %v13524_v16 }
0x1138   :  { %v4206_v19 = vmul.f32 0.03125, %v4187_v36 }
0x1139   :  { %v13536_v5 = vmul.f32 %v4221_v2, %v15692_v63  ;;  %4276 = vadd.xlane.f32.xlu1 %v4251_v8  ;;  %v4189_v50 = vpop.xlane.xlu1 %4188  ;;  %v4252_v38 = vmul.f32 %v13530_v0, %v13530_v0  ;;  %v15698_v2 = vld [vmem:[#allocation25_spill] sm:$0xff] }
0x113a   :  { %v4222_v62 = vsub.f32 %v13383_v31, %v4206_v19  ;;  %v4207_v25 = vmul.f32 0.03125, %v4189_v50  ;;  %v13568_v36 = vrot.slane %v13330_v29, %v15698_v2  ;;  %v13573_v50 = vld [vmem:[%s15543_s4 + $0x10] sm:$0xff] }
0x113b   :  { %4278 = vadd.xlane.f32.xlu0 %v4252_v38  ;;  %v4191_v41 = vpop.xlane.xlu0 %4190  ;;  %v4253_v57 = vmul.f32 %v13536_v5, %v13536_v5  ;;  %v11203_v2 = vld [vmem:[%s15546_s2 + $0x50] sm:$0xff] }
0x113c   :  { %v13544_v24 = vmul.f32 %v4222_v62, %v15692_v63  ;;  %v4223_v58 = vsub.f32 %v13386_v10, %v4207_v25  ;;  %v4208_v49 = vmul.f32 0.03125, %v4191_v41 }
0x113d   :  { %4280 = vadd.xlane.f32.xlu1 %v4253_v57  ;;  %v4193_v18 = vpop.xlane.xlu1 %4192 }
0x113e   :  { %v13548_v54 = vmul.f32 %v4223_v58, %v15692_v63  ;;  %v4224_v60 = vsub.f32 %v13390_v33, %v4208_v49  ;;  %v4209_v31 = vmul.f32 0.03125, %v4193_v18  ;;  %v4254_v23 = vmul.f32 %v13544_v24, %v13544_v24  ;;  %v15699_v49 = vld [vmem:[#allocation3_spill] sm:$0xff] }
0x113f   :  { %v13580_v18 = vrot.slane %v13573_v50, %v15699_v49 }
0x1140   :  { %v13554_v30 = vmul.f32 %v4224_v60, %v15692_v63  ;;  %v4225_v59 = vsub.f32 %v13394_v13, %v4209_v31  ;;  %4282 = vadd.xlane.f32.xlu0 %v4254_v23  ;;  %v4255_v10 = vmul.f32 %v13548_v54, %v13548_v54 }
0x1142   :  { %v13560_v43 = vmul.f32 %v4225_v59, %v15692_v63  ;;  %4284 = vadd.xlane.f32.xlu1 %v4255_v10  ;;  %v4256_v33 = vmul.f32 %v13554_v30, %v13554_v30 }
0x1144   :  { %4286 = vadd.xlane.f32.xlu0 %v4256_v33  ;;  %v4257_v44 = vmul.f32 %v13560_v43, %v13560_v43 }
0x1146   :  { %4288 = vadd.xlane.f32.xlu1 %v4257_v44 }
0x1187   :  { %v4259_v39 = vpop.xlane.xlu0 %4258 }
0x1188   :  { %v4290_v26 = vmul.f32 0.03125, %v4259_v39 }
0x1189   :  { %v4261_v3 = vpop.xlane.xlu1 %4260 }
0x118a   :  { %v4306_v13 = vadd.f32 1e-12, %v4290_v26  ;;  %v4291_v40 = vmul.f32 0.03125, %v4261_v3 }
0x118b   :  { %v4263_v51 = vpop.xlane.xlu0 %4262 }
0x118c   :  { %10760 = vrsqrt.f32 %v4306_v13  ;;  %v4307_v45 = vadd.f32 1e-12, %v4291_v40  ;;  %v4292_v20 = vmul.f32 0.03125, %v4263_v51 }
0x118d   :  { %v4265_v61 = vpop.xlane.xlu1 %4264 }
0x118e   :  { %10762 = vrsqrt.f32 %v4307_v45  ;;  %v4308_v37 = vadd.f32 1e-12, %v4292_v20  ;;  %v4293_v48 = vmul.f32 0.03125, %v4265_v61 }
0x118f   :  { %v4267_v32 = vpop.xlane.xlu0 %4266 }
0x1190   :  { %10764 = vrsqrt.f32 %v4308_v37  ;;  %v4309_v1 = vadd.f32 1e-12, %v4293_v48  ;;  %v4294_v15 = vmul.f32 0.03125, %v4267_v32 }
0x1191   :  { %v4269_v53 = vpop.xlane.xlu1 %4268 }
0x1192   :  { %10766 = vrsqrt.f32 %v4309_v1  ;;  %v4310_v47 = vadd.f32 1e-12, %v4294_v15  ;;  %v4295_v12 = vmul.f32 0.03125, %v4269_v53 }
0x1193   :  { %v4271_v52 = vpop.xlane.xlu0 %4270 }
0x1194   :  { %10768 = vrsqrt.f32 %v4310_v47  ;;  %v4311_v6 = vadd.f32 1e-12, %v4295_v12  ;;  %v4296_v56 = vmul.f32 0.03125, %v4271_v52 }
0x1195   :  { %v4273_v8 = vpop.xlane.xlu1 %4272 }
0x1196   :  { %v10761_v19 = vpop.eup %10760  ;;  %10770 = vrsqrt.f32 %v4311_v6  ;;  %v4312_v38 = vadd.f32 1e-12, %v4296_v56  ;;  %v4297_v62 = vmul.f32 0.03125, %v4273_v8 }
0x1197   :  { %v4338_v25 = vmul.f32 %v10761_v19, %v13415_v4 }
0x1198   :  { %v10763_v41 = vpop.eup %10762  ;;  %10772 = vrsqrt.f32 %v4312_v38  ;;  %v4313_v57 = vadd.f32 1e-12, %v4297_v62 }
0x1199   :  { %v4358_v58 = vmul.f32 %v13568_v36, %v4338_v25  ;;  %v4339_v29 = vmul.f32 %v10763_v41, %v13419_v55 }
0x119a   :  { %v10765_v60 = vpop.eup %10764  ;;  %10774 = vrsqrt.f32 %v4313_v57 }
0x119b   :  { %v4359_v31 = vmul.f32 %v13568_v36, %v4339_v29  ;;  %v4340_v23 = vmul.f32 %v10765_v60, %v13425_v42  ;;  %v13587_v33 = vadd.f32 %v13580_v18, %v4358_v58 }
0x119c   :  { %v10767_v59 = vpop.eup %10766 }
0x119d   :  { %v4360_v4 = vmul.f32 %v13568_v36, %v4340_v23  ;;  %v4341_v10 = vmul.f32 %v10767_v59, %v13431_v35  ;;  %15700 = vst [vmem:[#allocation33_spill] sm:$0xff] %v13587_v33  ;;  %v13590_v55 = vadd.f32 %v13580_v18, %v4359_v31 }
0x119e   :  { %v10769_v44 = vpop.eup %10768 }
0x119f   :  { %15701 = vst [vmem:[#allocation29_spill] sm:$0xff] %v13590_v55  ;;  %v4361_v39 = vmul.f32 %v13568_v36, %v4341_v10  ;;  %v4464_v26 = vpack.c.bf16 %v13590_v55, %v13587_v33  ;;  %v4342_v3 = vmul.f32 %v10769_v44, %v13437_v9  ;;  %v13597_v13 = vadd.f32 %v13580_v18, %v4360_v4  ;;  %v11209_v33 = vld [vmem:[%s15546_s2 + $0x78] sm:$0xff] }
0x11a0   :  { %v10771_v42 = vpop.eup %10770 }
0x11a1   :  { %15702 = vst [vmem:[#allocation27_spill] sm:$0xff] %v13597_v13  ;;  %4633 = vmatmul.mubr.bf16.vlgmr.msra.gmra.mrb[96].mxu1 %v4464_v26  ;;  %9712 = vmatprep.mubr.bf16.mxu0 %v4464_v26  ;;  %v13600_v35 = vadd.f32 %v13580_v18, %v4361_v39  ;;  %v4343_v40 = vmul.f32 %v10771_v42, %v13443_v7 }
0x11a2   :  { %v4362_v51 = vmul.f32 %v13568_v36, %v4342_v3  ;;  %v10773_v45 = vpop.eup %10772  ;;  %4642 = vmatprep.mubr.bf16.mxu1 %v15674_v34 }
0x11a3   :  { %15703 = vst [vmem:[#allocation26_spill] sm:$0xff] %v13600_v35  ;;  %v4465_v20 = vpack.c.bf16 %v13600_v35, %v13597_v13  ;;  %v4363_v9 = vmul.f32 %v13568_v36, %v4343_v40  ;;  %v4344_v61 = vmul.f32 %v10773_v45, %v13449_v11 }
0x11a4   :  { %v10775_v37 = vpop.eup %10774  ;;  %v13610_v48 = vadd.f32 %v13580_v18, %v4362_v51 }
0x11a5   :  { %9713 = vmatmul.mubr.bf16.vlgmr.msra.gmra.mrb[160].mxu0 %v4465_v20  ;;  %v13613_v32 = vadd.f32 %v13580_v18, %v4363_v9  ;;  %v4345_v7 = vmul.f32 %v10775_v37, %v13455_v28  ;;  %v4364_v1 = vmul.f32 %v13568_v36, %v4344_v61 }
0x11a6   :  { %15704 = vst [vmem:[#allocation30_spill] sm:$0xff] %v13610_v48 }
0x11a7   :  { %15705 = vst [vmem:[#allocation28_spill] sm:$0xff] %v13613_v32  ;;  %v4466_v15 = vpack.c.bf16 %v13613_v32, %v13610_v48  ;;  %v4365_v53 = vmul.f32 %v13568_v36, %v4345_v7  ;;  %v13621_v11 = vadd.f32 %v13580_v18, %v4364_v1  ;;  %v11208_v48 = vld [vmem:[%s15546_s2 + $0x60] sm:$0xff] }
0x11a9   :  { %4643 = vmatmul.mubr.bf16.gmra.mrb[100].mxu1 %v4465_v20  ;;  %9716 = vmatprep.mubr.bf16.mxu0 %v4466_v15  ;;  %15706 = vst [vmem:[#allocation32_spill] sm:$0xff] %v13621_v11  ;;  %v13624_v47 = vadd.f32 %v13580_v18, %v4365_v53 }
0x11aa   :  { %4652 = vmatprep.mubr.bf16.mxu1 %v15674_v34 }
0x11ab   :  { %15707 = vst [vmem:[#allocation9_spill] sm:$0xff] %v13624_v47  ;;  %v4467_v28 = vpack.c.bf16 %v13624_v47, %v13621_v11  ;;  %v11207_v47 = vld [vmem:[%s15546_s2 + $0x70] sm:$0xff] }
0x11ad   :  { %9717 = vmatmul.mubr.bf16.gmra.mrb[164].mxu0 %v4467_v28 }
0x11b1   :  { %4653 = vmatmul.mubr.bf16.gmra.mrb[104].mxu1 %v4466_v15 }
0x11b2   :  { %4662 = vmatprep.mubr.bf16.mxu1 %v15674_v34 }
0x11b9   :  { %4663 = vmatmul.mubr.bf16.gmra.mrb[108].mxu1 %v4467_v28 }
0x11ba   :  { %4672 = vmatprep.mubr.bf16.mxu1 %v15674_v34 }
0x11c4   :  { %v4275_v12 = vpop.xlane.xlu0 %4274 }
0x11c5   :  { %v4298_v52 = vmul.f32 0.03125, %v4275_v12 }
0x11c6   :  { %v4277_v6 = vpop.xlane.xlu1 %4276 }
0x11c7   :  { %v4314_v56 = vadd.f32 1e-12, %v4298_v52  ;;  %v4299_v8 = vmul.f32 0.03125, %v4277_v6 }
0x11c8   :  { %v4279_v19 = vpop.xlane.xlu0 %4278 }
0x11c9   :  { %10776 = vrsqrt.f32 %v4314_v56  ;;  %v4315_v38 = vadd.f32 1e-12, %v4299_v8  ;;  %v4300_v62 = vmul.f32 0.03125, %v4279_v19 }
0x11ca   :  { %v4281_v25 = vpop.xlane.xlu1 %4280 }
0x11cb   :  { %10778 = vrsqrt.f32 %v4315_v38  ;;  %v4316_v41 = vadd.f32 1e-12, %v4300_v62  ;;  %v4301_v57 = vmul.f32 0.03125, %v4281_v25 }
0x11cd   :  { %10780 = vrsqrt.f32 %v4316_v41  ;;  %v4317_v58 = vadd.f32 1e-12, %v4301_v57  ;;  %v4283_v29 = vpop.xlane.xlu0 %4282 }
0x11ce   :  { %v4302_v60 = vmul.f32 0.03125, %v4283_v29 }
0x11cf   :  { %10782 = vrsqrt.f32 %v4317_v58  ;;  %v4285_v31 = vpop.xlane.xlu1 %4284 }
0x11d0   :  { %v4318_v23 = vadd.f32 1e-12, %v4302_v60  ;;  %v4303_v59 = vmul.f32 0.03125, %v4285_v31 }
0x11d1   :  { %v4287_v4 = vpop.xlane.xlu0 %4286 }
0x11d2   :  { %10784 = vrsqrt.f32 %v4318_v23  ;;  %v4319_v10 = vadd.f32 1e-12, %v4303_v59  ;;  %v4304_v44 = vmul.f32 0.03125, %v4287_v4  ;;  %v15716_v59 = vld [vmem:[#allocation4_spill] sm:$0xff] }
0x11d3   :  { %v10777_v39 = vpop.eup %10776  ;;  %v4289_v26 = vpop.xlane.xlu1 %4288  ;;  %v13688_v4 = vrot.slane %v13573_v50, %v15716_v59 }
0x11d4   :  { %10786 = vrsqrt.f32 %v4319_v10  ;;  %v4320_v3 = vadd.f32 1e-12, %v4304_v44  ;;  %v4305_v42 = vmul.f32 0.03125, %v4289_v26  ;;  %v4346_v40 = vmul.f32 %v10777_v39, %v13520_v46 }
0x11d5   :  { %v10779_v51 = vpop.eup %10778 }
0x11d6   :  { %10788 = vrsqrt.f32 %v4320_v3  ;;  %v4321_v45 = vadd.f32 1e-12, %v4305_v42  ;;  %v4347_v20 = vmul.f32 %v10779_v51, %v13524_v16  ;;  %v4366_v9 = vmul.f32 %v13568_v36, %v4346_v40 }
0x11d7   :  { %v10781_v61 = vpop.eup %10780 }
0x11d8   :  { %10790 = vrsqrt.f32 %v4321_v45  ;;  %v4367_v37 = vmul.f32 %v13568_v36, %v4347_v20  ;;  %v4348_v7 = vmul.f32 %v10781_v61, %v13530_v0  ;;  %v13637_v15 = vadd.f32 %v13580_v18, %v4366_v9 }
0x11d9   :  { %v10783_v1 = vpop.eup %10782 }
0x11da   :  { %15708 = vst [vmem:[#allocation10_spill] sm:$0xff] %v13637_v15  ;;  %v13640_v53 = vadd.f32 %v13580_v18, %v4367_v37  ;;  %v4349_v46 = vmul.f32 %v10783_v1, %v13536_v5  ;;  %v4368_v28 = vmul.f32 %v13568_v36, %v4348_v7 }
0x11dc   :  { %15709 = vst [vmem:[#allocation11_spill] sm:$0xff] %v13640_v53  ;;  %v10785_v16 = vpop.eup %10784  ;;  %v4468_v12 = vpack.c.bf16 %v13640_v53, %v13637_v15  ;;  %v4369_v52 = vmul.f32 %v13568_v36, %v4349_v46  ;;  %v13649_v56 = vadd.f32 %v13580_v18, %v4368_v28 }
0x11dd   :  { %v4350_v6 = vmul.f32 %v10785_v16, %v13544_v24 }
0x11de   :  { %v10787_v0 = vpop.eup %10786  ;;  %4673 = vmatmul.mubr.bf16.gmra.mrb[112].mxu1 %v4468_v12  ;;  %9720 = vmatprep.mubr.bf16.mxu0 %v4468_v12  ;;  %15710 = vst [vmem:[#allocation12_spill] sm:$0xff] %v13649_v56  ;;  %v13652_v8 = vadd.f32 %v13580_v18, %v4369_v52 }
0x11df   :  { %4682 = vmatprep.mubr.bf16.mxu1 %v15674_v34  ;;  %v4351_v5 = vmul.f32 %v10787_v0, %v13548_v54  ;;  %v4370_v19 = vmul.f32 %v13568_v36, %v4350_v6 }
0x11e0   :  { %15711 = vst [vmem:[#allocation13_spill] sm:$0xff] %v13652_v8  ;;  %v10789_v38 = vpop.eup %10788  ;;  %v4469_v62 = vpack.c.bf16 %v13652_v8, %v13649_v56 }
0x11e1   :  { %v4371_v24 = vmul.f32 %v13568_v36, %v4351_v5  ;;  %v4352_v25 = vmul.f32 %v10789_v38, %v13554_v30  ;;  %v13662_v57 = vadd.f32 %v13580_v18, %v4370_v19 }
0x11e2   :  { %v10791_v41 = vpop.eup %10790  ;;  %9721 = vmatmul.mubr.bf16.gmra.mrb[168].mxu0 %v4469_v62 }
0x11e3   :  { %15712 = vst [vmem:[#allocation14_spill] sm:$0xff] %v13662_v57  ;;  %v13665_v58 = vadd.f32 %v13580_v18, %v4371_v24  ;;  %v4353_v54 = vmul.f32 %v10791_v41, %v13560_v43  ;;  %v4372_v29 = vmul.f32 %v13568_v36, %v4352_v25 }
0x11e5   :  { %15713 = vst [vmem:[#allocation15_spill] sm:$0xff] %v13665_v58  ;;  %v4470_v60 = vpack.c.bf16 %v13665_v58, %v13662_v57  ;;  %v4373_v31 = vmul.f32 %v13568_v36, %v4353_v54  ;;  %v13673_v30 = vadd.f32 %v13580_v18, %v4372_v29  ;;  %v13684_v36 = vrot.slane %v13573_v50, %v15675_v14 }
0x11e6   :  { %4683 = vmatmul.mubr.bf16.gmra.mrb[116].mxu1 %v4469_v62 }
0x11e7   :  { %9724 = vmatprep.mubr.bf16.mxu0 %v4470_v60  ;;  %15714 = vst [vmem:[#allocation16_spill] sm:$0xff] %v13673_v30  ;;  %v13676_v23 = vadd.f32 %v13580_v18, %v4373_v31  ;;  %4692 = vmatprep.mubr.bf16.mxu1 %v15674_v34 }
0x11e9   :  { %15715 = vst [vmem:[#allocation17_spill] sm:$0xff] %v13676_v23  ;;  %v4471_v43 = vpack.c.bf16 %v13676_v23, %v13673_v30 }
0x11eb   :  { %9725 = vmatmul.mubr.bf16.gmra.mrb[172].mxu0 %v4471_v43 }
0x11ee   :  { %4693 = vmatmul.mubr.bf16.gmra.mrb[120].mxu1 %v4470_v60 }
0x11ef   :  { %4702 = vmatprep.mubr.bf16.mxu1 %v15674_v34  ;;  %v13695_v34 = vrot.slane %v13573_v50, %v15693_v17 }
0x11f6   :  { %4703 = vmatmul.mubr.bf16.gmra.mrb[124].mxu1 %v4471_v43 }
0x1274   :  { %v4634_v18 = vpop.f32.mrb[96].mxu1 }
0x1275   :  { %v4636_v10 = vpop.f32.mrb[97].mxu1  ;;  %v4814_v26 = vadd.f32 %v13688_v4, %v4634_v18 }
0x1276   :  { %v4834_v44 = vadd.f32 %v13684_v36, %v4636_v10  ;;  %v4638_v39 = vpop.f32.mrb[98].mxu1 }
0x1277   :  { %v4815_v3 = vadd.f32 %v13688_v4, %v4638_v39  ;;  %v4640_v42 = vpop.f32.mrb[99].mxu1 }
0x1278   :  { %4870 = vxpose.xlu0.b32.start [1/16] (narrow) %v4834_v44, 32  ;;  %v9714_v40 = vpop.f32.mrb[160].mxu0  ;;  %v4835_v20 = vadd.f32 %v13684_v36, %v4640_v42 }
0x1279   :  { %v13697_v51 = vpack.c.bf16 %v4815_v3, %v4814_v26  ;;  %v4747_v45 = vpop.f32.mrb[161].mxu0  ;;  %v4856_v61 = vadd.f32 %v9714_v40, %v13695_v34 }
0x127a   :  { %v9715_v9 = vpop.f32.mrb[162].mxu0  ;;  %v4854_v17 = vadd.f32 %v13695_v34, %v4747_v45 }
0x127b   :  { %v4857_v37 = vadd.f32 %v9715_v9, %v13695_v34  ;;  %5309 = vrot.lane.b32.xlu1 %v13697_v51, %s11230_s26  ;;  %v4750_v7 = vpop.f32.mrb[163].mxu0  ;;  %9730 = vmatprep.mubr.msk.bf16.mxu0 %vm1213_vm0, %v13697_v51 }
0x127c   :  { %v4855_v50 = vadd.f32 %v13695_v34, %v4750_v7  ;;  %4871 = vxpose.xlu0.b32.cont [2/16] (narrow) %v4835_v20, 32  ;;  %v4644_v1 = vpop.f32.mrb[100].mxu1 }
0x127d   :  { %v13708_v46 = vpack.c.bf16 %v4857_v37, %v4856_v61  ;;  %v4646_v28 = vpop.f32.mrb[101].mxu1  ;;  %v4816_v6 = vadd.f32 %v13688_v4, %v4644_v1 }
0x127e   :  { %v13710_v16 = vpack.c.bf16 %v4855_v50, %v4854_v17  ;;  %v4836_v12 = vadd.f32 %v13684_v36, %v4646_v28  ;;  %v4648_v52 = vpop.f32.mrb[102].mxu1 }
0x127f   :  { %15717 = vst [vmem:[#allocation18_spill] sm:$0xff] %v13708_v46  ;;  %v4817_v0 = vadd.f32 %v13688_v4, %v4648_v52  ;;  %v4650_v5 = vpop.f32.mrb[103].mxu1 }
0x1280   :  { %15718 = vst [vmem:[#allocation19_spill] sm:$0xff] %v13710_v16  ;;  %9746 = vmatprep.subr.bf16.mxu1 %v13710_v16  ;;  %4872 = vxpose.xlu0.b32.cont [3/16] (narrow) %v4836_v12, 32  ;;  %v9718_v19 = vpop.f32.mrb[164].mxu0  ;;  %v4837_v24 = vadd.f32 %v13684_v36, %v4650_v5 }
0x1281   :  { %v13716_v38 = vpack.c.bf16 %v4817_v0, %v4816_v6  ;;  %v4763_v62 = vpop.f32.mrb[165].mxu0  ;;  %9747 = vmatpush3.bf16.msra.mxu1 %v13710_v16  ;;  %v4860_v41 = vadd.f32 %v9718_v19, %v13695_v34 }
0x1282   :  { %v9719_v25 = vpop.f32.mrb[166].mxu0  ;;  %9748 = vmatprep.subr.bf16.mxu1 %v13708_v46  ;;  %v4858_v60 = vadd.f32 %v13695_v34, %v4763_v62 }
0x1283   :  { %v4861_v54 = vadd.f32 %v9719_v25, %v13695_v34  ;;  %5311 = vrot.lane.b32.xlu1 %v13716_v38, %s11230_s26  ;;  %v4766_v29 = vpop.f32.mrb[167].mxu0 }
0x1284   :  { %v4859_v31 = vadd.f32 %v13695_v34, %v4766_v29  ;;  %4873 = vxpose.xlu0.b32.cont [4/16] (narrow) %v4837_v24, 32  ;;  %v4654_v43 = vpop.f32.mrb[104].mxu1 }
0x1285   :  { %v13727_v18 = vpack.c.bf16 %v4861_v54, %v4860_v41  ;;  %v4656_v10 = vpop.f32.mrb[105].mxu1  ;;  %9749 = vmatpush3.bf16.msra.mxu1 %v13708_v46  ;;  %v4818_v3 = vadd.f32 %v13688_v4, %v4654_v43 }
0x1286   :  { %v13730_v44 = vpack.c.bf16 %v4859_v31, %v4858_v60  ;;  %v4838_v39 = vadd.f32 %v13684_v36, %v4656_v10  ;;  %v4658_v26 = vpop.f32.mrb[106].mxu1 }
0x1287   :  { %15719 = vst [vmem:[#allocation20_spill] sm:$0xff] %v13727_v18  ;;  %v4819_v42 = vadd.f32 %v13688_v4, %v4658_v26  ;;  %v4660_v40 = vpop.f32.mrb[107].mxu1 }
0x1288   :  { %15720 = vst [vmem:[#allocation21_spill] sm:$0xff] %v13730_v44  ;;  %4874 = vxpose.xlu0.b32.cont [5/16] (narrow) %v4838_v39, 32  ;;  %9750 = vmatprep.subr.bf16.mxu1 %v13730_v44  ;;  %v4839_v20 = vadd.f32 %v13684_v36, %v4660_v40 }
0x1289   :  { %v13736_v45 = vpack.c.bf16 %v4819_v42, %v4818_v3  ;;  %9751 = vmatpush3.bf16.msra.mxu1 %v13730_v44 }
0x128a   :  { %9752 = vmatprep.subr.bf16.mxu1 %v13727_v18 }
0x128b   :  { %5313 = vrot.lane.b32.xlu1 %v13736_v45, %s11230_s26 }
0x128c   :  { %4875 = vxpose.xlu0.b32.cont [6/16] (narrow) %v4839_v20, 32  ;;  %v4664_v9 = vpop.f32.mrb[108].mxu1 }
0x128d   :  { %v4666_v61 = vpop.f32.mrb[109].mxu1  ;;  %9753 = vmatpush3.bf16.msra.mxu1 %v13727_v18  ;;  %v4820_v17 = vadd.f32 %v13688_v4, %v4664_v9 }
0x128e   :  { %v4840_v37 = vadd.f32 %v13684_v36, %v4666_v61  ;;  %v4668_v7 = vpop.f32.mrb[110].mxu1 }
0x128f   :  { %v4821_v50 = vadd.f32 %v13688_v4, %v4668_v7  ;;  %v4670_v1 = vpop.f32.mrb[111].mxu1 }
0x1290   :  { %4876 = vxpose.xlu0.b32.cont [7/16] (narrow) %v4840_v37, 32  ;;  %v4841_v12 = vadd.f32 %v13684_v36, %v4670_v1 }
0x1291   :  { %v13747_v28 = vpack.c.bf16 %v4821_v50, %v4820_v17 }
0x1293   :  { %5315 = vrot.lane.b32.xlu1 %v13747_v28, %s11230_s26 }
0x1294   :  { %4877 = vxpose.xlu0.b32.cont [8/16] (narrow) %v4841_v12, 32 }
0x12b1   :  { %v4674_v52 = vpop.f32.mrb[112].mxu1 }
0x12b2   :  { %v4676_v6 = vpop.f32.mrb[113].mxu1  ;;  %v4822_v19 = vadd.f32 %v13688_v4, %v4674_v52 }
0x12b3   :  { %v4842_v0 = vadd.f32 %v13684_v36, %v4676_v6  ;;  %v4678_v5 = vpop.f32.mrb[114].mxu1 }
0x12b4   :  { %v4823_v62 = vadd.f32 %v13688_v4, %v4678_v5  ;;  %v4680_v24 = vpop.f32.mrb[115].mxu1 }
0x12b5   :  { %4878 = vxpose.xlu0.b32.cont [9/16] (narrow) %v4842_v0, 32  ;;  %v9722_v25 = vpop.f32.mrb[168].mxu0  ;;  %v4843_v29 = vadd.f32 %v13684_v36, %v4680_v24 }
0x12b6   :  { %v13755_v41 = vpack.c.bf16 %v4823_v62, %v4822_v19  ;;  %v4779_v54 = vpop.f32.mrb[169].mxu0  ;;  %v4864_v31 = vadd.f32 %v9722_v25, %v13695_v34 }
0x12b7   :  { %v9723_v60 = vpop.f32.mrb[170].mxu0  ;;  %v4862_v39 = vadd.f32 %v13695_v34, %v4779_v54 }
0x12b8   :  { %v4865_v43 = vadd.f32 %v9723_v60, %v13695_v34  ;;  %5317 = vrot.lane.b32.xlu1 %v13755_v41, %s11230_s26  ;;  %v4782_v10 = vpop.f32.mrb[171].mxu0 }
0x12b9   :  { %v4863_v26 = vadd.f32 %v13695_v34, %v4782_v10  ;;  %4879 = vxpose.xlu0.b32.cont [10/16] (narrow) %v4843_v29, 32  ;;  %v4684_v3 = vpop.f32.mrb[116].mxu1 }
0x12ba   :  { %v13764_v42 = vpack.c.bf16 %v4865_v43, %v4864_v31  ;;  %v4686_v40 = vpop.f32.mrb[117].mxu1  ;;  %v4824_v37 = vadd.f32 %v13688_v4, %v4684_v3 }
0x12bb   :  { %v13766_v20 = vpack.c.bf16 %v4863_v26, %v4862_v39  ;;  %v4844_v9 = vadd.f32 %v13684_v36, %v4686_v40  ;;  %v4688_v61 = vpop.f32.mrb[118].mxu1 }
0x12bc   :  { %15721 = vst [vmem:[#allocation22_spill] sm:$0xff] %v13764_v42  ;;  %v4825_v7 = vadd.f32 %v13688_v4, %v4688_v61  ;;  %v4690_v17 = vpop.f32.mrb[119].mxu1 }
0x12bd   :  { %15722 = vst [vmem:[#allocation23_spill] sm:$0xff] %v13766_v20  ;;  %9754 = vmatprep.subr.bf16.mxu1 %v13766_v20  ;;  %4880 = vxpose.xlu0.b32.cont [11/16] (narrow) %v4844_v9, 32  ;;  %v4845_v12 = vadd.f32 %v13684_v36, %v4690_v17 }
0x12be   :  { %v13772_v50 = vpack.c.bf16 %v4825_v7, %v4824_v37  ;;  %9755 = vmatpush3.bf16.msra.mxu1 %v13766_v20  ;;  %v9726_v1 = vpop.f32.mrb[172].mxu0 }
0x12bf   :  { %9756 = vmatprep.subr.bf16.mxu1 %v13764_v42  ;;  %v4795_v52 = vpop.f32.mrb[173].mxu0  ;;  %v4868_v0 = vadd.f32 %v9726_v1, %v13695_v34 }
0x12c0   :  { %5319 = vrot.lane.b32.xlu1 %v13772_v50, %s11230_s26  ;;  %v9727_v6 = vpop.f32.mrb[174].mxu0  ;;  %v4866_v24 = vadd.f32 %v13695_v34, %v4795_v52 }
0x12c1   :  { %4881 = vxpose.xlu0.b32.cont [12/16] (narrow) %v4845_v12, 32  ;;  %v4694_v5 = vpop.f32.mrb[120].mxu1  ;;  %v4869_v19 = vadd.f32 %v9727_v6, %v13695_v34  ;;  %v4798_v62 = vpop.f32.mrb[175].mxu0 }
0x12c2   :  { %v4696_v25 = vpop.f32.mrb[121].mxu1  ;;  %v4867_v54 = vadd.f32 %v13695_v34, %v4798_v62  ;;  %9757 = vmatpush3.bf16.msra.mxu1 %v13764_v42  ;;  %v4826_v43 = vadd.f32 %v13688_v4, %v4694_v5 }
0x12c3   :  { %v13784_v29 = vpack.c.bf16 %v4869_v19, %v4868_v0  ;;  %v4846_v60 = vadd.f32 %v13684_v36, %v4696_v25  ;;  %v4698_v31 = vpop.f32.mrb[122].mxu1 }
0x12c4   :  { %v13788_v10 = vpack.c.bf16 %v4867_v54, %v4866_v24  ;;  %v4827_v39 = vadd.f32 %v13688_v4, %v4698_v31  ;;  %v4700_v26 = vpop.f32.mrb[123].mxu1 }
0x12c5   :  { %4882 = vxpose.xlu0.b32.cont [13/16] (narrow) %v4846_v60, 32  ;;  %v4847_v34 = vadd.f32 %v13684_v36, %v4700_v26 }
0x12c6   :  { %v13791_v3 = vpack.c.bf16 %v4827_v39, %v4826_v43  ;;  %9758 = vmatprep.subr.bf16.mxu1 %v13788_v10 }
0x12c7   :  { %9759 = vmatpush3.bf16.msra.mxu1 %v13788_v10 }
0x12c8   :  { %15723 = vst [vmem:[#allocation24_spill] sm:$0xff] %v13791_v3  ;;  %5321 = vrot.lane.b32.xlu1 %v13791_v3, %s11230_s26  ;;  %9760 = vmatprep.subr.bf16.mxu1 %v13784_v29 }
0x12c9   :  { %4883 = vxpose.xlu0.b32.cont [14/16] (narrow) %v4847_v34, 32  ;;  %v4704_v40 = vpop.f32.mrb[124].mxu1 }
0x12ca   :  { %v4706_v9 = vpop.f32.mrb[125].mxu1  ;;  %v4828_v7 = vadd.f32 %v13688_v4, %v4704_v40  ;;  %v13850_v40 = vld [vmem:[%s15546_s2 + $0x10] sm:$0xff] }
0x12cb   :  { %v4848_v61 = vadd.f32 %v13684_v36, %v4706_v9  ;;  %v4708_v37 = vpop.f32.mrb[126].mxu1  ;;  %9761 = vmatpush3.bf16.msra.mxu1 %v13784_v29 }
0x12cc   :  { %v4829_v17 = vadd.f32 %v13688_v4, %v4708_v37  ;;  %v4710_v1 = vpop.f32.mrb[127].mxu1 }
0x12cd   :  { %4884 = vxpose.xlu0.b32.cont [15/16] (narrow) %v4848_v61, 32  ;;  %v4849_v52 = vadd.f32 %v13684_v36, %v4710_v1 }
0x12ce   :  { %v13803_v12 = vpack.c.bf16 %v4829_v17, %v4828_v7  ;;  %v13859_v17 = vld [vmem:[%s15546_s2] sm:$0xff] }
0x12d0   :  { %5323 = vrot.lane.b32.xlu1 %v13803_v12, %s11230_s26 }
0x12d1   :  { %4885 = vxpose.xlu0.b32.end [16/16] (narrow) %v4849_v52, 32 }
0x12d4   :  { %5609 = vrot.lane.b32.xlu1 %v13710_v16, %s11230_s26 }
0x12d8   :  { %5611 = vrot.lane.b32.xlu1 %v13708_v46, %s11230_s26 }
0x12dc   :  { %5615 = vrot.lane.b32.xlu1 %v13727_v18, %s11230_s26 }
0x12ed   :  { %v5310_v62 = vpop.permute.xlu1 %5309 }
0x12f5   :  { %v5312_v24 = vpop.permute.xlu1 %5311 }
0x12fa   :  { %5613 = vrot.lane.b32.xlu0 %v13730_v44, %s11230_s26 }
0x12fd   :  { %v5314_v25 = vpop.permute.xlu1 %5313 }
0x12fe   :  { %5617 = vrot.lane.b32.xlu0 %v13766_v20, %s11230_s26 }
0x1305   :  { %v5316_v54 = vpop.permute.xlu1 %5315 }
0x1315   :  { %v4886_v36 = vpop.trf.xlu0 }
0x1316   :  { %v4910_v4 = vpack.c.bf16 %v4886_v36, %v4886_v36  ;;  %v13868_v36 = vld [vmem:[%s15546_s2 + $0x18] sm:$0xff] }
0x1318   :  { %10232 = vmatprep.subr.msk.bf16.mxu0 %vm1238_vm1, %v4910_v4  ;;  %v4936_v6 = vsel %vm1238_vm1, %v4910_v4, 0 }
0x1319   :  { %9729 = vmatpush3.bf16.msra.mxu0 %v4936_v6  ;;  %v4887_v0 = vpop.trf.xlu0 }
0x131a   :  { %v5300_v5 = vpack.c.bf16 %v4887_v0, %v4887_v0 }
0x131c   :  { %9731 = vmatmul.mubr.msk.bf16.vlgmr.msra.gmra.mrb[176].mxu0 %vm1213_vm0, %v13716_v38  ;;  %10233 = vmatprep.subr.msk.bf16.mxu0 %vm1238_vm1, %v5300_v5  ;;  %v5350_v19 = vsel %vm1238_vm1, %v5300_v5, 0  ;;  %v13876_v5 = vld [vmem:[%s15546_s2 + $0x38] sm:$0xff] }
0x131d   :  { %9734 = vmatprep.mubr.msk.bf16.mxu0 %vm1213_vm0, %v13736_v45  ;;  %9779 = vmatpush3.bf16.msra.mxu0 %v5350_v19 }
0x1324   :  { %9735 = vmatmul.mubr.msk.bf16.gmra.mrb[180].mxu0 %vm1213_vm0, %v13747_v28 }
0x1325   :  { %9738 = vmatprep.mubr.msk.bf16.mxu0 %vm1213_vm0, %v13755_v41 }
0x132a   :  { %v5318_v60 = vpop.permute.xlu1 %5317 }
0x132c   :  { %9739 = vmatmul.mubr.msk.bf16.gmra.mrb[184].mxu0 %vm1213_vm0, %v13772_v50 }
0x132d   :  { %9742 = vmatprep.mubr.msk.bf16.mxu0 %vm1213_vm0, %v13791_v3 }
0x1332   :  { %v5320_v31 = vpop.permute.xlu1 %5319 }
0x1334   :  { %9743 = vmatmul.mubr.msk.bf16.gmra.mrb[188].mxu0 %vm1213_vm0, %v13803_v12 }
0x1335   :  { %9780 = vmatprep.mubr.msk.bf16.mxu0 %vm1213_vm0, %v5310_v62 }
0x133a   :  { %v5322_v43 = vpop.permute.xlu1 %5321 }
0x133c   :  { %9781 = vmatmul.mubr.msk.bf16.vlgmr.msra.gmra.mrb[192].mxu0 %vm1213_vm0, %v5312_v24  ;;  %v13885_v24 = vld [vmem:[%s15546_s2 + $0x8] sm:$0xff] }
0x133d   :  { %9784 = vmatprep.mubr.msk.bf16.mxu0 %vm1213_vm0, %v5314_v25 }
0x1342   :  { %v5324_v39 = vpop.permute.xlu1 %5323 }
0x1344   :  { %9785 = vmatmul.mubr.msk.bf16.gmra.mrb[196].mxu0 %vm1213_vm0, %v5316_v54 }
0x1345   :  { %9788 = vmatprep.mubr.msk.bf16.mxu0 %vm1213_vm0, %v5318_v60  ;;  %v13895_v60 = vld [vmem:[%s15546_s2 + $0x30] sm:$0xff] }
0x1346   :  { %v13841_v26 = vpop.permute.xlu1 %5609 }
0x1347   :  { %15724 = vst [vmem:[#allocation8_spill] sm:$0xff] %v13841_v26  ;;  %9796 = vmatprep.subr.bf16.mxu1 %v13841_v26 }
0x134c   :  { %9789 = vmatmul.mubr.msk.bf16.gmra.mrb[200].mxu0 %vm1213_vm0, %v5320_v31 }
0x134d   :  { %9792 = vmatprep.mubr.msk.bf16.mxu0 %vm1213_vm0, %v5322_v43 }
0x1354   :  { %9793 = vmatmul.mubr.msk.bf16.gmra.mrb[204].mxu0 %vm1213_vm0, %v5324_v39 }
0x13ef   :  { %v9732_v34 = vpop.f32.mrb[176].mxu0 }
0x13f0   :  { %v13853_v9 = vadd.f32 %v13850_v40, %v9732_v34  ;;  %v4972_v61 = vpop.f32.mrb[177].mxu0 }
0x13f1   :  { %v9733_v37 = vpop.f32.mrb[178].mxu0  ;;  %v13862_v1 = vadd.f32 %v13859_v17, %v4972_v61  ;;  %v13904_v61 = vld [vmem:[%s15546_s2 + $0x20] sm:$0xff] }
0x13f2   :  { %5039 = vmax.xlane.f32.xlu1 %v13853_v9  ;;  %v4975_v7 = vpop.f32.mrb[179].mxu0  ;;  %v13871_v4 = vadd.f32 %v13868_v36, %v9733_v37 }
0x13f3   :  { %v13888_v25 = vadd.f32 %v13885_v24, %v4975_v7 }
0x13f6   :  { %5035 = vmax.xlane.f32.xlu1 %v13862_v1 }
0x13f7   :  { %v9736_v52 = vpop.f32.mrb[180].mxu0 }
0x13f8   :  { %v4988_v6 = vpop.f32.mrb[181].mxu0  ;;  %v13898_v31 = vadd.f32 %v13895_v60, %v9736_v52  ;;  %v11202_v52 = vld [vmem:[%s15546_s2 + $0x28] sm:$0xff] }
0x13f9   :  { %v9737_v0 = vpop.f32.mrb[182].mxu0  ;;  %v13907_v37 = vadd.f32 %v13904_v61, %v4988_v6 }
0x13fa   :  { %v13879_v19 = vadd.f32 %v13876_v5, %v9737_v0  ;;  %v4991_v62 = vpop.f32.mrb[183].mxu0  ;;  %5041 = vmax.xlane.f32.xlu1 %v13871_v4 }
0x13fb   :  { %v13913_v0 = vadd.f32 %v11202_v52, %v4991_v62 }
0x13fc   :  { %5049 = vmax.xlane.f32.xlu0 %v13879_v19 }
0x13fe   :  { %5037 = vmax.xlane.f32.xlu1 %v13888_v25 }
0x13ff   :  { %v9740_v54 = vpop.f32.mrb[184].mxu0 }
0x1400   :  { %v5004_v43 = vpop.f32.mrb[185].mxu0  ;;  %v13919_v6 = vadd.f32 %v11203_v2, %v9740_v54  ;;  %v11205_v54 = vld [vmem:[%s15546_s2 + $0x58] sm:$0xff] }
0x1401   :  { %v9741_v39 = vpop.f32.mrb[186].mxu0  ;;  %v13925_v62 = vadd.f32 %v11204_v27, %v5004_v43  ;;  %v11206_v43 = vld [vmem:[%s15546_s2 + $0x48] sm:$0xff] }
0x1402   :  { %v5007_v34 = vpop.f32.mrb[187].mxu0  ;;  %5047 = vmax.xlane.f32.xlu1 %v13898_v31  ;;  %v13933_v57 = vadd.f32 %v11205_v54, %v9741_v39 }
0x1403   :  { %v13939_v8 = vadd.f32 %v11206_v43, %v5007_v34 }
0x1406   :  { %5043 = vmax.xlane.f32.xlu1 %v13907_v37 }
0x1407   :  { %v9744_v7 = vpop.f32.mrb[188].mxu0 }
0x1408   :  { %v5020_v14 = vpop.f32.mrb[189].mxu0  ;;  %v13945_v39 = vadd.f32 %v11207_v47, %v9744_v7 }
0x1409   :  { %v9745_v59 = vpop.f32.mrb[190].mxu0  ;;  %v13951_v34 = vadd.f32 %v11208_v48, %v5020_v14 }
0x140a   :  { %v5023_v49 = vpop.f32.mrb[191].mxu0  ;;  %5045 = vmax.xlane.f32.xlu1 %v13913_v0  ;;  %v13957_v7 = vadd.f32 %v11209_v33, %v9745_v59 }
0x140b   :  { %v13963_v14 = vadd.f32 %v11210_v21, %v5023_v49 }
0x140e   :  { %5055 = vmax.xlane.f32.xlu1 %v13919_v6 }
0x140f   :  { %v9782_v22 = vpop.f32.mrb[192].mxu0 }
0x1410   :  { %v5386_v63 = vpop.f32.mrb[193].mxu0  ;;  %v13967_v26 = vadd.f32 %v13850_v40, %v9782_v22 }
0x1411   :  { %v9783_v23 = vpop.f32.mrb[194].mxu0  ;;  %v13974_v46 = vadd.f32 %v13859_v17, %v5386_v63 }
0x1412   :  { %5619 = vrot.lane.b32.xlu0 %v13764_v42, %s11230_s26  ;;  %5051 = vmax.xlane.f32.xlu1 %v13925_v62  ;;  %v5389_v58 = vpop.f32.mrb[195].mxu0  ;;  %v13971_v59 = vadd.f32 %v13868_v36, %v9783_v23 }
0x1413   :  { %v13982_v16 = vadd.f32 %v13885_v24, %v5389_v58 }
0x1416   :  { %5057 = vmax.xlane.f32.xlu1 %v13933_v57 }
0x1417   :  { %v9786_v53 = vpop.f32.mrb[196].mxu0 }
0x1418   :  { %v5402_v15 = vpop.f32.mrb[197].mxu0  ;;  %v13989_v23 = vadd.f32 %v13895_v60, %v9786_v53 }
0x1419   :  { %v9787_v56 = vpop.f32.mrb[198].mxu0 }
0x141a   :  { %5053 = vmax.xlane.f32.xlu1 %v13939_v8  ;;  %v5405_v30 = vpop.f32.mrb[199].mxu0  ;;  %v13979_v49 = vadd.f32 %v13876_v5, %v9787_v56  ;;  %v13996_v56 = vadd.f32 %v13904_v61, %v5402_v15 }
0x141b   :  { %v13986_v22 = vadd.f32 %v11202_v52, %v5405_v30 }
0x141e   :  { %5063 = vmax.xlane.f32.xlu1 %v13945_v39 }
0x141f   :  { %v9790_v11 = vpop.f32.mrb[200].mxu0 }
0x1420   :  { %v5418_v55 = vpop.f32.mrb[201].mxu0  ;;  %v14002_v30 = vadd.f32 %v11203_v2, %v9790_v11 }
0x1421   :  { %v9791_v32 = vpop.f32.mrb[202].mxu0  ;;  %v14008_v40 = vadd.f32 %v11204_v27, %v5418_v55  ;;  %v14023_v27 = vpop.trf.xlu0 }
0x1422   :  { %5059 = vmax.xlane.f32.xlu1 %v13951_v34  ;;  %v5421_v35 = vpop.f32.mrb[203].mxu0  ;;  %v13993_v63 = vadd.f32 %v11205_v54, %v9791_v32 }
0x1423   :  { %v14000_v58 = vadd.f32 %v11206_v43, %v5421_v35 }
0x1425   :  { %v14027_v55 = vpop.trf.xlu0 }
0x1426   :  { %5065 = vmax.xlane.f32.xlu1 %v13957_v7  ;;  %15725 = vst [vmem:[#allocation2_spill] sm:$0xff] %v14027_v55 }
0x1427   :  { %v9794_v13 = vpop.f32.mrb[204].mxu0 }
0x1428   :  { %v5434_v42 = vpop.f32.mrb[205].mxu0  ;;  %v14014_v15 = vadd.f32 %v11207_v47, %v9794_v13 }
0x1429   :  { %v9795_v20 = vpop.f32.mrb[206].mxu0  ;;  %v14018_v2 = vadd.f32 %v11208_v48, %v5434_v42  ;;  %v14031_v13 = vpop.permute.xlu0 %5613 }
0x142a   :  { %5061 = vmax.xlane.f32.xlu1 %v13963_v14  ;;  %v5437_v18 = vpop.f32.mrb[207].mxu0  ;;  %v14006_v53 = vadd.f32 %v11209_v33, %v9795_v20  ;;  %v14025_v33 = vpop.permute.xlu1 %5611 }
0x142b   :  { %v14012_v32 = vadd.f32 %v11210_v21, %v5437_v18 }
0x142d   :  { %v14035_v42 = vpop.permute.xlu0 %5617 }
0x142e   :  { %5453 = vmax.xlane.f32.xlu1 %v13967_v26  ;;  %v14029_v21 = vpop.permute.xlu1 %5615 }
0x1431   :  { %5455 = vmax.xlane.f32.xlu0 %v13971_v59 }
0x1432   :  { %5449 = vmax.xlane.f32.xlu1 %v13974_v46 }
0x1435   :  { %5463 = vmax.xlane.f32.xlu0 %v13979_v49 }
0x1436   :  { %5451 = vmax.xlane.f32.xlu1 %v13982_v16 }
0x1439   :  { %5459 = vmax.xlane.f32.xlu0 %v13986_v22 }
0x143a   :  { %5461 = vmax.xlane.f32.xlu1 %v13989_v23 }
0x143d   :  { %5471 = vmax.xlane.f32.xlu0 %v13993_v63 }
0x143e   :  { %5457 = vmax.xlane.f32.xlu1 %v13996_v56 }
0x1441   :  { %5467 = vmax.xlane.f32.xlu0 %v14000_v58 }
0x1442   :  { %5469 = vmax.xlane.f32.xlu1 %v14002_v30 }
0x1445   :  { %5479 = vmax.xlane.f32.xlu0 %v14006_v53 }
0x1446   :  { %5465 = vmax.xlane.f32.xlu1 %v14008_v40 }
0x1449   :  { %5475 = vmax.xlane.f32.xlu0 %v14012_v32 }
0x144a   :  { %5477 = vmax.xlane.f32.xlu1 %v14014_v15 }
0x144e   :  { %5473 = vmax.xlane.f32.xlu1 %v14018_v2 }
0x145f   :  { %5621 = vrot.lane.b32.xlu1 %v13788_v10, %s11230_s26 }
0x147f   :  { %v5040_v35 = vpop.xlane.xlu1 %5039 }
0x1480   :  { %v5069_v11 = vsub.f32 %v13853_v9, %v5040_v35 }
0x1482   :  { %v5087_v48 = vmul.f32 1.442695, %v5069_v11 }
0x1483   :  { %v5036_v47 = vpop.xlane.xlu1 %5035 }
0x1484   :  { %10792 = vpow2.f32 %v5087_v48  ;;  %v5067_v18 = vsub.f32 %v13862_v1, %v5036_v47 }
0x1486   :  { %v5083_v20 = vmul.f32 1.442695, %v5067_v18 }
0x1487   :  { %v5042_v17 = vpop.xlane.xlu1 %5041 }
0x1488   :  { %10794 = vpow2.f32 %v5083_v20  ;;  %v5070_v36 = vsub.f32 %v13871_v4, %v5042_v17 }
0x1489   :  { %v5050_v5 = vpop.xlane.xlu0 %5049 }
0x148a   :  { %v5089_v24 = vmul.f32 1.442695, %v5070_v36  ;;  %v5074_v60 = vsub.f32 %v13879_v19, %v5050_v5 }
0x148b   :  { %v5038_v61 = vpop.xlane.xlu1 %5037 }
0x148c   :  { %10796 = vpow2.f32 %v5089_v24  ;;  %v5068_v9 = vsub.f32 %v13888_v25, %v5038_v61  ;;  %v5097_v43 = vmul.f32 1.442695, %v5074_v60 }
0x148e   :  { %v14040_v52 = vpop.eup %10792  ;;  %v5085_v54 = vmul.f32 1.442695, %v5068_v9 }
0x148f   :  { %v5048_v1 = vpop.xlane.xlu1 %5047  ;;  %5119 = vadd.xlane.f32.xlu1 %v14040_v52 }
0x1490   :  { %10798 = vpow2.f32 %v5085_v54  ;;  %v5073_v35 = vsub.f32 %v13898_v31, %v5048_v1 }
0x1491   :  { %10800 = vpow2.f32 %v5097_v43 }
0x1492   :  { %v14044_v11 = vpop.eup %10794  ;;  %v5095_v4 = vmul.f32 1.442695, %v5073_v35 }
0x1493   :  { %v5044_v48 = vpop.xlane.xlu1 %5043  ;;  %5115 = vadd.xlane.f32.xlu1 %v14044_v11 }
0x1494   :  { %10802 = vpow2.f32 %v5095_v4  ;;  %v5071_v19 = vsub.f32 %v13907_v37, %v5044_v48 }
0x1496   :  { %v14048_v25 = vpop.eup %10796  ;;  %v5091_v47 = vmul.f32 1.442695, %v5071_v19 }
0x1497   :  { %v5046_v18 = vpop.xlane.xlu1 %5045  ;;  %5121 = vadd.xlane.f32.xlu0 %v14048_v25 }
0x1498   :  { %10804 = vpow2.f32 %v5091_v47  ;;  %v5072_v20 = vsub.f32 %v13913_v0, %v5046_v18 }
0x149a   :  { %v14052_v31 = vpop.eup %10798  ;;  %v5093_v17 = vmul.f32 1.442695, %v5072_v20 }
0x149b   :  { %v5056_v36 = vpop.xlane.xlu1 %5055  ;;  %5117 = vadd.xlane.f32.xlu0 %v14052_v31  ;;  %v14056_v24 = vpop.eup %10800 }
0x149c   :  { %10806 = vpow2.f32 %v5093_v17  ;;  %v5077_v5 = vsub.f32 %v13919_v6, %v5056_v36 }
0x149e   :  { %v14058_v37 = vpop.eup %10802  ;;  %v5103_v60 = vmul.f32 1.442695, %v5077_v5 }
0x149f   :  { %v5052_v61 = vpop.xlane.xlu1 %5051  ;;  %5127 = vadd.xlane.f32.xlu1 %v14058_v37  ;;  %5129 = vadd.xlane.f32.xlu0 %v14056_v24 }
0x14a0   :  { %10808 = vpow2.f32 %v5103_v60  ;;  %v5075_v0 = vsub.f32 %v13925_v62, %v5052_v61 }
0x14a2   :  { %v14063_v9 = vpop.eup %10804  ;;  %v5099_v54 = vmul.f32 1.442695, %v5075_v0 }
0x14a3   :  { %v5058_v43 = vpop.xlane.xlu1 %5057  ;;  %5123 = vadd.xlane.f32.xlu1 %v14063_v9 }
0x14a4   :  { %10810 = vpow2.f32 %v5099_v54  ;;  %v5078_v6 = vsub.f32 %v13933_v57, %v5058_v43 }
0x14a6   :  { %v14067_v1 = vpop.eup %10806  ;;  %v5105_v35 = vmul.f32 1.442695, %v5078_v6 }
0x14a7   :  { %v5054_v4 = vpop.xlane.xlu1 %5053  ;;  %5125 = vadd.xlane.f32.xlu0 %v14067_v1 }
0x14a8   :  { %10812 = vpow2.f32 %v5105_v35  ;;  %v5076_v48 = vsub.f32 %v13939_v8, %v5054_v4 }
0x14aa   :  { %v14071_v19 = vpop.eup %10808  ;;  %v5101_v62 = vmul.f32 1.442695, %v5076_v48 }
0x14ab   :  { %v5064_v47 = vpop.xlane.xlu1 %5063  ;;  %5135 = vadd.xlane.f32.xlu1 %v14071_v19 }
0x14ac   :  { %10814 = vpow2.f32 %v5101_v62  ;;  %v5081_v18 = vsub.f32 %v13945_v39, %v5064_v47 }
0x14ae   :  { %v14075_v20 = vpop.eup %10810  ;;  %v5111_v57 = vmul.f32 1.442695, %v5081_v18 }
0x14af   :  { %v5060_v17 = vpop.xlane.xlu1 %5059  ;;  %5131 = vadd.xlane.f32.xlu1 %v14075_v20 }
0x14b0   :  { %10816 = vpow2.f32 %v5111_v57  ;;  %v5079_v36 = vsub.f32 %v13951_v34, %v5060_v17  ;;  %v14089_v34 = vpop.permute.xlu0 %5619 }
0x14b2   :  { %v14079_v5 = vpop.eup %10812  ;;  %v5107_v8 = vmul.f32 1.442695, %v5079_v36 }
0x14b3   :  { %v5066_v60 = vpop.xlane.xlu1 %5065  ;;  %5137 = vadd.xlane.f32.xlu0 %v14079_v5 }
0x14b4   :  { %10818 = vpow2.f32 %v5107_v8  ;;  %v5082_v61 = vsub.f32 %v13957_v7, %v5066_v60 }
0x14b6   :  { %v14083_v0 = vpop.eup %10814  ;;  %v5113_v39 = vmul.f32 1.442695, %v5082_v61 }
0x14b7   :  { %v5062_v54 = vpop.xlane.xlu1 %5061  ;;  %5133 = vadd.xlane.f32.xlu0 %v14083_v0 }
0x14b8   :  { %10820 = vpow2.f32 %v5113_v39  ;;  %v5080_v43 = vsub.f32 %v13963_v14, %v5062_v54 }
0x14ba   :  { %v14087_v6 = vpop.eup %10816  ;;  %v5109_v35 = vmul.f32 1.442695, %v5080_v43 }
0x14bb   :  { %v5454_v4 = vpop.xlane.xlu1 %5453  ;;  %5143 = vadd.xlane.f32.xlu1 %v14087_v6 }
0x14bc   :  { %10822 = vpow2.f32 %v5109_v35  ;;  %v5483_v7 = vsub.f32 %v13967_v26, %v5454_v4 }
0x14be   :  { %v14093_v48 = vpop.eup %10818  ;;  %v5501_v62 = vmul.f32 1.442695, %v5483_v7  ;;  %v5456_v47 = vpop.xlane.xlu0 %5455 }
0x14bf   :  { %5139 = vadd.xlane.f32.xlu1 %v14093_v48  ;;  %v5450_v18 = vpop.xlane.xlu1 %5449  ;;  %v5484_v14 = vsub.f32 %v13971_v59, %v5456_v47 }
0x14c0   :  { %10824 = vpow2.f32 %v5501_v62  ;;  %v5481_v57 = vsub.f32 %v13974_v46, %v5450_v18 }
0x14c1   :  { %v5503_v26 = vmul.f32 1.442695, %v5484_v14 }
0x14c2   :  { %v14098_v17 = vpop.eup %10820  ;;  %v5497_v36 = vmul.f32 1.442695, %v5481_v57  ;;  %v5464_v8 = vpop.xlane.xlu0 %5463 }
0x14c3   :  { %v5452_v60 = vpop.xlane.xlu1 %5451  ;;  %5145 = vadd.xlane.f32.xlu0 %v14098_v17 }
0x14c4   :  { %10826 = vpow2.f32 %v5497_v36  ;;  %v5482_v61 = vsub.f32 %v13982_v16, %v5452_v60  ;;  %v5488_v16 = vsub.f32 %v13979_v49, %v5464_v8 }
0x14c5   :  { %10828 = vpow2.f32 %v5503_v26 }
0x14c6   :  { %v14102_v39 = vpop.eup %10822  ;;  %v5460_v54 = vpop.xlane.xlu0 %5459  ;;  %v5499_v43 = vmul.f32 1.442695, %v5482_v61  ;;  %v5511_v26 = vmul.f32 1.442695, %v5488_v16 }
0x14c7   :  { %v5486_v35 = vsub.f32 %v13986_v22, %v5460_v54  ;;  %v5462_v59 = vpop.xlane.xlu1 %5461  ;;  %5141 = vadd.xlane.f32.xlu0 %v14102_v39 }
0x14c8   :  { %v5487_v46 = vsub.f32 %v13989_v23, %v5462_v59  ;;  %10830 = vpow2.f32 %v5499_v43 }
0x14c9   :  { %v5507_v47 = vmul.f32 1.442695, %v5486_v35 }
0x14ca   :  { %v14107_v4 = vpop.eup %10824  ;;  %v5509_v7 = vmul.f32 1.442695, %v5487_v46  ;;  %v5472_v62 = vpop.xlane.xlu0 %5471 }
0x14cb   :  { %v5458_v18 = vpop.xlane.xlu1 %5457  ;;  %5533 = vadd.xlane.f32.xlu0 %v14107_v4 }
0x14cc   :  { %10832 = vpow2.f32 %v5509_v7  ;;  %v5485_v22 = vsub.f32 %v13996_v56, %v5458_v18  ;;  %v5492_v7 = vsub.f32 %v13993_v63, %v5472_v62 }
0x14cd   :  { %10834 = vpow2.f32 %v5507_v47 }
0x14ce   :  { %v14112_v14 = vpop.eup %10826  ;;  %v5505_v57 = vmul.f32 1.442695, %v5485_v22  ;;  %v5468_v36 = vpop.xlane.xlu0 %5467 }
0x14cf   :  { %v5490_v23 = vsub.f32 %v14000_v58, %v5468_v36  ;;  %v5470_v60 = vpop.xlane.xlu1 %5469  ;;  %5529 = vadd.xlane.f32.xlu0 %v14112_v14  ;;  %v14117_v43 = vpop.eup %10828  ;;  %v5519_v36 = vmul.f32 1.442695, %v5492_v7 }
0x14d0   :  { %10836 = vpow2.f32 %v5505_v57  ;;  %v5491_v61 = vsub.f32 %v14002_v30, %v5470_v60 }
0x14d1   :  { %v5515_v54 = vmul.f32 1.442695, %v5490_v23 }
0x14d2   :  { %v5480_v49 = vpop.xlane.xlu0 %5479  ;;  %v5517_v8 = vmul.f32 1.442695, %v5491_v61  ;;  %v14121_v58 = vpop.eup %10830 }
0x14d3   :  { %10838 = vpow2.f32 %v5515_v54  ;;  %v5466_v56 = vpop.xlane.xlu1 %5465  ;;  %5535 = vadd.xlane.f32.xlu0 %v14117_v43 }
0x14d4   :  { %10840 = vpow2.f32 %v5511_v26  ;;  %v5489_v35 = vsub.f32 %v14008_v40, %v5466_v56 }
0x14d5   :  { %10842 = vpow2.f32 %v5517_v8 }
0x14d6   :  { %v14123_v59 = vpop.eup %10832  ;;  %v5476_v46 = vpop.xlane.xlu0 %5475  ;;  %v5513_v30 = vmul.f32 1.442695, %v5489_v35 }
0x14d7   :  { %5541 = vadd.xlane.f32.xlu1 %v14123_v59  ;;  %v5478_v47 = vpop.xlane.xlu1 %5477  ;;  %5531 = vadd.xlane.f32.xlu0 %v14121_v58  ;;  %v5494_v18 = vsub.f32 %v14012_v32, %v5476_v46  ;;  %v14130_v22 = vpop.eup %10834  ;;  %v15726_v46 = vld [vmem:[#allocation19_spill] sm:$0xff] }
0x14d8   :  { %v5495_v16 = vsub.f32 %v14014_v15, %v5478_v47  ;;  %10844 = vpow2.f32 %v5513_v30  ;;  %v5496_v15 = vsub.f32 %v14006_v53, %v5480_v49  ;;  %v15727_v30 = vld [vmem:[#allocation18_spill] sm:$0xff] }
0x14d9   :  { %v5523_v62 = vmul.f32 1.442695, %v5494_v18 }
0x14da   :  { %v14132_v40 = vpop.eup %10836  ;;  %v5525_v57 = vmul.f32 1.442695, %v5495_v16  ;;  %v5527_v54 = vmul.f32 1.442695, %v5496_v15 }
0x14db   :  { %5537 = vadd.xlane.f32.xlu1 %v14132_v40  ;;  %v5474_v63 = vpop.xlane.xlu1 %5473  ;;  %5539 = vadd.xlane.f32.xlu0 %v14130_v22 }
0x14dc   :  { %10846 = vpow2.f32 %v5525_v57  ;;  %v5493_v23 = vsub.f32 %v14018_v2, %v5474_v63 }
0x14dd   :  { %v14137_v60 = vpop.eup %10838  ;;  %10848 = vpow2.f32 %v5519_v36 }
0x14de   :  { %v14139_v32 = vpop.eup %10840  ;;  %10850 = vpow2.f32 %v5523_v62  ;;  %v5521_v26 = vmul.f32 1.442695, %v5493_v23 }
0x14df   :  { %5543 = vadd.xlane.f32.xlu1 %v14139_v32  ;;  %5547 = vadd.xlane.f32.xlu0 %v14137_v60  ;;  %v14144_v61 = vpop.eup %10842  ;;  %v14187_v7 = vpop.permute.xlu1 %5621 }
0x14e0   :  { %10852 = vpow2.f32 %v5521_v26 }
0x14e1   :  { %10854 = vpow2.f32 %v5527_v54 }
0x14e2   :  { %v14147_v2 = vpop.eup %10844 }
0x14e3   :  { %5549 = vadd.xlane.f32.xlu1 %v14144_v61 }
0x14e6   :  { %v14149_v56 = vpop.eup %10846 }
0x14e7   :  { %5545 = vadd.xlane.f32.xlu1 %v14147_v2  ;;  %5557 = vadd.xlane.f32.xlu0 %v14149_v56  ;;  %v14153_v8 = vpop.eup %10848 }
0x14e8   :  { %v14155_v53 = vpop.eup %10850 }
0x14ea   :  { %v14159_v49 = vpop.eup %10852 }
0x14eb   :  { %5551 = vadd.xlane.f32.xlu1 %v14153_v8  ;;  %5555 = vadd.xlane.f32.xlu0 %v14155_v53  ;;  %v14162_v35 = vpop.eup %10854 }
0x14ef   :  { %5553 = vadd.xlane.f32.xlu1 %v14159_v49 }
0x14f3   :  { %5559 = vadd.xlane.f32.xlu1 %v14162_v35 }
0x1501   :  { %5623 = vrot.lane.b32.xlu0 %v13784_v29, %s11230_s26 }
0x1504   :  { %5990 = vrot.lane.b32.xlu1 %v13697_v51, %s11231_s15 }
0x1505   :  { %5994 = vrot.lane.b32.xlu0 %v13736_v45, %s11231_s15 }
0x1508   :  { %5992 = vrot.lane.b32.xlu1 %v13716_v38, %s11231_s15 }
0x1509   :  { %5998 = vrot.lane.b32.xlu0 %v13755_v41, %s11231_s15 }
0x150c   :  { %5996 = vrot.lane.b32.xlu1 %v13747_v28, %s11231_s15 }
0x150d   :  { %6002 = vrot.lane.b32.xlu0 %v13791_v3, %s11231_s15 }
0x1510   :  { %6000 = vrot.lane.b32.xlu1 %v13772_v50, %s11231_s15 }
0x1511   :  { %6286 = vrot.lane.b32.xlu0 %v13730_v44, %s11231_s15 }
0x1514   :  { %6004 = vrot.lane.b32.xlu1 %v13803_v12, %s11231_s15 }
0x1518   :  { %6282 = vrot.lane.b32.xlu1 %v15726_v46, %s11231_s15 }
0x151c   :  { %6284 = vrot.lane.b32.xlu1 %v15727_v30, %s11231_s15  ;;  %v5120_v47 = vpop.xlane.xlu1 %5119 }
0x1520   :  { %v5116_v18 = vpop.xlane.xlu1 %5115 }
0x1524   :  { %v5122_v16 = vpop.xlane.xlu0 %5121 }
0x1525   :  { %10856 = vrcp.f32 %v5122_v16 }
0x1526   :  { %10858 = vrcp.f32 %v5116_v18 }
0x1527   :  { %10860 = vrcp.f32 %v5120_v47 }
0x1528   :  { %v5118_v57 = vpop.xlane.xlu0 %5117 }
0x1529   :  { %10862 = vrcp.f32 %v5118_v57 }
0x152c   :  { %v5128_v36 = vpop.xlane.xlu1 %5127  ;;  %v5130_v63 = vpop.xlane.xlu0 %5129 }
0x152d   :  { %10864 = vrcp.f32 %v5128_v36  ;;  %v15728_v36 = vld [vmem:[#allocation8_spill] sm:$0xff] }
0x152e   :  { %10866 = vrcp.f32 %v5130_v63 }
0x152f   :  { %v10857_v62 = vpop.eup %10856 }
0x1530   :  { %v5124_v23 = vpop.xlane.xlu1 %5123  ;;  %v10859_v15 = vpop.eup %10858  ;;  %v5166_v44 = vmul.f32 %v10857_v62, %v14048_v25 }
0x1531   :  { %v10861_v26 = vpop.eup %10860  ;;  %10868 = vrcp.f32 %v5124_v23  ;;  %v5163_v55 = vmul.f32 %v10859_v15, %v14044_v11 }
0x1532   :  { %v5165_v47 = vmul.f32 %v10861_v26, %v14040_v52 }
0x1533   :  { %v10863_v54 = vpop.eup %10862 }
0x1534   :  { %v5126_v30 = vpop.xlane.xlu0 %5125  ;;  %v5164_v18 = vmul.f32 %v10863_v54, %v14052_v31  ;;  %v5180_v57 = vpack.c.bf16 %v5166_v44, %v5165_v47 }
0x1535   :  { %10870 = vrcp.f32 %v5126_v30 }
0x1536   :  { %v5179_v16 = vpack.c.bf16 %v5164_v18, %v5163_v55 }
0x1537   :  { %v10865_v63 = vpop.eup %10864 }
0x1538   :  { %9762 = vmatprep.mubr.bf16.mxu1 %v5179_v16  ;;  %v5136_v3 = vpop.xlane.xlu1 %5135  ;;  %v10867_v25 = vpop.eup %10866  ;;  %v5169_v52 = vmul.f32 %v10865_v63, %v14058_v37 }
0x1539   :  { %9763 = vmatmul.mubr.bf16.vlgmr.msra.gmra.mrb[128].mxu1 %v5180_v57  ;;  %v5170_v55 = vmul.f32 %v10867_v25, %v14056_v24 }
0x153a   :  { %9797 = vmatpush3.bf16.msra.mxu1 %v15728_v36 }
0x153b   :  { %9798 = vmatprep.subr.bf16.mxu1 %v14025_v33  ;;  %v10869_v62 = vpop.eup %10868 }
0x153c   :  { %v5132_v44 = vpop.xlane.xlu1 %5131  ;;  %v5167_v30 = vmul.f32 %v10869_v62, %v14063_v9 }
0x153e   :  { %9799 = vmatpush3.bf16.msra.mxu1 %v14025_v33  ;;  %v5182_v33 = vpack.c.bf16 %v5170_v55, %v5169_v52 }
0x153f   :  { %v10871_v11 = vpop.eup %10870  ;;  %9800 = vmatprep.subr.bf16.mxu1 %v14031_v13 }
0x1540   :  { %v5138_v31 = vpop.xlane.xlu0 %5137  ;;  %v5168_v23 = vmul.f32 %v10871_v11, %v14067_v1 }
0x1541   :  { %10872 = vrcp.f32 %v5138_v31 }
0x1542   :  { %9801 = vmatpush3.bf16.msra.mxu1 %v14031_v13  ;;  %v5181_v15 = vpack.c.bf16 %v5168_v23, %v5167_v30  ;;  %10874 = vrcp.f32 %v5132_v44 }
0x1543   :  { %9802 = vmatprep.subr.bf16.mxu1 %v14029_v21  ;;  %10876 = vrcp.f32 %v5136_v3 }
0x1544   :  { %9766 = vmatprep.mubr.bf16.mxu1 %v5181_v15  ;;  %v5134_v26 = vpop.xlane.xlu0 %5133 }
0x1545   :  { %10878 = vrcp.f32 %v5134_v26  ;;  %9767 = vmatmul.mubr.bf16.gmra.mrb[132].mxu1 %v5182_v33 }
0x1546   :  { %9803 = vmatpush3.bf16.msra.mxu1 %v14029_v21 }
0x1547   :  { %9804 = vmatprep.subr.bf16.mxu1 %v14035_v42 }
0x1548   :  { %v5144_v24 = vpop.xlane.xlu1 %5143 }
0x154a   :  { %9805 = vmatpush3.bf16.msra.mxu1 %v14035_v42 }
0x154b   :  { %9806 = vmatprep.subr.bf16.mxu1 %v14089_v34  ;;  %v10873_v13 = vpop.eup %10872 }
0x154c   :  { %v10875_v37 = vpop.eup %10874  ;;  %v5174_v3 = vmul.f32 %v10873_v13, %v14079_v5  ;;  %v5140_v54 = vpop.xlane.xlu1 %5139 }
0x154d   :  { %v10877_v9 = vpop.eup %10876  ;;  %v5171_v21 = vmul.f32 %v10875_v37, %v14075_v20 }
0x154e   :  { %9807 = vmatpush3.bf16.msra.mxu1 %v14089_v34  ;;  %v5173_v42 = vmul.f32 %v10877_v9, %v14071_v19 }
0x154f   :  { %v10879_v1 = vpop.eup %10878  ;;  %9808 = vmatprep.subr.bf16.mxu1 %v14187_v7 }
0x1550   :  { %v5146_v18 = vpop.xlane.xlu0 %5145  ;;  %v5172_v47 = vmul.f32 %v10879_v1, %v14083_v0  ;;  %v5184_v57 = vpack.c.bf16 %v5174_v3, %v5173_v42 }
0x1551   :  { %10880 = vrcp.f32 %v5146_v18 }
0x1552   :  { %9809 = vmatpush3.bf16.msra.mxu1 %v14187_v7  ;;  %v5183_v16 = vpack.c.bf16 %v5172_v47, %v5171_v21  ;;  %10882 = vrcp.f32 %v5140_v54 }
0x1553   :  { %10884 = vrcp.f32 %v5144_v24 }
0x1554   :  { %9770 = vmatprep.mubr.bf16.mxu1 %v5183_v16  ;;  %v5142_v34 = vpop.xlane.xlu0 %5141 }
0x1555   :  { %10886 = vrcp.f32 %v5142_v34  ;;  %9771 = vmatmul.mubr.bf16.gmra.mrb[136].mxu1 %v5184_v57  ;;  %v5989_v34 = vpack.c.bf16 %v14023_v27, %v14023_v27 }
0x1558   :  { %v5534_v5 = vpop.xlane.xlu0 %5533 }
0x155b   :  { %v10881_v36 = vpop.eup %10880 }
0x155c   :  { %v5530_v63 = vpop.xlane.xlu0 %5529  ;;  %v10883_v25 = vpop.eup %10882  ;;  %v5178_v0 = vmul.f32 %v10881_v36, %v14098_v17 }
0x155d   :  { %v10885_v20 = vpop.eup %10884  ;;  %v5175_v11 = vmul.f32 %v10883_v25, %v14093_v48  ;;  %10888 = vrcp.f32 %v5530_v63 }
0x155e   :  { %v5177_v52 = vmul.f32 %v10885_v20, %v14087_v6 }
0x155f   :  { %v10887_v62 = vpop.eup %10886 }
0x1560   :  { %v5536_v19 = vpop.xlane.xlu0 %5535  ;;  %v5176_v7 = vmul.f32 %v10887_v62, %v14102_v39  ;;  %v5186_v44 = vpack.c.bf16 %v5178_v0, %v5177_v52 }
0x1562   :  { %v5185_v55 = vpack.c.bf16 %v5176_v7, %v5175_v11 }
0x1564   :  { %v5542_v31 = vpop.xlane.xlu1 %5541  ;;  %9774 = vmatprep.mubr.bf16.mxu1 %v5185_v55  ;;  %v5532_v30 = vpop.xlane.xlu0 %5531 }
0x1565   :  { %9775 = vmatmul.mubr.bf16.gmra.mrb[140].mxu1 %v5186_v44  ;;  %10890 = vrcp.f32 %v5532_v30 }
0x1566   :  { %10892 = vrcp.f32 %v5536_v19 }
0x1567   :  { %v10889_v17 = vpop.eup %10888 }
0x1568   :  { %v5538_v23 = vpop.xlane.xlu1 %5537  ;;  %v5540_v15 = vpop.xlane.xlu0 %5539  ;;  %v5577_v6 = vmul.f32 %v10889_v17, %v14112_v14 }
0x1569   :  { %10894 = vrcp.f32 %v5538_v23 }
0x156a   :  { %10896 = vrcp.f32 %v5540_v15 }
0x156b   :  { %10898 = vrcp.f32 %v5534_v5 }
0x156c   :  { %v5544_v33 = vpop.xlane.xlu1 %5543  ;;  %v5548_v39 = vpop.xlane.xlu0 %5547 }
0x156d   :  { %10900 = vrcp.f32 %v5544_v33 }
0x156f   :  { %v10891_v48 = vpop.eup %10890 }
0x1570   :  { %v5550_v26 = vpop.xlane.xlu1 %5549  ;;  %v5578_v24 = vmul.f32 %v10891_v48, %v14121_v58  ;;  %v10893_v1 = vpop.eup %10892 }
0x1571   :  { %v5580_v42 = vmul.f32 %v10893_v1, %v14117_v43 }
0x1572   :  { %v5593_v13 = vpack.c.bf16 %v5578_v24, %v5577_v6 }
0x1573   :  { %v10895_v3 = vpop.eup %10894 }
0x1574   :  { %v5546_v37 = vpop.xlane.xlu1 %5545  ;;  %v5558_v9 = vpop.xlane.xlu0 %5557  ;;  %9812 = vmatprep.mubr.bf16.mxu1 %v5593_v13  ;;  %v5581_v58 = vmul.f32 %v10895_v3, %v14132_v40 }
0x1575   :  { %10902 = vrcp.f32 %v5546_v37  ;;  %v10897_v21 = vpop.eup %10896 }
0x1576   :  { %10904 = vrcp.f32 %v5542_v31  ;;  %v10899_v47 = vpop.eup %10898  ;;  %v5582_v57 = vmul.f32 %v10897_v21, %v14130_v22  ;;  %v6031_v22 = vsel %vm1238_vm1, %v5989_v34, 0 }
0x1577   :  { %10906 = vrcp.f32 %v5548_v39  ;;  %v5579_v5 = vmul.f32 %v10899_v47, %v14107_v4  ;;  %v10901_v63 = vpop.eup %10900 }
0x1578   :  { %v5552_v54 = vpop.xlane.xlu1 %5551  ;;  %v5556_v18 = vpop.xlane.xlu0 %5555  ;;  %v5595_v25 = vpack.c.bf16 %v5582_v57, %v5581_v58  ;;  %v5584_v4 = vmul.f32 %v10901_v63, %v14139_v32 }
0x1579   :  { %10908 = vrcp.f32 %v5552_v54  ;;  %v5594_v36 = vpack.c.bf16 %v5580_v42, %v5579_v5 }
0x157c   :  { %v5554_v16 = vpop.xlane.xlu1 %5553  ;;  %v5624_v14 = vpop.permute.xlu0 %5623 }
0x157d   :  { %9810 = vmatprep.subr.bf16.mxu1 %v5624_v14  ;;  %10910 = vrcp.f32 %v5554_v16 }
0x157e   :  { %9811 = vmatpush3.bf16.msra.mxu1 %v5624_v14  ;;  %10912 = vrcp.f32 %v5550_v26 }
0x157f   :  { %10236 = vmatprep.subr.msk.bf16.mxu1 %vm1238_vm1, %v5989_v34  ;;  %v10903_v20 = vpop.eup %10902  ;;  %10914 = vrcp.f32 %v5556_v18 }
0x1580   :  { %v5560_v43 = vpop.xlane.xlu1 %5559  ;;  %v10905_v40 = vpop.eup %10904  ;;  %v5585_v0 = vmul.f32 %v10903_v20, %v14147_v2 }
0x1581   :  { %9813 = vmatmul.mubr.bf16.vlgmr.msra.gmra.mrb[144].mxu1 %v5594_v36  ;;  %v10907_v27 = vpop.eup %10906  ;;  %v5583_v19 = vmul.f32 %v10905_v40, %v14123_v59  ;;  %10916 = vrcp.f32 %v5560_v43  ;;  %v5995_v24 = vpop.permute.xlu0 %5994 }
0x1582   :  { %9816 = vmatprep.mubr.bf16.mxu1 %v5595_v25  ;;  %9865 = vmatpush3.bf16.msra.mxu1 %v6031_v22  ;;  %v5586_v11 = vmul.f32 %v10907_v27, %v14137_v60  ;;  %10918 = vrcp.f32 %v5558_v9 }
0x1583   :  { %v5596_v7 = vpack.c.bf16 %v5584_v4, %v5583_v19  ;;  %v10909_v52 = vpop.eup %10908 }
0x1584   :  { %v5991_v62 = vpop.permute.xlu1 %5990  ;;  %v5597_v44 = vpack.c.bf16 %v5586_v11, %v5585_v0  ;;  %v5588_v32 = vmul.f32 %v10909_v52, %v14153_v8 }
0x1587   :  { %v10911_v31 = vpop.eup %10910 }
0x1588   :  { %v5993_v55 = vpop.permute.xlu1 %5992  ;;  %v10913_v30 = vpop.eup %10912  ;;  %v5589_v2 = vmul.f32 %v10911_v31, %v14159_v49 }
0x1589   :  { %9817 = vmatmul.mubr.bf16.gmra.mrb[148].mxu1 %v5596_v7  ;;  %v10915_v23 = vpop.eup %10914  ;;  %v5587_v59 = vmul.f32 %v10913_v30, %v14144_v61  ;;  %v5999_v61 = vpop.permute.xlu0 %5998 }
0x158a   :  { %9820 = vmatprep.mubr.bf16.mxu1 %v5597_v44  ;;  %v5590_v33 = vmul.f32 %v10915_v23, %v14155_v53 }
0x158b   :  { %v5598_v60 = vpack.c.bf16 %v5588_v32, %v5587_v59  ;;  %v10917_v17 = vpop.eup %10916 }
0x158c   :  { %v5997_v15 = vpop.permute.xlu1 %5996  ;;  %v5599_v39 = vpack.c.bf16 %v5590_v33, %v5589_v2  ;;  %v10919_v26 = vpop.eup %10918  ;;  %v5592_v6 = vmul.f32 %v10917_v17, %v14162_v35 }
0x158d   :  { %v5591_v8 = vmul.f32 %v10919_v26, %v14149_v56  ;;  %v6003_v53 = vpop.permute.xlu0 %6002  ;;  %v8644_v56 = vld [vmem:[%s15547_s6 + $0x10] sm:$0xff] }
0x158e   :  { %v8718_v1 = vcombine.high %v8644_v56, %v8644_v56  ;;  %v5890_v23 = vsel %vm1238_vm1, %v8644_v56, 0 }
0x158f   :  { %v5600_v37 = vpack.c.bf16 %v5592_v6, %v5591_v8 }
0x1590   :  { %v6001_v48 = vpop.permute.xlu1 %6000  ;;  %10234 = vmatprep.subr.msk.bf16.mxu0 %vm1238_vm1, %v8718_v1  ;;  %v5766_v3 = vsel %vm1238_vm1, %v8718_v1, 0 }
0x1591   :  { %9821 = vmatmul.mubr.bf16.gmra.mrb[152].mxu1 %v5598_v60  ;;  %v6287_v35 = vpop.permute.xlu0 %6286  ;;  %9829 = vmatpush3.bf16.msra.mxu0 %v5766_v3 }
0x1592   :  { %9824 = vmatprep.mubr.bf16.mxu1 %v5599_v39  ;;  %10235 = vmatprep.subr.msk.bf16.mxu0 %vm1238_vm1, %v8644_v56 }
0x1594   :  { %v6005_v13 = vpop.permute.xlu1 %6004 }
0x1598   :  { %v6283_v9 = vpop.permute.xlu1 %6282 }
0x1599   :  { %9825 = vmatmul.mubr.bf16.gmra.mrb[156].mxu1 %v5600_v37  ;;  %9882 = vmatprep.subr.bf16.mxu1 %v6283_v9 }
0x159a   :  { %9866 = vmatprep.mubr.msk.bf16.mxu1 %vm1213_vm0, %v5991_v62 }
0x159c   :  { %v6285_v49 = vpop.permute.xlu1 %6284 }
0x15a1   :  { %9867 = vmatmul.mubr.msk.bf16.vlgmr.msra.gmra.mrb[160].mxu1 %vm1213_vm0, %v5993_v55 }
0x15a2   :  { %9883 = vmatpush3.bf16.msra.mxu1 %v6283_v9  ;;  %9870 = vmatprep.mubr.msk.bf16.mxu1 %vm1213_vm0, %v5995_v24 }
0x15a3   :  { %9884 = vmatprep.subr.bf16.mxu1 %v6285_v49 }
0x15a6   :  { %9885 = vmatpush3.bf16.msra.mxu1 %v6285_v49 }
0x15a7   :  { %9886 = vmatprep.subr.bf16.mxu1 %v6287_v35 }
0x15a9   :  { %9871 = vmatmul.mubr.msk.bf16.gmra.mrb[164].mxu1 %vm1213_vm0, %v5997_v15 }
0x15aa   :  { %9887 = vmatpush3.bf16.msra.mxu1 %v6287_v35  ;;  %9874 = vmatprep.mubr.msk.bf16.mxu1 %vm1213_vm0, %v5999_v61  ;;  %v14309_v35 = vld [vmem:[%s15546_s2 + $0x10] sm:$0xff] }
0x15b1   :  { %9875 = vmatmul.mubr.msk.bf16.gmra.mrb[168].mxu1 %vm1213_vm0, %v6001_v48 }
0x15b2   :  { %9878 = vmatprep.mubr.msk.bf16.mxu1 %vm1213_vm0, %v6003_v53 }
0x15b9   :  { %9879 = vmatmul.mubr.msk.bf16.gmra.mrb[172].mxu1 %vm1213_vm0, %v6005_v13 }
0x160c   :  { %v14254_v54 = vpop.f32.mrb[128].mxu1 }
0x160d   :  { %v5229_v18 = vpop.f32.mrb[129].mxu1 }
0x160e   :  { %v14256_v21 = vpop.f32.mrb[130].mxu1 }
0x160f   :  { %v5293_v47 = vpack.c.bf16 %v14256_v21, %v14254_v54  ;;  %v5232_v42 = vpop.f32.mrb[131].mxu1 }
0x1610   :  { %v5292_v16 = vpack.c.bf16 %v5232_v42, %v5229_v18  ;;  %v14318_v42 = vld [vmem:[%s15546_s2 + $0x8] sm:$0xff] }
0x1618   :  { %v14260_v14 = vpop.f32.mrb[132].mxu1 }
0x1619   :  { %v14262_v58 = vpop.f32.mrb[133].mxu1 }
0x161a   :  { %v14264_v57 = vpop.f32.mrb[134].mxu1 }
0x161b   :  { %v5295_v34 = vpack.c.bf16 %v14264_v57, %v14260_v14  ;;  %v14268_v5 = vpop.f32.mrb[135].mxu1  ;;  %v14393_v14 = vld [vmem:[%s15546_s2 + $0x50] sm:$0xff] }
0x161c   :  { %v5294_v36 = vpack.c.bf16 %v14268_v5, %v14262_v58  ;;  %v14326_v58 = vld [vmem:[%s15546_s2] sm:$0xff] }
0x1628   :  { %v14272_v63 = vpop.f32.mrb[136].mxu1 }
0x1629   :  { %v14274_v43 = vpop.f32.mrb[137].mxu1 }
0x162a   :  { %v14276_v25 = vpop.f32.mrb[138].mxu1 }
0x162b   :  { %v5297_v20 = vpack.c.bf16 %v14276_v25, %v14272_v63  ;;  %v14280_v22 = vpop.f32.mrb[139].mxu1  ;;  %v14437_v63 = vld [vmem:[%s15546_s2 + $0x70] sm:$0xff] }
0x162c   :  { %v5296_v40 = vpack.c.bf16 %v14280_v22, %v14274_v43 }
0x1638   :  { %v14284_v27 = vpop.f32.mrb[140].mxu1 }
0x1639   :  { %v14286_v4 = vpop.f32.mrb[141].mxu1 }
0x163a   :  { %v14288_v62 = vpop.f32.mrb[142].mxu1 }
0x163b   :  { %v5299_v0 = vpack.c.bf16 %v14288_v62, %v14284_v27  ;;  %v14292_v19 = vpop.f32.mrb[143].mxu1  ;;  %v14475_v62 = vld [vmem:[%s15546_s2 + $0x68] sm:$0xff] }
0x163c   :  { %v5298_v11 = vpack.c.bf16 %v14292_v19, %v14286_v4 }
0x1654   :  { %v9814_v7 = vpop.f32.mrb[144].mxu1 }
0x1655   :  { %v5667_v52 = vpop.f32.mrb[145].mxu1 }
0x1656   :  { %v9815_v55 = vpop.f32.mrb[146].mxu1 }
0x1657   :  { %v5731_v44 = vpack.c.bf16 %v9815_v55, %v9814_v7  ;;  %v5670_v31 = vpop.f32.mrb[147].mxu1 }
0x1658   :  { %v5730_v30 = vpack.c.bf16 %v5670_v31, %v5667_v52  ;;  %v14341_v52 = vld [vmem:[%s15546_s2 + $0x18] sm:$0xff] }
0x1659   :  { %v14359_v31 = vld [vmem:[%s15546_s2 + $0x38] sm:$0xff] }
0x165a   :  { %9830 = vmatprep.mubr.msk.bf16.mxu0 %vm1213_vm0, %v5730_v30 }
0x165b   :  { %9831 = vmatmul.mubr.msk.bf16.vlgmr.msra.gmra.mrb[208].mxu0 %vm1213_vm0, %v5731_v44  ;;  %v14349_v44 = vld [vmem:[%s15546_s2 + $0x30] sm:$0xff] }
0x165c   :  { %v9818_v32 = vpop.f32.mrb[148].mxu1  ;;  %9847 = vmatpush3.bf16.msra.mxu0 %v5890_v23  ;;  %v14367_v23 = vld [vmem:[%s15546_s2 + $0x20] sm:$0xff] }
0x165d   :  { %v5683_v15 = vpop.f32.mrb[149].mxu1 }
0x165e   :  { %v9819_v2 = vpop.f32.mrb[150].mxu1 }
0x165f   :  { %v5733_v59 = vpack.c.bf16 %v9819_v2, %v9818_v32  ;;  %v5686_v33 = vpop.f32.mrb[151].mxu1  ;;  %v14385_v2 = vld [vmem:[%s15546_s2 + $0x28] sm:$0xff] }
0x1660   :  { %v5732_v60 = vpack.c.bf16 %v5686_v33, %v5683_v15 }
0x1662   :  { %9834 = vmatprep.mubr.msk.bf16.mxu0 %vm1213_vm0, %v5732_v60  ;;  %v14411_v60 = vld [vmem:[%s15546_s2 + $0x40] sm:$0xff] }
0x1663   :  { %9835 = vmatmul.mubr.msk.bf16.gmra.mrb[212].mxu0 %vm1213_vm0, %v5733_v59 }
0x1664   :  { %v9822_v17 = vpop.f32.mrb[152].mxu1 }
0x1665   :  { %v5699_v48 = vpop.f32.mrb[153].mxu1 }
0x1666   :  { %v9823_v39 = vpop.f32.mrb[154].mxu1 }
0x1667   :  { %v5735_v26 = vpack.c.bf16 %v9823_v39, %v9822_v17  ;;  %v5702_v6 = vpop.f32.mrb[155].mxu1  ;;  %v14429_v39 = vld [vmem:[%s15546_s2 + $0x48] sm:$0xff] }
0x1668   :  { %v5734_v24 = vpack.c.bf16 %v5702_v6, %v5699_v48 }
0x166a   :  { %9838 = vmatprep.mubr.msk.bf16.mxu0 %vm1213_vm0, %v5734_v24  ;;  %v15729_v24 = vld [vmem:[#allocation20_spill] sm:$0xff] }
0x166b   :  { %9839 = vmatmul.mubr.msk.bf16.gmra.mrb[216].mxu0 %vm1213_vm0, %v5735_v26 }
0x166c   :  { %v9826_v13 = vpop.f32.mrb[156].mxu1 }
0x166d   :  { %v5715_v8 = vpop.f32.mrb[157].mxu1 }
0x166e   :  { %v9827_v37 = vpop.f32.mrb[158].mxu1 }
0x166f   :  { %v5737_v9 = vpack.c.bf16 %v9827_v37, %v9826_v13  ;;  %v5718_v61 = vpop.f32.mrb[159].mxu1  ;;  %v15730_v13 = vld [vmem:[#allocation23_spill] sm:$0xff]  ;;  %v15731_v37 = vld [vmem:[#allocation22_spill] sm:$0xff] }
0x1670   :  { %v5736_v53 = vpack.c.bf16 %v5718_v61, %v5715_v8  ;;  %v14466_v8 = vld [vmem:[%s15546_s2 + $0x78] sm:$0xff] }
0x1672   :  { %9842 = vmatprep.mubr.msk.bf16.mxu0 %vm1213_vm0, %v5736_v53 }
0x1673   :  { %9843 = vmatmul.mubr.msk.bf16.gmra.mrb[220].mxu0 %vm1213_vm0, %v5737_v9 }
0x1674   :  { %9848 = vmatprep.mubr.msk.bf16.mxu0 %vm1213_vm0, %v5292_v16  ;;  %v9868_v49 = vpop.f32.mrb[160].mxu1 }
0x1675   :  { %v14312_v56 = vadd.f32 %v14309_v35, %v9868_v49  ;;  %v6067_v1 = vpop.f32.mrb[161].mxu1 }
0x1676   :  { %v9869_v3 = vpop.f32.mrb[162].mxu1  ;;  %v14329_v5 = vadd.f32 %v14326_v58, %v6067_v1 }
0x1677   :  { %6134 = vmax.xlane.f32.xlu0 %v14312_v56  ;;  %v6070_v18 = vpop.f32.mrb[163].mxu1  ;;  %v14344_v55 = vadd.f32 %v14341_v52, %v9869_v3 }
0x1678   :  { %v14321_v16 = vadd.f32 %v14318_v42, %v6070_v18 }
0x167a   :  { %6132 = vmax.xlane.f32.xlu1 %v14321_v16 }
0x167b   :  { %6130 = vmax.xlane.f32.xlu0 %v14329_v5  ;;  %9849 = vmatmul.mubr.msk.bf16.vlgmr.msra.gmra.mrb[208].mxu0 %vm1213_vm0, %v5293_v47 }
0x167c   :  { %9852 = vmatprep.mubr.msk.bf16.mxu0 %vm1213_vm0, %v5294_v36  ;;  %v9872_v7 = vpop.f32.mrb[164].mxu1 }
0x167d   :  { %v14352_v54 = vadd.f32 %v14349_v44, %v9872_v7  ;;  %v6083_v21 = vpop.f32.mrb[165].mxu1 }
0x167e   :  { %v9873_v47 = vpop.f32.mrb[166].mxu1  ;;  %v14370_v32 = vadd.f32 %v14367_v23, %v6083_v21 }
0x167f   :  { %6136 = vmax.xlane.f32.xlu0 %v14344_v55  ;;  %6142 = vmax.xlane.f32.xlu1 %v14352_v54  ;;  %v6086_v36 = vpop.f32.mrb[167].mxu1  ;;  %v14362_v30 = vadd.f32 %v14359_v31, %v9873_v47 }
0x1680   :  { %v14388_v59 = vadd.f32 %v14385_v2, %v6086_v36 }
0x1683   :  { %9853 = vmatmul.mubr.msk.bf16.gmra.mrb[212].mxu0 %vm1213_vm0, %v5295_v34  ;;  %6144 = vmax.xlane.f32.xlu0 %v14362_v30 }
0x1684   :  { %6138 = vmax.xlane.f32.xlu1 %v14370_v32  ;;  %9856 = vmatprep.mubr.msk.bf16.mxu0 %vm1213_vm0, %v5296_v40  ;;  %v9876_v15 = vpop.f32.mrb[168].mxu1  ;;  %v14403_v40 = vld [vmem:[%s15546_s2 + $0x58] sm:$0xff] }
0x1685   :  { %v14396_v57 = vadd.f32 %v14393_v14, %v9876_v15  ;;  %v6099_v34 = vpop.f32.mrb[169].mxu1 }
0x1686   :  { %v9877_v43 = vpop.f32.mrb[170].mxu1  ;;  %v14414_v17 = vadd.f32 %v14411_v60, %v6099_v34 }
0x1687   :  { %6140 = vmax.xlane.f32.xlu0 %v14388_v59  ;;  %v6102_v22 = vpop.f32.mrb[171].mxu1  ;;  %v14406_v33 = vadd.f32 %v14403_v40, %v9877_v43 }
0x1688   :  { %6150 = vmax.xlane.f32.xlu1 %v14396_v57  ;;  %v14432_v26 = vadd.f32 %v14429_v39, %v6102_v22 }
0x168b   :  { %9857 = vmatmul.mubr.msk.bf16.gmra.mrb[216].mxu0 %vm1213_vm0, %v5297_v20  ;;  %6152 = vmax.xlane.f32.xlu0 %v14406_v33 }
0x168c   :  { %6146 = vmax.xlane.f32.xlu1 %v14414_v17  ;;  %9860 = vmatprep.mubr.msk.bf16.mxu0 %vm1213_vm0, %v5298_v11  ;;  %v9880_v48 = vpop.f32.mrb[172].mxu1  ;;  %v14447_v11 = vld [vmem:[%s15546_s2 + $0x60] sm:$0xff] }
0x168d   :  { %v14440_v25 = vadd.f32 %v14437_v63, %v9880_v48  ;;  %v6115_v20 = vpop.f32.mrb[173].mxu1 }
0x168e   :  { %v9881_v4 = vpop.f32.mrb[174].mxu1  ;;  %v14450_v6 = vadd.f32 %v14447_v11, %v6115_v20 }
0x168f   :  { %6148 = vmax.xlane.f32.xlu0 %v14432_v26  ;;  %v6118_v19 = vpop.f32.mrb[175].mxu1  ;;  %v14469_v27 = vadd.f32 %v14466_v8, %v9881_v4 }
0x1690   :  { %6158 = vmax.xlane.f32.xlu1 %v14440_v25 }
0x1693   :  { %9861 = vmatmul.mubr.msk.bf16.gmra.mrb[220].mxu0 %vm1213_vm0, %v5299_v0  ;;  %v14478_v0 = vadd.f32 %v14475_v62, %v6118_v19 }
0x1694   :  { %6154 = vmax.xlane.f32.xlu1 %v14450_v6 }
0x16a5   :  { %6288 = vrot.lane.b32.xlu1 %v15729_v24, %s11231_s15  ;;  %6290 = vrot.lane.b32.xlu0 %v15730_v13, %s11231_s15 }
0x16a9   :  { %6294 = vrot.lane.b32.xlu1 %v13788_v10, %s11231_s15 }
0x16c4   :  { %6160 = vmax.xlane.f32.xlu0 %v14469_v27 }
0x16c8   :  { %6156 = vmax.xlane.f32.xlu0 %v14478_v0 }
0x16de   :  { %6292 = vrot.lane.b32.xlu0 %v15731_v37, %s11231_s15 }
0x1704   :  { %v6135_v9 = vpop.xlane.xlu0 %6134 }
0x1705   :  { %v6164_v61 = vsub.f32 %v14312_v56, %v6135_v9 }
0x1707   :  { %v6182_v53 = vmul.f32 1.442695, %v6164_v61  ;;  %v6133_v49 = vpop.xlane.xlu1 %6132 }
0x1708   :  { %v6131_v1 = vpop.xlane.xlu0 %6130  ;;  %v6163_v47 = vsub.f32 %v14321_v16, %v6133_v49 }
0x1709   :  { %10920 = vpow2.f32 %v6182_v53  ;;  %v6162_v3 = vsub.f32 %v14329_v5, %v6131_v1 }
0x170a   :  { %v6180_v56 = vmul.f32 1.442695, %v6163_v47 }
0x170b   :  { %v6178_v18 = vmul.f32 1.442695, %v6162_v3 }
0x170c   :  { %v6143_v7 = vpop.xlane.xlu1 %6142  ;;  %v6137_v21 = vpop.xlane.xlu0 %6136 }
0x170d   :  { %10922 = vpow2.f32 %v6178_v18  ;;  %v6168_v36 = vsub.f32 %v14352_v54, %v6143_v7  ;;  %v6165_v15 = vsub.f32 %v14344_v55, %v6137_v21 }
0x170f   :  { %v6190_v34 = vmul.f32 1.442695, %v6168_v36  ;;  %v6184_v43 = vmul.f32 1.442695, %v6165_v15 }
0x1710   :  { %v6145_v22 = vpop.xlane.xlu0 %6144 }
0x1711   :  { %10924 = vpow2.f32 %v6190_v34  ;;  %v6139_v48 = vpop.xlane.xlu1 %6138  ;;  %v6169_v5 = vsub.f32 %v14362_v30, %v6145_v22 }
0x1712   :  { %10926 = vpow2.f32 %v6184_v43  ;;  %v6166_v20 = vsub.f32 %v14370_v32, %v6139_v48 }
0x1713   :  { %v14490_v4 = vpop.eup %10920  ;;  %10928 = vpow2.f32 %v6180_v56  ;;  %v6192_v9 = vmul.f32 1.442695, %v6169_v5 }
0x1714   :  { %v6186_v19 = vmul.f32 1.442695, %v6166_v20  ;;  %6214 = vadd.xlane.f32.xlu0 %v14490_v4  ;;  %v6141_v16 = vpop.xlane.xlu0 %6140 }
0x1715   :  { %v6151_v54 = vpop.xlane.xlu1 %6150  ;;  %v6167_v55 = vsub.f32 %v14388_v59, %v6141_v16 }
0x1716   :  { %10930 = vpow2.f32 %v6186_v19  ;;  %v6172_v61 = vsub.f32 %v14396_v57, %v6151_v54 }
0x1717   :  { %v14495_v53 = vpop.eup %10922  ;;  %v6188_v49 = vmul.f32 1.442695, %v6167_v55 }
0x1718   :  { %6210 = vadd.xlane.f32.xlu0 %v14495_v53  ;;  %v6153_v30 = vpop.xlane.xlu0 %6152  ;;  %v6198_v1 = vmul.f32 1.442695, %v6172_v61 }
0x1719   :  { %10932 = vpow2.f32 %v6188_v49  ;;  %v6147_v32 = vpop.xlane.xlu1 %6146  ;;  %v6173_v36 = vsub.f32 %v14406_v33, %v6153_v30 }
0x171a   :  { %10934 = vpow2.f32 %v6192_v9  ;;  %v6170_v3 = vsub.f32 %v14414_v17, %v6147_v32 }
0x171b   :  { %v14499_v18 = vpop.eup %10924  ;;  %10936 = vpow2.f32 %v6198_v1 }
0x171c   :  { %v14501_v7 = vpop.eup %10926  ;;  %6222 = vadd.xlane.f32.xlu1 %v14499_v18  ;;  %v6149_v59 = vpop.xlane.xlu0 %6148  ;;  %v6194_v47 = vmul.f32 1.442695, %v6170_v3 }
0x171d   :  { %v6159_v57 = vpop.xlane.xlu1 %6158  ;;  %6216 = vadd.xlane.f32.xlu0 %v14501_v7  ;;  %v6171_v21 = vsub.f32 %v14432_v26, %v6149_v59  ;;  %v14508_v34 = vpop.eup %10928  ;;  %v6200_v26 = vmul.f32 1.442695, %v6173_v36 }
0x171e   :  { %v6176_v15 = vsub.f32 %v14440_v25, %v6159_v57 }
0x171f   :  { %v6196_v17 = vmul.f32 1.442695, %v6171_v21 }
0x1720   :  { %v14510_v43 = vpop.eup %10930  ;;  %v6206_v22 = vmul.f32 1.442695, %v6176_v15  ;;  %v6291_v19 = vpop.permute.xlu0 %6290 }
0x1721   :  { %10938 = vpow2.f32 %v6196_v17  ;;  %6218 = vadd.xlane.f32.xlu1 %v14510_v43  ;;  %v6155_v56 = vpop.xlane.xlu1 %6154  ;;  %6212 = vadd.xlane.f32.xlu0 %v14508_v34 }
0x1722   :  { %10940 = vpow2.f32 %v6194_v47  ;;  %v6174_v48 = vsub.f32 %v14450_v6, %v6155_v56 }
0x1723   :  { %v14515_v20 = vpop.eup %10932  ;;  %10942 = vpow2.f32 %v6206_v22 }
0x1724   :  { %v14517_v33 = vpop.eup %10934  ;;  %10944 = vpow2.f32 %v6200_v26  ;;  %v6202_v5 = vmul.f32 1.442695, %v6174_v48 }
0x1725   :  { %v6289_v25 = vpop.permute.xlu1 %6288  ;;  %6224 = vadd.xlane.f32.xlu1 %v14517_v33  ;;  %6220 = vadd.xlane.f32.xlu0 %v14515_v20  ;;  %v14521_v16 = vpop.eup %10936 }
0x1726   :  { %9888 = vmatprep.subr.bf16.mxu1 %v6289_v25  ;;  %10946 = vpow2.f32 %v6202_v5 }
0x1727   :  { %9889 = vmatpush3.bf16.msra.mxu1 %v6289_v25 }
0x1728   :  { %9890 = vmatprep.subr.bf16.mxu1 %v6291_v19 }
0x1729   :  { %6230 = vadd.xlane.f32.xlu1 %v14521_v16  ;;  %v6295_v21 = vpop.permute.xlu1 %6294 }
0x172b   :  { %v14524_v6 = vpop.eup %10938  ;;  %9891 = vmatpush3.bf16.msra.mxu1 %v6291_v19 }
0x172c   :  { %v14526_v54 = vpop.eup %10940  ;;  %6228 = vadd.xlane.f32.xlu0 %v14524_v6 }
0x172d   :  { %6226 = vadd.xlane.f32.xlu1 %v14526_v54  ;;  %v14530_v55 = vpop.eup %10942 }
0x172e   :  { %v14532_v9 = vpop.eup %10944 }
0x1730   :  { %6238 = vadd.xlane.f32.xlu0 %v14530_v55  ;;  %v14536_v61 = vpop.eup %10946 }
0x1731   :  { %6232 = vadd.xlane.f32.xlu1 %v14532_v9 }
0x1735   :  { %6234 = vadd.xlane.f32.xlu1 %v14536_v61 }
0x1751   :  { %v6161_v49 = vpop.xlane.xlu0 %6160 }
0x1752   :  { %v6177_v30 = vsub.f32 %v14469_v27, %v6161_v49 }
0x1754   :  { %v6208_v32 = vmul.f32 1.442695, %v6177_v30 }
0x1755   :  { %v6157_v1 = vpop.xlane.xlu0 %6156 }
0x1756   :  { %10948 = vpow2.f32 %v6208_v32  ;;  %v6175_v3 = vsub.f32 %v14478_v0, %v6157_v1 }
0x1758   :  { %v6204_v59 = vmul.f32 1.442695, %v6175_v3 }
0x1759   :  { %v6293_v57 = vpop.permute.xlu0 %6292 }
0x175a   :  { %10950 = vpow2.f32 %v6204_v59  ;;  %9892 = vmatprep.subr.bf16.mxu1 %v6293_v57 }
0x175b   :  { %9893 = vmatpush3.bf16.msra.mxu1 %v6293_v57 }
0x175c   :  { %9894 = vmatprep.subr.bf16.mxu1 %v6295_v21 }
0x175f   :  { %9895 = vmatpush3.bf16.msra.mxu1 %v6295_v21 }
0x1760   :  { %v14541_v47 = vpop.eup %10948 }
0x1761   :  { %6240 = vadd.xlane.f32.xlu1 %v14541_v47 }
0x1764   :  { %v14544_v36 = vpop.eup %10950 }
0x1765   :  { %6236 = vadd.xlane.f32.xlu0 %v14544_v36 }
0x1772   :  { %6552 = vrot.lane.b32.xlu1 %v13697_v51, %s11232_s28  ;;  %v14566_v51 = vld [vmem:[%s15547_s6 + $0x18] sm:$0xff] }
0x1773   :  { %10237 = vmatprep.subr.msk.bf16.mxu0 %vm1238_vm1, %v14566_v51 }
0x1776   :  { %6554 = vrot.lane.b32.xlu1 %v13716_v38, %s11232_s28  ;;  %v6436_v38 = vsel %vm1238_vm1, %v14566_v51, 0 }
0x1777   :  { %9915 = vmatpush3.bf16.msra.mxu0 %v6436_v38 }
0x177a   :  { %6558 = vrot.lane.b32.xlu1 %v13747_v28, %s11232_s28 }
0x177b   :  { %6296 = vrot.lane.b32.xlu0 %v13784_v29, %s11231_s15 }
0x177e   :  { %6562 = vrot.lane.b32.xlu1 %v13772_v50, %s11232_s28 }
0x177f   :  { %6556 = vrot.lane.b32.xlu0 %v13736_v45, %s11232_s28  ;;  %v15732_v45 = vld [vmem:[#allocation24_spill] sm:$0xff] }
0x1782   :  { %6566 = vrot.lane.b32.xlu1 %v13803_v12, %s11232_s28 }
0x1783   :  { %6560 = vrot.lane.b32.xlu0 %v13755_v41, %s11232_s28 }
0x1786   :  { %6844 = vrot.lane.b32.xlu1 %v15726_v46, %s11232_s28 }
0x1787   :  { %6564 = vrot.lane.b32.xlu0 %v15732_v45, %s11232_s28 }
0x17a1   :  { %v6215_v28 = vpop.xlane.xlu0 %6214 }
0x17a5   :  { %v6211_v41 = vpop.xlane.xlu0 %6210 }
0x17a6   :  { %10952 = vrcp.f32 %v6211_v41 }
0x17a9   :  { %v6223_v56 = vpop.xlane.xlu1 %6222 }
0x17aa   :  { %v6217_v50 = vpop.xlane.xlu0 %6216 }
0x17ae   :  { %v6213_v12 = vpop.xlane.xlu0 %6212  ;;  %v6219_v46 = vpop.xlane.xlu1 %6218 }
0x17af   :  { %10954 = vrcp.f32 %v6213_v12 }
0x17b0   :  { %v10953_v27 = vpop.eup %10952  ;;  %10956 = vrcp.f32 %v6217_v50  ;;  %v15733_v50 = vld [vmem:[#allocation2_spill] sm:$0xff] }
0x17b1   :  { %v6258_v15 = vmul.f32 %v10953_v27, %v14495_v53  ;;  %v6551_v12 = vpack.c.bf16 %v15733_v50, %v15733_v50 }
0x17b2   :  { %v6225_v26 = vpop.xlane.xlu1 %6224  ;;  %v6221_v5 = vpop.xlane.xlu0 %6220 }
0x17b3   :  { %10958 = vrcp.f32 %v6221_v5 }
0x17b4   :  { %10960 = vrcp.f32 %v6215_v28 }
0x17b5   :  { %10962 = vrcp.f32 %v6219_v46  ;;  %v6593_v46 = vsel %vm1238_vm1, %v6551_v12, 0 }
0x17b6   :  { %v6231_v48 = vpop.xlane.xlu1 %6230  ;;  %10964 = vrcp.f32 %v6225_v26 }
0x17b9   :  { %v10955_v0 = vpop.eup %10954  ;;  %v6229_v49 = vpop.xlane.xlu0 %6228 }
0x17ba   :  { %v6259_v17 = vmul.f32 %v10955_v0, %v14508_v34  ;;  %v6227_v25 = vpop.xlane.xlu1 %6226  ;;  %10966 = vrcp.f32 %v6229_v49  ;;  %v10957_v53 = vpop.eup %10956 }
0x17bb   :  { %10968 = vrcp.f32 %v6227_v25  ;;  %v6261_v38 = vmul.f32 %v10957_v53, %v14501_v7 }
0x17bc   :  { %v6274_v22 = vpack.c.bf16 %v6259_v17, %v6258_v15  ;;  %10970 = vrcp.f32 %v6223_v56 }
0x17bd   :  { %v6239_v32 = vpop.xlane.xlu0 %6238  ;;  %v10959_v59 = vpop.eup %10958 }
0x17be   :  { %9898 = vmatprep.mubr.bf16.mxu1 %v6274_v22  ;;  %v6233_v19 = vpop.xlane.xlu1 %6232  ;;  %v10961_v57 = vpop.eup %10960  ;;  %v6263_v28 = vmul.f32 %v10959_v59, %v14515_v20 }
0x17bf   :  { %v10963_v21 = vpop.eup %10962  ;;  %v6260_v27 = vmul.f32 %v10961_v57, %v14490_v4  ;;  %10972 = vrcp.f32 %v6233_v19 }
0x17c0   :  { %v6262_v0 = vmul.f32 %v10963_v21, %v14510_v43  ;;  %v10965_v15 = vpop.eup %10964 }
0x17c1   :  { %v6275_v17 = vpack.c.bf16 %v6261_v38, %v6260_v27  ;;  %v6265_v26 = vmul.f32 %v10965_v15, %v14517_v33 }
0x17c2   :  { %v6235_v30 = vpop.xlane.xlu1 %6234  ;;  %v6276_v56 = vpack.c.bf16 %v6263_v28, %v6262_v0 }
0x17c4   :  { %v10967_v7 = vpop.eup %10966 }
0x17c5   :  { %v10969_v20 = vpop.eup %10968  ;;  %v6267_v5 = vmul.f32 %v10967_v7, %v14524_v6 }
0x17c6   :  { %v10971_v4 = vpop.eup %10970  ;;  %v6266_v25 = vmul.f32 %v10969_v20, %v14526_v54 }
0x17c7   :  { %v6264_v19 = vmul.f32 %v10971_v4, %v14499_v18 }
0x17c8   :  { %v6278_v53 = vpack.c.bf16 %v6267_v5, %v6266_v25 }
0x17c9   :  { %v10973_v49 = vpop.eup %10972 }
0x17ca   :  { %v6269_v33 = vmul.f32 %v10973_v49, %v14532_v9 }
0x17ee   :  { %v6241_v1 = vpop.xlane.xlu1 %6240 }
0x17f2   :  { %v6553_v34 = vpop.permute.xlu1 %6552  ;;  %v6237_v3 = vpop.xlane.xlu0 %6236 }
0x17f3   :  { %10974 = vrcp.f32 %v6237_v3 }
0x17f4   :  { %10976 = vrcp.f32 %v6231_v48  ;;  %v6277_v48 = vpack.c.bf16 %v6265_v26, %v6264_v19 }
0x17f5   :  { %10978 = vrcp.f32 %v6235_v30 }
0x17f6   :  { %v6555_v45 = vpop.permute.xlu1 %6554  ;;  %v6297_v41 = vpop.permute.xlu0 %6296  ;;  %10980 = vrcp.f32 %v6241_v1 }
0x17f7   :  { %9896 = vmatprep.subr.bf16.mxu1 %v6297_v41  ;;  %10982 = vrcp.f32 %v6239_v32 }
0x17f8   :  { %9897 = vmatpush3.bf16.msra.mxu1 %v6297_v41 }
0x17f9   :  { %10238 = vmatprep.subr.msk.bf16.mxu1 %vm1238_vm1, %v6551_v12 }
0x17fa   :  { %v6559_v22 = vpop.permute.xlu1 %6558  ;;  %v6557_v9 = vpop.permute.xlu0 %6556 }
0x17fb   :  { %9899 = vmatmul.mubr.bf16.vlgmr.msra.gmra.mrb[176].mxu1 %v6275_v17 }
0x17fc   :  { %9902 = vmatprep.mubr.bf16.mxu1 %v6276_v56  ;;  %9933 = vmatpush3.bf16.msra.mxu1 %v6593_v46 }
0x17fd   :  { %v10975_v3 = vpop.eup %10974 }
0x17fe   :  { %v6563_v43 = vpop.permute.xlu1 %6562  ;;  %v10977_v59 = vpop.eup %10976  ;;  %v6271_v54 = vmul.f32 %v10975_v3, %v14544_v36 }
0x17ff   :  { %v10979_v57 = vpop.eup %10978  ;;  %v6268_v6 = vmul.f32 %v10977_v59, %v14521_v16  ;;  %v6561_v16 = vpop.permute.xlu0 %6560 }
0x1800   :  { %v6270_v18 = vmul.f32 %v10979_v57, %v14536_v61  ;;  %v10981_v38 = vpop.eup %10980 }
0x1801   :  { %v6279_v1 = vpack.c.bf16 %v6269_v33, %v6268_v6  ;;  %v10983_v41 = vpop.eup %10982  ;;  %v6273_v28 = vmul.f32 %v10981_v38, %v14541_v47 }
0x1802   :  { %v6567_v30 = vpop.permute.xlu1 %6566  ;;  %v6280_v32 = vpack.c.bf16 %v6271_v54, %v6270_v18  ;;  %v6272_v50 = vmul.f32 %v10983_v41, %v14530_v55 }
0x1803   :  { %9903 = vmatmul.mubr.bf16.gmra.mrb[180].mxu1 %v6277_v48  ;;  %v6565_v61 = vpop.permute.xlu0 %6564 }
0x1804   :  { %9906 = vmatprep.mubr.bf16.mxu1 %v6278_v53  ;;  %v6281_v12 = vpack.c.bf16 %v6273_v28, %v6272_v50 }
0x1806   :  { %v6845_v21 = vpop.permute.xlu1 %6844 }
0x1807   :  { %9950 = vmatprep.subr.bf16.mxu0 %v6845_v21 }
0x180b   :  { %9907 = vmatmul.mubr.bf16.gmra.mrb[184].mxu1 %v6279_v1 }
0x180c   :  { %9910 = vmatprep.mubr.bf16.mxu1 %v6280_v32 }
0x1813   :  { %9911 = vmatmul.mubr.bf16.gmra.mrb[188].mxu1 %v6281_v12 }
0x1814   :  { %9934 = vmatprep.mubr.msk.bf16.mxu1 %vm1213_vm0, %v6553_v34 }
0x181b   :  { %9935 = vmatmul.mubr.msk.bf16.vlgmr.msra.gmra.mrb[192].mxu1 %vm1213_vm0, %v6555_v45 }
0x181c   :  { %9938 = vmatprep.mubr.msk.bf16.mxu1 %vm1213_vm0, %v6557_v9 }
0x1823   :  { %9939 = vmatmul.mubr.msk.bf16.gmra.mrb[196].mxu1 %vm1213_vm0, %v6559_v22 }
0x1824   :  { %9942 = vmatprep.mubr.msk.bf16.mxu1 %vm1213_vm0, %v6561_v16 }
0x182b   :  { %9943 = vmatmul.mubr.msk.bf16.gmra.mrb[200].mxu1 %vm1213_vm0, %v6563_v43 }
0x182c   :  { %9946 = vmatprep.mubr.msk.bf16.mxu1 %vm1213_vm0, %v6565_v61 }
0x1833   :  { %9947 = vmatmul.mubr.msk.bf16.gmra.mrb[204].mxu1 %vm1213_vm0, %v6567_v30 }
0x18ce   :  { %v9900_v55 = vpop.f32.mrb[176].mxu1 }
0x18cf   :  { %v6340_v47 = vpop.f32.mrb[177].mxu1 }
0x18d0   :  { %v9901_v36 = vpop.f32.mrb[178].mxu1 }
0x18d1   :  { %v6404_v34 = vpack.c.bf16 %v9901_v36, %v9900_v55  ;;  %v6343_v27 = vpop.f32.mrb[179].mxu1 }
0x18d2   :  { %v6403_v45 = vpack.c.bf16 %v6343_v27, %v6340_v47  ;;  %v15734_v47 = vld [vmem:[#allocation18_spill] sm:$0xff] }
0x18d4   :  { %9916 = vmatprep.mubr.msk.bf16.mxu0 %vm1213_vm0, %v6403_v45 }
0x18d5   :  { %9917 = vmatmul.mubr.msk.bf16.vlgmr.msra.gmra.mrb[208].mxu0 %vm1213_vm0, %v6404_v34 }
0x18d6   :  { %9951 = vmatpush3.bf16.msra.mxu0 %v6845_v21  ;;  %v9904_v0 = vpop.f32.mrb[180].mxu1 }
0x18d7   :  { %v6356_v15 = vpop.f32.mrb[181].mxu1 }
0x18d8   :  { %v9905_v17 = vpop.f32.mrb[182].mxu1 }
0x18d9   :  { %v6406_v7 = vpack.c.bf16 %v9905_v17, %v9904_v0  ;;  %v6359_v22 = vpop.f32.mrb[183].mxu1 }
0x18da   :  { %v6405_v56 = vpack.c.bf16 %v6359_v22, %v6356_v15 }
0x18dc   :  { %9920 = vmatprep.mubr.msk.bf16.mxu0 %vm1213_vm0, %v6405_v56 }
0x18dd   :  { %9921 = vmatmul.mubr.msk.bf16.gmra.mrb[212].mxu0 %vm1213_vm0, %v6406_v7 }
0x18de   :  { %v9908_v20 = vpop.f32.mrb[184].mxu1 }
0x18df   :  { %v6372_v46 = vpop.f32.mrb[185].mxu1 }
0x18e0   :  { %v9909_v4 = vpop.f32.mrb[186].mxu1 }
0x18e1   :  { %v6408_v26 = vpack.c.bf16 %v9909_v4, %v9908_v20  ;;  %v6375_v43 = vpop.f32.mrb[187].mxu1 }
0x18e2   :  { %v6407_v25 = vpack.c.bf16 %v6375_v43, %v6372_v46 }
0x18e4   :  { %9924 = vmatprep.mubr.msk.bf16.mxu0 %vm1213_vm0, %v6407_v25 }
0x18e5   :  { %9925 = vmatmul.mubr.msk.bf16.gmra.mrb[216].mxu0 %vm1213_vm0, %v6408_v26 }
0x18e6   :  { %v9912_v5 = vpop.f32.mrb[188].mxu1 }
0x18e7   :  { %v6388_v19 = vpop.f32.mrb[189].mxu1 }
0x18e8   :  { %v9913_v48 = vpop.f32.mrb[190].mxu1 }
0x18e9   :  { %v6410_v49 = vpack.c.bf16 %v9913_v48, %v9912_v5  ;;  %v6391_v30 = vpop.f32.mrb[191].mxu1 }
0x18ea   :  { %v6409_v53 = vpack.c.bf16 %v6391_v30, %v6388_v19 }
0x18ec   :  { %9928 = vmatprep.mubr.msk.bf16.mxu0 %vm1213_vm0, %v6409_v53 }
0x18ed   :  { %9929 = vmatmul.mubr.msk.bf16.gmra.mrb[220].mxu0 %vm1213_vm0, %v6410_v49 }
0x18ee   :  { %v9936_v3 = vpop.f32.mrb[192].mxu1 }
0x18ef   :  { %v6638_v59 = vadd.f32 %v14309_v35, %v9936_v3  ;;  %v6629_v57 = vpop.f32.mrb[193].mxu1 }
0x18f0   :  { %v9937_v33 = vpop.f32.mrb[194].mxu1  ;;  %v6630_v6 = vadd.f32 %v14326_v58, %v6629_v57 }
0x18f1   :  { %6696 = vmax.xlane.f32.xlu0 %v6638_v59  ;;  %v6632_v21 = vpop.f32.mrb[195].mxu1  ;;  %v6641_v1 = vadd.f32 %v14341_v52, %v9937_v33 }
0x18f2   :  { %v14614_v54 = vadd.f32 %v14318_v42, %v6632_v21 }
0x18f4   :  { %6694 = vmax.xlane.f32.xlu1 %v14614_v54 }
0x18f5   :  { %6692 = vmax.xlane.f32.xlu0 %v6630_v6 }
0x18f6   :  { %v9940_v18 = vpop.f32.mrb[196].mxu1 }
0x18f7   :  { %v6654_v38 = vadd.f32 %v14349_v44, %v9940_v18  ;;  %v6645_v32 = vpop.f32.mrb[197].mxu1 }
0x18f8   :  { %v9941_v41 = vpop.f32.mrb[198].mxu1  ;;  %v6646_v28 = vadd.f32 %v14367_v23, %v6645_v32 }
0x18f9   :  { %6698 = vmax.xlane.f32.xlu0 %v6641_v1  ;;  %6704 = vmax.xlane.f32.xlu1 %v6654_v38  ;;  %v6648_v35 = vpop.f32.mrb[199].mxu1  ;;  %v14622_v42 = vadd.f32 %v14359_v31, %v9941_v41 }
0x18fa   :  { %v14626_v50 = vadd.f32 %v14385_v2, %v6648_v35 }
0x18fd   :  { %6706 = vmax.xlane.f32.xlu0 %v14622_v42  ;;  %6700 = vmax.xlane.f32.xlu1 %v6646_v28 }
0x18fe   :  { %v9944_v58 = vpop.f32.mrb[200].mxu1 }
0x18ff   :  { %v14629_v52 = vadd.f32 %v14393_v14, %v9944_v58  ;;  %v6661_v44 = vpop.f32.mrb[201].mxu1 }
0x1900   :  { %v9945_v12 = vpop.f32.mrb[202].mxu1  ;;  %v14634_v31 = vadd.f32 %v14411_v60, %v6661_v44 }
0x1901   :  { %6702 = vmax.xlane.f32.xlu0 %v14626_v50  ;;  %6712 = vmax.xlane.f32.xlu1 %v14629_v52  ;;  %v6664_v23 = vpop.f32.mrb[203].mxu1  ;;  %v14637_v9 = vadd.f32 %v14403_v40, %v9945_v12 }
0x1902   :  { %v14642_v14 = vadd.f32 %v14429_v39, %v6664_v23  ;;  %v15735_v39 = vld [vmem:[#allocation21_spill] sm:$0xff] }
0x1905   :  { %6714 = vmax.xlane.f32.xlu0 %v14637_v9  ;;  %6708 = vmax.xlane.f32.xlu1 %v14634_v31 }
0x1906   :  { %v9948_v2 = vpop.f32.mrb[204].mxu1 }
0x1907   :  { %v14645_v16 = vadd.f32 %v14437_v63, %v9948_v2  ;;  %v6677_v61 = vpop.f32.mrb[205].mxu1 }
0x1908   :  { %v9949_v55 = vpop.f32.mrb[206].mxu1  ;;  %v14650_v40 = vadd.f32 %v14447_v11, %v6677_v61 }
0x1909   :  { %6710 = vmax.xlane.f32.xlu0 %v14642_v14  ;;  %6720 = vmax.xlane.f32.xlu1 %v14645_v16  ;;  %v6680_v60 = vpop.f32.mrb[207].mxu1  ;;  %v14664_v63 = vadd.f32 %v14466_v8, %v9949_v55 }
0x190a   :  { %v14668_v11 = vadd.f32 %v14475_v62, %v6680_v60 }
0x190d   :  { %6716 = vmax.xlane.f32.xlu1 %v14650_v40 }
0x191e   :  { %6846 = vrot.lane.b32.xlu1 %v15734_v47, %s11232_s28 }
0x191f   :  { %6848 = vrot.lane.b32.xlu0 %v15735_v39, %s11232_s28 }
0x1922   :  { %6850 = vrot.lane.b32.xlu1 %v15729_v24, %s11232_s28 }
0x1923   :  { %6852 = vrot.lane.b32.xlu0 %v15730_v13, %s11232_s28 }
0x1926   :  { %6856 = vrot.lane.b32.xlu1 %v13788_v10, %s11232_s28 }
0x1942   :  { %6722 = vmax.xlane.f32.xlu0 %v14664_v63 }
0x1946   :  { %6718 = vmax.xlane.f32.xlu0 %v14668_v11 }
0x195c   :  { %6854 = vrot.lane.b32.xlu0 %v15731_v37, %s11232_s28 }
0x197e   :  { %v6697_v24 = vpop.xlane.xlu0 %6696 }
0x197f   :  { %v6726_v36 = vsub.f32 %v6638_v59, %v6697_v24 }
0x1981   :  { %v6744_v34 = vmul.f32 1.442695, %v6726_v36  ;;  %v6695_v13 = vpop.xlane.xlu1 %6694 }
0x1982   :  { %v6693_v27 = vpop.xlane.xlu0 %6692  ;;  %v6725_v62 = vsub.f32 %v14614_v54, %v6695_v13 }
0x1983   :  { %10984 = vpow2.f32 %v6744_v34  ;;  %v6724_v10 = vsub.f32 %v6630_v6, %v6693_v27 }
0x1984   :  { %v6742_v4 = vmul.f32 1.442695, %v6725_v62 }
0x1985   :  { %v6740_v45 = vmul.f32 1.442695, %v6724_v10 }
0x1986   :  { %v6705_v8 = vpop.xlane.xlu1 %6704  ;;  %v6699_v0 = vpop.xlane.xlu0 %6698 }
0x1987   :  { %10986 = vpow2.f32 %v6740_v45  ;;  %v6730_v15 = vsub.f32 %v6654_v38, %v6705_v8  ;;  %v6727_v17 = vsub.f32 %v6641_v1, %v6699_v0 }
0x1989   :  { %v6752_v7 = vmul.f32 1.442695, %v6730_v15  ;;  %v6746_v22 = vmul.f32 1.442695, %v6727_v17 }
0x198a   :  { %v6701_v56 = vpop.xlane.xlu1 %6700  ;;  %v6707_v20 = vpop.xlane.xlu0 %6706 }
0x198b   :  { %10988 = vpow2.f32 %v6752_v7  ;;  %v6728_v37 = vsub.f32 %v6646_v28, %v6701_v56  ;;  %v6731_v46 = vsub.f32 %v14622_v42, %v6707_v20 }
0x198c   :  { %10990 = vpow2.f32 %v6746_v22 }
0x198d   :  { %v14675_v26 = vpop.eup %10984  ;;  %v6748_v43 = vmul.f32 1.442695, %v6728_v37  ;;  %v6754_v19 = vmul.f32 1.442695, %v6731_v46 }
0x198e   :  { %v6713_v25 = vpop.xlane.xlu1 %6712  ;;  %6776 = vadd.xlane.f32.xlu0 %v14675_v26  ;;  %v6703_v5 = vpop.xlane.xlu0 %6702 }
0x198f   :  { %10992 = vpow2.f32 %v6748_v43  ;;  %v6734_v48 = vsub.f32 %v14629_v52, %v6713_v25  ;;  %v6729_v49 = vsub.f32 %v14626_v50, %v6703_v5 }
0x1990   :  { %10994 = vpow2.f32 %v6742_v4 }
0x1991   :  { %v14680_v30 = vpop.eup %10986  ;;  %v6750_v53 = vmul.f32 1.442695, %v6729_v49  ;;  %10996 = vpow2.f32 %v6754_v19  ;;  %v6760_v57 = vmul.f32 1.442695, %v6734_v48 }
0x1992   :  { %v6709_v3 = vpop.xlane.xlu1 %6708  ;;  %6772 = vadd.xlane.f32.xlu0 %v14680_v30  ;;  %v6715_v59 = vpop.xlane.xlu0 %6714 }
0x1993   :  { %v6732_v33 = vsub.f32 %v14634_v31, %v6709_v3  ;;  %10998 = vpow2.f32 %v6750_v53  ;;  %v6735_v38 = vsub.f32 %v14637_v9, %v6715_v59 }
0x1994   :  { %11000 = vpow2.f32 %v6760_v57 }
0x1995   :  { %v14684_v21 = vpop.eup %10988  ;;  %v6756_v1 = vmul.f32 1.442695, %v6732_v33  ;;  %v6762_v50 = vmul.f32 1.442695, %v6735_v38 }
0x1996   :  { %v14686_v54 = vpop.eup %10990  ;;  %v6721_v6 = vpop.xlane.xlu1 %6720  ;;  %6784 = vadd.xlane.f32.xlu1 %v14684_v21 }
0x1997   :  { %v6711_v18 = vpop.xlane.xlu0 %6710  ;;  %6778 = vadd.xlane.f32.xlu0 %v14686_v54  ;;  %v6738_v41 = vsub.f32 %v14645_v16, %v6721_v6  ;;  %11002 = vpow2.f32 %v6756_v1  ;;  %v8759_v6 = vcombine.high %v14566_v51, %v14566_v51 }
0x1998   :  { %v6733_v32 = vsub.f32 %v14642_v14, %v6711_v18 }
0x1999   :  { %v14693_v35 = vpop.eup %10992  ;;  %v6768_v44 = vmul.f32 1.442695, %v6738_v41 }
0x199a   :  { %v6758_v28 = vmul.f32 1.442695, %v6733_v32  ;;  %v14695_v42 = vpop.eup %10994  ;;  %6780 = vadd.xlane.f32.xlu1 %v14693_v35  ;;  %v6717_v58 = vpop.xlane.xlu1 %6716 }
0x199b   :  { %v6736_v52 = vsub.f32 %v14650_v40, %v6717_v58  ;;  %6774 = vadd.xlane.f32.xlu0 %v14695_v42  ;;  %v14700_v12 = vpop.eup %10996  ;;  %v6849_v2 = vpop.permute.xlu0 %6848 }
0x199c   :  { %11004 = vpow2.f32 %v6758_v28 }
0x199d   :  { %v14702_v23 = vpop.eup %10998  ;;  %11006 = vpow2.f32 %v6762_v50  ;;  %v6764_v9 = vmul.f32 1.442695, %v6736_v52 }
0x199e   :  { %v6847_v31 = vpop.permute.xlu1 %6846  ;;  %6786 = vadd.xlane.f32.xlu1 %v14700_v12  ;;  %11008 = vpow2.f32 %v6768_v44  ;;  %v14706_v14 = vpop.eup %11000 }
0x199f   :  { %6782 = vadd.xlane.f32.xlu0 %v14702_v23  ;;  %9952 = vmatprep.subr.bf16.mxu0 %v6847_v31  ;;  %11010 = vpow2.f32 %v6764_v9  ;;  %v6853_v60 = vpop.permute.xlu0 %6852 }
0x19a0   :  { %9953 = vmatpush3.bf16.msra.mxu0 %v6847_v31 }
0x19a1   :  { %9954 = vmatprep.subr.bf16.mxu0 %v6849_v2  ;;  %v14709_v61 = vpop.eup %11002 }
0x19a2   :  { %6792 = vadd.xlane.f32.xlu1 %v14706_v14  ;;  %v6851_v16 = vpop.permute.xlu1 %6850 }
0x19a4   :  { %9955 = vmatpush3.bf16.msra.mxu0 %v6849_v2 }
0x19a5   :  { %9956 = vmatprep.subr.bf16.mxu0 %v6851_v16 }
0x19a6   :  { %v14711_v55 = vpop.eup %11004  ;;  %6788 = vadd.xlane.f32.xlu1 %v14709_v61  ;;  %v6857_v8 = vpop.permute.xlu1 %6856 }
0x19a7   :  { %6790 = vadd.xlane.f32.xlu0 %v14711_v55  ;;  %v14715_v40 = vpop.eup %11006 }
0x19a8   :  { %9957 = vmatpush3.bf16.msra.mxu0 %v6851_v16  ;;  %v14717_v47 = vpop.eup %11008 }
0x19a9   :  { %9958 = vmatprep.subr.bf16.mxu0 %v6853_v60  ;;  %v14721_v39 = vpop.eup %11010 }
0x19aa   :  { %6794 = vadd.xlane.f32.xlu1 %v14715_v40 }
0x19ab   :  { %6800 = vadd.xlane.f32.xlu0 %v14717_v47 }
0x19ac   :  { %9959 = vmatpush3.bf16.msra.mxu0 %v6853_v60 }
0x19ae   :  { %6796 = vadd.xlane.f32.xlu1 %v14721_v39 }
0x19cf   :  { %v6723_v24 = vpop.xlane.xlu0 %6722 }
0x19d0   :  { %v6739_v36 = vsub.f32 %v14664_v63, %v6723_v24 }
0x19d2   :  { %v6770_v34 = vmul.f32 1.442695, %v6739_v36 }
0x19d3   :  { %v6719_v13 = vpop.xlane.xlu0 %6718 }
0x19d4   :  { %11012 = vpow2.f32 %v6770_v34  ;;  %v6737_v27 = vsub.f32 %v14668_v11, %v6719_v13 }
0x19d6   :  { %v6766_v10 = vmul.f32 1.442695, %v6737_v27 }
0x19d7   :  { %v6855_v45 = vpop.permute.xlu0 %6854 }
0x19d8   :  { %11014 = vpow2.f32 %v6766_v10  ;;  %9960 = vmatprep.subr.bf16.mxu0 %v6855_v45 }
0x19d9   :  { %9961 = vmatpush3.bf16.msra.mxu0 %v6855_v45 }
0x19da   :  { %9962 = vmatprep.subr.bf16.mxu0 %v6857_v8 }
0x19dd   :  { %9963 = vmatpush3.bf16.msra.mxu0 %v6857_v8 }
0x19de   :  { %v14726_v0 = vpop.eup %11012 }
0x19df   :  { %6802 = vadd.xlane.f32.xlu1 %v14726_v0 }
0x19e2   :  { %v14729_v15 = vpop.eup %11014 }
0x19e3   :  { %6798 = vadd.xlane.f32.xlu0 %v14729_v15 }
0x19f9   :  { %6858 = vrot.lane.b32.xlu0 %v13784_v29, %s11232_s28 }
0x1a1b   :  { %v6777_v63 = vpop.xlane.xlu0 %6776 }
0x1a1c   :  { %11016 = vrcp.f32 %v6777_v63 }
0x1a1f   :  { %v6773_v11 = vpop.xlane.xlu0 %6772 }
0x1a23   :  { %v6785_v5 = vpop.xlane.xlu1 %6784 }
0x1a24   :  { %v6779_v17 = vpop.xlane.xlu0 %6778 }
0x1a25   :  { %11018 = vrcp.f32 %v6779_v17 }
0x1a26   :  { %11020 = vrcp.f32 %v6773_v11  ;;  %v11017_v7 = vpop.eup %11016 }
0x1a27   :  { %v6822_v56 = vmul.f32 %v11017_v7, %v14675_v26  ;;  %v6781_v19 = vpop.xlane.xlu1 %6780 }
0x1a28   :  { %v6775_v62 = vpop.xlane.xlu0 %6774 }
0x1a29   :  { %11022 = vrcp.f32 %v6775_v62 }
0x1a2b   :  { %v6787_v48 = vpop.xlane.xlu1 %6786 }
0x1a2c   :  { %v6783_v49 = vpop.xlane.xlu0 %6782 }
0x1a2d   :  { %11024 = vrcp.f32 %v6783_v49 }
0x1a2e   :  { %11026 = vrcp.f32 %v6781_v19 }
0x1a2f   :  { %v11019_v22 = vpop.eup %11018  ;;  %v6793_v53 = vpop.xlane.xlu1 %6792  ;;  %11028 = vrcp.f32 %v6787_v48 }
0x1a30   :  { %v6823_v20 = vmul.f32 %v11019_v22, %v14686_v54  ;;  %v11021_v37 = vpop.eup %11020 }
0x1a31   :  { %v6820_v43 = vmul.f32 %v11021_v37, %v14680_v30 }
0x1a32   :  { %v6837_v46 = vpack.c.bf16 %v6823_v20, %v6822_v56 }
0x1a33   :  { %v11023_v4 = vpop.eup %11022  ;;  %v6789_v26 = vpop.xlane.xlu1 %6788 }
0x1a34   :  { %v6821_v29 = vmul.f32 %v11023_v4, %v14695_v42  ;;  %v6791_v3 = vpop.xlane.xlu0 %6790  ;;  %11030 = vrcp.f32 %v6789_v26  ;;  %v15736_v26 = vld [vmem:[#allocation34_spill] sm:$0xff] }
0x1a35   :  { %11032 = vrcp.f32 %v6791_v3  ;;  %v14765_v3 = vld [vmem:[%s15543_s4 + $0x10] sm:$0xff] }
0x1a36   :  { %v6836_v25 = vpack.c.bf16 %v6821_v29, %v6820_v43  ;;  %11034 = vrcp.f32 %v6785_v5 }
0x1a37   :  { %v6795_v57 = vpop.xlane.xlu1 %6794  ;;  %v11025_v33 = vpop.eup %11024 }
0x1a38   :  { %9966 = vmatprep.mubr.bf16.mxu0 %v6836_v25  ;;  %v6801_v59 = vpop.xlane.xlu0 %6800  ;;  %v11027_v54 = vpop.eup %11026  ;;  %v6825_v1 = vmul.f32 %v11025_v33, %v14702_v23  ;;  %11036 = vrcp.f32 %v6795_v57 }
0x1a39   :  { %v6824_v32 = vmul.f32 %v11027_v54, %v14693_v35  ;;  %v11029_v41 = vpop.eup %11028 }
0x1a3a   :  { %v6827_v52 = vmul.f32 %v11029_v41, %v14700_v12 }
0x1a3b   :  { %v6797_v38 = vpop.xlane.xlu1 %6796  ;;  %v6838_v42 = vpack.c.bf16 %v6825_v1, %v6824_v32  ;;  %v15738_v32 = vld [vmem:[#allocation33_spill] sm:$0xff] }
0x1a3e   :  { %v11031_v28 = vpop.eup %11030 }
0x1a3f   :  { %v11033_v58 = vpop.eup %11032  ;;  %v6828_v44 = vmul.f32 %v11031_v28, %v14709_v61 }
0x1a40   :  { %v11035_v51 = vpop.eup %11034  ;;  %v6829_v23 = vmul.f32 %v11033_v58, %v14711_v55 }
0x1a41   :  { %v6826_v35 = vmul.f32 %v11035_v51, %v14684_v21 }
0x1a42   :  { %v11037_v9 = vpop.eup %11036  ;;  %v6840_v2 = vpack.c.bf16 %v6829_v23, %v6828_v44 }
0x1a43   :  { %v6839_v31 = vpack.c.bf16 %v6827_v52, %v6826_v35  ;;  %v6831_v36 = vmul.f32 %v11037_v9, %v14715_v40  ;;  %v7001_v40 = vsel %vm1238_vm1, %v8759_v6, 0 }
0x1a6c   :  { %v6803_v50 = vpop.xlane.xlu1 %6802 }
0x1a70   :  { %v6799_v30 = vpop.xlane.xlu0 %6798 }
0x1a71   :  { %11038 = vrcp.f32 %v6799_v30 }
0x1a72   :  { %11040 = vrcp.f32 %v6793_v53 }
0x1a73   :  { %11042 = vrcp.f32 %v6797_v38 }
0x1a74   :  { %v6859_v18 = vpop.permute.xlu0 %6858  ;;  %11044 = vrcp.f32 %v6803_v50  ;;  %v15739_v50 = vld [vmem:[#allocation26_spill] sm:$0xff] }
0x1a75   :  { %9964 = vmatprep.subr.bf16.mxu0 %v6859_v18  ;;  %11046 = vrcp.f32 %v6801_v59  ;;  %v7119_v59 = vrot.slane %v14765_v3, %v15736_v26 }
0x1a76   :  { %9965 = vmatpush3.bf16.msra.mxu0 %v6859_v18 }
0x1a77   :  { %10239 = vmatprep.subr.msk.bf16.mxu0 %vm1238_vm1, %v8759_v6  ;;  %v15737_v6 = vld [vmem:[#allocation27_spill] sm:$0xff] }
0x1a79   :  { %9967 = vmatmul.mubr.bf16.vlgmr.msra.gmra.mrb[224].mxu0 %v6837_v46 }
0x1a7a   :  { %9970 = vmatprep.mubr.bf16.mxu0 %v6838_v42  ;;  %9983 = vmatpush3.bf16.msra.mxu0 %v7001_v40 }
0x1a7b   :  { %v11039_v16 = vpop.eup %11038 }
0x1a7c   :  { %v11041_v60 = vpop.eup %11040  ;;  %v6833_v12 = vmul.f32 %v11039_v16, %v14729_v15 }
0x1a7d   :  { %v11043_v24 = vpop.eup %11042  ;;  %v6830_v61 = vmul.f32 %v11041_v60, %v14706_v14 }
0x1a7e   :  { %v6832_v55 = vmul.f32 %v11043_v24, %v14721_v39  ;;  %v11045_v21 = vpop.eup %11044 }
0x1a7f   :  { %v6841_v34 = vpack.c.bf16 %v6831_v36, %v6830_v61  ;;  %v11047_v27 = vpop.eup %11046  ;;  %v6835_v10 = vmul.f32 %v11045_v21, %v14726_v0 }
0x1a80   :  { %v6842_v13 = vpack.c.bf16 %v6833_v12, %v6832_v55  ;;  %v6834_v45 = vmul.f32 %v11047_v27, %v14717_v47  ;;  %v15742_v55 = vld [vmem:[#allocation30_spill] sm:$0xff] }
0x1a81   :  { %9971 = vmatmul.mubr.bf16.gmra.mrb[228].mxu0 %v6839_v31  ;;  %v15740_v31 = vld [vmem:[#allocation28_spill] sm:$0xff] }
0x1a82   :  { %9974 = vmatprep.mubr.bf16.mxu0 %v6840_v2  ;;  %v6843_v8 = vpack.c.bf16 %v6835_v10, %v6834_v45  ;;  %v15741_v2 = vld [vmem:[#allocation29_spill] sm:$0xff] }
0x1a89   :  { %9975 = vmatmul.mubr.bf16.gmra.mrb[232].mxu0 %v6841_v34 }
0x1a8a   :  { %9978 = vmatprep.mubr.bf16.mxu0 %v6842_v13  ;;  %v15743_v13 = vld [vmem:[#allocation32_spill] sm:$0xff] }
0x1a91   :  { %9979 = vmatmul.mubr.bf16.gmra.mrb[236].mxu0 %v6843_v8 }
0x1b4c   :  { %v9968_v15 = vpop.f32.mrb[224].mxu0 }
0x1b4d   :  { %v6902_v63 = vpop.f32.mrb[225].mxu0 }
0x1b4e   :  { %v9969_v14 = vpop.f32.mrb[226].mxu0 }
0x1b4f   :  { %v6966_v11 = vpack.c.bf16 %v9969_v14, %v9968_v15  ;;  %v6905_v39 = vpop.f32.mrb[227].mxu0 }
0x1b50   :  { %v6965_v17 = vpack.c.bf16 %v6905_v39, %v6902_v63  ;;  %v15744_v63 = vld [vmem:[#allocation9_spill] sm:$0xff]  ;;  %v15745_v39 = vld [vmem:[#allocation16_spill] sm:$0xff] }
0x1b52   :  { %9984 = vmatprep.mubr.msk.bf16.mxu0 %vm1213_vm0, %v6965_v17 }
0x1b53   :  { %9985 = vmatmul.mubr.msk.bf16.vlgmr.msra.gmra.mrb[208].mxu0 %vm1213_vm0, %v6966_v11 }
0x1b54   :  { %v9972_v62 = vpop.f32.mrb[228].mxu0 }
0x1b55   :  { %v6918_v7 = vpop.f32.mrb[229].mxu0 }
0x1b56   :  { %v9973_v0 = vpop.f32.mrb[230].mxu0 }
0x1b57   :  { %v6968_v22 = vpack.c.bf16 %v9973_v0, %v9972_v62  ;;  %v6921_v47 = vpop.f32.mrb[231].mxu0 }
0x1b58   :  { %v6967_v56 = vpack.c.bf16 %v6921_v47, %v6918_v7  ;;  %v15746_v7 = vld [vmem:[#allocation12_spill] sm:$0xff]  ;;  %v15747_v47 = vld [vmem:[#allocation10_spill] sm:$0xff] }
0x1b5a   :  { %9988 = vmatprep.mubr.msk.bf16.mxu0 %vm1213_vm0, %v6967_v56 }
0x1b5b   :  { %9989 = vmatmul.mubr.msk.bf16.gmra.mrb[212].mxu0 %vm1213_vm0, %v6968_v22 }
0x1b5c   :  { %v9976_v20 = vpop.f32.mrb[232].mxu0 }
0x1b5d   :  { %v6934_v37 = vpop.f32.mrb[233].mxu0 }
0x1b5e   :  { %v9977_v46 = vpop.f32.mrb[234].mxu0 }
0x1b5f   :  { %v6970_v4 = vpack.c.bf16 %v9977_v46, %v9976_v20  ;;  %v6937_v43 = vpop.f32.mrb[235].mxu0 }
0x1b60   :  { %v6969_v29 = vpack.c.bf16 %v6937_v43, %v6934_v37  ;;  %v15748_v37 = vld [vmem:[#allocation13_spill] sm:$0xff]  ;;  %v15749_v43 = vld [vmem:[#allocation11_spill] sm:$0xff] }
0x1b62   :  { %9992 = vmatprep.mubr.msk.bf16.mxu0 %vm1213_vm0, %v6969_v29 }
0x1b63   :  { %9993 = vmatmul.mubr.msk.bf16.gmra.mrb[216].mxu0 %vm1213_vm0, %v6970_v4 }
0x1b64   :  { %v9980_v25 = vpop.f32.mrb[236].mxu0 }
0x1b65   :  { %v6950_v5 = vpop.f32.mrb[237].mxu0 }
0x1b66   :  { %v9981_v19 = vpop.f32.mrb[238].mxu0 }
0x1b67   :  { %v6972_v48 = vpack.c.bf16 %v9981_v19, %v9980_v25  ;;  %v6953_v49 = vpop.f32.mrb[239].mxu0 }
0x1b68   :  { %v6971_v53 = vpack.c.bf16 %v6953_v49, %v6950_v5  ;;  %v15750_v5 = vld [vmem:[#allocation14_spill] sm:$0xff] }
0x1b6a   :  { %9996 = vmatprep.mubr.msk.bf16.mxu0 %vm1213_vm0, %v6971_v53  ;;  %v15751_v53 = vld [vmem:[#allocation15_spill] sm:$0xff] }
0x1b6b   :  { %9997 = vmatmul.mubr.msk.bf16.gmra.mrb[220].mxu0 %vm1213_vm0, %v6972_v48 }
0x1c26   :  { %v9986_v57 = vpop.f32.mrb[208].mxu0 }
0x1c27   :  { %v7122_v30 = vadd.f32 %v9986_v57, %v7119_v59  ;;  %v7037_v33 = vpop.f32.mrb[209].mxu0 }
0x1c28   :  { %v9987_v54 = vpop.f32.mrb[210].mxu0  ;;  %v7120_v1 = vadd.f32 %v7119_v59, %v7037_v33 }
0x1c29   :  { %v14770_v18 = vadd.f32 %v7122_v30, %v15737_v6  ;;  %v7040_v38 = vpop.f32.mrb[211].mxu0  ;;  %v7123_v28 = vadd.f32 %v9987_v54, %v7119_v59  ;;  %v15752_v30 = vld [vmem:[#allocation17_spill] sm:$0xff] }
0x1c2a   :  { %v14774_v41 = vadd.f32 %v7120_v1, %v15738_v32  ;;  %v7121_v44 = vadd.f32 %v7119_v59, %v7040_v38 }
0x1c2b   :  { %7156 = vadd.xlane.f32.xlu1 %v14770_v18  ;;  %v14778_v52 = vadd.f32 %v7123_v28, %v15739_v50 }
0x1c2c   :  { %v14785_v16 = vadd.f32 %v7121_v44, %v15741_v2 }
0x1c2e   :  { %v9990_v42 = vpop.f32.mrb[212].mxu0 }
0x1c2f   :  { %7152 = vadd.xlane.f32.xlu1 %v14774_v41  ;;  %v7053_v58 = vpop.f32.mrb[213].mxu0  ;;  %v7126_v61 = vadd.f32 %v9990_v42, %v7119_v59 }
0x1c30   :  { %v9991_v51 = vpop.f32.mrb[214].mxu0  ;;  %v7124_v60 = vadd.f32 %v7119_v59, %v7053_v58 }
0x1c31   :  { %v7056_v23 = vpop.f32.mrb[215].mxu0  ;;  %v14794_v27 = vadd.f32 %v7126_v61, %v15743_v13  ;;  %v7127_v10 = vadd.f32 %v9991_v51, %v7119_v59 }
0x1c32   :  { %v7125_v35 = vadd.f32 %v7119_v59, %v7056_v23  ;;  %v14790_v34 = vadd.f32 %v7124_v60, %v15742_v55 }
0x1c33   :  { %7158 = vadd.xlane.f32.xlu1 %v14778_v52  ;;  %v14798_v14 = vadd.f32 %v7127_v10, %v15744_v63 }
0x1c34   :  { %v14782_v9 = vadd.f32 %v7125_v35, %v15740_v31 }
0x1c36   :  { %7162 = vadd.xlane.f32.xlu0 %v14782_v9  ;;  %v9994_v24 = vpop.f32.mrb[216].mxu0 }
0x1c37   :  { %7154 = vadd.xlane.f32.xlu1 %v14785_v16  ;;  %v7069_v36 = vpop.f32.mrb[217].mxu0  ;;  %v7130_v11 = vadd.f32 %v9994_v24, %v7119_v59 }
0x1c38   :  { %v9995_v12 = vpop.f32.mrb[218].mxu0  ;;  %v7128_v22 = vadd.f32 %v7119_v59, %v7069_v36 }
0x1c39   :  { %v7072_v21 = vpop.f32.mrb[219].mxu0  ;;  %v14806_v0 = vadd.f32 %v7130_v11, %v15746_v7  ;;  %v7131_v20 = vadd.f32 %v9995_v12, %v7119_v59 }
0x1c3a   :  { %v14810_v56 = vadd.f32 %v7128_v22, %v15747_v47  ;;  %v7129_v4 = vadd.f32 %v7119_v59, %v7072_v21  ;;  %v10344_v22 = vld [vmem:[%s15548_s7 + $0x40] sm:$0xff]  }
0x1c3b   :  { %7160 = vadd.xlane.f32.xlu1 %v14790_v34  ;;  %v14814_v46 = vadd.f32 %v7131_v20, %v15748_v37  ;;  %10000 = vmatprep.subr.bf16.mxu1 %v10344_v22 }
0x1c3c   :  { %v14818_v29 = vadd.f32 %v7129_v4, %v15749_v43  ;;  %10001 = vmatpush3.bf16.msra.mxu1 %v10344_v22  ;;  %v10345_v4 = vld [vmem:[%s15548_s7 + $0x48] sm:$0xff]  }
0x1c3d   :  { %10002 = vmatprep.subr.bf16.mxu1 %v10345_v4 }
0x1c3e   :  { %v9998_v45 = vpop.f32.mrb[220].mxu0 }
0x1c3f   :  { %v7134_v8 = vadd.f32 %v9998_v45, %v7119_v59  ;;  %7164 = vadd.xlane.f32.xlu1 %v14794_v27  ;;  %v7085_v40 = vpop.f32.mrb[221].mxu0 }
0x1c40   :  { %v9999_v15 = vpop.f32.mrb[222].mxu0  ;;  %v7132_v25 = vadd.f32 %v7119_v59, %v7085_v40  ;;  %10003 = vmatpush3.bf16.msra.mxu1 %v10345_v4 }
0x1c41   :  { %v14801_v17 = vadd.f32 %v7134_v8, %v15745_v39  ;;  %v7088_v62 = vpop.f32.mrb[223].mxu0  ;;  %v7135_v49 = vadd.f32 %v9999_v15, %v7119_v59 }
0x1c42   :  { %v14822_v19 = vadd.f32 %v7132_v25, %v15750_v5  ;;  %v7133_v48 = vadd.f32 %v7119_v59, %v7088_v62  ;;  %v15753_v59 = vld [vmem:[#allocation6_spill] sm:$0xff] }
0x1c43   :  { %7166 = vadd.xlane.f32.xlu1 %v14798_v14  ;;  %7180 = vadd.xlane.f32.xlu0 %v14801_v17  ;;  %v14830_v33 = vadd.f32 %v7135_v49, %v15752_v30  ;;  %v10346_v49 = vld [vmem:[%s15548_s7 + $0x50] sm:$0xff]  }
0x1c44   :  { %v14826_v57 = vadd.f32 %v7133_v48, %v15751_v53  ;;  %10004 = vmatprep.subr.bf16.mxu1 %v10346_v49 }
0x1c45   :  { %10005 = vmatpush3.bf16.msra.mxu1 %v10346_v49 }
0x1c47   :  { %7172 = vadd.xlane.f32.xlu1 %v14806_v0 }
0x1c4b   :  { %7168 = vadd.xlane.f32.xlu1 %v14810_v56 }
0x1c4f   :  { %7174 = vadd.xlane.f32.xlu1 %v14814_v46 }
0x1c53   :  { %7170 = vadd.xlane.f32.xlu1 %v14818_v29 }
0x1c57   :  { %7176 = vadd.xlane.f32.xlu1 %v14822_v19 }
0x1c5b   :  { %7178 = vadd.xlane.f32.xlu1 %v14826_v57 }
0x1c5f   :  { %7182 = vadd.xlane.f32.xlu1 %v14830_v33 }
0x1cb8   :  { %v7157_v54 = vpop.xlane.xlu1 %7156 }
0x1cb9   :  { %v7186_v6 = vmul.f32 0.03125, %v7157_v54 }
0x1cbb   :  { %v7202_v32 = vsub.f32 %v14770_v18, %v7186_v6 }
0x1cbc   :  { %v7153_v1 = vpop.xlane.xlu1 %7152 }
0x1cbd   :  { %v7184_v38 = vmul.f32 0.03125, %v7153_v1  ;;  %v14839_v51 = vmul.f32 %v7202_v32, %v15753_v59  ;;  %v10347_v1 = vld [vmem:[%s15548_s7 + $0x58] sm:$0xff]  }
0x1cbe   :  { %10006 = vmatprep.subr.bf16.mxu1 %v10347_v1 }
0x1cbf   :  { %v7200_v28 = vsub.f32 %v14774_v41, %v7184_v38  ;;  %v7234_v60 = vmul.f32 %v14839_v51, %v14839_v51  ;;  %10007 = vmatpush3.bf16.msra.mxu1 %v10347_v1 }
0x1cc0   :  { %v7159_v42 = vpop.xlane.xlu1 %7158 }
0x1cc1   :  { %v14836_v58 = vmul.f32 %v7200_v28, %v15753_v59  ;;  %v7187_v50 = vmul.f32 0.03125, %v7159_v42 }
0x1cc3   :  { %v7232_v44 = vmul.f32 %v14836_v58, %v14836_v58  ;;  %v7163_v23 = vpop.xlane.xlu0 %7162  ;;  %v7203_v2 = vsub.f32 %v14778_v52, %v7187_v50 }
0x1cc4   :  { %v7155_v35 = vpop.xlane.xlu1 %7154  ;;  %v7189_v18 = vmul.f32 0.03125, %v7163_v23 }
0x1cc5   :  { %v7185_v31 = vmul.f32 0.03125, %v7155_v35  ;;  %7248 = vadd.xlane.f32.xlu0 %v7232_v44  ;;  %v14851_v61 = vmul.f32 %v7203_v2, %v15753_v59  ;;  %v10348_v35 = vld [vmem:[%s15548_s7 + $0x60] sm:$0xff]  }
0x1cc6   :  { %v7205_v55 = vsub.f32 %v14782_v9, %v7189_v18  ;;  %10008 = vmatprep.subr.bf16.mxu1 %v10348_v35 }
0x1cc7   :  { %v7201_v41 = vsub.f32 %v14785_v16, %v7185_v31  ;;  %v7235_v9 = vmul.f32 %v14851_v61, %v14851_v61  ;;  %10009 = vmatpush3.bf16.msra.mxu1 %v10348_v35 }
0x1cc8   :  { %v7161_v24 = vpop.xlane.xlu1 %7160  ;;  %v14861_v45 = vmul.f32 %v7205_v55, %v15753_v59 }
0x1cc9   :  { %v14848_v36 = vmul.f32 %v7201_v41, %v15753_v59  ;;  %v7188_v12 = vmul.f32 0.03125, %v7161_v24  ;;  %7252 = vadd.xlane.f32.xlu0 %v7234_v60 }
0x1ccb   :  { %v7204_v21 = vsub.f32 %v14790_v34, %v7188_v12  ;;  %v7233_v52 = vmul.f32 %v14848_v36, %v14848_v36 }
0x1ccc   :  { %v7165_v16 = vpop.xlane.xlu1 %7164 }
0x1ccd   :  { %v14858_v13 = vmul.f32 %v7204_v21, %v15753_v59  ;;  %v7190_v10 = vmul.f32 0.03125, %v7165_v16  ;;  %7250 = vadd.xlane.f32.xlu1 %v7233_v52 }
0x1ccf   :  { %v7206_v8 = vsub.f32 %v14794_v27, %v7190_v10  ;;  %v7236_v40 = vmul.f32 %v14858_v13, %v14858_v13  ;;  %v7237_v27 = vmul.f32 %v14861_v45, %v14861_v45  ;;  %v10350_v10 = vld [vmem:[%s15548_s7 + $0x70] sm:$0xff]  }
0x1cd0   :  { %v7167_v34 = vpop.xlane.xlu1 %7166 }
0x1cd1   :  { %v14869_v15 = vmul.f32 %v7206_v8, %v15753_v59  ;;  %v7191_v63 = vmul.f32 0.03125, %v7167_v34  ;;  %7256 = vadd.xlane.f32.xlu0 %v7236_v40  ;;  %7254 = vadd.xlane.f32.xlu1 %v7235_v9  ;;  %v10351_v34 = vld [vmem:[%s15548_s7 + $0x78] sm:$0xff]  }
0x1cd3   :  { %v7207_v11 = vsub.f32 %v14798_v14, %v7191_v63  ;;  %v7238_v39 = vmul.f32 %v14869_v15, %v14869_v15 }
0x1cd4   :  { %v7173_v62 = vpop.xlane.xlu1 %7172 }
0x1cd5   :  { %v14877_v7 = vmul.f32 %v7207_v11, %v15753_v59  ;;  %7260 = vadd.xlane.f32.xlu0 %v7238_v39  ;;  %7258 = vadd.xlane.f32.xlu1 %v7237_v27  ;;  %v7194_v47 = vmul.f32 0.03125, %v7173_v62 }
0x1cd7   :  { %v7239_v14 = vmul.f32 %v14877_v7, %v14877_v7  ;;  %v7210_v43 = vsub.f32 %v14806_v0, %v7194_v47  ;;  %v7181_v0 = vpop.xlane.xlu0 %7180 }
0x1cd8   :  { %v7169_v20 = vpop.xlane.xlu1 %7168  ;;  %v7198_v38 = vmul.f32 0.03125, %v7181_v0 }
0x1cd9   :  { %v7192_v37 = vmul.f32 0.03125, %v7169_v20  ;;  %7262 = vadd.xlane.f32.xlu1 %v7239_v14  ;;  %v14896_v53 = vmul.f32 %v7210_v43, %v15753_v59 }
0x1cda   :  { %v7214_v31 = vsub.f32 %v14801_v17, %v7198_v38  ;;  %v10349_v17 = vld [vmem:[%s15548_s7 + $0x68] sm:$0xff]  }
0x1cdb   :  { %v7208_v25 = vsub.f32 %v14810_v56, %v7192_v37  ;;  %v7242_v42 = vmul.f32 %v14896_v53, %v14896_v53  ;;  %10010 = vmatprep.subr.bf16.mxu1 %v10349_v17 }
0x1cdc   :  { %v7175_v5 = vpop.xlane.xlu1 %7174  ;;  %v14927_v24 = vmul.f32 %v7214_v31, %v15753_v59  ;;  %10011 = vmatpush3.bf16.msra.mxu1 %v10349_v17  ;;  %v15755_v17 = vld [vmem:[#allocation5_spill] sm:$0xff] }
0x1cdd   :  { %v14890_v48 = vmul.f32 %v7208_v25, %v15753_v59  ;;  %v7195_v30 = vmul.f32 0.03125, %v7175_v5  ;;  %10012 = vmatprep.subr.bf16.mxu1 %v10350_v10 }
0x1cde   :  { %v7246_v8 = vmul.f32 %v14927_v24, %v14927_v24 }
0x1cdf   :  { %v7240_v54 = vmul.f32 %v14890_v48, %v14890_v48  ;;  %v7211_v32 = vsub.f32 %v14814_v46, %v7195_v30 }
0x1ce0   :  { %v7171_v6 = vpop.xlane.xlu1 %7170  ;;  %10013 = vmatpush3.bf16.msra.mxu1 %v10350_v10 }
0x1ce1   :  { %v7193_v56 = vmul.f32 0.03125, %v7171_v6  ;;  %7264 = vadd.xlane.f32.xlu0 %v7240_v54  ;;  %v14915_v46 = vmul.f32 %v7211_v32, %v15753_v59  ;;  %10014 = vmatprep.subr.bf16.mxu1 %v10351_v34  ;;  %v15754_v32 = vld [vmem:[#allocation31_spill] sm:$0xff] }
0x1ce3   :  { %v7209_v28 = vsub.f32 %v14818_v29, %v7193_v56  ;;  %v7243_v55 = vmul.f32 %v14915_v46, %v14915_v46 }
0x1ce4   :  { %v7177_v50 = vpop.xlane.xlu1 %7176  ;;  %10015 = vmatpush3.bf16.msra.mxu1 %v10351_v34 }
0x1ce5   :  { %v14908_v44 = vmul.f32 %v7209_v28, %v15753_v59  ;;  %v7196_v23 = vmul.f32 0.03125, %v7177_v50  ;;  %7268 = vadd.xlane.f32.xlu0 %v7242_v42  ;;  %v14955_v28 = vrot.slane %v14765_v3, %v15754_v32 }
0x1ce7   :  { %v7212_v29 = vsub.f32 %v14822_v19, %v7196_v23  ;;  %v7241_v2 = vmul.f32 %v14908_v44, %v14908_v44 }
0x1ce8   :  { %v7179_v18 = vpop.xlane.xlu1 %7178 }
0x1ce9   :  { %v14921_v41 = vmul.f32 %v7212_v29, %v15753_v59  ;;  %v7197_v60 = vmul.f32 0.03125, %v7179_v18  ;;  %7266 = vadd.xlane.f32.xlu1 %v7241_v2 }
0x1ceb   :  { %v7213_v19 = vsub.f32 %v14826_v57, %v7197_v60  ;;  %v7244_v12 = vmul.f32 %v14921_v41, %v14921_v41 }
0x1cec   :  { %v7183_v21 = vpop.xlane.xlu1 %7182 }
0x1ced   :  { %v14935_v52 = vmul.f32 %v7213_v19, %v15753_v59  ;;  %v7199_v16 = vmul.f32 0.03125, %v7183_v21  ;;  %7272 = vadd.xlane.f32.xlu0 %v7244_v12  ;;  %7270 = vadd.xlane.f32.xlu1 %v7243_v55  ;;  %v14963_v19 = vrot.slane %v14765_v3, %v15755_v17 }
0x1cef   :  { %v7215_v57 = vsub.f32 %v14830_v33, %v7199_v16  ;;  %v7245_v40 = vmul.f32 %v14935_v52, %v14935_v52 }
0x1cf1   :  { %v14946_v9 = vmul.f32 %v7215_v57, %v15753_v59  ;;  %7276 = vadd.xlane.f32.xlu0 %v7246_v8  ;;  %7274 = vadd.xlane.f32.xlu1 %v7245_v40 }
0x1cf3   :  { %v7247_v33 = vmul.f32 %v14946_v9, %v14946_v9 }
0x1cf5   :  { %7278 = vadd.xlane.f32.xlu1 %v7247_v33 }
0x1d52   :  { %v7249_v63 = vpop.xlane.xlu0 %7248 }
0x1d53   :  { %v7280_v11 = vmul.f32 0.03125, %v7249_v63 }
0x1d55   :  { %v7296_v39 = vadd.f32 1e-12, %v7280_v11 }
0x1d56   :  { %v7253_v27 = vpop.xlane.xlu0 %7252 }
0x1d57   :  { %v7282_v62 = vmul.f32 0.03125, %v7253_v27  ;;  %11048 = vrsqrt.f32 %v7296_v39 }
0x1d59   :  { %v7298_v22 = vadd.f32 1e-12, %v7282_v62 }
0x1d5a   :  { %v7251_v47 = vpop.xlane.xlu1 %7250 }
0x1d5b   :  { %v7281_v14 = vmul.f32 0.03125, %v7251_v47  ;;  %11050 = vrsqrt.f32 %v7298_v22 }
0x1d5d   :  { %v7297_v20 = vadd.f32 1e-12, %v7281_v14 }
0x1d5e   :  { %v7257_v37 = vpop.xlane.xlu0 %7256  ;;  %v7255_v4 = vpop.xlane.xlu1 %7254 }
0x1d5f   :  { %11052 = vrsqrt.f32 %v7297_v20  ;;  %v7284_v43 = vmul.f32 0.03125, %v7257_v37  ;;  %v7283_v25 = vmul.f32 0.03125, %v7255_v4 }
0x1d61   :  { %v7300_v5 = vadd.f32 1e-12, %v7284_v43  ;;  %v7299_v49 = vadd.f32 1e-12, %v7283_v25  ;;  %v11049_v0 = vpop.eup %11048 }
0x1d62   :  { %v7261_v30 = vpop.xlane.xlu0 %7260  ;;  %v7259_v54 = vpop.xlane.xlu1 %7258  ;;  %v7328_v50 = vmul.f32 %v11049_v0, %v14836_v58 }
0x1d63   :  { %11054 = vrsqrt.f32 %v7300_v5  ;;  %v7286_v6 = vmul.f32 0.03125, %v7261_v30  ;;  %v7285_v56 = vmul.f32 0.03125, %v7259_v54 }
0x1d64   :  { %11056 = vrsqrt.f32 %v7299_v49  ;;  %v7348_v60 = vmul.f32 %v14955_v28, %v7328_v50 }
0x1d65   :  { %v7302_v1 = vadd.f32 1e-12, %v7286_v6  ;;  %v7301_v38 = vadd.f32 1e-12, %v7285_v56  ;;  %v11051_v23 = vpop.eup %11050 }
0x1d66   :  { %v7263_v42 = vpop.xlane.xlu1 %7262  ;;  %v7330_v2 = vmul.f32 %v11051_v23, %v14839_v51  ;;  %v14968_v10 = vadd.f32 %v14963_v19, %v7348_v60 }
0x1d67   :  { %11058 = vrsqrt.f32 %v7302_v1  ;;  %v7287_v35 = vmul.f32 0.03125, %v7263_v42 }
0x1d68   :  { %11060 = vrsqrt.f32 %v7301_v38  ;;  %v7350_v21 = vmul.f32 %v14955_v28, %v7330_v2 }
0x1d69   :  { %v11053_v31 = vpop.eup %11052  ;;  %v7303_v29 = vadd.f32 1e-12, %v7287_v35 }
0x1d6a   :  { %v7329_v18 = vmul.f32 %v11053_v31, %v14848_v36  ;;  %v14979_v27 = vadd.f32 %v14963_v19, %v7350_v21 }
0x1d6b   :  { %11062 = vrsqrt.f32 %v7303_v29 }
0x1d6c   :  { %v7349_v12 = vmul.f32 %v14955_v28, %v7329_v18 }
0x1d6d   :  { %v11055_v58 = vpop.eup %11054 }
0x1d6e   :  { %v11057_v55 = vpop.eup %11056  ;;  %v7265_v16 = vpop.xlane.xlu0 %7264  ;;  %v14971_v51 = vadd.f32 %v14963_v19, %v7349_v12  ;;  %v7332_v8 = vmul.f32 %v11055_v58, %v14858_v13 }
0x1d6f   :  { %v7331_v36 = vmul.f32 %v11057_v55, %v14851_v61  ;;  %v7288_v57 = vmul.f32 0.03125, %v7265_v16 }
0x1d70   :  { %v7384_v40 = vpack.c.bf16 %v14971_v51, %v14968_v10  ;;  %v7352_v47 = vmul.f32 %v14955_v28, %v7332_v8 }
0x1d71   :  { %v11059_v34 = vpop.eup %11058  ;;  %v7351_v33 = vmul.f32 %v14955_v28, %v7331_v36  ;;  %v7304_v63 = vadd.f32 1e-12, %v7288_v57 }
0x1d72   :  { %v11061_v11 = vpop.eup %11060  ;;  %v7269_v39 = vpop.xlane.xlu0 %7268  ;;  %10016 = vmatprep.mubr.bf16.mxu1 %v7384_v40  ;;  %v7334_v62 = vmul.f32 %v11059_v34, %v14869_v15  ;;  %v14993_v49 = vadd.f32 %v14963_v19, %v7352_v47 }
0x1d73   :  { %v7290_v22 = vmul.f32 0.03125, %v7269_v39  ;;  %v14983_v61 = vadd.f32 %v14963_v19, %v7351_v33  ;;  %v7333_v13 = vmul.f32 %v11061_v11, %v14861_v45  ;;  %11064 = vrsqrt.f32 %v7304_v63 }
0x1d74   :  { %v7354_v15 = vmul.f32 %v14955_v28, %v7334_v62 }
0x1d75   :  { %v11063_v14 = vpop.eup %11062  ;;  %v7385_v20 = vpack.c.bf16 %v14983_v61, %v14979_v27  ;;  %v7353_v37 = vmul.f32 %v14955_v28, %v7333_v13  ;;  %v7306_v4 = vadd.f32 1e-12, %v7290_v22 }
0x1d76   :  { %v7267_v43 = vpop.xlane.xlu1 %7266  ;;  %v7335_v25 = vmul.f32 %v11063_v14, %v14877_v7  ;;  %v15002_v7 = vadd.f32 %v14963_v19, %v7354_v15 }
0x1d77   :  { %10017 = vmatmul.mubr.bf16.vlgmr.msra.gmra.mrb[208].mxu1 %v7385_v20  ;;  %v7289_v5 = vmul.f32 0.03125, %v7267_v43  ;;  %v14996_v45 = vadd.f32 %v14963_v19, %v7353_v37  ;;  %11066 = vrsqrt.f32 %v7306_v4 }
0x1d78   :  { %v7355_v30 = vmul.f32 %v14955_v28, %v7335_v25 }
0x1d79   :  { %v7305_v54 = vadd.f32 1e-12, %v7289_v5  ;;  %v7386_v0 = vpack.c.bf16 %v14996_v45, %v14993_v49 }
0x1d7a   :  { %v7273_v6 = vpop.xlane.xlu0 %7272  ;;  %v7271_v56 = vpop.xlane.xlu1 %7270  ;;  %v15005_v1 = vadd.f32 %v14963_v19, %v7355_v30 }
0x1d7b   :  { %11068 = vrsqrt.f32 %v7305_v54  ;;  %v7292_v38 = vmul.f32 0.03125, %v7273_v6  ;;  %10020 = vmatprep.mubr.bf16.mxu1 %v7386_v0  ;;  %v7291_v42 = vmul.f32 0.03125, %v7271_v56 }
0x1d7c   :  { %v7387_v50 = vpack.c.bf16 %v15005_v1, %v15002_v7 }
0x1d7d   :  { %v7308_v23 = vadd.f32 1e-12, %v7292_v38  ;;  %v7307_v35 = vadd.f32 1e-12, %v7291_v42  ;;  %v11065_v2 = vpop.eup %11064  ;;  %v10352_v38 = vld [vmem:[%s15549_s8 + $0x40] sm:$0xff]   ;;  %v10355_v42 = vld [vmem:[%s15549_s8 + $0x58] sm:$0xff]  }
0x1d7e   :  { %v7277_v31 = vpop.xlane.xlu0 %7276  ;;  %v7275_v29 = vpop.xlane.xlu1 %7274  ;;  %v7336_v55 = vmul.f32 %v11065_v2, %v14890_v48  ;;  %10032 = vmatprep.subr.bf16.mxu1 %v10352_v38 }
0x1d7f   :  { %11070 = vrsqrt.f32 %v7308_v23  ;;  %v7294_v18 = vmul.f32 0.03125, %v7277_v31  ;;  %10021 = vmatmul.mubr.bf16.gmra.mrb[212].mxu1 %v7387_v50  ;;  %v7293_v60 = vmul.f32 0.03125, %v7275_v29  ;;  %v10356_v50 = vld [vmem:[%s15549_s8 + $0x60] sm:$0xff]   ;;  %v10357_v23 = vld [vmem:[%s15549_s8 + $0x68] sm:$0xff]   ;;  %v10359_v31 = vld [vmem:[%s15549_s8 + $0x78] sm:$0xff]  }
0x1d80   :  { %11072 = vrsqrt.f32 %v7307_v35  ;;  %v7356_v40 = vmul.f32 %v14955_v28, %v7336_v55  ;;  %10033 = vmatpush3.bf16.msra.mxu1 %v10352_v38  ;;  %v10358_v35 = vld [vmem:[%s15549_s8 + $0x70] sm:$0xff]   ;;  %v15756_v29 = vld [vmem:[#allocation25_spill] sm:$0xff] }
0x1d81   :  { %v7310_v17 = vadd.f32 1e-12, %v7294_v18  ;;  %v7309_v12 = vadd.f32 1e-12, %v7293_v60  ;;  %v11067_v16 = vpop.eup %11066  ;;  %v15083_v2 = vrot.slane %v14765_v3, %v15756_v29 }
0x1d82   :  { %v7279_v58 = vpop.xlane.xlu1 %7278  ;;  %v7338_v34 = vmul.f32 %v11067_v16, %v14896_v53  ;;  %v15015_v39 = vadd.f32 %v14963_v19, %v7356_v40 }
0x1d83   :  { %11074 = vrsqrt.f32 %v7310_v17  ;;  %v7295_v21 = vmul.f32 0.03125, %v7279_v58 }
0x1d84   :  { %11076 = vrsqrt.f32 %v7309_v12  ;;  %v7358_v22 = vmul.f32 %v14955_v28, %v7338_v34 }
0x1d85   :  { %v11069_v36 = vpop.eup %11068  ;;  %v7311_v57 = vadd.f32 1e-12, %v7295_v21 }
0x1d86   :  { %v7337_v8 = vmul.f32 %v11069_v36, %v14908_v44  ;;  %v15028_v37 = vadd.f32 %v14963_v19, %v7358_v22 }
0x1d87   :  { %11078 = vrsqrt.f32 %v7311_v57 }
0x1d88   :  { %v7357_v33 = vmul.f32 %v14955_v28, %v7337_v8 }
0x1d89   :  { %v11071_v63 = vpop.eup %11070 }
0x1d8a   :  { %v11073_v11 = vpop.eup %11072  ;;  %v15018_v48 = vadd.f32 %v14963_v19, %v7357_v33  ;;  %v7340_v44 = vmul.f32 %v11071_v63, %v14921_v41 }
0x1d8b   :  { %v7339_v62 = vmul.f32 %v11073_v11, %v14915_v46 }
0x1d8c   :  { %v7388_v13 = vpack.c.bf16 %v15018_v48, %v15015_v39  ;;  %v7360_v41 = vmul.f32 %v14955_v28, %v7340_v44 }
0x1d8d   :  { %v11075_v53 = vpop.eup %11074  ;;  %v7359_v47 = vmul.f32 %v14955_v28, %v7339_v62 }
0x1d8e   :  { %v11077_v14 = vpop.eup %11076  ;;  %10024 = vmatprep.mubr.bf16.mxu1 %v7388_v13  ;;  %v7342_v20 = vmul.f32 %v11075_v53, %v14927_v24  ;;  %v15041_v30 = vadd.f32 %v14963_v19, %v7360_v41 }
0x1d8f   :  { %v15031_v4 = vadd.f32 %v14963_v19, %v7359_v47  ;;  %v7341_v46 = vmul.f32 %v11077_v14, %v14935_v52 }
0x1d90   :  { %v7362_v24 = vmul.f32 %v14955_v28, %v7342_v20 }
0x1d91   :  { %v11079_v43 = vpop.eup %11078  ;;  %v7389_v25 = vpack.c.bf16 %v15031_v4, %v15028_v37  ;;  %v7361_v15 = vmul.f32 %v14955_v28, %v7341_v46 }
0x1d92   :  { %v7343_v5 = vmul.f32 %v11079_v43, %v14946_v9  ;;  %v15050_v6 = vadd.f32 %v14963_v19, %v7362_v24 }
0x1d93   :  { %10025 = vmatmul.mubr.bf16.gmra.mrb[216].mxu1 %v7389_v25  ;;  %v15044_v54 = vadd.f32 %v14963_v19, %v7361_v15 }
0x1d94   :  { %v7363_v52 = vmul.f32 %v14955_v28, %v7343_v5  ;;  %v10353_v28 = vld [vmem:[%s15549_s8 + $0x48] sm:$0xff]  }
0x1d95   :  { %v7390_v0 = vpack.c.bf16 %v15044_v54, %v15041_v30  ;;  %10034 = vmatprep.subr.bf16.mxu1 %v10353_v28 }
0x1d96   :  { %v15053_v56 = vadd.f32 %v14963_v19, %v7363_v52  ;;  %10035 = vmatpush3.bf16.msra.mxu1 %v10353_v28  ;;  %v10354_v19 = vld [vmem:[%s15549_s8 + $0x50] sm:$0xff]  }
0x1d97   :  { %10028 = vmatprep.mubr.bf16.mxu1 %v7390_v0  ;;  %10036 = vmatprep.subr.bf16.mxu1 %v10354_v19 }
0x1d98   :  { %v7391_v9 = vpack.c.bf16 %v15053_v56, %v15050_v6 }
0x1d9a   :  { %10037 = vmatpush3.bf16.msra.mxu1 %v10354_v19 }
0x1d9b   :  { %10029 = vmatmul.mubr.bf16.gmra.mrb[220].mxu1 %v7391_v9  ;;  %10038 = vmatprep.subr.bf16.mxu1 %v10355_v42 }
0x1d9e   :  { %10039 = vmatpush3.bf16.msra.mxu1 %v10355_v42 }
0x1d9f   :  { %10040 = vmatprep.subr.bf16.mxu1 %v10356_v50 }
0x1da2   :  { %10041 = vmatpush3.bf16.msra.mxu1 %v10356_v50 }
0x1da3   :  { %10042 = vmatprep.subr.bf16.mxu1 %v10357_v23 }
0x1da6   :  { %10043 = vmatpush3.bf16.msra.mxu1 %v10357_v23 }
0x1da7   :  { %10044 = vmatprep.subr.bf16.mxu1 %v10358_v35 }
0x1daa   :  { %10045 = vmatpush3.bf16.msra.mxu1 %v10358_v35 }
0x1dab   :  { %10046 = vmatprep.subr.bf16.mxu1 %v10359_v31 }
0x1dae   :  { %10047 = vmatpush3.bf16.msra.mxu1 %v10359_v31 }
0x1e4a   :  { %v10018_v18 = vpop.f32.mrb[208].mxu1 }
0x1e4b   :  { %v15086_v60 = vadd.f32 %v10018_v18, %v15083_v2  ;;  %v7478_v17 = vpop.f32.mrb[209].mxu1 }
0x1e4c   :  { %v15089_v12 = vadd.f32 %v7478_v17, %v15083_v2  ;;  %v10019_v58 = vpop.f32.mrb[210].mxu1 }
0x1e4d   :  { %v7543_v55 = vmul.f32 %v15086_v60, %v15086_v60  ;;  %v15094_v21 = vadd.f32 %v10019_v58, %v15083_v2  ;;  %v7481_v16 = vpop.f32.mrb[211].mxu1 }
0x1e4e   :  { %v7541_v3 = vmul.f32 %v15089_v12, %v15089_v12  ;;  %v15099_v36 = vadd.f32 %v7481_v16, %v15083_v2 }
0x1e4f   :  { %v7559_v57 = vmul.f32 %v7543_v55, %v15086_v60  ;;  %v7544_v8 = vmul.f32 %v15094_v21, %v15094_v21 }
0x1e50   :  { %v7557_v40 = vmul.f32 %v7541_v3, %v15089_v12  ;;  %v7542_v34 = vmul.f32 %v15099_v36, %v15099_v36 }
0x1e51   :  { %v7575_v33 = vmul.f32 0.044715, %v7559_v57  ;;  %v7560_v63 = vmul.f32 %v7544_v8, %v15094_v21 }
0x1e52   :  { %v7573_v11 = vmul.f32 0.044715, %v7557_v40  ;;  %v7558_v62 = vmul.f32 %v7542_v34, %v15099_v36  ;;  %v10022_v22 = vpop.f32.mrb[212].mxu1 }
0x1e53   :  { %v7591_v44 = vadd.f32 %v7575_v33, %v15086_v60  ;;  %v7576_v13 = vmul.f32 0.044715, %v7560_v63  ;;  %v15111_v53 = vadd.f32 %v10022_v22, %v15083_v2  ;;  %v7494_v47 = vpop.f32.mrb[213].mxu1 }
0x1e54   :  { %v7589_v14 = vadd.f32 %v7573_v11, %v15089_v12  ;;  %v7574_v20 = vmul.f32 0.044715, %v7558_v62  ;;  %v15115_v46 = vadd.f32 %v7494_v47, %v15083_v2  ;;  %v10023_v41 = vpop.f32.mrb[214].mxu1 }
0x1e55   :  { %v7607_v43 = vmul.f32 0.7978846, %v7591_v44  ;;  %v7592_v25 = vadd.f32 %v7576_v13, %v15094_v21  ;;  %v7547_v15 = vmul.f32 %v15111_v53, %v15111_v53  ;;  %v15121_v5 = vadd.f32 %v10023_v41, %v15083_v2  ;;  %v7497_v24 = vpop.f32.mrb[215].mxu1 }
0x1e56   :  { %v7605_v52 = vmul.f32 0.7978846, %v7589_v14  ;;  %v7590_v0 = vadd.f32 %v7574_v20, %v15099_v36  ;;  %v7545_v9 = vmul.f32 %v15115_v46, %v15115_v46  ;;  %v15127_v38 = vadd.f32 %v7497_v24, %v15083_v2 }
0x1e57   :  { %11080 = vtanh.f32 %v7607_v43  ;;  %v7608_v28 = vmul.f32 0.7978846, %v7592_v25  ;;  %v7563_v19 = vmul.f32 %v7547_v15, %v15111_v53  ;;  %v7548_v42 = vmul.f32 %v15121_v5, %v15121_v5 }
0x1e58   :  { %11082 = vtanh.f32 %v7605_v52  ;;  %v7606_v50 = vmul.f32 0.7978846, %v7590_v0  ;;  %v7561_v23 = vmul.f32 %v7545_v9, %v15115_v46  ;;  %v7546_v35 = vmul.f32 %v15127_v38, %v15127_v38 }
0x1e59   :  { %11084 = vtanh.f32 %v7608_v28  ;;  %v7579_v31 = vmul.f32 0.044715, %v7563_v19  ;;  %v7564_v29 = vmul.f32 %v7548_v42, %v15121_v5 }
0x1e5a   :  { %11086 = vtanh.f32 %v7606_v50  ;;  %v7577_v18 = vmul.f32 0.044715, %v7561_v23  ;;  %v7562_v17 = vmul.f32 %v7546_v35, %v15127_v38 }
0x1e5b   :  { %v7595_v58 = vadd.f32 %v7579_v31, %v15111_v53  ;;  %v7580_v55 = vmul.f32 0.044715, %v7564_v29 }
0x1e5c   :  { %v7593_v16 = vadd.f32 %v7577_v18, %v15115_v46  ;;  %v7578_v3 = vmul.f32 0.044715, %v7562_v17 }
0x1e5d   :  { %v7611_v57 = vmul.f32 0.7978846, %v7595_v58  ;;  %v7596_v8 = vadd.f32 %v7580_v55, %v15121_v5 }
0x1e5e   :  { %v7609_v40 = vmul.f32 0.7978846, %v7593_v16  ;;  %v7594_v34 = vadd.f32 %v7578_v3, %v15127_v38 }
0x1e5f   :  { %11088 = vtanh.f32 %v7611_v57  ;;  %v7612_v33 = vmul.f32 0.7978846, %v7596_v8 }
0x1e60   :  { %11090 = vtanh.f32 %v7609_v40  ;;  %v7610_v63 = vmul.f32 0.7978846, %v7594_v34 }
0x1e61   :  { %v11081_v11 = vpop.eup %11080  ;;  %11092 = vtanh.f32 %v7612_v33 }
0x1e62   :  { %v11083_v62 = vpop.eup %11082  ;;  %v7639_v22 = vadd.f32 1.0, %v11081_v11  ;;  %11094 = vtanh.f32 %v7610_v63 }
0x1e63   :  { %v11085_v44 = vpop.eup %11084  ;;  %v7637_v13 = vadd.f32 1.0, %v11083_v62 }
0x1e64   :  { %v11087_v47 = vpop.eup %11086  ;;  %v7655_v14 = vmul.f32 0.5, %v7639_v22  ;;  %v7640_v20 = vadd.f32 1.0, %v11085_v44 }
0x1e65   :  { %v7638_v41 = vadd.f32 1.0, %v11087_v47  ;;  %v7653_v43 = vmul.f32 0.5, %v7637_v13 }
0x1e66   :  { %v7656_v25 = vmul.f32 0.5, %v7640_v20  ;;  %v10026_v15 = vpop.f32.mrb[216].mxu1  ;;  %v7671_v9 = vmul.f32 %v7655_v14, %v15086_v60 }
0x1e67   :  { %v15142_v24 = vadd.f32 %v10026_v15, %v15083_v2  ;;  %v7510_v52 = vpop.f32.mrb[217].mxu1  ;;  %v7654_v0 = vmul.f32 0.5, %v7638_v41  ;;  %v7669_v29 = vmul.f32 %v7653_v43, %v15089_v12 }
0x1e68   :  { %v7672_v28 = vmul.f32 %v7656_v25, %v15094_v21  ;;  %v15147_v19 = vadd.f32 %v7510_v52, %v15083_v2  ;;  %v10027_v42 = vpop.f32.mrb[218].mxu1 }
0x1e69   :  { %v11089_v50 = vpop.eup %11088  ;;  %v7551_v23 = vmul.f32 %v15142_v24, %v15142_v24  ;;  %v15152_v35 = vadd.f32 %v10027_v42, %v15083_v2  ;;  %v7513_v31 = vpop.f32.mrb[219].mxu1  ;;  %v7670_v18 = vmul.f32 %v7654_v0, %v15099_v36 }
0x1e6a   :  { %v11091_v17 = vpop.eup %11090  ;;  %v7686_v60 = vpack.c.bf16 %v7672_v28, %v7671_v9  ;;  %v7549_v21 = vmul.f32 %v15147_v19, %v15147_v19  ;;  %v15159_v58 = vadd.f32 %v7513_v31, %v15083_v2  ;;  %v7643_v55 = vadd.f32 1.0, %v11089_v50 }
0x1e6b   :  { %v11093_v16 = vpop.eup %11092  ;;  %v7567_v3 = vmul.f32 %v7551_v23, %v15142_v24  ;;  %v7552_v57 = vmul.f32 %v15152_v35, %v15152_v35  ;;  %v7685_v8 = vpack.c.bf16 %v7670_v18, %v7669_v29  ;;  %v7641_v40 = vadd.f32 1.0, %v11091_v17 }
0x1e6c   :  { %v11095_v12 = vpop.eup %11094  ;;  %v7565_v36 = vmul.f32 %v7549_v21, %v15147_v19  ;;  %v7550_v34 = vmul.f32 %v15159_v58, %v15159_v58  ;;  %v7644_v33 = vadd.f32 1.0, %v11093_v16  ;;  %v7659_v63 = vmul.f32 0.5, %v7643_v55 }
0x1e6d   :  { %v7583_v11 = vmul.f32 0.044715, %v7567_v3  ;;  %v7568_v62 = vmul.f32 %v7552_v57, %v15152_v35  ;;  %10048 = vmatprep.mubr.bf16.mxu1 %v7685_v8  ;;  %v7642_v22 = vadd.f32 1.0, %v11095_v12  ;;  %v7657_v44 = vmul.f32 0.5, %v7641_v40 }
0x1e6e   :  { %v7581_v13 = vmul.f32 0.044715, %v7565_v36  ;;  %v7566_v47 = vmul.f32 %v7550_v34, %v15159_v58  ;;  %v10030_v14 = vpop.f32.mrb[220].mxu1  ;;  %10049 = vmatmul.mubr.bf16.vlgmr.msra.gmra.mrb[224].mxu1 %v7686_v60  ;;  %v7660_v20 = vmul.f32 0.5, %v7644_v33  ;;  %v7675_v41 = vmul.f32 %v7659_v63, %v15111_v53 }
0x1e6f   :  { %v7599_v43 = vadd.f32 %v7583_v11, %v15142_v24  ;;  %v7584_v25 = vmul.f32 0.044715, %v7568_v62  ;;  %v15172_v15 = vadd.f32 %v10030_v14, %v15083_v2  ;;  %v7526_v52 = vpop.f32.mrb[221].mxu1  ;;  %v7658_v0 = vmul.f32 0.5, %v7642_v22 }
0x1e70   :  { %v7597_v9 = vadd.f32 %v7581_v13, %v15147_v19  ;;  %v7582_v28 = vmul.f32 0.044715, %v7566_v47  ;;  %v15176_v42 = vadd.f32 %v7526_v52, %v15083_v2  ;;  %v10031_v50 = vpop.f32.mrb[222].mxu1  ;;  %v7673_v23 = vmul.f32 %v7657_v44, %v15115_v46 }
0x1e71   :  { %v7615_v31 = vmul.f32 0.7978846, %v7599_v43  ;;  %v7600_v53 = vadd.f32 %v7584_v25, %v15152_v35  ;;  %v7555_v29 = vmul.f32 %v15172_v15, %v15172_v15  ;;  %v15183_v18 = vadd.f32 %v10031_v50, %v15083_v2  ;;  %v7529_v17 = vpop.f32.mrb[223].mxu1 }
0x1e72   :  { %v7613_v60 = vmul.f32 0.7978846, %v7597_v9  ;;  %v7598_v21 = vadd.f32 %v7582_v28, %v15159_v58  ;;  %v7553_v55 = vmul.f32 %v15176_v42, %v15176_v42  ;;  %v15189_v16 = vadd.f32 %v7529_v17, %v15083_v2 }
0x1e73   :  { %11096 = vtanh.f32 %v7615_v31  ;;  %v7616_v46 = vmul.f32 0.7978846, %v7600_v53  ;;  %v7571_v3 = vmul.f32 %v7555_v29, %v15172_v15  ;;  %v7556_v57 = vmul.f32 %v15183_v18, %v15183_v18 }
0x1e74   :  { %11098 = vtanh.f32 %v7613_v60  ;;  %v7614_v8 = vmul.f32 0.7978846, %v7598_v21  ;;  %v7569_v40 = vmul.f32 %v7553_v55, %v15176_v42  ;;  %v7554_v12 = vmul.f32 %v15189_v16, %v15189_v16 }
0x1e75   :  { %11100 = vtanh.f32 %v7616_v46  ;;  %v7587_v36 = vmul.f32 0.044715, %v7571_v3  ;;  %v7572_v34 = vmul.f32 %v7556_v57, %v15183_v18  ;;  %v7674_v2 = vmul.f32 %v7658_v0, %v15127_v38 }
0x1e76   :  { %11102 = vtanh.f32 %v7614_v8  ;;  %v7585_v33 = vmul.f32 0.044715, %v7569_v40  ;;  %v7570_v63 = vmul.f32 %v7554_v12, %v15189_v16  ;;  %v7676_v11 = vmul.f32 %v7660_v20, %v15121_v5 }
0x1e77   :  { %v7603_v62 = vadd.f32 %v7587_v36, %v15172_v15  ;;  %v7588_v22 = vmul.f32 0.044715, %v7572_v34  ;;  %v7687_v44 = vpack.c.bf16 %v7674_v2, %v7673_v23 }
0x1e78   :  { %v7601_v13 = vadd.f32 %v7585_v33, %v15176_v42  ;;  %v7586_v47 = vmul.f32 0.044715, %v7570_v63  ;;  %v7688_v14 = vpack.c.bf16 %v7676_v11, %v7675_v41 }
0x1e79   :  { %v7619_v43 = vmul.f32 0.7978846, %v7603_v62  ;;  %v7604_v25 = vadd.f32 %v7588_v22, %v15183_v18  ;;  %10052 = vmatprep.mubr.bf16.mxu1 %v7687_v44 }
0x1e7a   :  { %v7617_v52 = vmul.f32 0.7978846, %v7601_v13  ;;  %v7602_v38 = vadd.f32 %v7586_v47, %v15189_v16  ;;  %10053 = vmatmul.mubr.bf16.gmra.mrb[228].mxu1 %v7688_v14 }
0x1e7b   :  { %11104 = vtanh.f32 %v7619_v43  ;;  %v7620_v0 = vmul.f32 0.7978846, %v7604_v25  ;;  %v15216_v25 = vld [vmem:[%s15543_s4 + $0x18] sm:$0xff] }
0x1e7c   :  { %11106 = vtanh.f32 %v7617_v52  ;;  %v7618_v5 = vmul.f32 0.7978846, %v7602_v38  ;;  %v15757_v52 = vld [vmem:[#allocation3_spill] sm:$0xff] }
0x1e7d   :  { %v11097_v20 = vpop.eup %11096  ;;  %11108 = vtanh.f32 %v7620_v0  ;;  %v7696_v38 = vrot.slane %v15216_v25, %v15757_v52 }
0x1e7e   :  { %v11099_v9 = vpop.eup %11098  ;;  %11110 = vtanh.f32 %v7618_v5  ;;  %v7647_v28 = vadd.f32 1.0, %v11097_v20 }
0x1e7f   :  { %v11101_v50 = vpop.eup %11100  ;;  %v7645_v23 = vadd.f32 1.0, %v11099_v9 }
0x1e80   :  { %v11103_v41 = vpop.eup %11102  ;;  %v7648_v31 = vadd.f32 1.0, %v11101_v50  ;;  %v7663_v53 = vmul.f32 0.5, %v7647_v28 }
0x1e81   :  { %v7646_v29 = vadd.f32 1.0, %v11103_v41  ;;  %v7661_v17 = vmul.f32 0.5, %v7645_v23 }
0x1e82   :  { %v7664_v60 = vmul.f32 0.5, %v7648_v31  ;;  %v7679_v55 = vmul.f32 %v7663_v53, %v15142_v24 }
0x1e83   :  { %v7662_v21 = vmul.f32 0.5, %v7646_v29  ;;  %v7677_v57 = vmul.f32 %v7661_v17, %v15147_v19 }
0x1e84   :  { %v7680_v46 = vmul.f32 %v7664_v60, %v15152_v35 }
0x1e85   :  { %v11105_v3 = vpop.eup %11104  ;;  %v7678_v8 = vmul.f32 %v7662_v21, %v15159_v58 }
0x1e86   :  { %v11107_v40 = vpop.eup %11106  ;;  %v7690_v12 = vpack.c.bf16 %v7680_v46, %v7679_v55  ;;  %v7651_v36 = vadd.f32 1.0, %v11105_v3 }
0x1e87   :  { %v11109_v34 = vpop.eup %11108  ;;  %v7689_v2 = vpack.c.bf16 %v7678_v8, %v7677_v57  ;;  %v7649_v33 = vadd.f32 1.0, %v11107_v40 }
0x1e88   :  { %v11111_v63 = vpop.eup %11110  ;;  %v7652_v11 = vadd.f32 1.0, %v11109_v34  ;;  %v7667_v62 = vmul.f32 0.5, %v7651_v36 }
0x1e89   :  { %10056 = vmatprep.mubr.bf16.mxu1 %v7689_v2  ;;  %v7650_v22 = vadd.f32 1.0, %v11111_v63  ;;  %v7665_v44 = vmul.f32 0.5, %v7649_v33 }
0x1e8a   :  { %10057 = vmatmul.mubr.bf16.gmra.mrb[232].mxu1 %v7690_v12  ;;  %v7668_v24 = vmul.f32 0.5, %v7652_v11  ;;  %v7683_v13 = vmul.f32 %v7667_v62, %v15172_v15 }
0x1e8b   :  { %v7666_v35 = vmul.f32 0.5, %v7650_v22  ;;  %v7681_v58 = vmul.f32 %v7665_v44, %v15176_v42 }
0x1e8c   :  { %v7684_v19 = vmul.f32 %v7668_v24, %v15183_v18 }
0x1e8d   :  { %v7682_v47 = vmul.f32 %v7666_v35, %v15189_v16 }
0x1e8e   :  { %v7692_v14 = vpack.c.bf16 %v7684_v19, %v7683_v13 }
0x1e8f   :  { %v7691_v43 = vpack.c.bf16 %v7682_v47, %v7681_v58 }
0x1e91   :  { %10060 = vmatprep.mubr.bf16.mxu1 %v7691_v43 }
0x1e92   :  { %10061 = vmatmul.mubr.bf16.gmra.mrb[236].mxu1 %v7692_v14 }
0x1f41   :  { %v10050_v0 = vpop.f32.mrb[224].mxu1 }
0x1f42   :  { %v7779_v15 = vpop.f32.mrb[225].mxu1  ;;  %v7788_v42 = vadd.f32 %v10050_v0, %v7696_v38 }
0x1f43   :  { %v7780_v5 = vadd.f32 %v7779_v15, %v7696_v38  ;;  %v10051_v18 = vpop.f32.mrb[226].mxu1 }
0x1f44   :  { %v7782_v20 = vpop.f32.mrb[227].mxu1  ;;  %v7791_v28 = vadd.f32 %v10051_v18, %v7696_v38  ;;  %v15228_v23 = vadd.f32 %v7788_v42, %v14979_v27 }
0x1f45   :  { %v15221_v16 = vadd.f32 %v7780_v5, %v14968_v10  ;;  %v7783_v9 = vadd.f32 %v7782_v20, %v7696_v38 }
0x1f46   :  { %v15232_v41 = vadd.f32 %v7791_v28, %v14983_v61 }
0x1f47   :  { %v15224_v50 = vadd.f32 %v7783_v9, %v14971_v51  ;;  %7858 = vadd.xlane.f32.xlu0 %v15221_v16 }
0x1f49   :  { %7860 = vadd.xlane.f32.xlu1 %v15224_v50 }
0x1f4b   :  { %7862 = vadd.xlane.f32.xlu0 %v15228_v23 }
0x1f4d   :  { %v10054_v31 = vpop.f32.mrb[228].mxu1  ;;  %7864 = vadd.xlane.f32.xlu1 %v15232_v41 }
0x1f4e   :  { %v7795_v10 = vpop.f32.mrb[229].mxu1  ;;  %v7804_v17 = vadd.f32 %v10054_v31, %v7696_v38 }
0x1f4f   :  { %v7796_v53 = vadd.f32 %v7795_v10, %v7696_v38  ;;  %v10055_v29 = vpop.f32.mrb[230].mxu1 }
0x1f50   :  { %v7798_v51 = vpop.f32.mrb[231].mxu1  ;;  %v7807_v21 = vadd.f32 %v10055_v29, %v7696_v38  ;;  %v15244_v61 = vadd.f32 %v7804_v17, %v15002_v7 }
0x1f51   :  { %v15237_v60 = vadd.f32 %v7796_v53, %v14993_v49  ;;  %v7799_v27 = vadd.f32 %v7798_v51, %v7696_v38 }
0x1f52   :  { %v15248_v46 = vadd.f32 %v7807_v21, %v15005_v1 }
0x1f53   :  { %v15240_v55 = vadd.f32 %v7799_v27, %v14996_v45  ;;  %7866 = vadd.xlane.f32.xlu0 %v15237_v60 }
0x1f55   :  { %7868 = vadd.xlane.f32.xlu1 %v15240_v55 }
0x1f57   :  { %7870 = vadd.xlane.f32.xlu0 %v15244_v61 }
0x1f59   :  { %7872 = vadd.xlane.f32.xlu1 %v15248_v46 }
0x1f5d   :  { %v10058_v49 = vpop.f32.mrb[232].mxu1 }
0x1f5e   :  { %v7811_v3 = vpop.f32.mrb[233].mxu1  ;;  %v7820_v40 = vadd.f32 %v10058_v49, %v7696_v38 }
0x1f5f   :  { %v7812_v57 = vadd.f32 %v7811_v3, %v7696_v38  ;;  %v10059_v8 = vpop.f32.mrb[234].mxu1 }
0x1f60   :  { %v7814_v45 = vpop.f32.mrb[235].mxu1  ;;  %v7823_v36 = vadd.f32 %v10059_v8, %v7696_v38  ;;  %v15260_v1 = vadd.f32 %v7820_v40, %v15028_v37 }
0x1f61   :  { %v15253_v12 = vadd.f32 %v7812_v57, %v15015_v39  ;;  %v7815_v7 = vadd.f32 %v7814_v45, %v7696_v38 }
0x1f62   :  { %v15264_v63 = vadd.f32 %v7823_v36, %v15031_v4 }
0x1f63   :  { %v15256_v34 = vadd.f32 %v7815_v7, %v15018_v48  ;;  %7874 = vadd.xlane.f32.xlu0 %v15253_v12 }
0x1f65   :  { %7876 = vadd.xlane.f32.xlu1 %v15256_v34  ;;  %v10062_v2 = vpop.f32.mrb[236].mxu1 }
0x1f66   :  { %v7827_v33 = vpop.f32.mrb[237].mxu1  ;;  %v7836_v22 = vadd.f32 %v10062_v2, %v7696_v38 }
0x1f67   :  { %v7828_v11 = vadd.f32 %v7827_v33, %v7696_v38  ;;  %7878 = vadd.xlane.f32.xlu0 %v15260_v1  ;;  %v10063_v39 = vpop.f32.mrb[238].mxu1 }
0x1f68   :  { %v7830_v62 = vpop.f32.mrb[239].mxu1  ;;  %v7839_v37 = vadd.f32 %v10063_v39, %v7696_v38  ;;  %v15276_v4 = vadd.f32 %v7836_v22, %v15050_v6 }
0x1f69   :  { %v15268_v48 = vadd.f32 %v7828_v11, %v15041_v30  ;;  %v7831_v44 = vadd.f32 %v7830_v62, %v7696_v38  ;;  %7880 = vadd.xlane.f32.xlu1 %v15264_v63  ;;  %v10360_v30 = vld [vmem:[%s15541_s3 + $0x80] sm:$0xff]   ;;  %v10362_v62 = vld [vmem:[%s15541_s3 + $0x90] sm:$0xff]  }
0x1f6a   :  { %v15280_v35 = vadd.f32 %v7839_v37, %v15053_v56  ;;  %10064 = vmatprep.subr.bf16.mxu0 %v10360_v30 }
0x1f6b   :  { %v15272_v24 = vadd.f32 %v7831_v44, %v15044_v54  ;;  %7882 = vadd.xlane.f32.xlu0 %v15268_v48  ;;  %10065 = vmatpush3.bf16.msra.mxu0 %v10360_v30 }
0x1f6d   :  { %7884 = vadd.xlane.f32.xlu1 %v15272_v24 }
0x1f6f   :  { %7886 = vadd.xlane.f32.xlu0 %v15276_v4 }
0x1f71   :  { %7888 = vadd.xlane.f32.xlu1 %v15280_v35 }
0x1fd4   :  { %v7859_v54 = vpop.xlane.xlu0 %7858 }
0x1fd5   :  { %v7890_v13 = vmul.f32 0.03125, %v7859_v54 }
0x1fd6   :  { %v7861_v19 = vpop.xlane.xlu1 %7860 }
0x1fd7   :  { %v7906_v6 = vsub.f32 %v15221_v16, %v7890_v13  ;;  %v7891_v58 = vmul.f32 0.03125, %v7861_v19 }
0x1fd8   :  { %v7863_v47 = vpop.xlane.xlu0 %7862 }
0x1fd9   :  { %v15289_v56 = vmul.f32 %v7906_v6, %v15753_v59  ;;  %v7907_v14 = vsub.f32 %v15224_v50, %v7891_v58  ;;  %v7892_v43 = vmul.f32 0.03125, %v7863_v47  ;;  %v10363_v58 = vld [vmem:[%s15541_s3 + $0x98] sm:$0xff]  }
0x1fda   :  { %v7865_v52 = vpop.xlane.xlu1 %7864 }
0x1fdb   :  { %v15293_v38 = vmul.f32 %v7907_v14, %v15753_v59  ;;  %v7908_v0 = vsub.f32 %v15228_v23, %v7892_v43  ;;  %v7893_v15 = vmul.f32 0.03125, %v7865_v52  ;;  %v7938_v5 = vmul.f32 %v15289_v56, %v15289_v56 }
0x1fdd   :  { %v15299_v18 = vmul.f32 %v7908_v0, %v15753_v59  ;;  %v7909_v20 = vsub.f32 %v15232_v41, %v7893_v15  ;;  %7954 = vadd.xlane.f32.xlu0 %v7938_v5  ;;  %v7939_v42 = vmul.f32 %v15293_v38, %v15293_v38 }
0x1fdf   :  { %v15305_v16 = vmul.f32 %v7909_v20, %v15753_v59  ;;  %7956 = vadd.xlane.f32.xlu1 %v7939_v42  ;;  %v7940_v9 = vmul.f32 %v15299_v18, %v15299_v18 }
0x1fe0   :  { %v7867_v28 = vpop.xlane.xlu0 %7866 }
0x1fe1   :  { %v7894_v50 = vmul.f32 0.03125, %v7867_v28  ;;  %7958 = vadd.xlane.f32.xlu0 %v7940_v9  ;;  %v7941_v23 = vmul.f32 %v15305_v16, %v15305_v16 }
0x1fe2   :  { %v7869_v31 = vpop.xlane.xlu1 %7868 }
0x1fe3   :  { %v7910_v41 = vsub.f32 %v15237_v60, %v7894_v50  ;;  %v7895_v10 = vmul.f32 0.03125, %v7869_v31  ;;  %7960 = vadd.xlane.f32.xlu1 %v7941_v23 }
0x1fe4   :  { %v7871_v53 = vpop.xlane.xlu0 %7870 }
0x1fe5   :  { %v15313_v29 = vmul.f32 %v7910_v41, %v15753_v59  ;;  %v7911_v51 = vsub.f32 %v15240_v55, %v7895_v10  ;;  %v7896_v17 = vmul.f32 0.03125, %v7871_v53 }
0x1fe6   :  { %v7873_v27 = vpop.xlane.xlu1 %7872 }
0x1fe7   :  { %v15317_v21 = vmul.f32 %v7911_v51, %v15753_v59  ;;  %v7912_v49 = vsub.f32 %v15244_v61, %v7896_v17  ;;  %v7897_v3 = vmul.f32 0.03125, %v7873_v27  ;;  %v7942_v57 = vmul.f32 %v15313_v29, %v15313_v29 }
0x1fe9   :  { %v15323_v60 = vmul.f32 %v7912_v49, %v15753_v59  ;;  %v7913_v8 = vsub.f32 %v15248_v46, %v7897_v3  ;;  %7962 = vadd.xlane.f32.xlu0 %v7942_v57  ;;  %v7943_v55 = vmul.f32 %v15317_v21, %v15317_v21  ;;  %v10361_v46 = vld [vmem:[%s15541_s3 + $0x88] sm:$0xff]  }
0x1fea   :  { %10066 = vmatprep.subr.bf16.mxu0 %v10361_v46  ;;  %v10369_v57 = vld [vmem:[%s15541_s3 + $0xc8] sm:$0xff]  }
0x1feb   :  { %v15329_v45 = vmul.f32 %v7913_v8, %v15753_v59  ;;  %7964 = vadd.xlane.f32.xlu1 %v7943_v55  ;;  %v7944_v61 = vmul.f32 %v15323_v60, %v15323_v60  ;;  %10067 = vmatpush3.bf16.msra.mxu0 %v10361_v46  ;;  %v10370_v8 = vld [vmem:[%s15541_s3 + $0xd0] sm:$0xff]  }
0x1fec   :  { %10068 = vmatprep.subr.bf16.mxu0 %v10362_v62 }
0x1fed   :  { %7966 = vadd.xlane.f32.xlu0 %v7944_v61  ;;  %v7945_v40 = vmul.f32 %v15329_v45, %v15329_v45 }
0x1fef   :  { %7968 = vadd.xlane.f32.xlu1 %v7945_v40  ;;  %10069 = vmatpush3.bf16.msra.mxu0 %v10362_v62 }
0x1ff0   :  { %v7875_v7 = vpop.xlane.xlu0 %7874  ;;  %10070 = vmatprep.subr.bf16.mxu0 %v10363_v58 }
0x1ff1   :  { %v7898_v36 = vmul.f32 0.03125, %v7875_v7 }
0x1ff2   :  { %v7877_v2 = vpop.xlane.xlu1 %7876 }
0x1ff3   :  { %v7914_v33 = vsub.f32 %v15253_v12, %v7898_v36  ;;  %v7899_v11 = vmul.f32 0.03125, %v7877_v2  ;;  %10071 = vmatpush3.bf16.msra.mxu0 %v10363_v58 }
0x1ff4   :  { %v7879_v39 = vpop.xlane.xlu0 %7878 }
0x1ff5   :  { %v15343_v22 = vmul.f32 %v7914_v33, %v15753_v59  ;;  %v7915_v44 = vsub.f32 %v15256_v34, %v7899_v11  ;;  %v7900_v37 = vmul.f32 0.03125, %v7879_v39 }
0x1ff6   :  { %v7881_v30 = vpop.xlane.xlu1 %7880 }
0x1ff7   :  { %v15347_v54 = vmul.f32 %v7915_v44, %v15753_v59  ;;  %v7916_v13 = vsub.f32 %v15260_v1, %v7900_v37  ;;  %v7901_v12 = vmul.f32 0.03125, %v7881_v30  ;;  %v7946_v19 = vmul.f32 %v15343_v22, %v15343_v22 }
0x1ff8   :  { %v7883_v6 = vpop.xlane.xlu0 %7882 }
0x1ff9   :  { %v15356_v34 = vmul.f32 %v7916_v13, %v15753_v59  ;;  %v7917_v47 = vsub.f32 %v15264_v63, %v7901_v12  ;;  %v7902_v14 = vmul.f32 0.03125, %v7883_v6  ;;  %7970 = vadd.xlane.f32.xlu0 %v7946_v19  ;;  %v7947_v1 = vmul.f32 %v15347_v54, %v15347_v54  ;;  %v10364_v63 = vld [vmem:[%s15541_s3 + $0xa0] sm:$0xff]   ;;  %v15758_v13 = vld [vmem:[#allocation4_spill] sm:$0xff] }
0x1ffa   :  { %v7885_v43 = vpop.xlane.xlu1 %7884  ;;  %10072 = vmatprep.subr.bf16.mxu0 %v10364_v63  ;;  %v15415_v12 = vrot.slane %v15216_v25, %v15758_v13 }
0x1ffb   :  { %v15362_v52 = vmul.f32 %v7917_v47, %v15753_v59  ;;  %v7918_v0 = vsub.f32 %v15268_v48, %v7902_v14  ;;  %v7903_v15 = vmul.f32 0.03125, %v7885_v43  ;;  %7972 = vadd.xlane.f32.xlu1 %v7947_v1  ;;  %v7948_v5 = vmul.f32 %v15356_v34, %v15356_v34  ;;  %10073 = vmatpush3.bf16.msra.mxu0 %v10364_v63 }
0x1ffc   :  { %v7887_v20 = vpop.xlane.xlu0 %7886 }
0x1ffd   :  { %v15371_v42 = vmul.f32 %v7918_v0, %v15753_v59  ;;  %v7919_v9 = vsub.f32 %v15272_v24, %v7903_v15  ;;  %v7904_v28 = vmul.f32 0.03125, %v7887_v20  ;;  %7974 = vadd.xlane.f32.xlu0 %v7948_v5  ;;  %v7949_v48 = vmul.f32 %v15362_v52, %v15362_v52  ;;  %v10365_v24 = vld [vmem:[%s15541_s3 + $0xa8] sm:$0xff]  }
0x1ffe   :  { %v7889_v50 = vpop.xlane.xlu1 %7888  ;;  %10074 = vmatprep.subr.bf16.mxu0 %v10365_v24  ;;  %v15759_v5 = vld [vmem:[#allocation7_spill] sm:$0xff] }
0x1fff   :  { %v15377_v23 = vmul.f32 %v7919_v9, %v15753_v59  ;;  %v7920_v31 = vsub.f32 %v15276_v4, %v7904_v28  ;;  %v7905_v41 = vmul.f32 0.03125, %v7889_v50  ;;  %7976 = vadd.xlane.f32.xlu1 %v7949_v48  ;;  %v7950_v10 = vmul.f32 %v15371_v42, %v15371_v42  ;;  %v10366_v4 = vld [vmem:[%s15541_s3 + $0xb0] sm:$0xff]   ;;  %10075 = vmatpush3.bf16.msra.mxu0 %v10365_v24 }
0x2000   :  { %10076 = vmatprep.subr.bf16.mxu0 %v10366_v4  ;;  %v15420_v20 = vrot.slane %v15216_v25, %v15759_v5 }
0x2001   :  { %v15386_v53 = vmul.f32 %v7920_v31, %v15753_v59  ;;  %v7921_v51 = vsub.f32 %v15280_v35, %v7905_v41  ;;  %7978 = vadd.xlane.f32.xlu0 %v7950_v10  ;;  %v7951_v17 = vmul.f32 %v15377_v23, %v15377_v23  ;;  %v10367_v35 = vld [vmem:[%s15541_s3 + $0xb8] sm:$0xff]  }
0x2003   :  { %v15395_v27 = vmul.f32 %v7921_v51, %v15753_v59  ;;  %7980 = vadd.xlane.f32.xlu1 %v7951_v17  ;;  %v7952_v49 = vmul.f32 %v15386_v53, %v15386_v53  ;;  %10077 = vmatpush3.bf16.msra.mxu0 %v10366_v4  ;;  %v10368_v59 = vld [vmem:[%s15541_s3 + $0xc0] sm:$0xff]  }
0x2004   :  { %10078 = vmatprep.subr.bf16.mxu0 %v10367_v35  ;;  %10096 = vmatprep.subr.bf16.mxu1 %v10368_v59 }
0x2005   :  { %7982 = vadd.xlane.f32.xlu0 %v7952_v49  ;;  %v7953_v3 = vmul.f32 %v15395_v27, %v15395_v27  ;;  %10097 = vmatpush3.bf16.msra.mxu1 %v10368_v59 }
0x2006   :  { %10098 = vmatprep.subr.bf16.mxu1 %v10369_v57 }
0x2007   :  { %7984 = vadd.xlane.f32.xlu1 %v7953_v3  ;;  %10079 = vmatpush3.bf16.msra.mxu0 %v10367_v35 }
0x2009   :  { %10099 = vmatpush3.bf16.msra.mxu1 %v10369_v57 }
0x200a   :  { %10100 = vmatprep.subr.bf16.mxu1 %v10370_v8 }
0x200d   :  { %10101 = vmatpush3.bf16.msra.mxu1 %v10370_v8 }
0x206a   :  { %v7955_v55 = vpop.xlane.xlu0 %7954 }
0x206b   :  { %v7986_v61 = vmul.f32 0.03125, %v7955_v55 }
0x206c   :  { %v7957_v40 = vpop.xlane.xlu1 %7956 }
0x206d   :  { %v8002_v46 = vadd.f32 1e-12, %v7986_v61  ;;  %v7987_v7 = vmul.f32 0.03125, %v7957_v40 }
0x206e   :  { %v7959_v36 = vpop.xlane.xlu0 %7958 }
0x206f   :  { %11112 = vrsqrt.f32 %v8002_v46  ;;  %v8003_v2 = vadd.f32 1e-12, %v7987_v7  ;;  %v7988_v33 = vmul.f32 0.03125, %v7959_v36 }
0x2070   :  { %v7961_v11 = vpop.xlane.xlu1 %7960 }
0x2071   :  { %11114 = vrsqrt.f32 %v8003_v2  ;;  %v8004_v39 = vadd.f32 1e-12, %v7988_v33  ;;  %v7989_v62 = vmul.f32 0.03125, %v7961_v11 }
0x2073   :  { %11116 = vrsqrt.f32 %v8004_v39  ;;  %v8005_v44 = vadd.f32 1e-12, %v7989_v62 }
0x2075   :  { %11118 = vrsqrt.f32 %v8005_v44 }
0x2076   :  { %v7963_v37 = vpop.xlane.xlu0 %7962 }
0x2077   :  { %v7990_v30 = vmul.f32 0.03125, %v7963_v37 }
0x2078   :  { %v7965_v19 = vpop.xlane.xlu1 %7964 }
0x2079   :  { %v11113_v6 = vpop.eup %11112  ;;  %v8006_v58 = vadd.f32 1e-12, %v7990_v30  ;;  %v7991_v47 = vmul.f32 0.03125, %v7965_v19 }
0x207a   :  { %v7967_v14 = vpop.xlane.xlu0 %7966  ;;  %v8034_v1 = vmul.f32 %v11113_v6, %v15289_v56 }
0x207b   :  { %v11115_v43 = vpop.eup %11114  ;;  %11120 = vrsqrt.f32 %v8006_v58  ;;  %v8007_v0 = vadd.f32 1e-12, %v7991_v47  ;;  %v7992_v15 = vmul.f32 0.03125, %v7967_v14 }
0x207c   :  { %v7969_v63 = vpop.xlane.xlu1 %7968  ;;  %v8035_v9 = vmul.f32 %v11115_v43, %v15293_v38  ;;  %v8054_v28 = vmul.f32 %v15415_v12, %v8034_v1 }
0x207d   :  { %v11117_v48 = vpop.eup %11116  ;;  %11122 = vrsqrt.f32 %v8007_v0  ;;  %v8008_v50 = vadd.f32 1e-12, %v7992_v15  ;;  %v7993_v31 = vmul.f32 0.03125, %v7969_v63 }
0x207e   :  { %v8036_v41 = vmul.f32 %v11117_v48, %v15299_v18  ;;  %v8055_v56 = vmul.f32 %v15415_v12, %v8035_v9  ;;  %v8074_v17 = vadd.f32 %v15420_v20, %v8054_v28 }
0x207f   :  { %v11119_v10 = vpop.eup %11118  ;;  %11124 = vrsqrt.f32 %v8008_v50  ;;  %v8009_v24 = vadd.f32 1e-12, %v7993_v31 }
0x2080   :  { %v8056_v51 = vmul.f32 %v15415_v12, %v8036_v41  ;;  %v8037_v25 = vmul.f32 %v11119_v10, %v15305_v16  ;;  %v8075_v38 = vadd.f32 %v15420_v20, %v8055_v56 }
0x2081   :  { %11126 = vrsqrt.f32 %v8009_v24 }
0x2082   :  { %v8057_v4 = vmul.f32 %v15415_v12, %v8037_v25  ;;  %v8107_v49 = vpack.c.bf16 %v8075_v38, %v8074_v17  ;;  %v8076_v18 = vadd.f32 %v15420_v20, %v8056_v51 }
0x2084   :  { %10080 = vmatprep.mubr.bf16.mxu0 %v8107_v49  ;;  %v8077_v35 = vadd.f32 %v15420_v20, %v8057_v4 }
0x2085   :  { %v11121_v3 = vpop.eup %11120 }
0x2086   :  { %v7971_v59 = vpop.xlane.xlu0 %7970  ;;  %v8108_v57 = vpack.c.bf16 %v8077_v35, %v8076_v18  ;;  %v8038_v8 = vmul.f32 %v11121_v3, %v15313_v29 }
0x2087   :  { %v11123_v55 = vpop.eup %11122  ;;  %v7994_v16 = vmul.f32 0.03125, %v7971_v59 }
0x2088   :  { %v7973_v61 = vpop.xlane.xlu1 %7972  ;;  %10081 = vmatmul.mubr.bf16.vlgmr.msra.gmra.mrb[240].mxu0 %v8108_v57  ;;  %v8039_v40 = vmul.f32 %v11123_v55, %v15317_v21  ;;  %v8058_v46 = vmul.f32 %v15415_v12, %v8038_v8 }
0x2089   :  { %v11125_v7 = vpop.eup %11124  ;;  %v8010_v36 = vadd.f32 1e-12, %v7994_v16  ;;  %v7995_v2 = vmul.f32 0.03125, %v7973_v61 }
0x208a   :  { %v7975_v33 = vpop.xlane.xlu0 %7974  ;;  %v8059_v11 = vmul.f32 %v15415_v12, %v8039_v40  ;;  %v8040_v39 = vmul.f32 %v11125_v7, %v15323_v60  ;;  %v8078_v30 = vadd.f32 %v15420_v20, %v8058_v46 }
0x208b   :  { %v11127_v62 = vpop.eup %11126  ;;  %11128 = vrsqrt.f32 %v8010_v36  ;;  %v8011_v44 = vadd.f32 1e-12, %v7995_v2  ;;  %v7996_v29 = vmul.f32 0.03125, %v7975_v33 }
0x208c   :  { %v7977_v37 = vpop.xlane.xlu1 %7976  ;;  %v8079_v13 = vadd.f32 %v15420_v20, %v8059_v11  ;;  %v8041_v21 = vmul.f32 %v11127_v62, %v15329_v45  ;;  %v8060_v19 = vmul.f32 %v15415_v12, %v8040_v39 }
0x208d   :  { %11130 = vrsqrt.f32 %v8011_v44  ;;  %v8012_v6 = vadd.f32 1e-12, %v7996_v29  ;;  %v7997_v58 = vmul.f32 0.03125, %v7977_v37 }
0x208e   :  { %v8109_v47 = vpack.c.bf16 %v8079_v13, %v8078_v30  ;;  %v7979_v14 = vpop.xlane.xlu0 %7978  ;;  %v8061_v60 = vmul.f32 %v15415_v12, %v8041_v21  ;;  %v8080_v15 = vadd.f32 %v15420_v20, %v8060_v19  ;;  %v10375_v21 = vld [vmem:[%s15541_s3 + $0xf8] sm:$0xff]   ;;  %v15487_v19 = vld [vmem:[%s15543_s4] sm:$0xff] }
0x208f   :  { %11132 = vrsqrt.f32 %v8012_v6  ;;  %v8013_v1 = vadd.f32 1e-12, %v7997_v58  ;;  %v7998_v43 = vmul.f32 0.03125, %v7979_v14  ;;  %v8118_v6 = vrot.slane %v15487_v19, %v15736_v26 }
0x2090   :  { %10084 = vmatprep.mubr.bf16.mxu0 %v8109_v47  ;;  %v7981_v0 = vpop.xlane.xlu1 %7980  ;;  %v8081_v5 = vadd.f32 %v15420_v20, %v8061_v60 }
0x2091   :  { %11134 = vrsqrt.f32 %v8013_v1  ;;  %v8014_v45 = vadd.f32 1e-12, %v7998_v43  ;;  %v7999_v63 = vmul.f32 0.03125, %v7981_v0 }
0x2092   :  { %v8110_v9 = vpack.c.bf16 %v8081_v5, %v8080_v15  ;;  %v7983_v28 = vpop.xlane.xlu0 %7982 }
0x2093   :  { %11136 = vrsqrt.f32 %v8014_v45  ;;  %v8015_v48 = vadd.f32 1e-12, %v7999_v63  ;;  %v8000_v50 = vmul.f32 0.03125, %v7983_v28 }
0x2094   :  { %10085 = vmatmul.mubr.bf16.gmra.mrb[244].mxu0 %v8110_v9  ;;  %v7985_v31 = vpop.xlane.xlu1 %7984 }
0x2095   :  { %v11129_v41 = vpop.eup %11128  ;;  %11138 = vrsqrt.f32 %v8015_v48  ;;  %v8016_v56 = vadd.f32 1e-12, %v8000_v50  ;;  %v8001_v10 = vmul.f32 0.03125, %v7985_v31 }
0x2096   :  { %v8042_v24 = vmul.f32 %v11129_v41, %v15343_v22 }
0x2097   :  { %v11131_v51 = vpop.eup %11130  ;;  %11140 = vrsqrt.f32 %v8016_v56  ;;  %v8017_v25 = vadd.f32 1e-12, %v8001_v10 }
0x2098   :  { %v8043_v17 = vmul.f32 %v11131_v51, %v15347_v54  ;;  %v8062_v38 = vmul.f32 %v15415_v12, %v8042_v24 }
0x2099   :  { %v11133_v4 = vpop.eup %11132  ;;  %11142 = vrsqrt.f32 %v8017_v25 }
0x209a   :  { %v8063_v49 = vmul.f32 %v15415_v12, %v8043_v17  ;;  %v8044_v18 = vmul.f32 %v11133_v4, %v15356_v34  ;;  %v8082_v3 = vadd.f32 %v15420_v20, %v8062_v38 }
0x209b   :  { %v11135_v35 = vpop.eup %11134 }
0x209c   :  { %v8083_v59 = vadd.f32 %v15420_v20, %v8063_v49  ;;  %v8045_v22 = vmul.f32 %v11135_v35, %v15362_v52  ;;  %v8064_v57 = vmul.f32 %v15415_v12, %v8044_v18 }
0x209d   :  { %v11137_v8 = vpop.eup %11136 }
0x209e   :  { %v8111_v55 = vpack.c.bf16 %v8083_v59, %v8082_v3  ;;  %v8065_v54 = vmul.f32 %v15415_v12, %v8045_v22  ;;  %v8046_v16 = vmul.f32 %v11137_v8, %v15371_v42  ;;  %v8084_v40 = vadd.f32 %v15420_v20, %v8064_v57 }
0x209f   :  { %v11139_v61 = vpop.eup %11138 }
0x20a0   :  { %10088 = vmatprep.mubr.bf16.mxu0 %v8111_v55  ;;  %v8085_v34 = vadd.f32 %v15420_v20, %v8065_v54  ;;  %v8047_v46 = vmul.f32 %v11139_v61, %v15377_v23  ;;  %v8066_v7 = vmul.f32 %v15415_v12, %v8046_v16 }
0x20a1   :  { %v11141_v36 = vpop.eup %11140 }
0x20a2   :  { %v8112_v52 = vpack.c.bf16 %v8085_v34, %v8084_v40  ;;  %v8067_v2 = vmul.f32 %v15415_v12, %v8047_v46  ;;  %v8048_v33 = vmul.f32 %v11141_v36, %v15386_v53  ;;  %v8086_v42 = vadd.f32 %v15420_v20, %v8066_v7  ;;  %v10371_v53 = vld [vmem:[%s15541_s3 + $0xd8] sm:$0xff]  }
0x20a3   :  { %v11143_v11 = vpop.eup %11142  ;;  %10102 = vmatprep.subr.bf16.mxu1 %v10371_v53 }
0x20a4   :  { %10089 = vmatmul.mubr.bf16.gmra.mrb[248].mxu0 %v8112_v52  ;;  %v8087_v39 = vadd.f32 %v15420_v20, %v8067_v2  ;;  %v8049_v62 = vmul.f32 %v11143_v11, %v15395_v27  ;;  %v8068_v44 = vmul.f32 %v15415_v12, %v8048_v33  ;;  %10103 = vmatpush3.bf16.msra.mxu1 %v10371_v53  ;;  %v10372_v27 = vld [vmem:[%s15541_s3 + $0xe0] sm:$0xff]  }
0x20a5   :  { %10104 = vmatprep.subr.bf16.mxu1 %v10372_v27  ;;  %v8308_v53 = vrot.slane %v15487_v19, %v15754_v32 }
0x20a6   :  { %v8113_v29 = vpack.c.bf16 %v8087_v39, %v8086_v42  ;;  %v8069_v23 = vmul.f32 %v15415_v12, %v8049_v62  ;;  %v8088_v37 = vadd.f32 %v15420_v20, %v8068_v44  ;;  %v10373_v12 = vld [vmem:[%s15541_s3 + $0xe8] sm:$0xff]  }
0x20a8   :  { %10092 = vmatprep.mubr.bf16.mxu0 %v8113_v29  ;;  %v8089_v30 = vadd.f32 %v15420_v20, %v8069_v23  ;;  %10105 = vmatpush3.bf16.msra.mxu1 %v10372_v27  ;;  %v10374_v20 = vld [vmem:[%s15541_s3 + $0xf0] sm:$0xff]  }
0x20a9   :  { %10106 = vmatprep.subr.bf16.mxu1 %v10373_v12 }
0x20aa   :  { %v8114_v13 = vpack.c.bf16 %v8089_v30, %v8088_v37 }
0x20ac   :  { %10093 = vmatmul.mubr.bf16.gmra.mrb[252].mxu0 %v8114_v13  ;;  %10107 = vmatpush3.bf16.msra.mxu1 %v10373_v12 }
0x20ad   :  { %10108 = vmatprep.subr.bf16.mxu1 %v10374_v20 }
0x20b0   :  { %10109 = vmatpush3.bf16.msra.mxu1 %v10374_v20 }
0x20b1   :  { %10110 = vmatprep.subr.bf16.mxu1 %v10375_v21 }
0x20b4   :  { %10111 = vmatpush3.bf16.msra.mxu1 %v10375_v21 }
0x215b   :  { %v10082_v58 = vpop.f32.mrb[240].mxu0 }
0x215c   :  { %v8210_v47 = vadd.f32 %v10082_v58, %v8118_v6  ;;  %v8201_v14 = vpop.f32.mrb[241].mxu0 }
0x215d   :  { %v8202_v60 = vadd.f32 %v8201_v14, %v8118_v6  ;;  %v10083_v1 = vpop.f32.mrb[242].mxu0 }
0x215e   :  { %11144 = vtanh.f32 %v8210_v47  ;;  %v8213_v43 = vadd.f32 %v10083_v1, %v8118_v6  ;;  %v8204_v0 = vpop.f32.mrb[243].mxu0 }
0x215f   :  { %11146 = vtanh.f32 %v8202_v60  ;;  %v8205_v15 = vadd.f32 %v8204_v0, %v8118_v6 }
0x2160   :  { %11148 = vtanh.f32 %v8213_v43 }
0x2161   :  { %11150 = vtanh.f32 %v8205_v15 }
0x2167   :  { %v10086_v5 = vpop.f32.mrb[244].mxu0 }
0x2168   :  { %v11145_v45 = vpop.eup %11144  ;;  %v8226_v63 = vadd.f32 %v10086_v5, %v8118_v6  ;;  %v8217_v9 = vpop.f32.mrb[245].mxu0 }
0x2169   :  { %v11147_v28 = vpop.eup %11146  ;;  %v8218_v48 = vadd.f32 %v8217_v9, %v8118_v6  ;;  %v10087_v50 = vpop.f32.mrb[246].mxu0 }
0x216a   :  { %v11149_v26 = vpop.eup %11148  ;;  %11152 = vtanh.f32 %v8226_v63  ;;  %v8229_v31 = vadd.f32 %v10087_v50, %v8118_v6  ;;  %v8220_v41 = vpop.f32.mrb[247].mxu0 }
0x216b   :  { %v11151_v56 = vpop.eup %11150  ;;  %11154 = vtanh.f32 %v8218_v48  ;;  %v8221_v10 = vadd.f32 %v8220_v41, %v8118_v6  ;;  %v8298_v24 = vpack.c.bf16 %v11149_v26, %v11145_v45 }
0x216c   :  { %11156 = vtanh.f32 %v8229_v31  ;;  %v8297_v51 = vpack.c.bf16 %v11151_v56, %v11147_v28 }
0x216d   :  { %11158 = vtanh.f32 %v8221_v10 }
0x216e   :  { %10112 = vmatprep.mubr.bf16.mxu1 %v8297_v51 }
0x216f   :  { %10113 = vmatmul.mubr.bf16.vlgmr.msra.gmra.mrb[240].mxu1 %v8298_v24 }
0x2174   :  { %v11153_v25 = vpop.eup %11152 }
0x2175   :  { %v11155_v17 = vpop.eup %11154 }
0x2176   :  { %v11157_v38 = vpop.eup %11156 }
0x2177   :  { %v11159_v4 = vpop.eup %11158  ;;  %v10090_v49 = vpop.f32.mrb[248].mxu0  ;;  %v8300_v18 = vpack.c.bf16 %v11157_v38, %v11153_v25 }
0x2178   :  { %v8299_v35 = vpack.c.bf16 %v11159_v4, %v11155_v17  ;;  %v8242_v3 = vadd.f32 %v10090_v49, %v8118_v6  ;;  %v8233_v59 = vpop.f32.mrb[249].mxu0 }
0x2179   :  { %v8234_v22 = vadd.f32 %v8233_v59, %v8118_v6  ;;  %v10091_v57 = vpop.f32.mrb[250].mxu0 }
0x217a   :  { %10116 = vmatprep.mubr.bf16.mxu1 %v8299_v35  ;;  %11160 = vtanh.f32 %v8242_v3  ;;  %v8245_v8 = vadd.f32 %v10091_v57, %v8118_v6  ;;  %v8236_v55 = vpop.f32.mrb[251].mxu0 }
0x217b   :  { %10117 = vmatmul.mubr.bf16.gmra.mrb[244].mxu1 %v8300_v18  ;;  %11162 = vtanh.f32 %v8234_v22  ;;  %v8237_v54 = vadd.f32 %v8236_v55, %v8118_v6 }
0x217c   :  { %11164 = vtanh.f32 %v8245_v8 }
0x217d   :  { %11166 = vtanh.f32 %v8237_v54 }
0x217f   :  { %v10094_v16 = vpop.f32.mrb[252].mxu0 }
0x2180   :  { %v8258_v61 = vadd.f32 %v10094_v16, %v8118_v6  ;;  %v8249_v40 = vpop.f32.mrb[253].mxu0 }
0x2181   :  { %v8250_v34 = vadd.f32 %v8249_v40, %v8118_v6  ;;  %v10095_v46 = vpop.f32.mrb[254].mxu0 }
0x2182   :  { %11168 = vtanh.f32 %v8258_v61  ;;  %v8261_v7 = vadd.f32 %v10095_v46, %v8118_v6  ;;  %v8252_v36 = vpop.f32.mrb[255].mxu0 }
0x2183   :  { %11170 = vtanh.f32 %v8250_v34  ;;  %v8253_v52 = vadd.f32 %v8252_v36, %v8118_v6 }
0x2184   :  { %v11161_v2 = vpop.eup %11160  ;;  %11172 = vtanh.f32 %v8261_v7 }
0x2185   :  { %v11163_v33 = vpop.eup %11162  ;;  %11174 = vtanh.f32 %v8253_v52 }
0x2186   :  { %v11165_v11 = vpop.eup %11164 }
0x2187   :  { %v11167_v42 = vpop.eup %11166  ;;  %v8302_v39 = vpack.c.bf16 %v11165_v11, %v11161_v2 }
0x2188   :  { %v8301_v62 = vpack.c.bf16 %v11167_v42, %v11163_v33 }
0x218a   :  { %10120 = vmatprep.mubr.bf16.mxu1 %v8301_v62 }
0x218b   :  { %10121 = vmatmul.mubr.bf16.gmra.mrb[248].mxu1 %v8302_v39 }
0x218c   :  { %v11169_v44 = vpop.eup %11168 }
0x218d   :  { %v11171_v29 = vpop.eup %11170 }
0x218e   :  { %v11173_v23 = vpop.eup %11172 }
0x218f   :  { %v11175_v37 = vpop.eup %11174  ;;  %v8304_v30 = vpack.c.bf16 %v11173_v23, %v11169_v44 }
0x2190   :  { %v8303_v13 = vpack.c.bf16 %v11175_v37, %v11171_v29 }
0x2192   :  { %10124 = vmatprep.mubr.bf16.mxu1 %v8303_v13 }
0x2193   :  { %10125 = vmatmul.mubr.bf16.gmra.mrb[252].mxu1 %v8304_v30 }
0x2242   :  { %v10114_v27 = vpop.f32.mrb[240].mxu1 }
0x2243   :  { %v8400_v12 = vadd.f32 %v10114_v27, %v8308_v53  ;;  %v8391_v20 = vpop.f32.mrb[241].mxu1 }
0x2244   :  { %v8392_v21 = vadd.f32 %v8391_v20, %v8308_v53  ;;  %v10115_v6 = vpop.f32.mrb[242].mxu1 }
0x2245   :  { %8456 = vst [vmem:[%s15550_s9 + $0x10] sm:$0xff] %v8400_v12  ;;  %v8403_v58 = vadd.f32 %v10115_v6, %v8308_v53  ;;  %v8394_v47 = vpop.f32.mrb[243].mxu1 }
0x2246   :  { %8454 = vst [vmem:[%s15550_s9] sm:$0xff] %v8392_v21  ;;  %v8395_v14 = vadd.f32 %v8394_v47, %v8308_v53 }
0x2247   :  { %8457 = vst [vmem:[%s15550_s9 + $0x18] sm:$0xff] %v8403_v58 }
0x2248   :  { %8455 = vst [vmem:[%s15550_s9 + $0x8] sm:$0xff] %v8395_v14 }
0x224e   :  { %v10118_v32 = vpop.f32.mrb[244].mxu1 }
0x224f   :  { %v8416_v19 = vadd.f32 %v10118_v32, %v8308_v53  ;;  %v8407_v60 = vpop.f32.mrb[245].mxu1 }
0x2250   :  { %v8408_v1 = vadd.f32 %v8407_v60, %v8308_v53  ;;  %v10119_v43 = vpop.f32.mrb[246].mxu1 }
0x2251   :  { %8460 = vst [vmem:[%s15550_s9 + $0x30] sm:$0xff] %v8416_v19  ;;  %v8419_v0 = vadd.f32 %v10119_v43, %v8308_v53  ;;  %v8410_v15 = vpop.f32.mrb[247].mxu1 }
0x2252   :  { %8458 = vst [vmem:[%s15550_s9 + $0x20] sm:$0xff] %v8408_v1  ;;  %v8411_v5 = vadd.f32 %v8410_v15, %v8308_v53 }
0x2253   :  { %8461 = vst [vmem:[%s15550_s9 + $0x38] sm:$0xff] %v8419_v0 }
0x2254   :  { %8459 = vst [vmem:[%s15550_s9 + $0x28] sm:$0xff] %v8411_v5 }
0x225e   :  { %v10122_v45 = vpop.f32.mrb[248].mxu1 }
0x225f   :  { %v8432_v63 = vadd.f32 %v10122_v45, %v8308_v53  ;;  %v8423_v9 = vpop.f32.mrb[249].mxu1 }
0x2260   :  { %v8424_v28 = vadd.f32 %v8423_v9, %v8308_v53  ;;  %v10123_v48 = vpop.f32.mrb[250].mxu1 }
0x2261   :  { %8464 = vst [vmem:[%s15550_s9 + $0x50] sm:$0xff] %v8432_v63  ;;  %v8435_v50 = vadd.f32 %v10123_v48, %v8308_v53  ;;  %v8426_v26 = vpop.f32.mrb[251].mxu1 }
0x2262   :  { %8462 = vst [vmem:[%s15550_s9 + $0x40] sm:$0xff] %v8424_v28  ;;  %v8427_v31 = vadd.f32 %v8426_v26, %v8308_v53 }
0x2263   :  { %8465 = vst [vmem:[%s15550_s9 + $0x58] sm:$0xff] %v8435_v50 }
0x2264   :  { %8463 = vst [vmem:[%s15550_s9 + $0x48] sm:$0xff] %v8427_v31 }
0x2266   :  { %v10126_v41 = vpop.f32.mrb[252].mxu1 }
0x2267   :  { %v8448_v56 = vadd.f32 %v10126_v41, %v8308_v53  ;;  %v8439_v10 = vpop.f32.mrb[253].mxu1 }
0x2268   :  { %v8440_v24 = vadd.f32 %v8439_v10, %v8308_v53  ;;  %v10127_v51 = vpop.f32.mrb[254].mxu1 }
0x2269   :  { %8468 = vst [vmem:[%s15550_s9 + $0x70] sm:$0xff] %v8448_v56  ;;  %v8451_v25 = vadd.f32 %v10127_v51, %v8308_v53  ;;  %v8442_v17 = vpop.f32.mrb[255].mxu1 }
0x226a   :  { %8466 = vst [vmem:[%s15550_s9 + $0x60] sm:$0xff] %v8440_v24  ;;  %v8443_v38 = vadd.f32 %v8442_v17, %v8308_v53 }
0x226b   :  { %8469 = vst [vmem:[%s15550_s9 + $0x78] sm:$0xff] %v8451_v25 }
0x226c   :  { %8467 = vst [vmem:[%s15550_s9 + $0x68] sm:$0xff] %v8443_v38 }

</bundles_post_ra>
